<compile_context>
chip_gen: v7x
topology: tpu7x:2x2x1
jax: 0.10.0
libtpu: 0.0.40
codegen_flags: <defaults>
</compile_context>

<pallas_src>
import jax
import jax.numpy as jnp
from jax.experimental import pallas as pl
from jax.experimental.pallas import tpu as pltpu


def _round_up(n, m):
    return ((n + m - 1) // m) * m


def _choose_k_tiling(kp, max_tk, can_pad, align):
    """Return (tk, nk, kp_padded) with nk * tk == kp_padded >= kp."""
    if kp <= max_tk:
        return kp, 1, kp
    if can_pad:  # layer 0: free to zero-pad K (we also pad the flattened input)
        tk = max_tk
        nk = -(-kp // tk)
        return tk, nk, nk * tk
    # hidden layers: K is the previous layer's padded output -> pick a divisor
    tk = max(max_tk - (max_tk % align), align)
    while kp % tk != 0:
        tk -= align
        assert tk > 0
    return tk, kp // tk, kp


def init_linear_params(key, in_features, out_features):
    """nn.Linear-style init; weight stored pre-transposed (in, out) in bf16; bias f32."""
    kw, kb = jax.random.split(key)
    bound = 1.0 / jnp.sqrt(jnp.asarray(in_features, jnp.float32))
    w_t = jax.random.uniform(kw, (in_features, out_features), jnp.float32, -bound, bound)
    b = jax.random.uniform(kb, (out_features,), jnp.float32, -bound, bound)
    return w_t.astype(jnp.bfloat16), b


def _pack_params(params, layer_geom, tn):
    """Zero-pad each layer to (Kp, Np) and pre-tile weights into contiguous (tk, tn) tiles.

    Weight layout per layer: (ns*nk, tk, tn) bf16, tile index = j*nk + kk -> each tile is
    one contiguous HBM DMA.  Bias layout per layer: (1, Np) f32 (zero-padded).
    Zero padding is exact: padded output columns are bias-0 + zero weight columns -> 0,
    and zero-padded K rows multiply zero-valued padded activations -> contribute 0.
    """
    w_tiled, b_padded = [], []
    for (w_t, b), (kp, npad, tk, nk, ns) in zip(params, layer_geom):
        k, n = w_t.shape
        w_p = jnp.zeros((kp, npad), jnp.bfloat16).at[:k, :n].set(w_t.astype(jnp.bfloat16))
        w_p = w_p.reshape(nk, tk, ns, tn).transpose(2, 0, 1, 3)      # (ns, nk, tk, tn)
        w_tiled.append(w_p.reshape(ns * nk, tk, tn))
        b_p = jnp.zeros((1, npad), jnp.float32).at[0, :n].set(b)
        b_padded.append(b_p)
    return w_tiled, b_padded


def build_fused_mlp_forward(layer_geom, tn, batch):
    """Returns a pallas_call callable: (x_bf16, *w_tiled, *b_padded) -> padded f32 logits."""
    n_layers = len(layer_geom)
    kps = [g[0] for g in layer_geom]
    nps = [g[1] for g in layer_geom]
    tks = [g[2] for g in layer_geom]
    nks = [g[3] for g in layer_geom]
    nss = [g[4] for g in layer_geom]
    act_width = max(nps[:-1]) if n_layers > 1 else nps[-1]

    # Global (layer, out-stripe, k-tile) schedule: the double-buffered prefetch runs across
    # layer boundaries as one continuous weight stream.
    schedule = [(l, j, kk)
                for l in range(n_layers)
                for j in range(nss[l])
                for kk in range(nks[l])]

    # One weight double-buffer per distinct k-tile height.
    tk_sizes = sorted(set(tks))
    tk_index = {t: i for i, t in enumerate(tk_sizes)}

    def kernel(*refs):
        x_ref = refs[0]                                   # VMEM, (B, Kp0) bf16
        w_refs = refs[1:1 + n_layers]                     # HBM (pl.ANY), (ns*nk, tk, tn) bf16
        b_refs = refs[1 + n_layers:1 + 2 * n_layers]      # VMEM, (1, Np) f32
        out_ref = refs[1 + 2 * n_layers]                  # VMEM, (B, Np_last) f32
        scratch = refs[2 + 2 * n_layers:]
        wbufs = scratch[:len(tk_sizes)]                   # (2, tk, tn) bf16 double buffers
        act_a, act_b, acc_ref, sem = scratch[len(tk_sizes):]
        acts = (act_a, act_b)

        def fetch(s, slot):
            l, j, kk = schedule[s]
            buf = wbufs[tk_index[tks[l]]]
            cp = pltpu.make_async_copy(w_refs[l].at[j * nks[l] + kk], buf.at[slot],
                                       sem.at[slot])
            cp.start()
            return cp

        pending = [None, None]
        pending[0] = fetch(0, 0)                          # prime the pipeline

        for s, (l, j, kk) in enumerate(schedule):
            slot = s % 2
            pending[slot].wait()
            if s + 1 < len(schedule):
                pending[1 - slot] = fetch(s + 1, 1 - slot)

            tk, nk = tks[l], nks[l]
            if l == 0:
                xin = x_ref[:, kk * tk:(kk + 1) * tk]            # (B, tk) bf16
            else:
                xin = acts[(l - 1) % 2][:, kk * tk:(kk + 1) * tk]
            w_tile = wbufs[tk_index[tk]][slot]                   # (tk, tn) bf16
            part = jnp.dot(xin, w_tile, preferred_element_type=jnp.float32)

            if nk == 1:
                y = part                                         # no accumulator round trip
            else:
                if kk == 0:
                    acc_ref[...] = part
                else:
                    acc_ref[...] += part
                y = acc_ref[...] if kk == nk - 1 else None

            if y is not None:
                y = y + b_refs[l][:, j * tn:(j + 1) * tn]        # f32 bias add
                if l < n_layers - 1:
                    y = jnp.maximum(y, 0.0)
                    dst = acts[l % 2]
                    dst[:, j * tn:(j + 1) * tn] = y.astype(dst.dtype)
                else:
                    out_ref[:, j * tn:(j + 1) * tn] = y.astype(out_ref.dtype)

    in_specs = (
        [pl.BlockSpec(memory_space=pltpu.MemorySpace.VMEM)]                 # x
        + [pl.BlockSpec(memory_space=pl.ANY)] * n_layers                    # weights in HBM
        + [pl.BlockSpec(memory_space=pltpu.MemorySpace.VMEM)] * n_layers    # biases
    )
    out_specs = pl.BlockSpec(memory_space=pltpu.MemorySpace.VMEM)
    scratch_shapes = (
        [pltpu.VMEM((2, t, tn), jnp.bfloat16) for t in tk_sizes]
        + [pltpu.VMEM((batch, act_width), jnp.bfloat16),
           pltpu.VMEM((batch, act_width), jnp.bfloat16),
           pltpu.VMEM((batch, tn), jnp.float32),
           pltpu.SemaphoreType.DMA((2,))]
    )

    # Explicit VMEM budget (sublane-rounded) with headroom; never below the default scope.
    def _rows(r):
        return _round_up(max(r, 1), 8)
    vmem = _rows(batch) * kps[0] * 2                                    # x (bf16)
    vmem += sum(_rows(1) * nps[l] * 4 for l in range(n_layers))         # biases (f32)
    vmem += _rows(batch) * nps[-1] * 4                                  # out (f32)
    vmem += 2 * _rows(batch) * act_width * 2                            # act ping-pong (bf16)
    vmem += _rows(batch) * tn * 4                                       # accumulator (f32)
    vmem += sum(2 * t * tn * 2 for t in tk_sizes)                       # weight double-buffers
    vmem_limit = max(int(vmem * 1.5) + (2 << 20), 32 * 1024 * 1024)

    return pl.pallas_call(
        kernel,
        out_shape=jax.ShapeDtypeStruct((batch, nps[-1]), jnp.float32),
        in_specs=in_specs,
        out_specs=out_specs,
        scratch_shapes=scratch_shapes,
        compiler_params=pltpu.CompilerParams(vmem_limit_bytes=vmem_limit),
    )


class ImageNetMLPPallas:
    """Structural mirror of the PyTorch ImageNetMLP (widths configurable)."""

    def __init__(self, key, in_features, hidden, num_classes, *,
                 tn=256, max_tk=2048, n_hidden_layers=9):
        dims = [in_features] + [hidden] * n_hidden_layers + [num_classes]
        keys = jax.random.split(key, len(dims) - 1)
        self.params = [init_linear_params(keys[i], dims[i], dims[i + 1])
                       for i in range(len(dims) - 1)]
        self.num_classes = num_classes
        self.tn = tn

        n_layers = len(dims) - 1
        np_pad = [_round_up(d, tn) for d in dims[1:]]                 # padded output widths
        self._layer_geom = []
        for l in range(n_layers):
            raw_k = _round_up(in_features, 8) if l == 0 else np_pad[l - 1]
            tk, nk, kp = _choose_k_tiling(raw_k, max_tk, can_pad=(l == 0), align=tn)
            self._layer_geom.append((kp, np_pad[l], tk, nk, np_pad[l] // tn))
        self._in_pad = self._layer_geom[0][0]
        self._w_tiled, self._b_padded = _pack_params(self.params, self._layer_geom, tn)
        self._fwd_cache = {}

    def __call__(self, x):
        b = x.shape[0]
        x_flat = x.reshape(b, -1).astype(jnp.bfloat16)                # nn.Flatten()
        if x_flat.shape[1] < self._in_pad:
            x_flat = jnp.pad(x_flat, ((0, 0), (0, self._in_pad - x_flat.shape[1])))
        fwd = self._fwd_cache.get(b)
        if fwd is None:
            fwd = build_fused_mlp_forward(self._layer_geom, self.tn, b)
            self._fwd_cache[b] = fwd
        logits_padded = fwd(x_flat, *self._w_tiled, *self._b_padded)
        return logits_padded[:, :self.num_classes]


def reference_forward(params, x):
    """Pure-JAX reference with the same bf16-weight / f32-accumulate numerics."""
    h = x.reshape(x.shape[0], -1).astype(jnp.bfloat16)
    n = len(params)
    for i, (w_t, b) in enumerate(params):
        y = jnp.dot(h, w_t, preferred_element_type=jnp.float32) + b
        if i < n - 1:
            h = jnp.maximum(y, 0.0).astype(jnp.bfloat16)
        else:
            return y


if __name__ == "__main__":
    # Small shapes consistent with the module's forward: x NCHW -> flatten -> MLP.
    B, C, H, W = 2, 3, 16, 16          # in_features = 3*16*16 = 768
    HIDDEN = 512                        # stands in for 4096
    NUM_CLASSES = 250                   # stands in for 1000 (exercises N-padding to 256)
    TN = 256                            # output-stripe width; use 512-1024 at real sizes
    MAX_TK = 512                        # forces K-tiling on layer 0 (768 -> 2 x 512 tiles)

    root = jax.random.PRNGKey(0)
    k_params, k_x = jax.random.split(root)

    model = ImageNetMLPPallas(k_params, C * H * W, HIDDEN, NUM_CLASSES,
                              tn=TN, max_tk=MAX_TK)
    x = jax.random.normal(k_x, (B, C, H, W), jnp.float32)

    logits = jax.block_until_ready(model(x))

    ref = reference_forward(model.params, x)
    assert logits.shape == (B, NUM_CLASSES)
    max_err = float(jnp.max(jnp.abs(logits - ref)))
    assert jnp.allclose(logits, ref, atol=2e-2, rtol=2e-2), max_err

    print("KERNEL_OK")
</pallas_src>

<mosaic_0001>
module attributes {stable_mosaic.version = 11 : i64} {
  func.func @kernel(%arg0: memref<2x1024xbf16, #tpu.memory_space<vmem>>, %arg1: memref<4x512x256xbf16, #tpu.memory_space<any>>, %arg2: memref<2x512x256xbf16, #tpu.memory_space<any>>, %arg3: memref<2x512x256xbf16, #tpu.memory_space<any>>, %arg4: memref<2x512x256xbf16, #tpu.memory_space<any>>, %arg5: memref<2x512x256xbf16, #tpu.memory_space<any>>, %arg6: memref<2x512x256xbf16, #tpu.memory_space<any>>, %arg7: memref<2x512x256xbf16, #tpu.memory_space<any>>, %arg8: memref<2x512x256xbf16, #tpu.memory_space<any>>, %arg9: memref<2x512x256xbf16, #tpu.memory_space<any>>, %arg10: memref<1x512x256xbf16, #tpu.memory_space<any>>, %arg11: memref<1x512xf32, #tpu.memory_space<vmem>>, %arg12: memref<1x512xf32, #tpu.memory_space<vmem>>, %arg13: memref<1x512xf32, #tpu.memory_space<vmem>>, %arg14: memref<1x512xf32, #tpu.memory_space<vmem>>, %arg15: memref<1x512xf32, #tpu.memory_space<vmem>>, %arg16: memref<1x512xf32, #tpu.memory_space<vmem>>, %arg17: memref<1x512xf32, #tpu.memory_space<vmem>>, %arg18: memref<1x512xf32, #tpu.memory_space<vmem>>, %arg19: memref<1x512xf32, #tpu.memory_space<vmem>>, %arg20: memref<1x256xf32, #tpu.memory_space<vmem>>, %arg21: memref<2x256xf32, #tpu.memory_space<vmem>>, %arg22: memref<2x512x256xbf16, #tpu.memory_space<vmem>>, %arg23: memref<2x512xbf16, #tpu.memory_space<vmem>>, %arg24: memref<2x512xbf16, #tpu.memory_space<vmem>>, %arg25: memref<2x256xf32, #tpu.memory_space<vmem>>, %arg26: memref<2x!tpu.dma_semaphore, #tpu.memory_space<semaphore_mem>>) attributes {dimension_semantics = [], scalar_prefetch = 0 : i64, scratch_operands = 5 : i64, tpu.core_type = #tpu.core_type<tc>} {
    %c0_i32 = arith.constant 0 : i32
    %c0_i32_0 = arith.constant 0 : i32
    %c0_i32_1 = arith.constant 0 : i32
    %c0_i32_2 = arith.constant 0 : i32
    %c0_i32_3 = arith.constant 0 : i32
    %0 = tpu.memref_slice %arg1[%c0_i32, %c0_i32_2, %c0_i32_3] : memref<4x512x256xbf16, #tpu.memory_space<any>> -> memref<1x512x256xbf16, #tpu.memory_space<any>>
    %1 = tpu.memref_squeeze %0 : memref<1x512x256xbf16, #tpu.memory_space<any>> -> memref<512x256xbf16, #tpu.memory_space<any>>
    %c0_i32_4 = arith.constant 0 : i32
    %c0_i32_5 = arith.constant 0 : i32
    %2 = tpu.memref_slice %arg22[%c0_i32_0, %c0_i32_4, %c0_i32_5] : memref<2x512x256xbf16, #tpu.memory_space<vmem>> -> memref<1x512x256xbf16, #tpu.memory_space<vmem>>
    %3 = tpu.memref_squeeze %2 : memref<1x512x256xbf16, #tpu.memory_space<vmem>> -> memref<512x256xbf16, #tpu.memory_space<vmem>>
    %4 = tpu.memref_slice %arg26[%c0_i32_1] : memref<2x!tpu.dma_semaphore, #tpu.memory_space<semaphore_mem>> -> memref<1x!tpu.dma_semaphore, #tpu.memory_space<semaphore_mem>>
    %5 = tpu.memref_squeeze %4 : memref<1x!tpu.dma_semaphore, #tpu.memory_space<semaphore_mem>> -> memref<!tpu.dma_semaphore, #tpu.memory_space<semaphore_mem>>
    tpu.enqueue_dma source(%1 : memref<512x256xbf16, #tpu.memory_space<any>>) target(%3 : memref<512x256xbf16, #tpu.memory_space<vmem>>) target_semaphore(%5 : memref<!tpu.dma_semaphore, #tpu.memory_space<semaphore_mem>>)
    %c0_i32_6 = arith.constant 0 : i32
    %c0_i32_7 = arith.constant 0 : i32
    %c0_i32_8 = arith.constant 0 : i32
    %c0_i32_9 = arith.constant 0 : i32
    %c0_i32_10 = arith.constant 0 : i32
    %6 = tpu.memref_slice %arg1[%c0_i32_6, %c0_i32_9, %c0_i32_10] : memref<4x512x256xbf16, #tpu.memory_space<any>> -> memref<1x512x256xbf16, #tpu.memory_space<any>>
    %7 = tpu.memref_squeeze %6 : memref<1x512x256xbf16, #tpu.memory_space<any>> -> memref<512x256xbf16, #tpu.memory_space<any>>
    %c0_i32_11 = arith.constant 0 : i32
    %c0_i32_12 = arith.constant 0 : i32
    %8 = tpu.memref_slice %arg22[%c0_i32_7, %c0_i32_11, %c0_i32_12] : memref<2x512x256xbf16, #tpu.memory_space<vmem>> -> memref<1x512x256xbf16, #tpu.memory_space<vmem>>
    %9 = tpu.memref_squeeze %8 : memref<1x512x256xbf16, #tpu.memory_space<vmem>> -> memref<512x256xbf16, #tpu.memory_space<vmem>>
    %10 = tpu.memref_slice %arg26[%c0_i32_8] : memref<2x!tpu.dma_semaphore, #tpu.memory_space<semaphore_mem>> -> memref<1x!tpu.dma_semaphore, #tpu.memory_space<semaphore_mem>>
    %11 = tpu.memref_squeeze %10 : memref<1x!tpu.dma_semaphore, #tpu.memory_space<semaphore_mem>> -> memref<!tpu.dma_semaphore, #tpu.memory_space<semaphore_mem>>
    tpu.wait_dma2 semaphore(%11 : memref<!tpu.dma_semaphore, #tpu.memory_space<semaphore_mem>>) src(%7 : memref<512x256xbf16, #tpu.memory_space<any>>) dst(%9 : memref<512x256xbf16, #tpu.memory_space<vmem>>)
    %c1_i32 = arith.constant 1 : i32
    %c1_i32_13 = arith.constant 1 : i32
    %c1_i32_14 = arith.constant 1 : i32
    %c0_i32_15 = arith.constant 0 : i32
    %c0_i32_16 = arith.constant 0 : i32
    %12 = tpu.memref_slice %arg1[%c1_i32, %c0_i32_15, %c0_i32_16] : memref<4x512x256xbf16, #tpu.memory_space<any>> -> memref<1x512x256xbf16, #tpu.memory_space<any>>
    %13 = tpu.memref_squeeze %12 : memref<1x512x256xbf16, #tpu.memory_space<any>> -> memref<512x256xbf16, #tpu.memory_space<any>>
    %c0_i32_17 = arith.constant 0 : i32
    %c0_i32_18 = arith.constant 0 : i32
    %14 = tpu.memref_slice %arg22[%c1_i32_13, %c0_i32_17, %c0_i32_18] : memref<2x512x256xbf16, #tpu.memory_space<vmem>> -> memref<1x512x256xbf16, #tpu.memory_space<vmem>>
    %15 = tpu.memref_squeeze %14 : memref<1x512x256xbf16, #tpu.memory_space<vmem>> -> memref<512x256xbf16, #tpu.memory_space<vmem>>
    %16 = tpu.memref_slice %arg26[%c1_i32_14] : memref<2x!tpu.dma_semaphore, #tpu.memory_space<semaphore_mem>> -> memref<1x!tpu.dma_semaphore, #tpu.memory_space<semaphore_mem>>
    %17 = tpu.memref_squeeze %16 : memref<1x!tpu.dma_semaphore, #tpu.memory_space<semaphore_mem>> -> memref<!tpu.dma_semaphore, #tpu.memory_space<semaphore_mem>>
    tpu.enqueue_dma source(%13 : memref<512x256xbf16, #tpu.memory_space<any>>) target(%15 : memref<512x256xbf16, #tpu.memory_space<vmem>>) target_semaphore(%17 : memref<!tpu.dma_semaphore, #tpu.memory_space<semaphore_mem>>)
    %c0 = arith.constant 0 : index
    %c0_19 = arith.constant 0 : index
    %18 = vector.load %arg0[%c0, %c0_19] : memref<2x1024xbf16, #tpu.memory_space<vmem>>, vector<2x512xbf16>
    %c0_20 = arith.constant 0 : index
    %c0_21 = arith.constant 0 : index
    %c0_22 = arith.constant 0 : index
    %19 = vector.load %arg22[%c0_20, %c0_21, %c0_22] : memref<2x512x256xbf16, #tpu.memory_space<vmem>>, vector<1x512x256xbf16>
    %20 = vector.shape_cast %19 : vector<1x512x256xbf16> to vector<512x256xbf16>
    %cst = arith.constant dense<0.000000e+00> : vector<2x256xf32>
    %21 = tpu.matmul %18, %20, %cst {dimension_numbers = #tpu.dot_dimension_numbers<[1], [0], [0], [1], [0, 0, 1, 1], [], []>} : vector<2x512xbf16>, vector<512x256xbf16>, vector<2x256xf32> -> vector<2x256xf32>
    %c0_23 = arith.constant 0 : index
    %c0_24 = arith.constant 0 : index
    %22 = vector.load %arg25[%c0_23, %c0_24] : memref<2x256xf32, #tpu.memory_space<vmem>>, vector<2x256xf32>
    tpu.vector_store %arg25[%c0_23, %c0_24], %21 {strides = array<i32>} : memref<2x256xf32, #tpu.memory_space<vmem>>, vector<2x256xf32>,
    %c1_i32_25 = arith.constant 1 : i32
    %c1_i32_26 = arith.constant 1 : i32
    %c1_i32_27 = arith.constant 1 : i32
    %c0_i32_28 = arith.constant 0 : i32
    %c0_i32_29 = arith.constant 0 : i32
    %23 = tpu.memref_slice %arg1[%c1_i32_25, %c0_i32_28, %c0_i32_29] : memref<4x512x256xbf16, #tpu.memory_space<any>> -> memref<1x512x256xbf16, #tpu.memory_space<any>>
    %24 = tpu.memref_squeeze %23 : memref<1x512x256xbf16, #tpu.memory_space<any>> -> memref<512x256xbf16, #tpu.memory_space<any>>
    %c0_i32_30 = arith.constant 0 : i32
    %c0_i32_31 = arith.constant 0 : i32
    %25 = tpu.memref_slice %arg22[%c1_i32_26, %c0_i32_30, %c0_i32_31] : memref<2x512x256xbf16, #tpu.memory_space<vmem>> -> memref<1x512x256xbf16, #tpu.memory_space<vmem>>
    %26 = tpu.memref_squeeze %25 : memref<1x512x256xbf16, #tpu.memory_space<vmem>> -> memref<512x256xbf16, #tpu.memory_space<vmem>>
    %27 = tpu.memref_slice %arg26[%c1_i32_27] : memref<2x!tpu.dma_semaphore, #tpu.memory_space<semaphore_mem>> -> memref<1x!tpu.dma_semaphore, #tpu.memory_space<semaphore_mem>>
    %28 = tpu.memref_squeeze %27 : memref<1x!tpu.dma_semaphore, #tpu.memory_space<semaphore_mem>> -> memref<!tpu.dma_semaphore, #tpu.memory_space<semaphore_mem>>
    tpu.wait_dma2 semaphore(%28 : memref<!tpu.dma_semaphore, #tpu.memory_space<semaphore_mem>>) src(%24 : memref<512x256xbf16, #tpu.memory_space<any>>) dst(%26 : memref<512x256xbf16, #tpu.memory_space<vmem>>)
    %c2_i32 = arith.constant 2 : i32
    %c0_i32_32 = arith.constant 0 : i32
    %c0_i32_33 = arith.constant 0 : i32
    %c0_i32_34 = arith.constant 0 : i32
    %c0_i32_35 = arith.constant 0 : i32
    %29 = tpu.memref_slice %arg1[%c2_i32, %c0_i32_34, %c0_i32_35] : memref<4x512x256xbf16, #tpu.memory_space<any>> -> memref<1x512x256xbf16, #tpu.memory_space<any>>
    %30 = tpu.memref_squeeze %29 : memref<1x512x256xbf16, #tpu.memory_space<any>> -> memref<512x256xbf16, #tpu.memory_space<any>>
    %c0_i32_36 = arith.constant 0 : i32
    %c0_i32_37 = arith.constant 0 : i32
    %31 = tpu.memref_slice %arg22[%c0_i32_32, %c0_i32_36, %c0_i32_37] : memref<2x512x256xbf16, #tpu.memory_space<vmem>> -> memref<1x512x256xbf16, #tpu.memory_space<vmem>>
    %32 = tpu.memref_squeeze %31 : memref<1x512x256xbf16, #tpu.memory_space<vmem>> -> memref<512x256xbf16, #tpu.memory_space<vmem>>
    %33 = tpu.memref_slice %arg26[%c0_i32_33] : memref<2x!tpu.dma_semaphore, #tpu.memory_space<semaphore_mem>> -> memref<1x!tpu.dma_semaphore, #tpu.memory_space<semaphore_mem>>
    %34 = tpu.memref_squeeze %33 : memref<1x!tpu.dma_semaphore, #tpu.memory_space<semaphore_mem>> -> memref<!tpu.dma_semaphore, #tpu.memory_space<semaphore_mem>>
    tpu.enqueue_dma source(%30 : memref<512x256xbf16, #tpu.memory_space<any>>) target(%32 : memref<512x256xbf16, #tpu.memory_space<vmem>>) target_semaphore(%34 : memref<!tpu.dma_semaphore, #tpu.memory_space<semaphore_mem>>)
    %c0_38 = arith.constant 0 : index
    %c512 = arith.constant 512 : index
    %35 = vector.load %arg0[%c0_38, %c512] : memref<2x1024xbf16, #tpu.memory_space<vmem>>, vector<2x512xbf16>
    %c1 = arith.constant 1 : index
    %c0_39 = arith.constant 0 : index
    %c0_40 = arith.constant 0 : index
    %36 = vector.load %arg22[%c1, %c0_39, %c0_40] : memref<2x512x256xbf16, #tpu.memory_space<vmem>>, vector<1x512x256xbf16>
    %37 = vector.shape_cast %36 : vector<1x512x256xbf16> to vector<512x256xbf16>
    %cst_41 = arith.constant dense<0.000000e+00> : vector<2x256xf32>
    %38 = tpu.matmul %35, %37, %cst_41 {dimension_numbers = #tpu.dot_dimension_numbers<[1], [0], [0], [1], [0, 0, 1, 1], [], []>} : vector<2x512xbf16>, vector<512x256xbf16>, vector<2x256xf32> -> vector<2x256xf32>
    %c0_42 = arith.constant 0 : index
    %c0_43 = arith.constant 0 : index
    %39 = vector.load %arg25[%c0_42, %c0_43] : memref<2x256xf32, #tpu.memory_space<vmem>>, vector<2x256xf32>
    %40 = arith.addf %39, %38 : vector<2x256xf32>
    %c0_44 = arith.constant 0 : index
    %c0_45 = arith.constant 0 : index
    %41 = vector.load %arg25[%c0_44, %c0_45] : memref<2x256xf32, #tpu.memory_space<vmem>>, vector<2x256xf32>
    tpu.vector_store %arg25[%c0_44, %c0_45], %40 {strides = array<i32>} : memref<2x256xf32, #tpu.memory_space<vmem>>, vector<2x256xf32>,
    %c0_46 = arith.constant 0 : index
    %c0_47 = arith.constant 0 : index
    %42 = vector.load %arg25[%c0_46, %c0_47] : memref<2x256xf32, #tpu.memory_space<vmem>>, vector<2x256xf32>
    %c0_48 = arith.constant 0 : index
    %c0_49 = arith.constant 0 : index
    %43 = vector.load %arg11[%c0_48, %c0_49] : memref<1x512xf32, #tpu.memory_space<vmem>>, vector<1x256xf32>
    %44 = vector.broadcast %43 : vector<1x256xf32> to vector<2x256xf32>
    %45 = arith.addf %42, %44 : vector<2x256xf32>
    %cst_50 = arith.constant 0.000000e+00 : f32
    %46 = vector.broadcast %cst_50 : f32 to vector<2x256xf32>
    %47 = arith.maximumf %45, %46 : vector<2x256xf32>
    %48 = arith.truncf %47 : vector<2x256xf32> to vector<2x256xbf16>
    %c0_51 = arith.constant 0 : index
    %c0_52 = arith.constant 0 : index
    %49 = vector.load %arg23[%c0_51, %c0_52] : memref<2x512xbf16, #tpu.memory_space<vmem>>, vector<2x256xbf16>
    tpu.vector_store %arg23[%c0_51, %c0_52], %48 {strides = array<i32>} : memref<2x512xbf16, #tpu.memory_space<vmem>>, vector<2x256xbf16>,
    %c2_i32_53 = arith.constant 2 : i32
    %c0_i32_54 = arith.constant 0 : i32
    %c0_i32_55 = arith.constant 0 : i32
    %c0_i32_56 = arith.constant 0 : i32
    %c0_i32_57 = arith.constant 0 : i32
    %50 = tpu.memref_slice %arg1[%c2_i32_53, %c0_i32_56, %c0_i32_57] : memref<4x512x256xbf16, #tpu.memory_space<any>> -> memref<1x512x256xbf16, #tpu.memory_space<any>>
    %51 = tpu.memref_squeeze %50 : memref<1x512x256xbf16, #tpu.memory_space<any>> -> memref<512x256xbf16, #tpu.memory_space<any>>
    %c0_i32_58 = arith.constant 0 : i32
    %c0_i32_59 = arith.constant 0 : i32
    %52 = tpu.memref_slice %arg22[%c0_i32_54, %c0_i32_58, %c0_i32_59] : memref<2x512x256xbf16, #tpu.memory_space<vmem>> -> memref<1x512x256xbf16, #tpu.memory_space<vmem>>
    %53 = tpu.memref_squeeze %52 : memref<1x512x256xbf16, #tpu.memory_space<vmem>> -> memref<512x256xbf16, #tpu.memory_space<vmem>>
    %54 = tpu.memref_slice %arg26[%c0_i32_55] : memref<2x!tpu.dma_semaphore, #tpu.memory_space<semaphore_mem>> -> memref<1x!tpu.dma_semaphore, #tpu.memory_space<semaphore_mem>>
    %55 = tpu.memref_squeeze %54 : memref<1x!tpu.dma_semaphore, #tpu.memory_space<semaphore_mem>> -> memref<!tpu.dma_semaphore, #tpu.memory_space<semaphore_mem>>
    tpu.wait_dma2 semaphore(%55 : memref<!tpu.dma_semaphore, #tpu.memory_space<semaphore_mem>>) src(%51 : memref<512x256xbf16, #tpu.memory_space<any>>) dst(%53 : memref<512x256xbf16, #tpu.memory_space<vmem>>)
    %c3_i32 = arith.constant 3 : i32
    %c1_i32_60 = arith.constant 1 : i32
    %c1_i32_61 = arith.constant 1 : i32
    %c0_i32_62 = arith.constant 0 : i32
    %c0_i32_63 = arith.constant 0 : i32
    %56 = tpu.memref_slice %arg1[%c3_i32, %c0_i32_62, %c0_i32_63] : memref<4x512x256xbf16, #tpu.memory_space<any>> -> memref<1x512x256xbf16, #tpu.memory_space<any>>
    %57 = tpu.memref_squeeze %56 : memref<1x512x256xbf16, #tpu.memory_space<any>> -> memref<512x256xbf16, #tpu.memory_space<any>>
    %c0_i32_64 = arith.constant 0 : i32
    %c0_i32_65 = arith.constant 0 : i32
    %58 = tpu.memref_slice %arg22[%c1_i32_60, %c0_i32_64, %c0_i32_65] : memref<2x512x256xbf16, #tpu.memory_space<vmem>> -> memref<1x512x256xbf16, #tpu.memory_space<vmem>>
    %59 = tpu.memref_squeeze %58 : memref<1x512x256xbf16, #tpu.memory_space<vmem>> -> memref<512x256xbf16, #tpu.memory_space<vmem>>
    %60 = tpu.memref_slice %arg26[%c1_i32_61] : memref<2x!tpu.dma_semaphore, #tpu.memory_space<semaphore_mem>> -> memref<1x!tpu.dma_semaphore, #tpu.memory_space<semaphore_mem>>
    %61 = tpu.memref_squeeze %60 : memref<1x!tpu.dma_semaphore, #tpu.memory_space<semaphore_mem>> -> memref<!tpu.dma_semaphore, #tpu.memory_space<semaphore_mem>>
    tpu.enqueue_dma source(%57 : memref<512x256xbf16, #tpu.memory_space<any>>) target(%59 : memref<512x256xbf16, #tpu.memory_space<vmem>>) target_semaphore(%61 : memref<!tpu.dma_semaphore, #tpu.memory_space<semaphore_mem>>)
    %c0_66 = arith.constant 0 : index
    %c0_67 = arith.constant 0 : index
    %62 = vector.load %arg0[%c0_66, %c0_67] : memref<2x1024xbf16, #tpu.memory_space<vmem>>, vector<2x512xbf16>
    %c0_68 = arith.constant 0 : index
    %c0_69 = arith.constant 0 : index
    %c0_70 = arith.constant 0 : index
    %63 = vector.load %arg22[%c0_68, %c0_69, %c0_70] : memref<2x512x256xbf16, #tpu.memory_space<vmem>>, vector<1x512x256xbf16>
    %64 = vector.shape_cast %63 : vector<1x512x256xbf16> to vector<512x256xbf16>
    %cst_71 = arith.constant dense<0.000000e+00> : vector<2x256xf32>
    %65 = tpu.matmul %62, %64, %cst_71 {dimension_numbers = #tpu.dot_dimension_numbers<[1], [0], [0], [1], [0, 0, 1, 1], [], []>} : vector<2x512xbf16>, vector<512x256xbf16>, vector<2x256xf32> -> vector<2x256xf32>
    %c0_72 = arith.constant 0 : index
    %c0_73 = arith.constant 0 : index
    %66 = vector.load %arg25[%c0_72, %c0_73] : memref<2x256xf32, #tpu.memory_space<vmem>>, vector<2x256xf32>
    tpu.vector_store %arg25[%c0_72, %c0_73], %65 {strides = array<i32>} : memref<2x256xf32, #tpu.memory_space<vmem>>, vector<2x256xf32>,
    %c3_i32_74 = arith.constant 3 : i32
    %c1_i32_75 = arith.constant 1 : i32
    %c1_i32_76 = arith.constant 1 : i32
    %c0_i32_77 = arith.constant 0 : i32
    %c0_i32_78 = arith.constant 0 : i32
    %67 = tpu.memref_slice %arg1[%c3_i32_74, %c0_i32_77, %c0_i32_78] : memref<4x512x256xbf16, #tpu.memory_space<any>> -> memref<1x512x256xbf16, #tpu.memory_space<any>>
    %68 = tpu.memref_squeeze %67 : memref<1x512x256xbf16, #tpu.memory_space<any>> -> memref<512x256xbf16, #tpu.memory_space<any>>
    %c0_i32_79 = arith.constant 0 : i32
    %c0_i32_80 = arith.constant 0 : i32
    %69 = tpu.memref_slice %arg22[%c1_i32_75, %c0_i32_79, %c0_i32_80] : memref<2x512x256xbf16, #tpu.memory_space<vmem>> -> memref<1x512x256xbf16, #tpu.memory_space<vmem>>
    %70 = tpu.memref_squeeze %69 : memref<1x512x256xbf16, #tpu.memory_space<vmem>> -> memref<512x256xbf16, #tpu.memory_space<vmem>>
    %71 = tpu.memref_slice %arg26[%c1_i32_76] : memref<2x!tpu.dma_semaphore, #tpu.memory_space<semaphore_mem>> -> memref<1x!tpu.dma_semaphore, #tpu.memory_space<semaphore_mem>>
    %72 = tpu.memref_squeeze %71 : memref<1x!tpu.dma_semaphore, #tpu.memory_space<semaphore_mem>> -> memref<!tpu.dma_semaphore, #tpu.memory_space<semaphore_mem>>
    tpu.wait_dma2 semaphore(%72 : memref<!tpu.dma_semaphore, #tpu.memory_space<semaphore_mem>>) src(%68 : memref<512x256xbf16, #tpu.memory_space<any>>) dst(%70 : memref<512x256xbf16, #tpu.memory_space<vmem>>)
    %c0_i32_81 = arith.constant 0 : i32
    %c0_i32_82 = arith.constant 0 : i32
    %c0_i32_83 = arith.constant 0 : i32
    %c0_i32_84 = arith.constant 0 : i32
    %c0_i32_85 = arith.constant 0 : i32
    %73 = tpu.memref_slice %arg2[%c0_i32_81, %c0_i32_84, %c0_i32_85] : memref<2x512x256xbf16, #tpu.memory_space<any>> -> memref<1x512x256xbf16, #tpu.memory_space<any>>
    %74 = tpu.memref_squeeze %73 : memref<1x512x256xbf16, #tpu.memory_space<any>> -> memref<512x256xbf16, #tpu.memory_space<any>>
    %c0_i32_86 = arith.constant 0 : i32
    %c0_i32_87 = arith.constant 0 : i32
    %75 = tpu.memref_slice %arg22[%c0_i32_82, %c0_i32_86, %c0_i32_87] : memref<2x512x256xbf16, #tpu.memory_space<vmem>> -> memref<1x512x256xbf16, #tpu.memory_space<vmem>>
    %76 = tpu.memref_squeeze %75 : memref<1x512x256xbf16, #tpu.memory_space<vmem>> -> memref<512x256xbf16, #tpu.memory_space<vmem>>
    %77 = tpu.memref_slice %arg26[%c0_i32_83] : memref<2x!tpu.dma_semaphore, #tpu.memory_space<semaphore_mem>> -> memref<1x!tpu.dma_semaphore, #tpu.memory_space<semaphore_mem>>
    %78 = tpu.memref_squeeze %77 : memref<1x!tpu.dma_semaphore, #tpu.memory_space<semaphore_mem>> -> memref<!tpu.dma_semaphore, #tpu.memory_space<semaphore_mem>>
    tpu.enqueue_dma source(%74 : memref<512x256xbf16, #tpu.memory_space<any>>) target(%76 : memref<512x256xbf16, #tpu.memory_space<vmem>>) target_semaphore(%78 : memref<!tpu.dma_semaphore, #tpu.memory_space<semaphore_mem>>)
    %c0_88 = arith.constant 0 : index
    %c512_89 = arith.constant 512 : index
    %79 = vector.load %arg0[%c0_88, %c512_89] : memref<2x1024xbf16, #tpu.memory_space<vmem>>, vector<2x512xbf16>
    %c1_90 = arith.constant 1 : index
    %c0_91 = arith.constant 0 : index
    %c0_92 = arith.constant 0 : index
    %80 = vector.load %arg22[%c1_90, %c0_91, %c0_92] : memref<2x512x256xbf16, #tpu.memory_space<vmem>>, vector<1x512x256xbf16>
    %81 = vector.shape_cast %80 : vector<1x512x256xbf16> to vector<512x256xbf16>
    %cst_93 = arith.constant dense<0.000000e+00> : vector<2x256xf32>
    %82 = tpu.matmul %79, %81, %cst_93 {dimension_numbers = #tpu.dot_dimension_numbers<[1], [0], [0], [1], [0, 0, 1, 1], [], []>} : vector<2x512xbf16>, vector<512x256xbf16>, vector<2x256xf32> -> vector<2x256xf32>
    %c0_94 = arith.constant 0 : index
    %c0_95 = arith.constant 0 : index
    %83 = vector.load %arg25[%c0_94, %c0_95] : memref<2x256xf32, #tpu.memory_space<vmem>>, vector<2x256xf32>
    %84 = arith.addf %83, %82 : vector<2x256xf32>
    %c0_96 = arith.constant 0 : index
    %c0_97 = arith.constant 0 : index
    %85 = vector.load %arg25[%c0_96, %c0_97] : memref<2x256xf32, #tpu.memory_space<vmem>>, vector<2x256xf32>
    tpu.vector_store %arg25[%c0_96, %c0_97], %84 {strides = array<i32>} : memref<2x256xf32, #tpu.memory_space<vmem>>, vector<2x256xf32>,
    %c0_98 = arith.constant 0 : index
    %c0_99 = arith.constant 0 : index
    %86 = vector.load %arg25[%c0_98, %c0_99] : memref<2x256xf32, #tpu.memory_space<vmem>>, vector<2x256xf32>
    %c0_100 = arith.constant 0 : index
    %c256 = arith.constant 256 : index
    %87 = vector.load %arg11[%c0_100, %c256] : memref<1x512xf32, #tpu.memory_space<vmem>>, vector<1x256xf32>
    %88 = vector.broadcast %87 : vector<1x256xf32> to vector<2x256xf32>
    %89 = arith.addf %86, %88 : vector<2x256xf32>
    %cst_101 = arith.constant 0.000000e+00 : f32
    %90 = vector.broadcast %cst_101 : f32 to vector<2x256xf32>
    %91 = arith.maximumf %89, %90 : vector<2x256xf32>
    %92 = arith.truncf %91 : vector<2x256xf32> to vector<2x256xbf16>
    %c0_102 = arith.constant 0 : index
    %c256_103 = arith.constant 256 : index
    %93 = vector.load %arg23[%c0_102, %c256_103] : memref<2x512xbf16, #tpu.memory_space<vmem>>, vector<2x256xbf16>
    tpu.vector_store %arg23[%c0_102, %c256_103], %92 {strides = array<i32>} : memref<2x512xbf16, #tpu.memory_space<vmem>>, vector<2x256xbf16>,
    %c0_i32_104 = arith.constant 0 : i32
    %c0_i32_105 = arith.constant 0 : i32
    %c0_i32_106 = arith.constant 0 : i32
    %c0_i32_107 = arith.constant 0 : i32
    %c0_i32_108 = arith.constant 0 : i32
    %94 = tpu.memref_slice %arg2[%c0_i32_104, %c0_i32_107, %c0_i32_108] : memref<2x512x256xbf16, #tpu.memory_space<any>> -> memref<1x512x256xbf16, #tpu.memory_space<any>>
    %95 = tpu.memref_squeeze %94 : memref<1x512x256xbf16, #tpu.memory_space<any>> -> memref<512x256xbf16, #tpu.memory_space<any>>
    %c0_i32_109 = arith.constant 0 : i32
    %c0_i32_110 = arith.constant 0 : i32
    %96 = tpu.memref_slice %arg22[%c0_i32_105, %c0_i32_109, %c0_i32_110] : memref<2x512x256xbf16, #tpu.memory_space<vmem>> -> memref<1x512x256xbf16, #tpu.memory_space<vmem>>
    %97 = tpu.memref_squeeze %96 : memref<1x512x256xbf16, #tpu.memory_space<vmem>> -> memref<512x256xbf16, #tpu.memory_space<vmem>>
    %98 = tpu.memref_slice %arg26[%c0_i32_106] : memref<2x!tpu.dma_semaphore, #tpu.memory_space<semaphore_mem>> -> memref<1x!tpu.dma_semaphore, #tpu.memory_space<semaphore_mem>>
    %99 = tpu.memref_squeeze %98 : memref<1x!tpu.dma_semaphore, #tpu.memory_space<semaphore_mem>> -> memref<!tpu.dma_semaphore, #tpu.memory_space<semaphore_mem>>
    tpu.wait_dma2 semaphore(%99 : memref<!tpu.dma_semaphore, #tpu.memory_space<semaphore_mem>>) src(%95 : memref<512x256xbf16, #tpu.memory_space<any>>) dst(%97 : memref<512x256xbf16, #tpu.memory_space<vmem>>)
    %c1_i32_111 = arith.constant 1 : i32
    %c1_i32_112 = arith.constant 1 : i32
    %c1_i32_113 = arith.constant 1 : i32
    %c0_i32_114 = arith.constant 0 : i32
    %c0_i32_115 = arith.constant 0 : i32
    %100 = tpu.memref_slice %arg2[%c1_i32_111, %c0_i32_114, %c0_i32_115] : memref<2x512x256xbf16, #tpu.memory_space<any>> -> memref<1x512x256xbf16, #tpu.memory_space<any>>
    %101 = tpu.memref_squeeze %100 : memref<1x512x256xbf16, #tpu.memory_space<any>> -> memref<512x256xbf16, #tpu.memory_space<any>>
    %c0_i32_116 = arith.constant 0 : i32
    %c0_i32_117 = arith.constant 0 : i32
    %102 = tpu.memref_slice %arg22[%c1_i32_112, %c0_i32_116, %c0_i32_117] : memref<2x512x256xbf16, #tpu.memory_space<vmem>> -> memref<1x512x256xbf16, #tpu.memory_space<vmem>>
    %103 = tpu.memref_squeeze %102 : memref<1x512x256xbf16, #tpu.memory_space<vmem>> -> memref<512x256xbf16, #tpu.memory_space<vmem>>
    %104 = tpu.memref_slice %arg26[%c1_i32_113] : memref<2x!tpu.dma_semaphore, #tpu.memory_space<semaphore_mem>> -> memref<1x!tpu.dma_semaphore, #tpu.memory_space<semaphore_mem>>
    %105 = tpu.memref_squeeze %104 : memref<1x!tpu.dma_semaphore, #tpu.memory_space<semaphore_mem>> -> memref<!tpu.dma_semaphore, #tpu.memory_space<semaphore_mem>>
    tpu.enqueue_dma source(%101 : memref<512x256xbf16, #tpu.memory_space<any>>) target(%103 : memref<512x256xbf16, #tpu.memory_space<vmem>>) target_semaphore(%105 : memref<!tpu.dma_semaphore, #tpu.memory_space<semaphore_mem>>)
    %c0_118 = arith.constant 0 : index
    %c0_119 = arith.constant 0 : index
    %106 = vector.load %arg23[%c0_118, %c0_119] : memref<2x512xbf16, #tpu.memory_space<vmem>>, vector<2x512xbf16>
    %c0_120 = arith.constant 0 : index
    %c0_121 = arith.constant 0 : index
    %c0_122 = arith.constant 0 : index
    %107 = vector.load %arg22[%c0_120, %c0_121, %c0_122] : memref<2x512x256xbf16, #tpu.memory_space<vmem>>, vector<1x512x256xbf16>
    %108 = vector.shape_cast %107 : vector<1x512x256xbf16> to vector<512x256xbf16>
    %cst_123 = arith.constant dense<0.000000e+00> : vector<2x256xf32>
    %109 = tpu.matmul %106, %108, %cst_123 {dimension_numbers = #tpu.dot_dimension_numbers<[1], [0], [0], [1], [0, 0, 1, 1], [], []>} : vector<2x512xbf16>, vector<512x256xbf16>, vector<2x256xf32> -> vector<2x256xf32>
    %c0_124 = arith.constant 0 : index
    %c0_125 = arith.constant 0 : index
    %110 = vector.load %arg12[%c0_124, %c0_125] : memref<1x512xf32, #tpu.memory_space<vmem>>, vector<1x256xf32>
    %111 = vector.broadcast %110 : vector<1x256xf32> to vector<2x256xf32>
    %112 = arith.addf %109, %111 : vector<2x256xf32>
    %cst_126 = arith.constant 0.000000e+00 : f32
    %113 = vector.broadcast %cst_126 : f32 to vector<2x256xf32>
    %114 = arith.maximumf %112, %113 : vector<2x256xf32>
    %115 = arith.truncf %114 : vector<2x256xf32> to vector<2x256xbf16>
    %c0_127 = arith.constant 0 : index
    %c0_128 = arith.constant 0 : index
    %116 = vector.load %arg24[%c0_127, %c0_128] : memref<2x512xbf16, #tpu.memory_space<vmem>>, vector<2x256xbf16>
    tpu.vector_store %arg24[%c0_127, %c0_128], %115 {strides = array<i32>} : memref<2x512xbf16, #tpu.memory_space<vmem>>, vector<2x256xbf16>,
    %c1_i32_129 = arith.constant 1 : i32
    %c1_i32_130 = arith.constant 1 : i32
    %c1_i32_131 = arith.constant 1 : i32
    %c0_i32_132 = arith.constant 0 : i32
    %c0_i32_133 = arith.constant 0 : i32
    %117 = tpu.memref_slice %arg2[%c1_i32_129, %c0_i32_132, %c0_i32_133] : memref<2x512x256xbf16, #tpu.memory_space<any>> -> memref<1x512x256xbf16, #tpu.memory_space<any>>
    %118 = tpu.memref_squeeze %117 : memref<1x512x256xbf16, #tpu.memory_space<any>> -> memref<512x256xbf16, #tpu.memory_space<any>>
    %c0_i32_134 = arith.constant 0 : i32
    %c0_i32_135 = arith.constant 0 : i32
    %119 = tpu.memref_slice %arg22[%c1_i32_130, %c0_i32_134, %c0_i32_135] : memref<2x512x256xbf16, #tpu.memory_space<vmem>> -> memref<1x512x256xbf16, #tpu.memory_space<vmem>>
    %120 = tpu.memref_squeeze %119 : memref<1x512x256xbf16, #tpu.memory_space<vmem>> -> memref<512x256xbf16, #tpu.memory_space<vmem>>
    %121 = tpu.memref_slice %arg26[%c1_i32_131] : memref<2x!tpu.dma_semaphore, #tpu.memory_space<semaphore_mem>> -> memref<1x!tpu.dma_semaphore, #tpu.memory_space<semaphore_mem>>
    %122 = tpu.memref_squeeze %121 : memref<1x!tpu.dma_semaphore, #tpu.memory_space<semaphore_mem>> -> memref<!tpu.dma_semaphore, #tpu.memory_space<semaphore_mem>>
    tpu.wait_dma2 semaphore(%122 : memref<!tpu.dma_semaphore, #tpu.memory_space<semaphore_mem>>) src(%118 : memref<512x256xbf16, #tpu.memory_space<any>>) dst(%120 : memref<512x256xbf16, #tpu.memory_space<vmem>>)
    %c0_i32_136 = arith.constant 0 : i32
    %c0_i32_137 = arith.constant 0 : i32
    %c0_i32_138 = arith.constant 0 : i32
    %c0_i32_139 = arith.constant 0 : i32
    %c0_i32_140 = arith.constant 0 : i32
    %123 = tpu.memref_slice %arg3[%c0_i32_136, %c0_i32_139, %c0_i32_140] : memref<2x512x256xbf16, #tpu.memory_space<any>> -> memref<1x512x256xbf16, #tpu.memory_space<any>>
    %124 = tpu.memref_squeeze %123 : memref<1x512x256xbf16, #tpu.memory_space<any>> -> memref<512x256xbf16, #tpu.memory_space<any>>
    %c0_i32_141 = arith.constant 0 : i32
    %c0_i32_142 = arith.constant 0 : i32
    %125 = tpu.memref_slice %arg22[%c0_i32_137, %c0_i32_141, %c0_i32_142] : memref<2x512x256xbf16, #tpu.memory_space<vmem>> -> memref<1x512x256xbf16, #tpu.memory_space<vmem>>
    %126 = tpu.memref_squeeze %125 : memref<1x512x256xbf16, #tpu.memory_space<vmem>> -> memref<512x256xbf16, #tpu.memory_space<vmem>>
    %127 = tpu.memref_slice %arg26[%c0_i32_138] : memref<2x!tpu.dma_semaphore, #tpu.memory_space<semaphore_mem>> -> memref<1x!tpu.dma_semaphore, #tpu.memory_space<semaphore_mem>>
    %128 = tpu.memref_squeeze %127 : memref<1x!tpu.dma_semaphore, #tpu.memory_space<semaphore_mem>> -> memref<!tpu.dma_semaphore, #tpu.memory_space<semaphore_mem>>
    tpu.enqueue_dma source(%124 : memref<512x256xbf16, #tpu.memory_space<any>>) target(%126 : memref<512x256xbf16, #tpu.memory_space<vmem>>) target_semaphore(%128 : memref<!tpu.dma_semaphore, #tpu.memory_space<semaphore_mem>>)
    %c0_143 = arith.constant 0 : index
    %c0_144 = arith.constant 0 : index
    %129 = vector.load %arg23[%c0_143, %c0_144] : memref<2x512xbf16, #tpu.memory_space<vmem>>, vector<2x512xbf16>
    %c1_145 = arith.constant 1 : index
    %c0_146 = arith.constant 0 : index
    %c0_147 = arith.constant 0 : index
    %130 = vector.load %arg22[%c1_145, %c0_146, %c0_147] : memref<2x512x256xbf16, #tpu.memory_space<vmem>>, vector<1x512x256xbf16>
    %131 = vector.shape_cast %130 : vector<1x512x256xbf16> to vector<512x256xbf16>
    %cst_148 = arith.constant dense<0.000000e+00> : vector<2x256xf32>
    %132 = tpu.matmul %129, %131, %cst_148 {dimension_numbers = #tpu.dot_dimension_numbers<[1], [0], [0], [1], [0, 0, 1, 1], [], []>} : vector<2x512xbf16>, vector<512x256xbf16>, vector<2x256xf32> -> vector<2x256xf32>
    %c0_149 = arith.constant 0 : index
    %c256_150 = arith.constant 256 : index
    %133 = vector.load %arg12[%c0_149, %c256_150] : memref<1x512xf32, #tpu.memory_space<vmem>>, vector<1x256xf32>
    %134 = vector.broadcast %133 : vector<1x256xf32> to vector<2x256xf32>
    %135 = arith.addf %132, %134 : vector<2x256xf32>
    %cst_151 = arith.constant 0.000000e+00 : f32
    %136 = vector.broadcast %cst_151 : f32 to vector<2x256xf32>
    %137 = arith.maximumf %135, %136 : vector<2x256xf32>
    %138 = arith.truncf %137 : vector<2x256xf32> to vector<2x256xbf16>
    %c0_152 = arith.constant 0 : index
    %c256_153 = arith.constant 256 : index
    %139 = vector.load %arg24[%c0_152, %c256_153] : memref<2x512xbf16, #tpu.memory_space<vmem>>, vector<2x256xbf16>
    tpu.vector_store %arg24[%c0_152, %c256_153], %138 {strides = array<i32>} : memref<2x512xbf16, #tpu.memory_space<vmem>>, vector<2x256xbf16>,
    %c0_i32_154 = arith.constant 0 : i32
    %c0_i32_155 = arith.constant 0 : i32
    %c0_i32_156 = arith.constant 0 : i32
    %c0_i32_157 = arith.constant 0 : i32
    %c0_i32_158 = arith.constant 0 : i32
    %140 = tpu.memref_slice %arg3[%c0_i32_154, %c0_i32_157, %c0_i32_158] : memref<2x512x256xbf16, #tpu.memory_space<any>> -> memref<1x512x256xbf16, #tpu.memory_space<any>>
    %141 = tpu.memref_squeeze %140 : memref<1x512x256xbf16, #tpu.memory_space<any>> -> memref<512x256xbf16, #tpu.memory_space<any>>
    %c0_i32_159 = arith.constant 0 : i32
    %c0_i32_160 = arith.constant 0 : i32
    %142 = tpu.memref_slice %arg22[%c0_i32_155, %c0_i32_159, %c0_i32_160] : memref<2x512x256xbf16, #tpu.memory_space<vmem>> -> memref<1x512x256xbf16, #tpu.memory_space<vmem>>
    %143 = tpu.memref_squeeze %142 : memref<1x512x256xbf16, #tpu.memory_space<vmem>> -> memref<512x256xbf16, #tpu.memory_space<vmem>>
    %144 = tpu.memref_slice %arg26[%c0_i32_156] : memref<2x!tpu.dma_semaphore, #tpu.memory_space<semaphore_mem>> -> memref<1x!tpu.dma_semaphore, #tpu.memory_space<semaphore_mem>>
    %145 = tpu.memref_squeeze %144 : memref<1x!tpu.dma_semaphore, #tpu.memory_space<semaphore_mem>> -> memref<!tpu.dma_semaphore, #tpu.memory_space<semaphore_mem>>
    tpu.wait_dma2 semaphore(%145 : memref<!tpu.dma_semaphore, #tpu.memory_space<semaphore_mem>>) src(%141 : memref<512x256xbf16, #tpu.memory_space<any>>) dst(%143 : memref<512x256xbf16, #tpu.memory_space<vmem>>)
    %c1_i32_161 = arith.constant 1 : i32
    %c1_i32_162 = arith.constant 1 : i32
    %c1_i32_163 = arith.constant 1 : i32
    %c0_i32_164 = arith.constant 0 : i32
    %c0_i32_165 = arith.constant 0 : i32
    %146 = tpu.memref_slice %arg3[%c1_i32_161, %c0_i32_164, %c0_i32_165] : memref<2x512x256xbf16, #tpu.memory_space<any>> -> memref<1x512x256xbf16, #tpu.memory_space<any>>
    %147 = tpu.memref_squeeze %146 : memref<1x512x256xbf16, #tpu.memory_space<any>> -> memref<512x256xbf16, #tpu.memory_space<any>>
    %c0_i32_166 = arith.constant 0 : i32
    %c0_i32_167 = arith.constant 0 : i32
    %148 = tpu.memref_slice %arg22[%c1_i32_162, %c0_i32_166, %c0_i32_167] : memref<2x512x256xbf16, #tpu.memory_space<vmem>> -> memref<1x512x256xbf16, #tpu.memory_space<vmem>>
    %149 = tpu.memref_squeeze %148 : memref<1x512x256xbf16, #tpu.memory_space<vmem>> -> memref<512x256xbf16, #tpu.memory_space<vmem>>
    %150 = tpu.memref_slice %arg26[%c1_i32_163] : memref<2x!tpu.dma_semaphore, #tpu.memory_space<semaphore_mem>> -> memref<1x!tpu.dma_semaphore, #tpu.memory_space<semaphore_mem>>
    %151 = tpu.memref_squeeze %150 : memref<1x!tpu.dma_semaphore, #tpu.memory_space<semaphore_mem>> -> memref<!tpu.dma_semaphore, #tpu.memory_space<semaphore_mem>>
    tpu.enqueue_dma source(%147 : memref<512x256xbf16, #tpu.memory_space<any>>) target(%149 : memref<512x256xbf16, #tpu.memory_space<vmem>>) target_semaphore(%151 : memref<!tpu.dma_semaphore, #tpu.memory_space<semaphore_mem>>)
    %c0_168 = arith.constant 0 : index
    %c0_169 = arith.constant 0 : index
    %152 = vector.load %arg24[%c0_168, %c0_169] : memref<2x512xbf16, #tpu.memory_space<vmem>>, vector<2x512xbf16>
    %c0_170 = arith.constant 0 : index
    %c0_171 = arith.constant 0 : index
    %c0_172 = arith.constant 0 : index
    %153 = vector.load %arg22[%c0_170, %c0_171, %c0_172] : memref<2x512x256xbf16, #tpu.memory_space<vmem>>, vector<1x512x256xbf16>
    %154 = vector.shape_cast %153 : vector<1x512x256xbf16> to vector<512x256xbf16>
    %cst_173 = arith.constant dense<0.000000e+00> : vector<2x256xf32>
    %155 = tpu.matmul %152, %154, %cst_173 {dimension_numbers = #tpu.dot_dimension_numbers<[1], [0], [0], [1], [0, 0, 1, 1], [], []>} : vector<2x512xbf16>, vector<512x256xbf16>, vector<2x256xf32> -> vector<2x256xf32>
    %c0_174 = arith.constant 0 : index
    %c0_175 = arith.constant 0 : index
    %156 = vector.load %arg13[%c0_174, %c0_175] : memref<1x512xf32, #tpu.memory_space<vmem>>, vector<1x256xf32>
    %157 = vector.broadcast %156 : vector<1x256xf32> to vector<2x256xf32>
    %158 = arith.addf %155, %157 : vector<2x256xf32>
    %cst_176 = arith.constant 0.000000e+00 : f32
    %159 = vector.broadcast %cst_176 : f32 to vector<2x256xf32>
    %160 = arith.maximumf %158, %159 : vector<2x256xf32>
    %161 = arith.truncf %160 : vector<2x256xf32> to vector<2x256xbf16>
    %c0_177 = arith.constant 0 : index
    %c0_178 = arith.constant 0 : index
    %162 = vector.load %arg23[%c0_177, %c0_178] : memref<2x512xbf16, #tpu.memory_space<vmem>>, vector<2x256xbf16>
    tpu.vector_store %arg23[%c0_177, %c0_178], %161 {strides = array<i32>} : memref<2x512xbf16, #tpu.memory_space<vmem>>, vector<2x256xbf16>,
    %c1_i32_179 = arith.constant 1 : i32
    %c1_i32_180 = arith.constant 1 : i32
    %c1_i32_181 = arith.constant 1 : i32
    %c0_i32_182 = arith.constant 0 : i32
    %c0_i32_183 = arith.constant 0 : i32
    %163 = tpu.memref_slice %arg3[%c1_i32_179, %c0_i32_182, %c0_i32_183] : memref<2x512x256xbf16, #tpu.memory_space<any>> -> memref<1x512x256xbf16, #tpu.memory_space<any>>
    %164 = tpu.memref_squeeze %163 : memref<1x512x256xbf16, #tpu.memory_space<any>> -> memref<512x256xbf16, #tpu.memory_space<any>>
    %c0_i32_184 = arith.constant 0 : i32
    %c0_i32_185 = arith.constant 0 : i32
    %165 = tpu.memref_slice %arg22[%c1_i32_180, %c0_i32_184, %c0_i32_185] : memref<2x512x256xbf16, #tpu.memory_space<vmem>> -> memref<1x512x256xbf16, #tpu.memory_space<vmem>>
    %166 = tpu.memref_squeeze %165 : memref<1x512x256xbf16, #tpu.memory_space<vmem>> -> memref<512x256xbf16, #tpu.memory_space<vmem>>
    %167 = tpu.memref_slice %arg26[%c1_i32_181] : memref<2x!tpu.dma_semaphore, #tpu.memory_space<semaphore_mem>> -> memref<1x!tpu.dma_semaphore, #tpu.memory_space<semaphore_mem>>
    %168 = tpu.memref_squeeze %167 : memref<1x!tpu.dma_semaphore, #tpu.memory_space<semaphore_mem>> -> memref<!tpu.dma_semaphore, #tpu.memory_space<semaphore_mem>>
    tpu.wait_dma2 semaphore(%168 : memref<!tpu.dma_semaphore, #tpu.memory_space<semaphore_mem>>) src(%164 : memref<512x256xbf16, #tpu.memory_space<any>>) dst(%166 : memref<512x256xbf16, #tpu.memory_space<vmem>>)
    %c0_i32_186 = arith.constant 0 : i32
    %c0_i32_187 = arith.constant 0 : i32
    %c0_i32_188 = arith.constant 0 : i32
    %c0_i32_189 = arith.constant 0 : i32
    %c0_i32_190 = arith.constant 0 : i32
    %169 = tpu.memref_slice %arg4[%c0_i32_186, %c0_i32_189, %c0_i32_190] : memref<2x512x256xbf16, #tpu.memory_space<any>> -> memref<1x512x256xbf16, #tpu.memory_space<any>>
    %170 = tpu.memref_squeeze %169 : memref<1x512x256xbf16, #tpu.memory_space<any>> -> memref<512x256xbf16, #tpu.memory_space<any>>
    %c0_i32_191 = arith.constant 0 : i32
    %c0_i32_192 = arith.constant 0 : i32
    %171 = tpu.memref_slice %arg22[%c0_i32_187, %c0_i32_191, %c0_i32_192] : memref<2x512x256xbf16, #tpu.memory_space<vmem>> -> memref<1x512x256xbf16, #tpu.memory_space<vmem>>
    %172 = tpu.memref_squeeze %171 : memref<1x512x256xbf16, #tpu.memory_space<vmem>> -> memref<512x256xbf16, #tpu.memory_space<vmem>>
    %173 = tpu.memref_slice %arg26[%c0_i32_188] : memref<2x!tpu.dma_semaphore, #tpu.memory_space<semaphore_mem>> -> memref<1x!tpu.dma_semaphore, #tpu.memory_space<semaphore_mem>>
    %174 = tpu.memref_squeeze %173 : memref<1x!tpu.dma_semaphore, #tpu.memory_space<semaphore_mem>> -> memref<!tpu.dma_semaphore, #tpu.memory_space<semaphore_mem>>
    tpu.enqueue_dma source(%170 : memref<512x256xbf16, #tpu.memory_space<any>>) target(%172 : memref<512x256xbf16, #tpu.memory_space<vmem>>) target_semaphore(%174 : memref<!tpu.dma_semaphore, #tpu.memory_space<semaphore_mem>>)
    %c0_193 = arith.constant 0 : index
    %c0_194 = arith.constant 0 : index
    %175 = vector.load %arg24[%c0_193, %c0_194] : memref<2x512xbf16, #tpu.memory_space<vmem>>, vector<2x512xbf16>
    %c1_195 = arith.constant 1 : index
    %c0_196 = arith.constant 0 : index
    %c0_197 = arith.constant 0 : index
    %176 = vector.load %arg22[%c1_195, %c0_196, %c0_197] : memref<2x512x256xbf16, #tpu.memory_space<vmem>>, vector<1x512x256xbf16>
    %177 = vector.shape_cast %176 : vector<1x512x256xbf16> to vector<512x256xbf16>
    %cst_198 = arith.constant dense<0.000000e+00> : vector<2x256xf32>
    %178 = tpu.matmul %175, %177, %cst_198 {dimension_numbers = #tpu.dot_dimension_numbers<[1], [0], [0], [1], [0, 0, 1, 1], [], []>} : vector<2x512xbf16>, vector<512x256xbf16>, vector<2x256xf32> -> vector<2x256xf32>
    %c0_199 = arith.constant 0 : index
    %c256_200 = arith.constant 256 : index
    %179 = vector.load %arg13[%c0_199, %c256_200] : memref<1x512xf32, #tpu.memory_space<vmem>>, vector<1x256xf32>
    %180 = vector.broadcast %179 : vector<1x256xf32> to vector<2x256xf32>
    %181 = arith.addf %178, %180 : vector<2x256xf32>
    %cst_201 = arith.constant 0.000000e+00 : f32
    %182 = vector.broadcast %cst_201 : f32 to vector<2x256xf32>
    %183 = arith.maximumf %181, %182 : vector<2x256xf32>
    %184 = arith.truncf %183 : vector<2x256xf32> to vector<2x256xbf16>
    %c0_202 = arith.constant 0 : index
    %c256_203 = arith.constant 256 : index
    %185 = vector.load %arg23[%c0_202, %c256_203] : memref<2x512xbf16, #tpu.memory_space<vmem>>, vector<2x256xbf16>
    tpu.vector_store %arg23[%c0_202, %c256_203], %184 {strides = array<i32>} : memref<2x512xbf16, #tpu.memory_space<vmem>>, vector<2x256xbf16>,
    %c0_i32_204 = arith.constant 0 : i32
    %c0_i32_205 = arith.constant 0 : i32
    %c0_i32_206 = arith.constant 0 : i32
    %c0_i32_207 = arith.constant 0 : i32
    %c0_i32_208 = arith.constant 0 : i32
    %186 = tpu.memref_slice %arg4[%c0_i32_204, %c0_i32_207, %c0_i32_208] : memref<2x512x256xbf16, #tpu.memory_space<any>> -> memref<1x512x256xbf16, #tpu.memory_space<any>>
    %187 = tpu.memref_squeeze %186 : memref<1x512x256xbf16, #tpu.memory_space<any>> -> memref<512x256xbf16, #tpu.memory_space<any>>
    %c0_i32_209 = arith.constant 0 : i32
    %c0_i32_210 = arith.constant 0 : i32
    %188 = tpu.memref_slice %arg22[%c0_i32_205, %c0_i32_209, %c0_i32_210] : memref<2x512x256xbf16, #tpu.memory_space<vmem>> -> memref<1x512x256xbf16, #tpu.memory_space<vmem>>
    %189 = tpu.memref_squeeze %188 : memref<1x512x256xbf16, #tpu.memory_space<vmem>> -> memref<512x256xbf16, #tpu.memory_space<vmem>>
    %190 = tpu.memref_slice %arg26[%c0_i32_206] : memref<2x!tpu.dma_semaphore, #tpu.memory_space<semaphore_mem>> -> memref<1x!tpu.dma_semaphore, #tpu.memory_space<semaphore_mem>>
    %191 = tpu.memref_squeeze %190 : memref<1x!tpu.dma_semaphore, #tpu.memory_space<semaphore_mem>> -> memref<!tpu.dma_semaphore, #tpu.memory_space<semaphore_mem>>
    tpu.wait_dma2 semaphore(%191 : memref<!tpu.dma_semaphore, #tpu.memory_space<semaphore_mem>>) src(%187 : memref<512x256xbf16, #tpu.memory_space<any>>) dst(%189 : memref<512x256xbf16, #tpu.memory_space<vmem>>)
    %c1_i32_211 = arith.constant 1 : i32
    %c1_i32_212 = arith.constant 1 : i32
    %c1_i32_213 = arith.constant 1 : i32
    %c0_i32_214 = arith.constant 0 : i32
    %c0_i32_215 = arith.constant 0 : i32
    %192 = tpu.memref_slice %arg4[%c1_i32_211, %c0_i32_214, %c0_i32_215] : memref<2x512x256xbf16, #tpu.memory_space<any>> -> memref<1x512x256xbf16, #tpu.memory_space<any>>
    %193 = tpu.memref_squeeze %192 : memref<1x512x256xbf16, #tpu.memory_space<any>> -> memref<512x256xbf16, #tpu.memory_space<any>>
    %c0_i32_216 = arith.constant 0 : i32
    %c0_i32_217 = arith.constant 0 : i32
    %194 = tpu.memref_slice %arg22[%c1_i32_212, %c0_i32_216, %c0_i32_217] : memref<2x512x256xbf16, #tpu.memory_space<vmem>> -> memref<1x512x256xbf16, #tpu.memory_space<vmem>>
    %195 = tpu.memref_squeeze %194 : memref<1x512x256xbf16, #tpu.memory_space<vmem>> -> memref<512x256xbf16, #tpu.memory_space<vmem>>
    %196 = tpu.memref_slice %arg26[%c1_i32_213] : memref<2x!tpu.dma_semaphore, #tpu.memory_space<semaphore_mem>> -> memref<1x!tpu.dma_semaphore, #tpu.memory_space<semaphore_mem>>
    %197 = tpu.memref_squeeze %196 : memref<1x!tpu.dma_semaphore, #tpu.memory_space<semaphore_mem>> -> memref<!tpu.dma_semaphore, #tpu.memory_space<semaphore_mem>>
    tpu.enqueue_dma source(%193 : memref<512x256xbf16, #tpu.memory_space<any>>) target(%195 : memref<512x256xbf16, #tpu.memory_space<vmem>>) target_semaphore(%197 : memref<!tpu.dma_semaphore, #tpu.memory_space<semaphore_mem>>)
    %c0_218 = arith.constant 0 : index
    %c0_219 = arith.constant 0 : index
    %198 = vector.load %arg23[%c0_218, %c0_219] : memref<2x512xbf16, #tpu.memory_space<vmem>>, vector<2x512xbf16>
    %c0_220 = arith.constant 0 : index
    %c0_221 = arith.constant 0 : index
    %c0_222 = arith.constant 0 : index
    %199 = vector.load %arg22[%c0_220, %c0_221, %c0_222] : memref<2x512x256xbf16, #tpu.memory_space<vmem>>, vector<1x512x256xbf16>
    %200 = vector.shape_cast %199 : vector<1x512x256xbf16> to vector<512x256xbf16>
    %cst_223 = arith.constant dense<0.000000e+00> : vector<2x256xf32>
    %201 = tpu.matmul %198, %200, %cst_223 {dimension_numbers = #tpu.dot_dimension_numbers<[1], [0], [0], [1], [0, 0, 1, 1], [], []>} : vector<2x512xbf16>, vector<512x256xbf16>, vector<2x256xf32> -> vector<2x256xf32>
    %c0_224 = arith.constant 0 : index
    %c0_225 = arith.constant 0 : index
    %202 = vector.load %arg14[%c0_224, %c0_225] : memref<1x512xf32, #tpu.memory_space<vmem>>, vector<1x256xf32>
    %203 = vector.broadcast %202 : vector<1x256xf32> to vector<2x256xf32>
    %204 = arith.addf %201, %203 : vector<2x256xf32>
    %cst_226 = arith.constant 0.000000e+00 : f32
    %205 = vector.broadcast %cst_226 : f32 to vector<2x256xf32>
    %206 = arith.maximumf %204, %205 : vector<2x256xf32>
    %207 = arith.truncf %206 : vector<2x256xf32> to vector<2x256xbf16>
    %c0_227 = arith.constant 0 : index
    %c0_228 = arith.constant 0 : index
    %208 = vector.load %arg24[%c0_227, %c0_228] : memref<2x512xbf16, #tpu.memory_space<vmem>>, vector<2x256xbf16>
    tpu.vector_store %arg24[%c0_227, %c0_228], %207 {strides = array<i32>} : memref<2x512xbf16, #tpu.memory_space<vmem>>, vector<2x256xbf16>,
    %c1_i32_229 = arith.constant 1 : i32
    %c1_i32_230 = arith.constant 1 : i32
    %c1_i32_231 = arith.constant 1 : i32
    %c0_i32_232 = arith.constant 0 : i32
    %c0_i32_233 = arith.constant 0 : i32
    %209 = tpu.memref_slice %arg4[%c1_i32_229, %c0_i32_232, %c0_i32_233] : memref<2x512x256xbf16, #tpu.memory_space<any>> -> memref<1x512x256xbf16, #tpu.memory_space<any>>
    %210 = tpu.memref_squeeze %209 : memref<1x512x256xbf16, #tpu.memory_space<any>> -> memref<512x256xbf16, #tpu.memory_space<any>>
    %c0_i32_234 = arith.constant 0 : i32
    %c0_i32_235 = arith.constant 0 : i32
    %211 = tpu.memref_slice %arg22[%c1_i32_230, %c0_i32_234, %c0_i32_235] : memref<2x512x256xbf16, #tpu.memory_space<vmem>> -> memref<1x512x256xbf16, #tpu.memory_space<vmem>>
    %212 = tpu.memref_squeeze %211 : memref<1x512x256xbf16, #tpu.memory_space<vmem>> -> memref<512x256xbf16, #tpu.memory_space<vmem>>
    %213 = tpu.memref_slice %arg26[%c1_i32_231] : memref<2x!tpu.dma_semaphore, #tpu.memory_space<semaphore_mem>> -> memref<1x!tpu.dma_semaphore, #tpu.memory_space<semaphore_mem>>
    %214 = tpu.memref_squeeze %213 : memref<1x!tpu.dma_semaphore, #tpu.memory_space<semaphore_mem>> -> memref<!tpu.dma_semaphore, #tpu.memory_space<semaphore_mem>>
    tpu.wait_dma2 semaphore(%214 : memref<!tpu.dma_semaphore, #tpu.memory_space<semaphore_mem>>) src(%210 : memref<512x256xbf16, #tpu.memory_space<any>>) dst(%212 : memref<512x256xbf16, #tpu.memory_space<vmem>>)
    %c0_i32_236 = arith.constant 0 : i32
    %c0_i32_237 = arith.constant 0 : i32
    %c0_i32_238 = arith.constant 0 : i32
    %c0_i32_239 = arith.constant 0 : i32
    %c0_i32_240 = arith.constant 0 : i32
    %215 = tpu.memref_slice %arg5[%c0_i32_236, %c0_i32_239, %c0_i32_240] : memref<2x512x256xbf16, #tpu.memory_space<any>> -> memref<1x512x256xbf16, #tpu.memory_space<any>>
    %216 = tpu.memref_squeeze %215 : memref<1x512x256xbf16, #tpu.memory_space<any>> -> memref<512x256xbf16, #tpu.memory_space<any>>
    %c0_i32_241 = arith.constant 0 : i32
    %c0_i32_242 = arith.constant 0 : i32
    %217 = tpu.memref_slice %arg22[%c0_i32_237, %c0_i32_241, %c0_i32_242] : memref<2x512x256xbf16, #tpu.memory_space<vmem>> -> memref<1x512x256xbf16, #tpu.memory_space<vmem>>
    %218 = tpu.memref_squeeze %217 : memref<1x512x256xbf16, #tpu.memory_space<vmem>> -> memref<512x256xbf16, #tpu.memory_space<vmem>>
    %219 = tpu.memref_slice %arg26[%c0_i32_238] : memref<2x!tpu.dma_semaphore, #tpu.memory_space<semaphore_mem>> -> memref<1x!tpu.dma_semaphore, #tpu.memory_space<semaphore_mem>>
    %220 = tpu.memref_squeeze %219 : memref<1x!tpu.dma_semaphore, #tpu.memory_space<semaphore_mem>> -> memref<!tpu.dma_semaphore, #tpu.memory_space<semaphore_mem>>
    tpu.enqueue_dma source(%216 : memref<512x256xbf16, #tpu.memory_space<any>>) target(%218 : memref<512x256xbf16, #tpu.memory_space<vmem>>) target_semaphore(%220 : memref<!tpu.dma_semaphore, #tpu.memory_space<semaphore_mem>>)
    %c0_243 = arith.constant 0 : index
    %c0_244 = arith.constant 0 : index
    %221 = vector.load %arg23[%c0_243, %c0_244] : memref<2x512xbf16, #tpu.memory_space<vmem>>, vector<2x512xbf16>
    %c1_245 = arith.constant 1 : index
    %c0_246 = arith.constant 0 : index
    %c0_247 = arith.constant 0 : index
    %222 = vector.load %arg22[%c1_245, %c0_246, %c0_247] : memref<2x512x256xbf16, #tpu.memory_space<vmem>>, vector<1x512x256xbf16>
    %223 = vector.shape_cast %222 : vector<1x512x256xbf16> to vector<512x256xbf16>
    %cst_248 = arith.constant dense<0.000000e+00> : vector<2x256xf32>
    %224 = tpu.matmul %221, %223, %cst_248 {dimension_numbers = #tpu.dot_dimension_numbers<[1], [0], [0], [1], [0, 0, 1, 1], [], []>} : vector<2x512xbf16>, vector<512x256xbf16>, vector<2x256xf32> -> vector<2x256xf32>
    %c0_249 = arith.constant 0 : index
    %c256_250 = arith.constant 256 : index
    %225 = vector.load %arg14[%c0_249, %c256_250] : memref<1x512xf32, #tpu.memory_space<vmem>>, vector<1x256xf32>
    %226 = vector.broadcast %225 : vector<1x256xf32> to vector<2x256xf32>
    %227 = arith.addf %224, %226 : vector<2x256xf32>
    %cst_251 = arith.constant 0.000000e+00 : f32
    %228 = vector.broadcast %cst_251 : f32 to vector<2x256xf32>
    %229 = arith.maximumf %227, %228 : vector<2x256xf32>
    %230 = arith.truncf %229 : vector<2x256xf32> to vector<2x256xbf16>
    %c0_252 = arith.constant 0 : index
    %c256_253 = arith.constant 256 : index
    %231 = vector.load %arg24[%c0_252, %c256_253] : memref<2x512xbf16, #tpu.memory_space<vmem>>, vector<2x256xbf16>
    tpu.vector_store %arg24[%c0_252, %c256_253], %230 {strides = array<i32>} : memref<2x512xbf16, #tpu.memory_space<vmem>>, vector<2x256xbf16>,
    %c0_i32_254 = arith.constant 0 : i32
    %c0_i32_255 = arith.constant 0 : i32
    %c0_i32_256 = arith.constant 0 : i32
    %c0_i32_257 = arith.constant 0 : i32
    %c0_i32_258 = arith.constant 0 : i32
    %232 = tpu.memref_slice %arg5[%c0_i32_254, %c0_i32_257, %c0_i32_258] : memref<2x512x256xbf16, #tpu.memory_space<any>> -> memref<1x512x256xbf16, #tpu.memory_space<any>>
    %233 = tpu.memref_squeeze %232 : memref<1x512x256xbf16, #tpu.memory_space<any>> -> memref<512x256xbf16, #tpu.memory_space<any>>
    %c0_i32_259 = arith.constant 0 : i32
    %c0_i32_260 = arith.constant 0 : i32
    %234 = tpu.memref_slice %arg22[%c0_i32_255, %c0_i32_259, %c0_i32_260] : memref<2x512x256xbf16, #tpu.memory_space<vmem>> -> memref<1x512x256xbf16, #tpu.memory_space<vmem>>
    %235 = tpu.memref_squeeze %234 : memref<1x512x256xbf16, #tpu.memory_space<vmem>> -> memref<512x256xbf16, #tpu.memory_space<vmem>>
    %236 = tpu.memref_slice %arg26[%c0_i32_256] : memref<2x!tpu.dma_semaphore, #tpu.memory_space<semaphore_mem>> -> memref<1x!tpu.dma_semaphore, #tpu.memory_space<semaphore_mem>>
    %237 = tpu.memref_squeeze %236 : memref<1x!tpu.dma_semaphore, #tpu.memory_space<semaphore_mem>> -> memref<!tpu.dma_semaphore, #tpu.memory_space<semaphore_mem>>
    tpu.wait_dma2 semaphore(%237 : memref<!tpu.dma_semaphore, #tpu.memory_space<semaphore_mem>>) src(%233 : memref<512x256xbf16, #tpu.memory_space<any>>) dst(%235 : memref<512x256xbf16, #tpu.memory_space<vmem>>)
    %c1_i32_261 = arith.constant 1 : i32
    %c1_i32_262 = arith.constant 1 : i32
    %c1_i32_263 = arith.constant 1 : i32
    %c0_i32_264 = arith.constant 0 : i32
    %c0_i32_265 = arith.constant 0 : i32
    %238 = tpu.memref_slice %arg5[%c1_i32_261, %c0_i32_264, %c0_i32_265] : memref<2x512x256xbf16, #tpu.memory_space<any>> -> memref<1x512x256xbf16, #tpu.memory_space<any>>
    %239 = tpu.memref_squeeze %238 : memref<1x512x256xbf16, #tpu.memory_space<any>> -> memref<512x256xbf16, #tpu.memory_space<any>>
    %c0_i32_266 = arith.constant 0 : i32
    %c0_i32_267 = arith.constant 0 : i32
    %240 = tpu.memref_slice %arg22[%c1_i32_262, %c0_i32_266, %c0_i32_267] : memref<2x512x256xbf16, #tpu.memory_space<vmem>> -> memref<1x512x256xbf16, #tpu.memory_space<vmem>>
    %241 = tpu.memref_squeeze %240 : memref<1x512x256xbf16, #tpu.memory_space<vmem>> -> memref<512x256xbf16, #tpu.memory_space<vmem>>
    %242 = tpu.memref_slice %arg26[%c1_i32_263] : memref<2x!tpu.dma_semaphore, #tpu.memory_space<semaphore_mem>> -> memref<1x!tpu.dma_semaphore, #tpu.memory_space<semaphore_mem>>
    %243 = tpu.memref_squeeze %242 : memref<1x!tpu.dma_semaphore, #tpu.memory_space<semaphore_mem>> -> memref<!tpu.dma_semaphore, #tpu.memory_space<semaphore_mem>>
    tpu.enqueue_dma source(%239 : memref<512x256xbf16, #tpu.memory_space<any>>) target(%241 : memref<512x256xbf16, #tpu.memory_space<vmem>>) target_semaphore(%243 : memref<!tpu.dma_semaphore, #tpu.memory_space<semaphore_mem>>)
    %c0_268 = arith.constant 0 : index
    %c0_269 = arith.constant 0 : index
    %244 = vector.load %arg24[%c0_268, %c0_269] : memref<2x512xbf16, #tpu.memory_space<vmem>>, vector<2x512xbf16>
    %c0_270 = arith.constant 0 : index
    %c0_271 = arith.constant 0 : index
    %c0_272 = arith.constant 0 : index
    %245 = vector.load %arg22[%c0_270, %c0_271, %c0_272] : memref<2x512x256xbf16, #tpu.memory_space<vmem>>, vector<1x512x256xbf16>
    %246 = vector.shape_cast %245 : vector<1x512x256xbf16> to vector<512x256xbf16>
    %cst_273 = arith.constant dense<0.000000e+00> : vector<2x256xf32>
    %247 = tpu.matmul %244, %246, %cst_273 {dimension_numbers = #tpu.dot_dimension_numbers<[1], [0], [0], [1], [0, 0, 1, 1], [], []>} : vector<2x512xbf16>, vector<512x256xbf16>, vector<2x256xf32> -> vector<2x256xf32>
    %c0_274 = arith.constant 0 : index
    %c0_275 = arith.constant 0 : index
    %248 = vector.load %arg15[%c0_274, %c0_275] : memref<1x512xf32, #tpu.memory_space<vmem>>, vector<1x256xf32>
    %249 = vector.broadcast %248 : vector<1x256xf32> to vector<2x256xf32>
    %250 = arith.addf %247, %249 : vector<2x256xf32>
    %cst_276 = arith.constant 0.000000e+00 : f32
    %251 = vector.broadcast %cst_276 : f32 to vector<2x256xf32>
    %252 = arith.maximumf %250, %251 : vector<2x256xf32>
    %253 = arith.truncf %252 : vector<2x256xf32> to vector<2x256xbf16>
    %c0_277 = arith.constant 0 : index
    %c0_278 = arith.constant 0 : index
    %254 = vector.load %arg23[%c0_277, %c0_278] : memref<2x512xbf16, #tpu.memory_space<vmem>>, vector<2x256xbf16>
    tpu.vector_store %arg23[%c0_277, %c0_278], %253 {strides = array<i32>} : memref<2x512xbf16, #tpu.memory_space<vmem>>, vector<2x256xbf16>,
    %c1_i32_279 = arith.constant 1 : i32
    %c1_i32_280 = arith.constant 1 : i32
    %c1_i32_281 = arith.constant 1 : i32
    %c0_i32_282 = arith.constant 0 : i32
    %c0_i32_283 = arith.constant 0 : i32
    %255 = tpu.memref_slice %arg5[%c1_i32_279, %c0_i32_282, %c0_i32_283] : memref<2x512x256xbf16, #tpu.memory_space<any>> -> memref<1x512x256xbf16, #tpu.memory_space<any>>
    %256 = tpu.memref_squeeze %255 : memref<1x512x256xbf16, #tpu.memory_space<any>> -> memref<512x256xbf16, #tpu.memory_space<any>>
    %c0_i32_284 = arith.constant 0 : i32
    %c0_i32_285 = arith.constant 0 : i32
    %257 = tpu.memref_slice %arg22[%c1_i32_280, %c0_i32_284, %c0_i32_285] : memref<2x512x256xbf16, #tpu.memory_space<vmem>> -> memref<1x512x256xbf16, #tpu.memory_space<vmem>>
    %258 = tpu.memref_squeeze %257 : memref<1x512x256xbf16, #tpu.memory_space<vmem>> -> memref<512x256xbf16, #tpu.memory_space<vmem>>
    %259 = tpu.memref_slice %arg26[%c1_i32_281] : memref<2x!tpu.dma_semaphore, #tpu.memory_space<semaphore_mem>> -> memref<1x!tpu.dma_semaphore, #tpu.memory_space<semaphore_mem>>
    %260 = tpu.memref_squeeze %259 : memref<1x!tpu.dma_semaphore, #tpu.memory_space<semaphore_mem>> -> memref<!tpu.dma_semaphore, #tpu.memory_space<semaphore_mem>>
    tpu.wait_dma2 semaphore(%260 : memref<!tpu.dma_semaphore, #tpu.memory_space<semaphore_mem>>) src(%256 : memref<512x256xbf16, #tpu.memory_space<any>>) dst(%258 : memref<512x256xbf16, #tpu.memory_space<vmem>>)
    %c0_i32_286 = arith.constant 0 : i32
    %c0_i32_287 = arith.constant 0 : i32
    %c0_i32_288 = arith.constant 0 : i32
    %c0_i32_289 = arith.constant 0 : i32
    %c0_i32_290 = arith.constant 0 : i32
    %261 = tpu.memref_slice %arg6[%c0_i32_286, %c0_i32_289, %c0_i32_290] : memref<2x512x256xbf16, #tpu.memory_space<any>> -> memref<1x512x256xbf16, #tpu.memory_space<any>>
    %262 = tpu.memref_squeeze %261 : memref<1x512x256xbf16, #tpu.memory_space<any>> -> memref<512x256xbf16, #tpu.memory_space<any>>
    %c0_i32_291 = arith.constant 0 : i32
    %c0_i32_292 = arith.constant 0 : i32
    %263 = tpu.memref_slice %arg22[%c0_i32_287, %c0_i32_291, %c0_i32_292] : memref<2x512x256xbf16, #tpu.memory_space<vmem>> -> memref<1x512x256xbf16, #tpu.memory_space<vmem>>
    %264 = tpu.memref_squeeze %263 : memref<1x512x256xbf16, #tpu.memory_space<vmem>> -> memref<512x256xbf16, #tpu.memory_space<vmem>>
    %265 = tpu.memref_slice %arg26[%c0_i32_288] : memref<2x!tpu.dma_semaphore, #tpu.memory_space<semaphore_mem>> -> memref<1x!tpu.dma_semaphore, #tpu.memory_space<semaphore_mem>>
    %266 = tpu.memref_squeeze %265 : memref<1x!tpu.dma_semaphore, #tpu.memory_space<semaphore_mem>> -> memref<!tpu.dma_semaphore, #tpu.memory_space<semaphore_mem>>
    tpu.enqueue_dma source(%262 : memref<512x256xbf16, #tpu.memory_space<any>>) target(%264 : memref<512x256xbf16, #tpu.memory_space<vmem>>) target_semaphore(%266 : memref<!tpu.dma_semaphore, #tpu.memory_space<semaphore_mem>>)
    %c0_293 = arith.constant 0 : index
    %c0_294 = arith.constant 0 : index
    %267 = vector.load %arg24[%c0_293, %c0_294] : memref<2x512xbf16, #tpu.memory_space<vmem>>, vector<2x512xbf16>
    %c1_295 = arith.constant 1 : index
    %c0_296 = arith.constant 0 : index
    %c0_297 = arith.constant 0 : index
    %268 = vector.load %arg22[%c1_295, %c0_296, %c0_297] : memref<2x512x256xbf16, #tpu.memory_space<vmem>>, vector<1x512x256xbf16>
    %269 = vector.shape_cast %268 : vector<1x512x256xbf16> to vector<512x256xbf16>
    %cst_298 = arith.constant dense<0.000000e+00> : vector<2x256xf32>
    %270 = tpu.matmul %267, %269, %cst_298 {dimension_numbers = #tpu.dot_dimension_numbers<[1], [0], [0], [1], [0, 0, 1, 1], [], []>} : vector<2x512xbf16>, vector<512x256xbf16>, vector<2x256xf32> -> vector<2x256xf32>
    %c0_299 = arith.constant 0 : index
    %c256_300 = arith.constant 256 : index
    %271 = vector.load %arg15[%c0_299, %c256_300] : memref<1x512xf32, #tpu.memory_space<vmem>>, vector<1x256xf32>
    %272 = vector.broadcast %271 : vector<1x256xf32> to vector<2x256xf32>
    %273 = arith.addf %270, %272 : vector<2x256xf32>
    %cst_301 = arith.constant 0.000000e+00 : f32
    %274 = vector.broadcast %cst_301 : f32 to vector<2x256xf32>
    %275 = arith.maximumf %273, %274 : vector<2x256xf32>
    %276 = arith.truncf %275 : vector<2x256xf32> to vector<2x256xbf16>
    %c0_302 = arith.constant 0 : index
    %c256_303 = arith.constant 256 : index
    %277 = vector.load %arg23[%c0_302, %c256_303] : memref<2x512xbf16, #tpu.memory_space<vmem>>, vector<2x256xbf16>
    tpu.vector_store %arg23[%c0_302, %c256_303], %276 {strides = array<i32>} : memref<2x512xbf16, #tpu.memory_space<vmem>>, vector<2x256xbf16>,
    %c0_i32_304 = arith.constant 0 : i32
    %c0_i32_305 = arith.constant 0 : i32
    %c0_i32_306 = arith.constant 0 : i32
    %c0_i32_307 = arith.constant 0 : i32
    %c0_i32_308 = arith.constant 0 : i32
    %278 = tpu.memref_slice %arg6[%c0_i32_304, %c0_i32_307, %c0_i32_308] : memref<2x512x256xbf16, #tpu.memory_space<any>> -> memref<1x512x256xbf16, #tpu.memory_space<any>>
    %279 = tpu.memref_squeeze %278 : memref<1x512x256xbf16, #tpu.memory_space<any>> -> memref<512x256xbf16, #tpu.memory_space<any>>
    %c0_i32_309 = arith.constant 0 : i32
    %c0_i32_310 = arith.constant 0 : i32
    %280 = tpu.memref_slice %arg22[%c0_i32_305, %c0_i32_309, %c0_i32_310] : memref<2x512x256xbf16, #tpu.memory_space<vmem>> -> memref<1x512x256xbf16, #tpu.memory_space<vmem>>
    %281 = tpu.memref_squeeze %280 : memref<1x512x256xbf16, #tpu.memory_space<vmem>> -> memref<512x256xbf16, #tpu.memory_space<vmem>>
    %282 = tpu.memref_slice %arg26[%c0_i32_306] : memref<2x!tpu.dma_semaphore, #tpu.memory_space<semaphore_mem>> -> memref<1x!tpu.dma_semaphore, #tpu.memory_space<semaphore_mem>>
    %283 = tpu.memref_squeeze %282 : memref<1x!tpu.dma_semaphore, #tpu.memory_space<semaphore_mem>> -> memref<!tpu.dma_semaphore, #tpu.memory_space<semaphore_mem>>
    tpu.wait_dma2 semaphore(%283 : memref<!tpu.dma_semaphore, #tpu.memory_space<semaphore_mem>>) src(%279 : memref<512x256xbf16, #tpu.memory_space<any>>) dst(%281 : memref<512x256xbf16, #tpu.memory_space<vmem>>)
    %c1_i32_311 = arith.constant 1 : i32
    %c1_i32_312 = arith.constant 1 : i32
    %c1_i32_313 = arith.constant 1 : i32
    %c0_i32_314 = arith.constant 0 : i32
    %c0_i32_315 = arith.constant 0 : i32
    %284 = tpu.memref_slice %arg6[%c1_i32_311, %c0_i32_314, %c0_i32_315] : memref<2x512x256xbf16, #tpu.memory_space<any>> -> memref<1x512x256xbf16, #tpu.memory_space<any>>
    %285 = tpu.memref_squeeze %284 : memref<1x512x256xbf16, #tpu.memory_space<any>> -> memref<512x256xbf16, #tpu.memory_space<any>>
    %c0_i32_316 = arith.constant 0 : i32
    %c0_i32_317 = arith.constant 0 : i32
    %286 = tpu.memref_slice %arg22[%c1_i32_312, %c0_i32_316, %c0_i32_317] : memref<2x512x256xbf16, #tpu.memory_space<vmem>> -> memref<1x512x256xbf16, #tpu.memory_space<vmem>>
    %287 = tpu.memref_squeeze %286 : memref<1x512x256xbf16, #tpu.memory_space<vmem>> -> memref<512x256xbf16, #tpu.memory_space<vmem>>
    %288 = tpu.memref_slice %arg26[%c1_i32_313] : memref<2x!tpu.dma_semaphore, #tpu.memory_space<semaphore_mem>> -> memref<1x!tpu.dma_semaphore, #tpu.memory_space<semaphore_mem>>
    %289 = tpu.memref_squeeze %288 : memref<1x!tpu.dma_semaphore, #tpu.memory_space<semaphore_mem>> -> memref<!tpu.dma_semaphore, #tpu.memory_space<semaphore_mem>>
    tpu.enqueue_dma source(%285 : memref<512x256xbf16, #tpu.memory_space<any>>) target(%287 : memref<512x256xbf16, #tpu.memory_space<vmem>>) target_semaphore(%289 : memref<!tpu.dma_semaphore, #tpu.memory_space<semaphore_mem>>)
    %c0_318 = arith.constant 0 : index
    %c0_319 = arith.constant 0 : index
    %290 = vector.load %arg23[%c0_318, %c0_319] : memref<2x512xbf16, #tpu.memory_space<vmem>>, vector<2x512xbf16>
    %c0_320 = arith.constant 0 : index
    %c0_321 = arith.constant 0 : index
    %c0_322 = arith.constant 0 : index
    %291 = vector.load %arg22[%c0_320, %c0_321, %c0_322] : memref<2x512x256xbf16, #tpu.memory_space<vmem>>, vector<1x512x256xbf16>
    %292 = vector.shape_cast %291 : vector<1x512x256xbf16> to vector<512x256xbf16>
    %cst_323 = arith.constant dense<0.000000e+00> : vector<2x256xf32>
    %293 = tpu.matmul %290, %292, %cst_323 {dimension_numbers = #tpu.dot_dimension_numbers<[1], [0], [0], [1], [0, 0, 1, 1], [], []>} : vector<2x512xbf16>, vector<512x256xbf16>, vector<2x256xf32> -> vector<2x256xf32>
    %c0_324 = arith.constant 0 : index
    %c0_325 = arith.constant 0 : index
    %294 = vector.load %arg16[%c0_324, %c0_325] : memref<1x512xf32, #tpu.memory_space<vmem>>, vector<1x256xf32>
    %295 = vector.broadcast %294 : vector<1x256xf32> to vector<2x256xf32>
    %296 = arith.addf %293, %295 : vector<2x256xf32>
    %cst_326 = arith.constant 0.000000e+00 : f32
    %297 = vector.broadcast %cst_326 : f32 to vector<2x256xf32>
    %298 = arith.maximumf %296, %297 : vector<2x256xf32>
    %299 = arith.truncf %298 : vector<2x256xf32> to vector<2x256xbf16>
    %c0_327 = arith.constant 0 : index
    %c0_328 = arith.constant 0 : index
    %300 = vector.load %arg24[%c0_327, %c0_328] : memref<2x512xbf16, #tpu.memory_space<vmem>>, vector<2x256xbf16>
    tpu.vector_store %arg24[%c0_327, %c0_328], %299 {strides = array<i32>} : memref<2x512xbf16, #tpu.memory_space<vmem>>, vector<2x256xbf16>,
    %c1_i32_329 = arith.constant 1 : i32
    %c1_i32_330 = arith.constant 1 : i32
    %c1_i32_331 = arith.constant 1 : i32
    %c0_i32_332 = arith.constant 0 : i32
    %c0_i32_333 = arith.constant 0 : i32
    %301 = tpu.memref_slice %arg6[%c1_i32_329, %c0_i32_332, %c0_i32_333] : memref<2x512x256xbf16, #tpu.memory_space<any>> -> memref<1x512x256xbf16, #tpu.memory_space<any>>
    %302 = tpu.memref_squeeze %301 : memref<1x512x256xbf16, #tpu.memory_space<any>> -> memref<512x256xbf16, #tpu.memory_space<any>>
    %c0_i32_334 = arith.constant 0 : i32
    %c0_i32_335 = arith.constant 0 : i32
    %303 = tpu.memref_slice %arg22[%c1_i32_330, %c0_i32_334, %c0_i32_335] : memref<2x512x256xbf16, #tpu.memory_space<vmem>> -> memref<1x512x256xbf16, #tpu.memory_space<vmem>>
    %304 = tpu.memref_squeeze %303 : memref<1x512x256xbf16, #tpu.memory_space<vmem>> -> memref<512x256xbf16, #tpu.memory_space<vmem>>
    %305 = tpu.memref_slice %arg26[%c1_i32_331] : memref<2x!tpu.dma_semaphore, #tpu.memory_space<semaphore_mem>> -> memref<1x!tpu.dma_semaphore, #tpu.memory_space<semaphore_mem>>
    %306 = tpu.memref_squeeze %305 : memref<1x!tpu.dma_semaphore, #tpu.memory_space<semaphore_mem>> -> memref<!tpu.dma_semaphore, #tpu.memory_space<semaphore_mem>>
    tpu.wait_dma2 semaphore(%306 : memref<!tpu.dma_semaphore, #tpu.memory_space<semaphore_mem>>) src(%302 : memref<512x256xbf16, #tpu.memory_space<any>>) dst(%304 : memref<512x256xbf16, #tpu.memory_space<vmem>>)
    %c0_i32_336 = arith.constant 0 : i32
    %c0_i32_337 = arith.constant 0 : i32
    %c0_i32_338 = arith.constant 0 : i32
    %c0_i32_339 = arith.constant 0 : i32
    %c0_i32_340 = arith.constant 0 : i32
    %307 = tpu.memref_slice %arg7[%c0_i32_336, %c0_i32_339, %c0_i32_340] : memref<2x512x256xbf16, #tpu.memory_space<any>> -> memref<1x512x256xbf16, #tpu.memory_space<any>>
    %308 = tpu.memref_squeeze %307 : memref<1x512x256xbf16, #tpu.memory_space<any>> -> memref<512x256xbf16, #tpu.memory_space<any>>
    %c0_i32_341 = arith.constant 0 : i32
    %c0_i32_342 = arith.constant 0 : i32
    %309 = tpu.memref_slice %arg22[%c0_i32_337, %c0_i32_341, %c0_i32_342] : memref<2x512x256xbf16, #tpu.memory_space<vmem>> -> memref<1x512x256xbf16, #tpu.memory_space<vmem>>
    %310 = tpu.memref_squeeze %309 : memref<1x512x256xbf16, #tpu.memory_space<vmem>> -> memref<512x256xbf16, #tpu.memory_space<vmem>>
    %311 = tpu.memref_slice %arg26[%c0_i32_338] : memref<2x!tpu.dma_semaphore, #tpu.memory_space<semaphore_mem>> -> memref<1x!tpu.dma_semaphore, #tpu.memory_space<semaphore_mem>>
    %312 = tpu.memref_squeeze %311 : memref<1x!tpu.dma_semaphore, #tpu.memory_space<semaphore_mem>> -> memref<!tpu.dma_semaphore, #tpu.memory_space<semaphore_mem>>
    tpu.enqueue_dma source(%308 : memref<512x256xbf16, #tpu.memory_space<any>>) target(%310 : memref<512x256xbf16, #tpu.memory_space<vmem>>) target_semaphore(%312 : memref<!tpu.dma_semaphore, #tpu.memory_space<semaphore_mem>>)
    %c0_343 = arith.constant 0 : index
    %c0_344 = arith.constant 0 : index
    %313 = vector.load %arg23[%c0_343, %c0_344] : memref<2x512xbf16, #tpu.memory_space<vmem>>, vector<2x512xbf16>
    %c1_345 = arith.constant 1 : index
    %c0_346 = arith.constant 0 : index
    %c0_347 = arith.constant 0 : index
    %314 = vector.load %arg22[%c1_345, %c0_346, %c0_347] : memref<2x512x256xbf16, #tpu.memory_space<vmem>>, vector<1x512x256xbf16>
    %315 = vector.shape_cast %314 : vector<1x512x256xbf16> to vector<512x256xbf16>
    %cst_348 = arith.constant dense<0.000000e+00> : vector<2x256xf32>
    %316 = tpu.matmul %313, %315, %cst_348 {dimension_numbers = #tpu.dot_dimension_numbers<[1], [0], [0], [1], [0, 0, 1, 1], [], []>} : vector<2x512xbf16>, vector<512x256xbf16>, vector<2x256xf32> -> vector<2x256xf32>
    %c0_349 = arith.constant 0 : index
    %c256_350 = arith.constant 256 : index
    %317 = vector.load %arg16[%c0_349, %c256_350] : memref<1x512xf32, #tpu.memory_space<vmem>>, vector<1x256xf32>
    %318 = vector.broadcast %317 : vector<1x256xf32> to vector<2x256xf32>
    %319 = arith.addf %316, %318 : vector<2x256xf32>
    %cst_351 = arith.constant 0.000000e+00 : f32
    %320 = vector.broadcast %cst_351 : f32 to vector<2x256xf32>
    %321 = arith.maximumf %319, %320 : vector<2x256xf32>
    %322 = arith.truncf %321 : vector<2x256xf32> to vector<2x256xbf16>
    %c0_352 = arith.constant 0 : index
    %c256_353 = arith.constant 256 : index
    %323 = vector.load %arg24[%c0_352, %c256_353] : memref<2x512xbf16, #tpu.memory_space<vmem>>, vector<2x256xbf16>
    tpu.vector_store %arg24[%c0_352, %c256_353], %322 {strides = array<i32>} : memref<2x512xbf16, #tpu.memory_space<vmem>>, vector<2x256xbf16>,
    %c0_i32_354 = arith.constant 0 : i32
    %c0_i32_355 = arith.constant 0 : i32
    %c0_i32_356 = arith.constant 0 : i32
    %c0_i32_357 = arith.constant 0 : i32
    %c0_i32_358 = arith.constant 0 : i32
    %324 = tpu.memref_slice %arg7[%c0_i32_354, %c0_i32_357, %c0_i32_358] : memref<2x512x256xbf16, #tpu.memory_space<any>> -> memref<1x512x256xbf16, #tpu.memory_space<any>>
    %325 = tpu.memref_squeeze %324 : memref<1x512x256xbf16, #tpu.memory_space<any>> -> memref<512x256xbf16, #tpu.memory_space<any>>
    %c0_i32_359 = arith.constant 0 : i32
    %c0_i32_360 = arith.constant 0 : i32
    %326 = tpu.memref_slice %arg22[%c0_i32_355, %c0_i32_359, %c0_i32_360] : memref<2x512x256xbf16, #tpu.memory_space<vmem>> -> memref<1x512x256xbf16, #tpu.memory_space<vmem>>
    %327 = tpu.memref_squeeze %326 : memref<1x512x256xbf16, #tpu.memory_space<vmem>> -> memref<512x256xbf16, #tpu.memory_space<vmem>>
    %328 = tpu.memref_slice %arg26[%c0_i32_356] : memref<2x!tpu.dma_semaphore, #tpu.memory_space<semaphore_mem>> -> memref<1x!tpu.dma_semaphore, #tpu.memory_space<semaphore_mem>>
    %329 = tpu.memref_squeeze %328 : memref<1x!tpu.dma_semaphore, #tpu.memory_space<semaphore_mem>> -> memref<!tpu.dma_semaphore, #tpu.memory_space<semaphore_mem>>
    tpu.wait_dma2 semaphore(%329 : memref<!tpu.dma_semaphore, #tpu.memory_space<semaphore_mem>>) src(%325 : memref<512x256xbf16, #tpu.memory_space<any>>) dst(%327 : memref<512x256xbf16, #tpu.memory_space<vmem>>)
    %c1_i32_361 = arith.constant 1 : i32
    %c1_i32_362 = arith.constant 1 : i32
    %c1_i32_363 = arith.constant 1 : i32
    %c0_i32_364 = arith.constant 0 : i32
    %c0_i32_365 = arith.constant 0 : i32
    %330 = tpu.memref_slice %arg7[%c1_i32_361, %c0_i32_364, %c0_i32_365] : memref<2x512x256xbf16, #tpu.memory_space<any>> -> memref<1x512x256xbf16, #tpu.memory_space<any>>
    %331 = tpu.memref_squeeze %330 : memref<1x512x256xbf16, #tpu.memory_space<any>> -> memref<512x256xbf16, #tpu.memory_space<any>>
    %c0_i32_366 = arith.constant 0 : i32
    %c0_i32_367 = arith.constant 0 : i32
    %332 = tpu.memref_slice %arg22[%c1_i32_362, %c0_i32_366, %c0_i32_367] : memref<2x512x256xbf16, #tpu.memory_space<vmem>> -> memref<1x512x256xbf16, #tpu.memory_space<vmem>>
    %333 = tpu.memref_squeeze %332 : memref<1x512x256xbf16, #tpu.memory_space<vmem>> -> memref<512x256xbf16, #tpu.memory_space<vmem>>
    %334 = tpu.memref_slice %arg26[%c1_i32_363] : memref<2x!tpu.dma_semaphore, #tpu.memory_space<semaphore_mem>> -> memref<1x!tpu.dma_semaphore, #tpu.memory_space<semaphore_mem>>
    %335 = tpu.memref_squeeze %334 : memref<1x!tpu.dma_semaphore, #tpu.memory_space<semaphore_mem>> -> memref<!tpu.dma_semaphore, #tpu.memory_space<semaphore_mem>>
    tpu.enqueue_dma source(%331 : memref<512x256xbf16, #tpu.memory_space<any>>) target(%333 : memref<512x256xbf16, #tpu.memory_space<vmem>>) target_semaphore(%335 : memref<!tpu.dma_semaphore, #tpu.memory_space<semaphore_mem>>)
    %c0_368 = arith.constant 0 : index
    %c0_369 = arith.constant 0 : index
    %336 = vector.load %arg24[%c0_368, %c0_369] : memref<2x512xbf16, #tpu.memory_space<vmem>>, vector<2x512xbf16>
    %c0_370 = arith.constant 0 : index
    %c0_371 = arith.constant 0 : index
    %c0_372 = arith.constant 0 : index
    %337 = vector.load %arg22[%c0_370, %c0_371, %c0_372] : memref<2x512x256xbf16, #tpu.memory_space<vmem>>, vector<1x512x256xbf16>
    %338 = vector.shape_cast %337 : vector<1x512x256xbf16> to vector<512x256xbf16>
    %cst_373 = arith.constant dense<0.000000e+00> : vector<2x256xf32>
    %339 = tpu.matmul %336, %338, %cst_373 {dimension_numbers = #tpu.dot_dimension_numbers<[1], [0], [0], [1], [0, 0, 1, 1], [], []>} : vector<2x512xbf16>, vector<512x256xbf16>, vector<2x256xf32> -> vector<2x256xf32>
    %c0_374 = arith.constant 0 : index
    %c0_375 = arith.constant 0 : index
    %340 = vector.load %arg17[%c0_374, %c0_375] : memref<1x512xf32, #tpu.memory_space<vmem>>, vector<1x256xf32>
    %341 = vector.broadcast %340 : vector<1x256xf32> to vector<2x256xf32>
    %342 = arith.addf %339, %341 : vector<2x256xf32>
    %cst_376 = arith.constant 0.000000e+00 : f32
    %343 = vector.broadcast %cst_376 : f32 to vector<2x256xf32>
    %344 = arith.maximumf %342, %343 : vector<2x256xf32>
    %345 = arith.truncf %344 : vector<2x256xf32> to vector<2x256xbf16>
    %c0_377 = arith.constant 0 : index
    %c0_378 = arith.constant 0 : index
    %346 = vector.load %arg23[%c0_377, %c0_378] : memref<2x512xbf16, #tpu.memory_space<vmem>>, vector<2x256xbf16>
    tpu.vector_store %arg23[%c0_377, %c0_378], %345 {strides = array<i32>} : memref<2x512xbf16, #tpu.memory_space<vmem>>, vector<2x256xbf16>,
    %c1_i32_379 = arith.constant 1 : i32
    %c1_i32_380 = arith.constant 1 : i32
    %c1_i32_381 = arith.constant 1 : i32
    %c0_i32_382 = arith.constant 0 : i32
    %c0_i32_383 = arith.constant 0 : i32
    %347 = tpu.memref_slice %arg7[%c1_i32_379, %c0_i32_382, %c0_i32_383] : memref<2x512x256xbf16, #tpu.memory_space<any>> -> memref<1x512x256xbf16, #tpu.memory_space<any>>
    %348 = tpu.memref_squeeze %347 : memref<1x512x256xbf16, #tpu.memory_space<any>> -> memref<512x256xbf16, #tpu.memory_space<any>>
    %c0_i32_384 = arith.constant 0 : i32
    %c0_i32_385 = arith.constant 0 : i32
    %349 = tpu.memref_slice %arg22[%c1_i32_380, %c0_i32_384, %c0_i32_385] : memref<2x512x256xbf16, #tpu.memory_space<vmem>> -> memref<1x512x256xbf16, #tpu.memory_space<vmem>>
    %350 = tpu.memref_squeeze %349 : memref<1x512x256xbf16, #tpu.memory_space<vmem>> -> memref<512x256xbf16, #tpu.memory_space<vmem>>
    %351 = tpu.memref_slice %arg26[%c1_i32_381] : memref<2x!tpu.dma_semaphore, #tpu.memory_space<semaphore_mem>> -> memref<1x!tpu.dma_semaphore, #tpu.memory_space<semaphore_mem>>
    %352 = tpu.memref_squeeze %351 : memref<1x!tpu.dma_semaphore, #tpu.memory_space<semaphore_mem>> -> memref<!tpu.dma_semaphore, #tpu.memory_space<semaphore_mem>>
    tpu.wait_dma2 semaphore(%352 : memref<!tpu.dma_semaphore, #tpu.memory_space<semaphore_mem>>) src(%348 : memref<512x256xbf16, #tpu.memory_space<any>>) dst(%350 : memref<512x256xbf16, #tpu.memory_space<vmem>>)
    %c0_i32_386 = arith.constant 0 : i32
    %c0_i32_387 = arith.constant 0 : i32
    %c0_i32_388 = arith.constant 0 : i32
    %c0_i32_389 = arith.constant 0 : i32
    %c0_i32_390 = arith.constant 0 : i32
    %353 = tpu.memref_slice %arg8[%c0_i32_386, %c0_i32_389, %c0_i32_390] : memref<2x512x256xbf16, #tpu.memory_space<any>> -> memref<1x512x256xbf16, #tpu.memory_space<any>>
    %354 = tpu.memref_squeeze %353 : memref<1x512x256xbf16, #tpu.memory_space<any>> -> memref<512x256xbf16, #tpu.memory_space<any>>
    %c0_i32_391 = arith.constant 0 : i32
    %c0_i32_392 = arith.constant 0 : i32
    %355 = tpu.memref_slice %arg22[%c0_i32_387, %c0_i32_391, %c0_i32_392] : memref<2x512x256xbf16, #tpu.memory_space<vmem>> -> memref<1x512x256xbf16, #tpu.memory_space<vmem>>
    %356 = tpu.memref_squeeze %355 : memref<1x512x256xbf16, #tpu.memory_space<vmem>> -> memref<512x256xbf16, #tpu.memory_space<vmem>>
    %357 = tpu.memref_slice %arg26[%c0_i32_388] : memref<2x!tpu.dma_semaphore, #tpu.memory_space<semaphore_mem>> -> memref<1x!tpu.dma_semaphore, #tpu.memory_space<semaphore_mem>>
    %358 = tpu.memref_squeeze %357 : memref<1x!tpu.dma_semaphore, #tpu.memory_space<semaphore_mem>> -> memref<!tpu.dma_semaphore, #tpu.memory_space<semaphore_mem>>
    tpu.enqueue_dma source(%354 : memref<512x256xbf16, #tpu.memory_space<any>>) target(%356 : memref<512x256xbf16, #tpu.memory_space<vmem>>) target_semaphore(%358 : memref<!tpu.dma_semaphore, #tpu.memory_space<semaphore_mem>>)
    %c0_393 = arith.constant 0 : index
    %c0_394 = arith.constant 0 : index
    %359 = vector.load %arg24[%c0_393, %c0_394] : memref<2x512xbf16, #tpu.memory_space<vmem>>, vector<2x512xbf16>
    %c1_395 = arith.constant 1 : index
    %c0_396 = arith.constant 0 : index
    %c0_397 = arith.constant 0 : index
    %360 = vector.load %arg22[%c1_395, %c0_396, %c0_397] : memref<2x512x256xbf16, #tpu.memory_space<vmem>>, vector<1x512x256xbf16>
    %361 = vector.shape_cast %360 : vector<1x512x256xbf16> to vector<512x256xbf16>
    %cst_398 = arith.constant dense<0.000000e+00> : vector<2x256xf32>
    %362 = tpu.matmul %359, %361, %cst_398 {dimension_numbers = #tpu.dot_dimension_numbers<[1], [0], [0], [1], [0, 0, 1, 1], [], []>} : vector<2x512xbf16>, vector<512x256xbf16>, vector<2x256xf32> -> vector<2x256xf32>
    %c0_399 = arith.constant 0 : index
    %c256_400 = arith.constant 256 : index
    %363 = vector.load %arg17[%c0_399, %c256_400] : memref<1x512xf32, #tpu.memory_space<vmem>>, vector<1x256xf32>
    %364 = vector.broadcast %363 : vector<1x256xf32> to vector<2x256xf32>
    %365 = arith.addf %362, %364 : vector<2x256xf32>
    %cst_401 = arith.constant 0.000000e+00 : f32
    %366 = vector.broadcast %cst_401 : f32 to vector<2x256xf32>
    %367 = arith.maximumf %365, %366 : vector<2x256xf32>
    %368 = arith.truncf %367 : vector<2x256xf32> to vector<2x256xbf16>
    %c0_402 = arith.constant 0 : index
    %c256_403 = arith.constant 256 : index
    %369 = vector.load %arg23[%c0_402, %c256_403] : memref<2x512xbf16, #tpu.memory_space<vmem>>, vector<2x256xbf16>
    tpu.vector_store %arg23[%c0_402, %c256_403], %368 {strides = array<i32>} : memref<2x512xbf16, #tpu.memory_space<vmem>>, vector<2x256xbf16>,
    %c0_i32_404 = arith.constant 0 : i32
    %c0_i32_405 = arith.constant 0 : i32
    %c0_i32_406 = arith.constant 0 : i32
    %c0_i32_407 = arith.constant 0 : i32
    %c0_i32_408 = arith.constant 0 : i32
    %370 = tpu.memref_slice %arg8[%c0_i32_404, %c0_i32_407, %c0_i32_408] : memref<2x512x256xbf16, #tpu.memory_space<any>> -> memref<1x512x256xbf16, #tpu.memory_space<any>>
    %371 = tpu.memref_squeeze %370 : memref<1x512x256xbf16, #tpu.memory_space<any>> -> memref<512x256xbf16, #tpu.memory_space<any>>
    %c0_i32_409 = arith.constant 0 : i32
    %c0_i32_410 = arith.constant 0 : i32
    %372 = tpu.memref_slice %arg22[%c0_i32_405, %c0_i32_409, %c0_i32_410] : memref<2x512x256xbf16, #tpu.memory_space<vmem>> -> memref<1x512x256xbf16, #tpu.memory_space<vmem>>
    %373 = tpu.memref_squeeze %372 : memref<1x512x256xbf16, #tpu.memory_space<vmem>> -> memref<512x256xbf16, #tpu.memory_space<vmem>>
    %374 = tpu.memref_slice %arg26[%c0_i32_406] : memref<2x!tpu.dma_semaphore, #tpu.memory_space<semaphore_mem>> -> memref<1x!tpu.dma_semaphore, #tpu.memory_space<semaphore_mem>>
    %375 = tpu.memref_squeeze %374 : memref<1x!tpu.dma_semaphore, #tpu.memory_space<semaphore_mem>> -> memref<!tpu.dma_semaphore, #tpu.memory_space<semaphore_mem>>
    tpu.wait_dma2 semaphore(%375 : memref<!tpu.dma_semaphore, #tpu.memory_space<semaphore_mem>>) src(%371 : memref<512x256xbf16, #tpu.memory_space<any>>) dst(%373 : memref<512x256xbf16, #tpu.memory_space<vmem>>)
    %c1_i32_411 = arith.constant 1 : i32
    %c1_i32_412 = arith.constant 1 : i32
    %c1_i32_413 = arith.constant 1 : i32
    %c0_i32_414 = arith.constant 0 : i32
    %c0_i32_415 = arith.constant 0 : i32
    %376 = tpu.memref_slice %arg8[%c1_i32_411, %c0_i32_414, %c0_i32_415] : memref<2x512x256xbf16, #tpu.memory_space<any>> -> memref<1x512x256xbf16, #tpu.memory_space<any>>
    %377 = tpu.memref_squeeze %376 : memref<1x512x256xbf16, #tpu.memory_space<any>> -> memref<512x256xbf16, #tpu.memory_space<any>>
    %c0_i32_416 = arith.constant 0 : i32
    %c0_i32_417 = arith.constant 0 : i32
    %378 = tpu.memref_slice %arg22[%c1_i32_412, %c0_i32_416, %c0_i32_417] : memref<2x512x256xbf16, #tpu.memory_space<vmem>> -> memref<1x512x256xbf16, #tpu.memory_space<vmem>>
    %379 = tpu.memref_squeeze %378 : memref<1x512x256xbf16, #tpu.memory_space<vmem>> -> memref<512x256xbf16, #tpu.memory_space<vmem>>
    %380 = tpu.memref_slice %arg26[%c1_i32_413] : memref<2x!tpu.dma_semaphore, #tpu.memory_space<semaphore_mem>> -> memref<1x!tpu.dma_semaphore, #tpu.memory_space<semaphore_mem>>
    %381 = tpu.memref_squeeze %380 : memref<1x!tpu.dma_semaphore, #tpu.memory_space<semaphore_mem>> -> memref<!tpu.dma_semaphore, #tpu.memory_space<semaphore_mem>>
    tpu.enqueue_dma source(%377 : memref<512x256xbf16, #tpu.memory_space<any>>) target(%379 : memref<512x256xbf16, #tpu.memory_space<vmem>>) target_semaphore(%381 : memref<!tpu.dma_semaphore, #tpu.memory_space<semaphore_mem>>)
    %c0_418 = arith.constant 0 : index
    %c0_419 = arith.constant 0 : index
    %382 = vector.load %arg23[%c0_418, %c0_419] : memref<2x512xbf16, #tpu.memory_space<vmem>>, vector<2x512xbf16>
    %c0_420 = arith.constant 0 : index
    %c0_421 = arith.constant 0 : index
    %c0_422 = arith.constant 0 : index
    %383 = vector.load %arg22[%c0_420, %c0_421, %c0_422] : memref<2x512x256xbf16, #tpu.memory_space<vmem>>, vector<1x512x256xbf16>
    %384 = vector.shape_cast %383 : vector<1x512x256xbf16> to vector<512x256xbf16>
    %cst_423 = arith.constant dense<0.000000e+00> : vector<2x256xf32>
    %385 = tpu.matmul %382, %384, %cst_423 {dimension_numbers = #tpu.dot_dimension_numbers<[1], [0], [0], [1], [0, 0, 1, 1], [], []>} : vector<2x512xbf16>, vector<512x256xbf16>, vector<2x256xf32> -> vector<2x256xf32>
    %c0_424 = arith.constant 0 : index
    %c0_425 = arith.constant 0 : index
    %386 = vector.load %arg18[%c0_424, %c0_425] : memref<1x512xf32, #tpu.memory_space<vmem>>, vector<1x256xf32>
    %387 = vector.broadcast %386 : vector<1x256xf32> to vector<2x256xf32>
    %388 = arith.addf %385, %387 : vector<2x256xf32>
    %cst_426 = arith.constant 0.000000e+00 : f32
    %389 = vector.broadcast %cst_426 : f32 to vector<2x256xf32>
    %390 = arith.maximumf %388, %389 : vector<2x256xf32>
    %391 = arith.truncf %390 : vector<2x256xf32> to vector<2x256xbf16>
    %c0_427 = arith.constant 0 : index
    %c0_428 = arith.constant 0 : index
    %392 = vector.load %arg24[%c0_427, %c0_428] : memref<2x512xbf16, #tpu.memory_space<vmem>>, vector<2x256xbf16>
    tpu.vector_store %arg24[%c0_427, %c0_428], %391 {strides = array<i32>} : memref<2x512xbf16, #tpu.memory_space<vmem>>, vector<2x256xbf16>,
    %c1_i32_429 = arith.constant 1 : i32
    %c1_i32_430 = arith.constant 1 : i32
    %c1_i32_431 = arith.constant 1 : i32
    %c0_i32_432 = arith.constant 0 : i32
    %c0_i32_433 = arith.constant 0 : i32
    %393 = tpu.memref_slice %arg8[%c1_i32_429, %c0_i32_432, %c0_i32_433] : memref<2x512x256xbf16, #tpu.memory_space<any>> -> memref<1x512x256xbf16, #tpu.memory_space<any>>
    %394 = tpu.memref_squeeze %393 : memref<1x512x256xbf16, #tpu.memory_space<any>> -> memref<512x256xbf16, #tpu.memory_space<any>>
    %c0_i32_434 = arith.constant 0 : i32
    %c0_i32_435 = arith.constant 0 : i32
    %395 = tpu.memref_slice %arg22[%c1_i32_430, %c0_i32_434, %c0_i32_435] : memref<2x512x256xbf16, #tpu.memory_space<vmem>> -> memref<1x512x256xbf16, #tpu.memory_space<vmem>>
    %396 = tpu.memref_squeeze %395 : memref<1x512x256xbf16, #tpu.memory_space<vmem>> -> memref<512x256xbf16, #tpu.memory_space<vmem>>
    %397 = tpu.memref_slice %arg26[%c1_i32_431] : memref<2x!tpu.dma_semaphore, #tpu.memory_space<semaphore_mem>> -> memref<1x!tpu.dma_semaphore, #tpu.memory_space<semaphore_mem>>
    %398 = tpu.memref_squeeze %397 : memref<1x!tpu.dma_semaphore, #tpu.memory_space<semaphore_mem>> -> memref<!tpu.dma_semaphore, #tpu.memory_space<semaphore_mem>>
    tpu.wait_dma2 semaphore(%398 : memref<!tpu.dma_semaphore, #tpu.memory_space<semaphore_mem>>) src(%394 : memref<512x256xbf16, #tpu.memory_space<any>>) dst(%396 : memref<512x256xbf16, #tpu.memory_space<vmem>>)
    %c0_i32_436 = arith.constant 0 : i32
    %c0_i32_437 = arith.constant 0 : i32
    %c0_i32_438 = arith.constant 0 : i32
    %c0_i32_439 = arith.constant 0 : i32
    %c0_i32_440 = arith.constant 0 : i32
    %399 = tpu.memref_slice %arg9[%c0_i32_436, %c0_i32_439, %c0_i32_440] : memref<2x512x256xbf16, #tpu.memory_space<any>> -> memref<1x512x256xbf16, #tpu.memory_space<any>>
    %400 = tpu.memref_squeeze %399 : memref<1x512x256xbf16, #tpu.memory_space<any>> -> memref<512x256xbf16, #tpu.memory_space<any>>
    %c0_i32_441 = arith.constant 0 : i32
    %c0_i32_442 = arith.constant 0 : i32
    %401 = tpu.memref_slice %arg22[%c0_i32_437, %c0_i32_441, %c0_i32_442] : memref<2x512x256xbf16, #tpu.memory_space<vmem>> -> memref<1x512x256xbf16, #tpu.memory_space<vmem>>
    %402 = tpu.memref_squeeze %401 : memref<1x512x256xbf16, #tpu.memory_space<vmem>> -> memref<512x256xbf16, #tpu.memory_space<vmem>>
    %403 = tpu.memref_slice %arg26[%c0_i32_438] : memref<2x!tpu.dma_semaphore, #tpu.memory_space<semaphore_mem>> -> memref<1x!tpu.dma_semaphore, #tpu.memory_space<semaphore_mem>>
    %404 = tpu.memref_squeeze %403 : memref<1x!tpu.dma_semaphore, #tpu.memory_space<semaphore_mem>> -> memref<!tpu.dma_semaphore, #tpu.memory_space<semaphore_mem>>
    tpu.enqueue_dma source(%400 : memref<512x256xbf16, #tpu.memory_space<any>>) target(%402 : memref<512x256xbf16, #tpu.memory_space<vmem>>) target_semaphore(%404 : memref<!tpu.dma_semaphore, #tpu.memory_space<semaphore_mem>>)
    %c0_443 = arith.constant 0 : index
    %c0_444 = arith.constant 0 : index
    %405 = vector.load %arg23[%c0_443, %c0_444] : memref<2x512xbf16, #tpu.memory_space<vmem>>, vector<2x512xbf16>
    %c1_445 = arith.constant 1 : index
    %c0_446 = arith.constant 0 : index
    %c0_447 = arith.constant 0 : index
    %406 = vector.load %arg22[%c1_445, %c0_446, %c0_447] : memref<2x512x256xbf16, #tpu.memory_space<vmem>>, vector<1x512x256xbf16>
    %407 = vector.shape_cast %406 : vector<1x512x256xbf16> to vector<512x256xbf16>
    %cst_448 = arith.constant dense<0.000000e+00> : vector<2x256xf32>
    %408 = tpu.matmul %405, %407, %cst_448 {dimension_numbers = #tpu.dot_dimension_numbers<[1], [0], [0], [1], [0, 0, 1, 1], [], []>} : vector<2x512xbf16>, vector<512x256xbf16>, vector<2x256xf32> -> vector<2x256xf32>
    %c0_449 = arith.constant 0 : index
    %c256_450 = arith.constant 256 : index
    %409 = vector.load %arg18[%c0_449, %c256_450] : memref<1x512xf32, #tpu.memory_space<vmem>>, vector<1x256xf32>
    %410 = vector.broadcast %409 : vector<1x256xf32> to vector<2x256xf32>
    %411 = arith.addf %408, %410 : vector<2x256xf32>
    %cst_451 = arith.constant 0.000000e+00 : f32
    %412 = vector.broadcast %cst_451 : f32 to vector<2x256xf32>
    %413 = arith.maximumf %411, %412 : vector<2x256xf32>
    %414 = arith.truncf %413 : vector<2x256xf32> to vector<2x256xbf16>
    %c0_452 = arith.constant 0 : index
    %c256_453 = arith.constant 256 : index
    %415 = vector.load %arg24[%c0_452, %c256_453] : memref<2x512xbf16, #tpu.memory_space<vmem>>, vector<2x256xbf16>
    tpu.vector_store %arg24[%c0_452, %c256_453], %414 {strides = array<i32>} : memref<2x512xbf16, #tpu.memory_space<vmem>>, vector<2x256xbf16>,
    %c0_i32_454 = arith.constant 0 : i32
    %c0_i32_455 = arith.constant 0 : i32
    %c0_i32_456 = arith.constant 0 : i32
    %c0_i32_457 = arith.constant 0 : i32
    %c0_i32_458 = arith.constant 0 : i32
    %416 = tpu.memref_slice %arg9[%c0_i32_454, %c0_i32_457, %c0_i32_458] : memref<2x512x256xbf16, #tpu.memory_space<any>> -> memref<1x512x256xbf16, #tpu.memory_space<any>>
    %417 = tpu.memref_squeeze %416 : memref<1x512x256xbf16, #tpu.memory_space<any>> -> memref<512x256xbf16, #tpu.memory_space<any>>
    %c0_i32_459 = arith.constant 0 : i32
    %c0_i32_460 = arith.constant 0 : i32
    %418 = tpu.memref_slice %arg22[%c0_i32_455, %c0_i32_459, %c0_i32_460] : memref<2x512x256xbf16, #tpu.memory_space<vmem>> -> memref<1x512x256xbf16, #tpu.memory_space<vmem>>
    %419 = tpu.memref_squeeze %418 : memref<1x512x256xbf16, #tpu.memory_space<vmem>> -> memref<512x256xbf16, #tpu.memory_space<vmem>>
    %420 = tpu.memref_slice %arg26[%c0_i32_456] : memref<2x!tpu.dma_semaphore, #tpu.memory_space<semaphore_mem>> -> memref<1x!tpu.dma_semaphore, #tpu.memory_space<semaphore_mem>>
    %421 = tpu.memref_squeeze %420 : memref<1x!tpu.dma_semaphore, #tpu.memory_space<semaphore_mem>> -> memref<!tpu.dma_semaphore, #tpu.memory_space<semaphore_mem>>
    tpu.wait_dma2 semaphore(%421 : memref<!tpu.dma_semaphore, #tpu.memory_space<semaphore_mem>>) src(%417 : memref<512x256xbf16, #tpu.memory_space<any>>) dst(%419 : memref<512x256xbf16, #tpu.memory_space<vmem>>)
    %c1_i32_461 = arith.constant 1 : i32
    %c1_i32_462 = arith.constant 1 : i32
    %c1_i32_463 = arith.constant 1 : i32
    %c0_i32_464 = arith.constant 0 : i32
    %c0_i32_465 = arith.constant 0 : i32
    %422 = tpu.memref_slice %arg9[%c1_i32_461, %c0_i32_464, %c0_i32_465] : memref<2x512x256xbf16, #tpu.memory_space<any>> -> memref<1x512x256xbf16, #tpu.memory_space<any>>
    %423 = tpu.memref_squeeze %422 : memref<1x512x256xbf16, #tpu.memory_space<any>> -> memref<512x256xbf16, #tpu.memory_space<any>>
    %c0_i32_466 = arith.constant 0 : i32
    %c0_i32_467 = arith.constant 0 : i32
    %424 = tpu.memref_slice %arg22[%c1_i32_462, %c0_i32_466, %c0_i32_467] : memref<2x512x256xbf16, #tpu.memory_space<vmem>> -> memref<1x512x256xbf16, #tpu.memory_space<vmem>>
    %425 = tpu.memref_squeeze %424 : memref<1x512x256xbf16, #tpu.memory_space<vmem>> -> memref<512x256xbf16, #tpu.memory_space<vmem>>
    %426 = tpu.memref_slice %arg26[%c1_i32_463] : memref<2x!tpu.dma_semaphore, #tpu.memory_space<semaphore_mem>> -> memref<1x!tpu.dma_semaphore, #tpu.memory_space<semaphore_mem>>
    %427 = tpu.memref_squeeze %426 : memref<1x!tpu.dma_semaphore, #tpu.memory_space<semaphore_mem>> -> memref<!tpu.dma_semaphore, #tpu.memory_space<semaphore_mem>>
    tpu.enqueue_dma source(%423 : memref<512x256xbf16, #tpu.memory_space<any>>) target(%425 : memref<512x256xbf16, #tpu.memory_space<vmem>>) target_semaphore(%427 : memref<!tpu.dma_semaphore, #tpu.memory_space<semaphore_mem>>)
    %c0_468 = arith.constant 0 : index
    %c0_469 = arith.constant 0 : index
    %428 = vector.load %arg24[%c0_468, %c0_469] : memref<2x512xbf16, #tpu.memory_space<vmem>>, vector<2x512xbf16>
    %c0_470 = arith.constant 0 : index
    %c0_471 = arith.constant 0 : index
    %c0_472 = arith.constant 0 : index
    %429 = vector.load %arg22[%c0_470, %c0_471, %c0_472] : memref<2x512x256xbf16, #tpu.memory_space<vmem>>, vector<1x512x256xbf16>
    %430 = vector.shape_cast %429 : vector<1x512x256xbf16> to vector<512x256xbf16>
    %cst_473 = arith.constant dense<0.000000e+00> : vector<2x256xf32>
    %431 = tpu.matmul %428, %430, %cst_473 {dimension_numbers = #tpu.dot_dimension_numbers<[1], [0], [0], [1], [0, 0, 1, 1], [], []>} : vector<2x512xbf16>, vector<512x256xbf16>, vector<2x256xf32> -> vector<2x256xf32>
    %c0_474 = arith.constant 0 : index
    %c0_475 = arith.constant 0 : index
    %432 = vector.load %arg19[%c0_474, %c0_475] : memref<1x512xf32, #tpu.memory_space<vmem>>, vector<1x256xf32>
    %433 = vector.broadcast %432 : vector<1x256xf32> to vector<2x256xf32>
    %434 = arith.addf %431, %433 : vector<2x256xf32>
    %cst_476 = arith.constant 0.000000e+00 : f32
    %435 = vector.broadcast %cst_476 : f32 to vector<2x256xf32>
    %436 = arith.maximumf %434, %435 : vector<2x256xf32>
    %437 = arith.truncf %436 : vector<2x256xf32> to vector<2x256xbf16>
    %c0_477 = arith.constant 0 : index
    %c0_478 = arith.constant 0 : index
    %438 = vector.load %arg23[%c0_477, %c0_478] : memref<2x512xbf16, #tpu.memory_space<vmem>>, vector<2x256xbf16>
    tpu.vector_store %arg23[%c0_477, %c0_478], %437 {strides = array<i32>} : memref<2x512xbf16, #tpu.memory_space<vmem>>, vector<2x256xbf16>,
    %c1_i32_479 = arith.constant 1 : i32
    %c1_i32_480 = arith.constant 1 : i32
    %c1_i32_481 = arith.constant 1 : i32
    %c0_i32_482 = arith.constant 0 : i32
    %c0_i32_483 = arith.constant 0 : i32
    %439 = tpu.memref_slice %arg9[%c1_i32_479, %c0_i32_482, %c0_i32_483] : memref<2x512x256xbf16, #tpu.memory_space<any>> -> memref<1x512x256xbf16, #tpu.memory_space<any>>
    %440 = tpu.memref_squeeze %439 : memref<1x512x256xbf16, #tpu.memory_space<any>> -> memref<512x256xbf16, #tpu.memory_space<any>>
    %c0_i32_484 = arith.constant 0 : i32
    %c0_i32_485 = arith.constant 0 : i32
    %441 = tpu.memref_slice %arg22[%c1_i32_480, %c0_i32_484, %c0_i32_485] : memref<2x512x256xbf16, #tpu.memory_space<vmem>> -> memref<1x512x256xbf16, #tpu.memory_space<vmem>>
    %442 = tpu.memref_squeeze %441 : memref<1x512x256xbf16, #tpu.memory_space<vmem>> -> memref<512x256xbf16, #tpu.memory_space<vmem>>
    %443 = tpu.memref_slice %arg26[%c1_i32_481] : memref<2x!tpu.dma_semaphore, #tpu.memory_space<semaphore_mem>> -> memref<1x!tpu.dma_semaphore, #tpu.memory_space<semaphore_mem>>
    %444 = tpu.memref_squeeze %443 : memref<1x!tpu.dma_semaphore, #tpu.memory_space<semaphore_mem>> -> memref<!tpu.dma_semaphore, #tpu.memory_space<semaphore_mem>>
    tpu.wait_dma2 semaphore(%444 : memref<!tpu.dma_semaphore, #tpu.memory_space<semaphore_mem>>) src(%440 : memref<512x256xbf16, #tpu.memory_space<any>>) dst(%442 : memref<512x256xbf16, #tpu.memory_space<vmem>>)
    %c0_i32_486 = arith.constant 0 : i32
    %c0_i32_487 = arith.constant 0 : i32
    %c0_i32_488 = arith.constant 0 : i32
    %c0_i32_489 = arith.constant 0 : i32
    %c0_i32_490 = arith.constant 0 : i32
    %445 = tpu.memref_slice %arg10[%c0_i32_486, %c0_i32_489, %c0_i32_490] : memref<1x512x256xbf16, #tpu.memory_space<any>> -> memref<1x512x256xbf16, #tpu.memory_space<any>>
    %446 = tpu.memref_squeeze %445 : memref<1x512x256xbf16, #tpu.memory_space<any>> -> memref<512x256xbf16, #tpu.memory_space<any>>
    %c0_i32_491 = arith.constant 0 : i32
    %c0_i32_492 = arith.constant 0 : i32
    %447 = tpu.memref_slice %arg22[%c0_i32_487, %c0_i32_491, %c0_i32_492] : memref<2x512x256xbf16, #tpu.memory_space<vmem>> -> memref<1x512x256xbf16, #tpu.memory_space<vmem>>
    %448 = tpu.memref_squeeze %447 : memref<1x512x256xbf16, #tpu.memory_space<vmem>> -> memref<512x256xbf16, #tpu.memory_space<vmem>>
    %449 = tpu.memref_slice %arg26[%c0_i32_488] : memref<2x!tpu.dma_semaphore, #tpu.memory_space<semaphore_mem>> -> memref<1x!tpu.dma_semaphore, #tpu.memory_space<semaphore_mem>>
    %450 = tpu.memref_squeeze %449 : memref<1x!tpu.dma_semaphore, #tpu.memory_space<semaphore_mem>> -> memref<!tpu.dma_semaphore, #tpu.memory_space<semaphore_mem>>
    tpu.enqueue_dma source(%446 : memref<512x256xbf16, #tpu.memory_space<any>>) target(%448 : memref<512x256xbf16, #tpu.memory_space<vmem>>) target_semaphore(%450 : memref<!tpu.dma_semaphore, #tpu.memory_space<semaphore_mem>>)
    %c0_493 = arith.constant 0 : index
    %c0_494 = arith.constant 0 : index
    %451 = vector.load %arg24[%c0_493, %c0_494] : memref<2x512xbf16, #tpu.memory_space<vmem>>, vector<2x512xbf16>
    %c1_495 = arith.constant 1 : index
    %c0_496 = arith.constant 0 : index
    %c0_497 = arith.constant 0 : index
    %452 = vector.load %arg22[%c1_495, %c0_496, %c0_497] : memref<2x512x256xbf16, #tpu.memory_space<vmem>>, vector<1x512x256xbf16>
    %453 = vector.shape_cast %452 : vector<1x512x256xbf16> to vector<512x256xbf16>
    %cst_498 = arith.constant dense<0.000000e+00> : vector<2x256xf32>
    %454 = tpu.matmul %451, %453, %cst_498 {dimension_numbers = #tpu.dot_dimension_numbers<[1], [0], [0], [1], [0, 0, 1, 1], [], []>} : vector<2x512xbf16>, vector<512x256xbf16>, vector<2x256xf32> -> vector<2x256xf32>
    %c0_499 = arith.constant 0 : index
    %c256_500 = arith.constant 256 : index
    %455 = vector.load %arg19[%c0_499, %c256_500] : memref<1x512xf32, #tpu.memory_space<vmem>>, vector<1x256xf32>
    %456 = vector.broadcast %455 : vector<1x256xf32> to vector<2x256xf32>
    %457 = arith.addf %454, %456 : vector<2x256xf32>
    %cst_501 = arith.constant 0.000000e+00 : f32
    %458 = vector.broadcast %cst_501 : f32 to vector<2x256xf32>
    %459 = arith.maximumf %457, %458 : vector<2x256xf32>
    %460 = arith.truncf %459 : vector<2x256xf32> to vector<2x256xbf16>
    %c0_502 = arith.constant 0 : index
    %c256_503 = arith.constant 256 : index
    %461 = vector.load %arg23[%c0_502, %c256_503] : memref<2x512xbf16, #tpu.memory_space<vmem>>, vector<2x256xbf16>
    tpu.vector_store %arg23[%c0_502, %c256_503], %460 {strides = array<i32>} : memref<2x512xbf16, #tpu.memory_space<vmem>>, vector<2x256xbf16>,
    %c0_i32_504 = arith.constant 0 : i32
    %c0_i32_505 = arith.constant 0 : i32
    %c0_i32_506 = arith.constant 0 : i32
    %c0_i32_507 = arith.constant 0 : i32
    %c0_i32_508 = arith.constant 0 : i32
    %462 = tpu.memref_slice %arg10[%c0_i32_504, %c0_i32_507, %c0_i32_508] : memref<1x512x256xbf16, #tpu.memory_space<any>> -> memref<1x512x256xbf16, #tpu.memory_space<any>>
    %463 = tpu.memref_squeeze %462 : memref<1x512x256xbf16, #tpu.memory_space<any>> -> memref<512x256xbf16, #tpu.memory_space<any>>
    %c0_i32_509 = arith.constant 0 : i32
    %c0_i32_510 = arith.constant 0 : i32
    %464 = tpu.memref_slice %arg22[%c0_i32_505, %c0_i32_509, %c0_i32_510] : memref<2x512x256xbf16, #tpu.memory_space<vmem>> -> memref<1x512x256xbf16, #tpu.memory_space<vmem>>
    %465 = tpu.memref_squeeze %464 : memref<1x512x256xbf16, #tpu.memory_space<vmem>> -> memref<512x256xbf16, #tpu.memory_space<vmem>>
    %466 = tpu.memref_slice %arg26[%c0_i32_506] : memref<2x!tpu.dma_semaphore, #tpu.memory_space<semaphore_mem>> -> memref<1x!tpu.dma_semaphore, #tpu.memory_space<semaphore_mem>>
    %467 = tpu.memref_squeeze %466 : memref<1x!tpu.dma_semaphore, #tpu.memory_space<semaphore_mem>> -> memref<!tpu.dma_semaphore, #tpu.memory_space<semaphore_mem>>
    tpu.wait_dma2 semaphore(%467 : memref<!tpu.dma_semaphore, #tpu.memory_space<semaphore_mem>>) src(%463 : memref<512x256xbf16, #tpu.memory_space<any>>) dst(%465 : memref<512x256xbf16, #tpu.memory_space<vmem>>)
    %c0_511 = arith.constant 0 : index
    %c0_512 = arith.constant 0 : index
    %468 = vector.load %arg23[%c0_511, %c0_512] : memref<2x512xbf16, #tpu.memory_space<vmem>>, vector<2x512xbf16>
    %c0_513 = arith.constant 0 : index
    %c0_514 = arith.constant 0 : index
    %c0_515 = arith.constant 0 : index
    %469 = vector.load %arg22[%c0_513, %c0_514, %c0_515] : memref<2x512x256xbf16, #tpu.memory_space<vmem>>, vector<1x512x256xbf16>
    %470 = vector.shape_cast %469 : vector<1x512x256xbf16> to vector<512x256xbf16>
    %cst_516 = arith.constant dense<0.000000e+00> : vector<2x256xf32>
    %471 = tpu.matmul %468, %470, %cst_516 {dimension_numbers = #tpu.dot_dimension_numbers<[1], [0], [0], [1], [0, 0, 1, 1], [], []>} : vector<2x512xbf16>, vector<512x256xbf16>, vector<2x256xf32> -> vector<2x256xf32>
    %c0_517 = arith.constant 0 : index
    %c0_518 = arith.constant 0 : index
    %472 = vector.load %arg20[%c0_517, %c0_518] : memref<1x256xf32, #tpu.memory_space<vmem>>, vector<1x256xf32>
    %473 = vector.broadcast %472 : vector<1x256xf32> to vector<2x256xf32>
    %474 = arith.addf %471, %473 : vector<2x256xf32>
    %c0_519 = arith.constant 0 : index
    %c0_520 = arith.constant 0 : index
    %475 = vector.load %arg21[%c0_519, %c0_520] : memref<2x256xf32, #tpu.memory_space<vmem>>, vector<2x256xf32>
    tpu.vector_store %arg21[%c0_519, %c0_520], %474 {strides = array<i32>} : memref<2x256xf32, #tpu.memory_space<vmem>>, vector<2x256xf32>,
    return
  }
}

</mosaic_0001>

<bundles_post_ra>
// kernel: tpu_custom_call.1
= control target key start
LH: loop header
LB: loop body
LE: loop exit
PB: predicated region body
PF: predicated region fallthrough
CT: control target
= control target key end

     0   :  { %s6414_s0 = inlined_call_operand.hbm [shape: bf16[2,1024], index: 0, kind: input, shape index: {}]   ;;  %s6415_s1 = inlined_call_operand.hbm [shape: bf16[4,512,256], index: 1, kind: input, shape index: {}]   ;;  %s6416_s2 = inlined_call_operand.hbm [shape: bf16[2,512,256], index: 2, kind: input, shape index: {}]   ;;  %s6417_s3 = inlined_call_operand.hbm [shape: bf16[2,512,256], index: 3, kind: input, shape index: {}]   ;;  %s6418_s4 = inlined_call_operand.hbm [shape: bf16[2,512,256], index: 4, kind: input, shape index: {}]   ;;  %s6419_s5 = inlined_call_operand.hbm [shape: bf16[2,512,256], index: 5, kind: input, shape index: {}]   ;;  %s6420_s6 = inlined_call_operand.hbm [shape: bf16[2,512,256], index: 6, kind: input, shape index: {}]   ;;  %s6421_s7 = inlined_call_operand.hbm [shape: bf16[2,512,256], index: 7, kind: input, shape index: {}]   ;;  %s6422_s8 = inlined_call_operand.hbm [shape: bf16[2,512,256], index: 8, kind: input, shape index: {}]   ;;  %s6423_s9 = inlined_call_operand.hbm [shape: bf16[2,512,256], index: 9, kind: input, shape index: {}]   ;;  %s6424_s10 = inlined_call_operand.hbm [shape: bf16[1,512,256], index: 10, kind: input, shape index: {}]   ;;  %s6425_s11 = inlined_call_operand.vmem [shape: f32[1,512], index: 11, kind: input, shape index: {}]   ;;  %s6426_s12 = inlined_call_operand.vmem [shape: f32[1,512], index: 12, kind: input, shape index: {}]   ;;  %s6427_s13 = inlined_call_operand.vmem [shape: f32[1,512], index: 13, kind: input, shape index: {}]   ;;  %s6428_s14 = inlined_call_operand.vmem [shape: f32[1,512], index: 14, kind: input, shape index: {}]   ;;  %s6429_s15 = inlined_call_operand.vmem [shape: f32[1,512], index: 15, kind: input, shape index: {}]   ;;  %s6430_s16 = inlined_call_operand.vmem [shape: f32[1,512], index: 16, kind: input, shape index: {}]   ;;  %s6431_s17 = inlined_call_operand.vmem [shape: f32[1,512], index: 17, kind: input, shape index: {}]   ;;  %s6432_s18 = inlined_call_operand.vmem [shape: f32[1,512], index: 18, kind: input, shape index: {}]   ;;  %s6433_s19 = inlined_call_operand.vmem [shape: f32[1,512], index: 19, kind: input, shape index: {}]   ;;  %s6434_s20 = inlined_call_operand.vmem [shape: f32[1,256], index: 20, kind: input, shape index: {}]   ;;  %s6435_s21 = inlined_call_operand.hbm [shape: f32[2,256], index: 21, kind: output, shape index: {}]  }
   0x1   :  { %6447 = sst [smem:[#allocation76_spill]] %s6414_s0 }
   0x2   :  { %6448 = sst [smem:[#allocation77_spill]] %s6415_s1 }
   0x3   :  { %6449 = sst [smem:[#allocation78_spill]] %s6416_s2 }
   0x4   :  { %6450 = sst [smem:[#allocation79_spill]] %s6417_s3 }
   0x5   :  { %6451 = sst [smem:[#allocation80_spill]] %s6418_s4 }
   0x6   :  { %6452 = sst [smem:[#allocation81_spill]] %s6419_s5 }
   0x7   :  { %6453 = sst [smem:[#allocation82_spill]] %s6435_s21 }
   0x8   :  { %26 = vsyncpa [#allocation8], 0 }
   0x9   :  { %27 = vsyncpa [#allocation9], 0  ;;  %s5645_s2 = smov [#allocation7]   ;;  %s6454_s3 = sld [smem:[#allocation76_spill]] }
   0xa   :  { %s34_s25 = sshll.u32 %s5645_s2, 4  ;;  %s35_s25 = int_to_ptr.vmem [resolvable:$true] %s34_s25 }
   0xf   :  { %s5555_s28 = scalar_lea.hbm %s6454_s3, 128 }
  0x10   :  { %p5556_p0 = scmp.ne.s32.totalorder %s6454_s3, %s5555_s28  ;;  %p5559_p1 = scmp.lt.u32.totalorder %s5555_s28, %s6454_s3 }
  0x12   :  { %p5561_p2 = pnand %p5559_p1, %p5556_p0 }
  0x14   :  { %5564 = shalt.err (!%p5561_p2)
}
  0x15   :  { %s5565_s5 = scalar_lea.vmem %s35_s25, 128  ;;  %p5570_p4 = scmp.lt.s32.totalorder %s35_s25, %s35_s25 }
  0x16   :  { %p5566_p3 = scmp.ne.s32.totalorder %s35_s25, %s5565_s5  ;;  %p5571_p5 = scmp.lt.s32.totalorder %s5565_s5, %s5565_s5 }
  0x18   :  { %p5572_p6 = por %p5571_p5, %p5570_p4 }
  0x1a   :  { %p5573_p7 = pnand %p5572_p6, %p5566_p3 }
  0x1c   :  { %5576 = shalt.err (!%p5573_p7)
}
  0x1d   :  { %37 = dma.hbm_to_vmem [thread:$0]  %s6454_s3, 128, %s35_s25, [#allocation8]  }
  0x1e   :  { %5599 = dma.done.wait [#allocation8], 128  }
  0x1f   :  { %5600 = vsyncadd [#allocation8], 4294967168  ;;  %s65_s1 = sld [smem:[#allocation0]]   ;;  %s5646_s24 = smov 256  }
  0x20   :  { %77 = sst [smem:[#allocation12]] %s5646_s24  ;;  %s5647_s2 = smov 2  }
  0x21   :  { %79 = sst [smem:[#allocation12 + $0x1]] %s5646_s24  ;;  %s5648_s26 = smov 64  }
  0x22   :  { %81 = sst [smem:[#allocation12 + $0x2]] %s5647_s2  ;;  %s6444_s27 = smov 128  }
  0x23   :  { %83 = sst [smem:[#allocation12 + $0x3]] %s5648_s26  ;;  %s5650_s25 = smov [#allocation2]  }
  0x24   :  { %85 = sst [smem:[#allocation12 + $0x4]] %s6444_s27  ;;  %s73_s3 = sshll.u32 %s5650_s25, 4  ;;  %s5812_s3 = int_to_ptr.vmem [resolvable:$true] %s73_s3 }
  0x25   :  { %87 = sst [smem:[#allocation12 + $0x5]] %s5647_s2  ;;  %s5301_s28 = sshll.u32 %s65_s1, 26 }
  0x26   :  { %89 = sst [smem:[#allocation12 + $0x6]] %s6444_s27  ;;  %s5808_s29 = sadd.s32 134217728, %s5301_s28 }
  0x27   :  { %91 = sst [smem:[#allocation12 + $0x7]] %s5648_s26  ;;  %s6442_s0 = smov 4  }
  0x28   :  { %93 = sst [smem:[#allocation12 + $0x8]] %s6442_s0  ;;  %s5652_s4 = smov [#allocation6]  }
  0x29   :  { %s5653_s30 = smov [#allocation11]   ;;  %s6455_s23 = sld [smem:[#allocation77_spill]] }
  0x2f   :  { %95 = dma.general %s6455_s23, 8192, %s5812_s3, %s5652_s4, %s5653_s30, [#allocation12], %s5808_s29, 0  }
  0x30   :  { %5601 = dma.done.wait [#allocation6], 8192 }
  0x31   :  { %5602 = vsyncadd [#allocation6], 4294959104  ;;  %118 = sst [smem:[#allocation14]] %s5646_s24  ;;  %s5654_s1 = smov [#allocation2 + $0x200]   ;;  %v5657_v18 = vmov 1966171168   ;;  %v214_v20 = vlaneseq }
  0x32   :  { %120 = sst [smem:[#allocation14 + $0x1]] %s5646_s24  ;;  %s114_s25 = sshll.u32 %s5654_s1, 4  ;;  %v212_v19 = vunpack.c.l.s4 %v5657_v18  ;;  %s5828_s25 = int_to_ptr.vmem [resolvable:$true] %s114_s25 }
  0x33   :  { %122 = sst [smem:[#allocation14 + $0x2]] %s5647_s2  ;;  %s100_s27 = scalar_lea.hbm %s6455_s23, 8192  ;;  %v5837_v26 = vshrl.u32 %v214_v20, 7 }
  0x34   :  { %124 = sst [smem:[#allocation14 + $0x3]] %s5648_s26  ;;  %s6456_s21 = smov 128   ;;  %v213_v25 = vunpack.c.0.s8 %v212_v19 }
  0x35   :  { %126 = sst [smem:[#allocation14 + $0x4]] %s6456_s21  ;;  %s6457_s30 = smov 4  }
  0x36   :  { %128 = sst [smem:[#allocation14 + $0x5]] %s5647_s2  ;;  %s5655_s5 = smov [#allocation6 + $0x1]   ;;  %v5840_v31 = vsub.s32 %v213_v25, %v5837_v26 }
  0x37   :  { %130 = sst [smem:[#allocation14 + $0x6]] %s6456_s21  ;;  %s5656_s22 = smov [#allocation13]  }
  0x38   :  { %132 = sst [smem:[#allocation14 + $0x7]] %s5648_s26 }
  0x39   :  { %134 = sst [smem:[#allocation14 + $0x8]] %s6457_s30 }
  0x3a   :  { %136 = dma.general %s100_s27, 8192, %s5828_s25, %s5655_s5, %s5656_s22, [#allocation14], %s5808_s29, 0  }
  0x3b   :  { %v139_v0 = vld [vmem:[#allocation2 + $0x8] sm:$0xff]  ;;  %v138_v2 = vld [vmem:[#allocation2] sm:$0xff]  ;;  %v141_v4 = vld [vmem:[#allocation2 + $0x18] sm:$0xff] }
  0x3c   :  { %v171_v1 = vld [vmem:[#allocation2 + $0x108] sm:$0xff]  ;;  %231 = vmatprep.subr.bf16.mxu1 %v139_v0  ;;  %v170_v3 = vld [vmem:[#allocation2 + $0x100] sm:$0xff]  ;;  %v173_v5 = vld [vmem:[#allocation2 + $0x118] sm:$0xff] }
  0x3d   :  { %272 = vmatprep.subr.bf16.mxu0 %v171_v1  ;;  %232 = vmatpush1.bf16.msra.mxu1 %v138_v2  ;;  %v140_v6 = vld [vmem:[#allocation2 + $0x10] sm:$0xff]  ;;  %v143_v8 = vld [vmem:[#allocation2 + $0x28] sm:$0xff]  ;;  %v142_v10 = vld [vmem:[#allocation2 + $0x20] sm:$0xff] }
  0x3e   :  { %273 = vmatpush1.bf16.msra.mxu0 %v170_v3  ;;  %233 = vmatprep.subr.bf16.mxu1 %v141_v4  ;;  %v172_v7 = vld [vmem:[#allocation2 + $0x110] sm:$0xff]  ;;  %v175_v9 = vld [vmem:[#allocation2 + $0x128] sm:$0xff]  ;;  %v174_v11 = vld [vmem:[#allocation2 + $0x120] sm:$0xff] }
  0x3f   :  { %274 = vmatprep.subr.bf16.mxu0 %v173_v5  ;;  %v145_v12 = vld [vmem:[#allocation2 + $0x38] sm:$0xff]  ;;  %v144_v14 = vld [vmem:[#allocation2 + $0x30] sm:$0xff]  ;;  %v147_v16 = vld [vmem:[#allocation2 + $0x48] sm:$0xff] }
  0x40   :  { %v177_v13 = vld [vmem:[#allocation2 + $0x138] sm:$0xff]  ;;  %v176_v15 = vld [vmem:[#allocation2 + $0x130] sm:$0xff]  ;;  %v179_v17 = vld [vmem:[#allocation2 + $0x148] sm:$0xff] }
  0x41   :  { %234 = vmatpush1.bf16.msra.mxu1 %v140_v6  ;;  %v146_v21 = vld [vmem:[#allocation2 + $0x40] sm:$0xff]  ;;  %v149_v23 = vld [vmem:[#allocation2 + $0x58] sm:$0xff]  ;;  %v148_v27 = vld [vmem:[#allocation2 + $0x50] sm:$0xff] }
  0x42   :  { %275 = vmatpush1.bf16.msra.mxu0 %v172_v7  ;;  %235 = vmatprep.subr.bf16.mxu1 %v143_v8  ;;  %v178_v22 = vld [vmem:[#allocation2 + $0x140] sm:$0xff]  ;;  %v181_v24 = vld [vmem:[#allocation2 + $0x158] sm:$0xff]  ;;  %v180_v28 = vld [vmem:[#allocation2 + $0x150] sm:$0xff] }
  0x43   :  { %276 = vmatprep.subr.bf16.mxu0 %v175_v9  ;;  %v151_v29 = vld [vmem:[#allocation2 + $0x68] sm:$0xff]  ;;  %v150_v34 = vld [vmem:[#allocation2 + $0x60] sm:$0xff]  ;;  %v153_v36 = vld [vmem:[#allocation2 + $0x78] sm:$0xff] }
  0x44   :  { %v183_v30 = vld [vmem:[#allocation2 + $0x168] sm:$0xff]  ;;  %v182_v35 = vld [vmem:[#allocation2 + $0x160] sm:$0xff]  ;;  %v185_v37 = vld [vmem:[#allocation2 + $0x178] sm:$0xff] }
  0x45   :  { %236 = vmatpush1.bf16.msra.mxu1 %v142_v10  ;;  %v5842_v32 = vld.sshfl [vmem:[#allocation7] sm:$0x33 pattern:$0x75316420]  ;;  %v152_v40 = vld [vmem:[#allocation2 + $0x70] sm:$0xff]  ;;  %v154_v44 = vld [vmem:[#allocation2 + $0x80] sm:$0xff] }
  0x46   :  { %277 = vmatpush1.bf16.msra.mxu0 %v174_v11  ;;  %237 = vmatprep.subr.bf16.mxu1 %v145_v12  ;;  %v210_v33 = vcombine.high %v5842_v32, %v5842_v32  ;;  %v184_v41 = vld [vmem:[#allocation2 + $0x170] sm:$0xff]  ;;  %v155_v42 = vld [vmem:[#allocation2 + $0x88] sm:$0xff]  ;;  %v186_v45 = vld [vmem:[#allocation2 + $0x180] sm:$0xff]  ;;  %v217_v8 = vrot.slane %v5842_v32, %v5840_v31 }
  0x47   :  { %278 = vmatprep.subr.bf16.mxu0 %v177_v13  ;;  %v187_v43 = vld [vmem:[#allocation2 + $0x188] sm:$0xff]  ;;  %v157_v46 = vld [vmem:[#allocation2 + $0x98] sm:$0xff]  ;;  %v156_v48 = vld [vmem:[#allocation2 + $0x90] sm:$0xff] }
  0x48   :  { %v224_v38 = vrot.slane %v210_v33, %v5840_v31  ;;  %v189_v47 = vld [vmem:[#allocation2 + $0x198] sm:$0xff]  ;;  %v188_v49 = vld [vmem:[#allocation2 + $0x190] sm:$0xff]  ;;  %v159_v50 = vld [vmem:[#allocation2 + $0xa8] sm:$0xff]  ;;  %v225_v11 = vcombine.high %v217_v8, %v217_v8 }
  0x49   :  { %238 = vmatpush1.bf16.msra.mxu1 %v144_v14  ;;  %v191_v51 = vld [vmem:[#allocation2 + $0x1a8] sm:$0xff]  ;;  %v158_v52 = vld [vmem:[#allocation2 + $0xa0] sm:$0xff]  ;;  %v161_v54 = vld [vmem:[#allocation2 + $0xb8] sm:$0xff] }
  0x4a   :  { %279 = vmatpush1.bf16.msra.mxu0 %v176_v15  ;;  %239 = vmatprep.subr.bf16.mxu1 %v147_v16  ;;  %v226_v39 = vcombine.high %v224_v38, %v224_v38  ;;  %v190_v53 = vld [vmem:[#allocation2 + $0x1a0] sm:$0xff]  ;;  %v193_v55 = vld [vmem:[#allocation2 + $0x1b8] sm:$0xff]  ;;  %v160_v56 = vld [vmem:[#allocation2 + $0xb0] sm:$0xff] }
  0x4b   :  { %280 = vmatprep.subr.bf16.mxu0 %v179_v17  ;;  %263 = vmatprep.mubr.bf16.mxu1 %v224_v38  ;;  %v192_v57 = vld [vmem:[#allocation2 + $0x1b0] sm:$0xff]  ;;  %v163_v58 = vld [vmem:[#allocation2 + $0xc8] sm:$0xff]  ;;  %v162_v60 = vld [vmem:[#allocation2 + $0xc0] sm:$0xff] }
  0x4c   :  { %304 = vmatprep.mubr.bf16.mxu0 %v226_v39  ;;  %v195_v59 = vld [vmem:[#allocation2 + $0x1c8] sm:$0xff]  ;;  %v194_v61 = vld [vmem:[#allocation2 + $0x1c0] sm:$0xff]  ;;  %v165_v62 = vld [vmem:[#allocation2 + $0xd8] sm:$0xff] }
  0x4d   :  { %240 = vmatpush1.bf16.msra.mxu1 %v146_v21  ;;  %v197_v63 = vld [vmem:[#allocation2 + $0x1d8] sm:$0xff]  ;;  %v164_v0 = vld [vmem:[#allocation2 + $0xd0] sm:$0xff]  ;;  %v167_v2 = vld [vmem:[#allocation2 + $0xe8] sm:$0xff] }
  0x4e   :  { %281 = vmatpush1.bf16.msra.mxu0 %v178_v22  ;;  %241 = vmatprep.subr.bf16.mxu1 %v149_v23  ;;  %v196_v1 = vld [vmem:[#allocation2 + $0x1d0] sm:$0xff]  ;;  %v199_v3 = vld [vmem:[#allocation2 + $0x1e8] sm:$0xff]  ;;  %v166_v4 = vld [vmem:[#allocation2 + $0xe0] sm:$0xff] }
  0x4f   :  { %282 = vmatprep.subr.bf16.mxu0 %v181_v24  ;;  %v198_v5 = vld [vmem:[#allocation2 + $0x1e0] sm:$0xff]  ;;  %v169_v6 = vld [vmem:[#allocation2 + $0xf8] sm:$0xff]  ;;  %v168_v9 = vld [vmem:[#allocation2 + $0xf0] sm:$0xff] }
  0x50   :  { %v201_v7 = vld [vmem:[#allocation2 + $0x1f8] sm:$0xff]  ;;  %v200_v10 = vld [vmem:[#allocation2 + $0x1f0] sm:$0xff] }
  0x51   :  { %242 = vmatpush1.bf16.msra.mxu1 %v148_v27 }
  0x52   :  { %283 = vmatpush1.bf16.msra.mxu0 %v180_v28  ;;  %243 = vmatprep.subr.bf16.mxu1 %v151_v29 }
  0x53   :  { %284 = vmatprep.subr.bf16.mxu0 %v183_v30 }
  0x55   :  { %244 = vmatpush1.bf16.msra.mxu1 %v150_v34 }
  0x56   :  { %285 = vmatpush1.bf16.msra.mxu0 %v182_v35  ;;  %245 = vmatprep.subr.bf16.mxu1 %v153_v36 }
  0x57   :  { %286 = vmatprep.subr.bf16.mxu0 %v185_v37 }
  0x59   :  { %246 = vmatpush1.bf16.msra.mxu1 %v152_v40 }
  0x5a   :  { %287 = vmatpush1.bf16.msra.mxu0 %v184_v41  ;;  %247 = vmatprep.subr.bf16.mxu1 %v155_v42 }
  0x5b   :  { %288 = vmatprep.subr.bf16.mxu0 %v187_v43 }
  0x5d   :  { %248 = vmatpush1.bf16.msra.mxu1 %v154_v44 }
  0x5e   :  { %289 = vmatpush1.bf16.msra.mxu0 %v186_v45  ;;  %249 = vmatprep.subr.bf16.mxu1 %v157_v46 }
  0x5f   :  { %290 = vmatprep.subr.bf16.mxu0 %v189_v47 }
  0x61   :  { %250 = vmatpush1.bf16.msra.mxu1 %v156_v48 }
  0x62   :  { %291 = vmatpush1.bf16.msra.mxu0 %v188_v49  ;;  %251 = vmatprep.subr.bf16.mxu1 %v159_v50 }
  0x63   :  { %292 = vmatprep.subr.bf16.mxu0 %v191_v51 }
  0x65   :  { %252 = vmatpush1.bf16.msra.mxu1 %v158_v52 }
  0x66   :  { %293 = vmatpush1.bf16.msra.mxu0 %v190_v53  ;;  %253 = vmatprep.subr.bf16.mxu1 %v161_v54 }
  0x67   :  { %294 = vmatprep.subr.bf16.mxu0 %v193_v55 }
  0x69   :  { %254 = vmatpush1.bf16.msra.mxu1 %v160_v56 }
  0x6a   :  { %295 = vmatpush1.bf16.msra.mxu0 %v192_v57  ;;  %255 = vmatprep.subr.bf16.mxu1 %v163_v58 }
  0x6b   :  { %296 = vmatprep.subr.bf16.mxu0 %v195_v59 }
  0x6d   :  { %256 = vmatpush1.bf16.msra.mxu1 %v162_v60 }
  0x6e   :  { %297 = vmatpush1.bf16.msra.mxu0 %v194_v61  ;;  %257 = vmatprep.subr.bf16.mxu1 %v165_v62 }
  0x6f   :  { %298 = vmatprep.subr.bf16.mxu0 %v197_v63 }
  0x71   :  { %258 = vmatpush1.bf16.msra.mxu1 %v164_v0 }
  0x72   :  { %299 = vmatpush1.bf16.msra.mxu0 %v196_v1  ;;  %259 = vmatprep.subr.bf16.mxu1 %v167_v2 }
  0x73   :  { %300 = vmatprep.subr.bf16.mxu0 %v199_v3 }
  0x75   :  { %260 = vmatpush1.bf16.msra.mxu1 %v166_v4 }
  0x76   :  { %301 = vmatpush1.bf16.msra.mxu0 %v198_v5  ;;  %261 = vmatprep.subr.bf16.mxu1 %v169_v6 }
  0x77   :  { %302 = vmatprep.subr.bf16.mxu0 %v201_v7 }
  0x79   :  { %262 = vmatpush1.bf16.msra.mxu1 %v168_v9 }
  0x7a   :  { %303 = vmatpush1.bf16.msra.mxu0 %v200_v10 }
  0x7c   :  { %264 = vmatmul.mubr.bf16.vlgmr.msra.gmra.mrb[0].mxu1 %v217_v8 }
  0x7d   :  { %305 = vmatmul.mubr.bf16.vlgmr.msra.gmra.mrb[0].mxu0 %v225_v11 }
 0x14f   :  { %v265_v12 = vpop.f32.mrb[0].mxu1 }
 0x150   :  { %v306_v13 = vpop.f32.mrb[0].mxu0  ;;  %v267_v15 = vpop.f32.mrb[1].mxu1 }
 0x151   :  { %v307_v14 = vadd.f32 %v306_v13, %v265_v12  ;;  %v308_v16 = vpop.f32.mrb[1].mxu0  ;;  %v269_v18 = vpop.f32.mrb[2].mxu1 }
 0x152   :  { %v309_v17 = vadd.f32 %v308_v16, %v267_v15  ;;  %v310_v19 = vpop.f32.mrb[2].mxu0  ;;  %v270_v20 = vpop.f32.mrb[3].mxu1 }
 0x153   :  { %v311_v21 = vpop.f32.mrb[3].mxu0 }
 0x154   :  { %v315_v22 = vcombine.low %v307_v14, %v309_v17 }
 0x156   :  { %5306 = vst.sshfl [vmem:[#allocation5] sm:$0x33 pattern:$0x76325410] %v315_v22 }
 0x157   :  { %5603 = dma.done.wait [#allocation6 + $0x1], 8192 }
 0x158   :  { %5604 = vsyncadd [#allocation6 + $0x1], 4294959104  ;;  %343 = sst [smem:[#allocation16]] %s5646_s24  ;;  %s327_s1 = scalar_lea.hbm %s6455_s23, 16384 }
 0x159   :  { %345 = sst [smem:[#allocation16 + $0x1]] %s5646_s24  ;;  %s5658_s28 = smov [#allocation15]  }
 0x15a   :  { %347 = sst [smem:[#allocation16 + $0x2]] %s5647_s2 }
 0x15b   :  { %349 = sst [smem:[#allocation16 + $0x3]] %s5648_s26 }
 0x15c   :  { %351 = sst [smem:[#allocation16 + $0x4]] %s6456_s21 }
 0x15d   :  { %353 = sst [smem:[#allocation16 + $0x5]] %s5647_s2 }
 0x15e   :  { %355 = sst [smem:[#allocation16 + $0x6]] %s6456_s21 }
 0x15f   :  { %357 = sst [smem:[#allocation16 + $0x7]] %s5648_s26 }
 0x160   :  { %359 = sst [smem:[#allocation16 + $0x8]] %s6457_s30 }
 0x161   :  { %361 = dma.general %s327_s1, 8192, %s5812_s3, %s5652_s4, %s5658_s28, [#allocation16], %s5808_s29, 0  }
 0x162   :  { %v364_v23 = vld [vmem:[#allocation2 + $0x208] sm:$0xff]  ;;  %v363_v24 = vld [vmem:[#allocation2 + $0x200] sm:$0xff]  ;;  %v366_v25 = vld [vmem:[#allocation2 + $0x218] sm:$0xff] }
 0x163   :  { %456 = vmatprep.subr.bf16.mxu1 %v364_v23  ;;  %v365_v27 = vld [vmem:[#allocation2 + $0x210] sm:$0xff]  ;;  %v368_v28 = vld [vmem:[#allocation2 + $0x228] sm:$0xff]  ;;  %v367_v29 = vld [vmem:[#allocation2 + $0x220] sm:$0xff] }
 0x164   :  { %457 = vmatpush1.bf16.msra.mxu1 %v363_v24  ;;  %v370_v30 = vld [vmem:[#allocation2 + $0x238] sm:$0xff]  ;;  %v5309_v32 = vld.sshfl [vmem:[#allocation7 + $0x4] sm:$0x33 pattern:$0x75316420]  ;;  %v372_v35 = vld [vmem:[#allocation2 + $0x248] sm:$0xff] }
 0x165   :  { %458 = vmatprep.subr.bf16.mxu1 %v366_v25  ;;  %v369_v33 = vld [vmem:[#allocation2 + $0x230] sm:$0xff]  ;;  %v435_v34 = vcombine.high %v5309_v32, %v5309_v32  ;;  %v371_v37 = vld [vmem:[#allocation2 + $0x240] sm:$0xff]  ;;  %v374_v38 = vld [vmem:[#allocation2 + $0x258] sm:$0xff]  ;;  %v5866_v61 = vrot.slane %v5309_v32, %v5840_v31 }
 0x166   :  { %v373_v39 = vld [vmem:[#allocation2 + $0x250] sm:$0xff]  ;;  %v376_v40 = vld [vmem:[#allocation2 + $0x268] sm:$0xff]  ;;  %v375_v41 = vld [vmem:[#allocation2 + $0x260] sm:$0xff] }
 0x167   :  { %v449_v36 = vrot.slane %v435_v34, %v5840_v31  ;;  %v378_v42 = vld [vmem:[#allocation2 + $0x278] sm:$0xff]  ;;  %v377_v43 = vld [vmem:[#allocation2 + $0x270] sm:$0xff]  ;;  %v380_v44 = vld [vmem:[#allocation2 + $0x288] sm:$0xff]  ;;  %v450_v32 = vcombine.high %v5866_v61, %v5866_v61 }
 0x168   :  { %459 = vmatpush1.bf16.msra.mxu1 %v365_v27  ;;  %v379_v45 = vld [vmem:[#allocation2 + $0x280] sm:$0xff]  ;;  %v382_v46 = vld [vmem:[#allocation2 + $0x298] sm:$0xff]  ;;  %v381_v47 = vld [vmem:[#allocation2 + $0x290] sm:$0xff] }
 0x169   :  { %460 = vmatprep.subr.bf16.mxu1 %v368_v28  ;;  %488 = vmatprep.mubr.bf16.mxu1 %v449_v36  ;;  %v384_v48 = vld [vmem:[#allocation2 + $0x2a8] sm:$0xff]  ;;  %v383_v49 = vld [vmem:[#allocation2 + $0x2a0] sm:$0xff]  ;;  %v386_v50 = vld [vmem:[#allocation2 + $0x2b8] sm:$0xff]  ;;  %v451_v62 = vcombine.high %v449_v36, %v449_v36 }
 0x16a   :  { %v385_v51 = vld [vmem:[#allocation2 + $0x2b0] sm:$0xff]  ;;  %v388_v52 = vld [vmem:[#allocation2 + $0x2c8] sm:$0xff]  ;;  %v387_v53 = vld [vmem:[#allocation2 + $0x2c0] sm:$0xff] }
 0x16b   :  { %v390_v54 = vld [vmem:[#allocation2 + $0x2d8] sm:$0xff]  ;;  %v389_v55 = vld [vmem:[#allocation2 + $0x2d0] sm:$0xff]  ;;  %v392_v56 = vld [vmem:[#allocation2 + $0x2e8] sm:$0xff] }
 0x16c   :  { %461 = vmatpush1.bf16.msra.mxu1 %v367_v29  ;;  %v391_v57 = vld [vmem:[#allocation2 + $0x2e0] sm:$0xff]  ;;  %v394_v58 = vld [vmem:[#allocation2 + $0x2f8] sm:$0xff]  ;;  %v393_v59 = vld [vmem:[#allocation2 + $0x2f0] sm:$0xff] }
 0x16d   :  { %462 = vmatprep.subr.bf16.mxu1 %v370_v30  ;;  %v396_v60 = vld [vmem:[#allocation2 + $0x308] sm:$0xff]  ;;  %v395_v63 = vld [vmem:[#allocation2 + $0x300] sm:$0xff]  ;;  %v398_v0 = vld [vmem:[#allocation2 + $0x318] sm:$0xff] }
 0x16e   :  { %v397_v1 = vld [vmem:[#allocation2 + $0x310] sm:$0xff]  ;;  %v400_v2 = vld [vmem:[#allocation2 + $0x328] sm:$0xff]  ;;  %v399_v3 = vld [vmem:[#allocation2 + $0x320] sm:$0xff] }
 0x16f   :  { %v402_v4 = vld [vmem:[#allocation2 + $0x338] sm:$0xff]  ;;  %v401_v5 = vld [vmem:[#allocation2 + $0x330] sm:$0xff]  ;;  %v404_v6 = vld [vmem:[#allocation2 + $0x348] sm:$0xff] }
 0x170   :  { %463 = vmatpush1.bf16.msra.mxu1 %v369_v33  ;;  %v403_v7 = vld [vmem:[#allocation2 + $0x340] sm:$0xff]  ;;  %v406_v8 = vld [vmem:[#allocation2 + $0x358] sm:$0xff]  ;;  %v405_v9 = vld [vmem:[#allocation2 + $0x350] sm:$0xff]  ;;  %v5659_v33 = vmov 1983009808  }
 0x171   :  { %464 = vmatprep.subr.bf16.mxu1 %v372_v35  ;;  %v408_v10 = vld [vmem:[#allocation2 + $0x368] sm:$0xff]  ;;  %v407_v11 = vld [vmem:[#allocation2 + $0x360] sm:$0xff]  ;;  %v410_v12 = vld [vmem:[#allocation2 + $0x378] sm:$0xff]  ;;  %v543_v34 = vunpack.c.l.s4 %v5659_v33 }
 0x172   :  { %v409_v13 = vld [vmem:[#allocation2 + $0x370] sm:$0xff]  ;;  %v412_v14 = vld [vmem:[#allocation2 + $0x388] sm:$0xff]  ;;  %v411_v15 = vld [vmem:[#allocation2 + $0x380] sm:$0xff] }
 0x173   :  { %v414_v16 = vld [vmem:[#allocation2 + $0x398] sm:$0xff]  ;;  %v413_v17 = vld [vmem:[#allocation2 + $0x390] sm:$0xff]  ;;  %v416_v18 = vld [vmem:[#allocation2 + $0x3a8] sm:$0xff]  ;;  %v544_v35 = vunpack.c.0.s8 %v543_v34 }
 0x174   :  { %465 = vmatpush1.bf16.msra.mxu1 %v371_v37  ;;  %v415_v19 = vld [vmem:[#allocation2 + $0x3a0] sm:$0xff]  ;;  %v418_v20 = vld [vmem:[#allocation2 + $0x3b8] sm:$0xff]  ;;  %v417_v21 = vld [vmem:[#allocation2 + $0x3b0] sm:$0xff] }
 0x175   :  { %466 = vmatprep.subr.bf16.mxu1 %v374_v38  ;;  %v420_v22 = vld [vmem:[#allocation2 + $0x3c8] sm:$0xff]  ;;  %v419_v23 = vld [vmem:[#allocation2 + $0x3c0] sm:$0xff]  ;;  %v422_v24 = vld [vmem:[#allocation2 + $0x3d8] sm:$0xff]  ;;  %v5872_v37 = vsub.s32 %v544_v35, %v5837_v26  ;;  %v5875_v38 = vsub.s32 0, %v5837_v26 }
 0x176   :  { %v421_v25 = vld [vmem:[#allocation2 + $0x3d0] sm:$0xff]  ;;  %v424_v27 = vld [vmem:[#allocation2 + $0x3e8] sm:$0xff]  ;;  %v423_v28 = vld [vmem:[#allocation2 + $0x3e0] sm:$0xff] }
 0x177   :  { %v426_v29 = vld [vmem:[#allocation2 + $0x3f8] sm:$0xff]  ;;  %v425_v30 = vld [vmem:[#allocation2 + $0x3f0] sm:$0xff] }
 0x178   :  { %467 = vmatpush1.bf16.msra.mxu1 %v373_v39  ;;  %v5878_v39 = vsub.s32 1, %v5837_v26 }
 0x179   :  { %468 = vmatprep.subr.bf16.mxu1 %v376_v40 }
 0x17c   :  { %469 = vmatpush1.bf16.msra.mxu1 %v375_v41  ;;  %v553_v41 = vld [vmem:[%s6425_s11] sm:$0x3] }
 0x17d   :  { %470 = vmatprep.subr.bf16.mxu1 %v378_v42 }
 0x180   :  { %471 = vmatpush1.bf16.msra.mxu1 %v377_v43 }
 0x181   :  { %472 = vmatprep.subr.bf16.mxu1 %v380_v44  ;;  %v538_v44 = vld [vmem:[#allocation5] sm:$0xf] }
 0x184   :  { %473 = vmatpush1.bf16.msra.mxu1 %v379_v45 }
 0x185   :  { %474 = vmatprep.subr.bf16.mxu1 %v382_v46 }
 0x188   :  { %475 = vmatpush1.bf16.msra.mxu1 %v381_v47  ;;  %v558_v47 = vrot.slane %v553_v41, %v5875_v38 }
 0x189   :  { %476 = vmatprep.subr.bf16.mxu1 %v384_v48  ;;  %v562_v48 = vrot.slane %v553_v41, %v5878_v39 }
 0x18c   :  { %477 = vmatpush1.bf16.msra.mxu1 %v383_v49 }
 0x18d   :  { %478 = vmatprep.subr.bf16.mxu1 %v386_v50  ;;  %v563_v50 = vcombine.low %v558_v47, %v562_v48 }
 0x18f   :  { %v570_v26 = vrot.slane %v563_v50, %v5872_v37 }
 0x190   :  { %479 = vmatpush1.bf16.msra.mxu1 %v385_v51 }
 0x191   :  { %480 = vmatprep.subr.bf16.mxu1 %v388_v52 }
 0x194   :  { %481 = vmatpush1.bf16.msra.mxu1 %v387_v53 }
 0x195   :  { %482 = vmatprep.subr.bf16.mxu1 %v390_v54 }
 0x198   :  { %483 = vmatpush1.bf16.msra.mxu1 %v389_v55 }
 0x199   :  { %484 = vmatprep.subr.bf16.mxu1 %v392_v56 }
 0x19c   :  { %485 = vmatpush1.bf16.msra.mxu1 %v391_v57 }
 0x19d   :  { %486 = vmatprep.subr.bf16.mxu1 %v394_v58 }
 0x1a0   :  { %487 = vmatpush1.bf16.msra.mxu1 %v393_v59 }
 0x1a1   :  { %497 = vmatprep.subr.bf16.mxu1 %v396_v60 }
 0x1a3   :  { %489 = vmatmul.mubr.bf16.vlgmr.msra.gmra.mrb[4].mxu1 %v5866_v61 }
 0x1a4   :  { %498 = vmatpush1.bf16.msra.mxu1 %v395_v63  ;;  %529 = vmatprep.mubr.bf16.mxu1 %v451_v62 }
 0x1a5   :  { %499 = vmatprep.subr.bf16.mxu1 %v398_v0 }
 0x1a8   :  { %500 = vmatpush1.bf16.msra.mxu1 %v397_v1 }
 0x1a9   :  { %501 = vmatprep.subr.bf16.mxu1 %v400_v2 }
 0x1ac   :  { %502 = vmatpush1.bf16.msra.mxu1 %v399_v3 }
 0x1ad   :  { %503 = vmatprep.subr.bf16.mxu1 %v402_v4 }
 0x1b0   :  { %504 = vmatpush1.bf16.msra.mxu1 %v401_v5 }
 0x1b1   :  { %505 = vmatprep.subr.bf16.mxu1 %v404_v6 }
 0x1b4   :  { %506 = vmatpush1.bf16.msra.mxu1 %v403_v7 }
 0x1b5   :  { %507 = vmatprep.subr.bf16.mxu1 %v406_v8 }
 0x1b8   :  { %508 = vmatpush1.bf16.msra.mxu1 %v405_v9 }
 0x1b9   :  { %509 = vmatprep.subr.bf16.mxu1 %v408_v10 }
 0x1bc   :  { %510 = vmatpush1.bf16.msra.mxu1 %v407_v11 }
 0x1bd   :  { %511 = vmatprep.subr.bf16.mxu1 %v410_v12 }
 0x1c0   :  { %512 = vmatpush1.bf16.msra.mxu1 %v409_v13 }
 0x1c1   :  { %513 = vmatprep.subr.bf16.mxu1 %v412_v14 }
 0x1c4   :  { %514 = vmatpush1.bf16.msra.mxu1 %v411_v15 }
 0x1c5   :  { %515 = vmatprep.subr.bf16.mxu1 %v414_v16 }
 0x1c8   :  { %516 = vmatpush1.bf16.msra.mxu1 %v413_v17 }
 0x1c9   :  { %517 = vmatprep.subr.bf16.mxu1 %v416_v18 }
 0x1cc   :  { %518 = vmatpush1.bf16.msra.mxu1 %v415_v19 }
 0x1cd   :  { %519 = vmatprep.subr.bf16.mxu1 %v418_v20 }
 0x1d0   :  { %520 = vmatpush1.bf16.msra.mxu1 %v417_v21 }
 0x1d1   :  { %521 = vmatprep.subr.bf16.mxu1 %v420_v22 }
 0x1d4   :  { %522 = vmatpush1.bf16.msra.mxu1 %v419_v23 }
 0x1d5   :  { %523 = vmatprep.subr.bf16.mxu1 %v422_v24 }
 0x1d8   :  { %524 = vmatpush1.bf16.msra.mxu1 %v421_v25 }
 0x1d9   :  { %525 = vmatprep.subr.bf16.mxu1 %v424_v27 }
 0x1dc   :  { %526 = vmatpush1.bf16.msra.mxu1 %v423_v28 }
 0x1dd   :  { %527 = vmatprep.subr.bf16.mxu1 %v426_v29 }
 0x1e0   :  { %528 = vmatpush1.bf16.msra.mxu1 %v425_v30 }
 0x1e3   :  { %530 = vmatmul.mubr.bf16.vlgmr.msra.gmra.mrb[4].mxu1 %v450_v32 }
 0x2b6   :  { %v531_v36 = vpop.f32.mrb[4].mxu1 }
 0x2b7   :  { %v533_v40 = vpop.f32.mrb[5].mxu1 }
 0x2b8   :  { %v541_v42 = vcombine.low %v531_v36, %v533_v40  ;;  %v535_v43 = vpop.f32.mrb[6].mxu1 }
 0x2b9   :  { %v536_v45 = vpop.f32.mrb[7].mxu1 }
 0x2ba   :  { %v548_v46 = vrot.slane %v541_v42, %v5872_v37 }
 0x2bc   :  { %v550_v49 = vadd.f32 %v548_v46, %v538_v44 }
 0x2be   :  { %551 = vst [vmem:[#allocation5] sm:$0xf] %v550_v49 }
 0x2c5   :  { %v552_v51 = vld [vmem:[#allocation5] sm:$0xf] }
 0x2c6   :  { %v572_v52 = vadd.f32 %v570_v26, %v552_v51 }
 0x2c8   :  { %v573_v53 = vmax.f32 %v572_v52, 0.0 }
 0x2ca   :  { %v581_v54 = vrot.slane %v573_v53, %v5872_v37 }
 0x2cc   :  { %v582_v55 = vcombine.high %v581_v54, %v581_v54 }
 0x2ce   :  { %v5310_v56 = vpack.c.bf16 %v582_v55, %v581_v54 }
 0x2d0   :  { %v596_v57 = vrot.slane %v5310_v56, %v5840_v31 }
 0x2d2   :  { %5311 = vst.sshfl [vmem:[#allocation3] sm:$0x5 pattern:$0x73625140] %v596_v57 }
 0x2d3   :  { %5605 = dma.done.wait [#allocation6], 8192 }
 0x2d4   :  { %5606 = vsyncadd [#allocation6], 4294959104  ;;  %624 = sst [smem:[#allocation18]] %s5646_s24  ;;  %s608_s28 = scalar_lea.hbm %s6455_s23, 24576 }
 0x2d5   :  { %626 = sst [smem:[#allocation18 + $0x1]] %s5646_s24  ;;  %s5660_s22 = smov [#allocation17]  }
 0x2d6   :  { %628 = sst [smem:[#allocation18 + $0x2]] %s5647_s2 }
 0x2d7   :  { %630 = sst [smem:[#allocation18 + $0x3]] %s5648_s26 }
 0x2d8   :  { %632 = sst [smem:[#allocation18 + $0x4]] %s6456_s21 }
 0x2d9   :  { %634 = sst [smem:[#allocation18 + $0x5]] %s5647_s2 }
 0x2da   :  { %636 = sst [smem:[#allocation18 + $0x6]] %s6456_s21 }
 0x2db   :  { %638 = sst [smem:[#allocation18 + $0x7]] %s5648_s26 }
 0x2dc   :  { %640 = sst [smem:[#allocation18 + $0x8]] %s6457_s30 }
 0x2dd   :  { %642 = dma.general %s608_s28, 8192, %s5828_s25, %s5655_s5, %s5660_s22, [#allocation18], %s5808_s29, 0  }
 0x2de   :  { %v645_v58 = vld [vmem:[#allocation2 + $0x8] sm:$0xff]  ;;  %v644_v59 = vld [vmem:[#allocation2] sm:$0xff]  ;;  %v647_v60 = vld [vmem:[#allocation2 + $0x18] sm:$0xff] }
 0x2df   :  { %737 = vmatprep.subr.bf16.mxu0 %v645_v58  ;;  %v646_v61 = vld [vmem:[#allocation2 + $0x10] sm:$0xff]  ;;  %v649_v62 = vld [vmem:[#allocation2 + $0x28] sm:$0xff]  ;;  %v648_v63 = vld [vmem:[#allocation2 + $0x20] sm:$0xff] }
 0x2e0   :  { %738 = vmatpush1.bf16.msra.mxu0 %v644_v59  ;;  %v651_v0 = vld [vmem:[#allocation2 + $0x38] sm:$0xff]  ;;  %v5314_v1 = vld.sshfl [vmem:[#allocation7] sm:$0x33 pattern:$0x75316420]  ;;  %v650_v2 = vld [vmem:[#allocation2 + $0x30] sm:$0xff] }
 0x2e1   :  { %739 = vmatprep.subr.bf16.mxu0 %v647_v60  ;;  %v716_v3 = vcombine.high %v5314_v1, %v5314_v1  ;;  %v653_v4 = vld [vmem:[#allocation2 + $0x48] sm:$0xff]  ;;  %v652_v6 = vld [vmem:[#allocation2 + $0x40] sm:$0xff]  ;;  %v655_v7 = vld [vmem:[#allocation2 + $0x58] sm:$0xff]  ;;  %v5906_v32 = vrot.slane %v5314_v1, %v5840_v31 }
 0x2e2   :  { %v654_v8 = vld [vmem:[#allocation2 + $0x50] sm:$0xff]  ;;  %v657_v9 = vld [vmem:[#allocation2 + $0x68] sm:$0xff]  ;;  %v656_v10 = vld [vmem:[#allocation2 + $0x60] sm:$0xff] }
 0x2e3   :  { %v730_v5 = vrot.slane %v716_v3, %v5840_v31  ;;  %v659_v11 = vld [vmem:[#allocation2 + $0x78] sm:$0xff]  ;;  %v658_v12 = vld [vmem:[#allocation2 + $0x70] sm:$0xff]  ;;  %v661_v13 = vld [vmem:[#allocation2 + $0x88] sm:$0xff]  ;;  %v731_v3 = vcombine.high %v5906_v32, %v5906_v32 }
 0x2e4   :  { %740 = vmatpush1.bf16.msra.mxu0 %v646_v61  ;;  %v660_v14 = vld [vmem:[#allocation2 + $0x80] sm:$0xff]  ;;  %v663_v15 = vld [vmem:[#allocation2 + $0x98] sm:$0xff]  ;;  %v662_v16 = vld [vmem:[#allocation2 + $0x90] sm:$0xff] }
 0x2e5   :  { %741 = vmatprep.subr.bf16.mxu0 %v649_v62  ;;  %769 = vmatprep.mubr.bf16.mxu0 %v730_v5  ;;  %v665_v17 = vld [vmem:[#allocation2 + $0xa8] sm:$0xff]  ;;  %v664_v18 = vld [vmem:[#allocation2 + $0xa0] sm:$0xff]  ;;  %v667_v19 = vld [vmem:[#allocation2 + $0xb8] sm:$0xff]  ;;  %v732_v33 = vcombine.high %v730_v5, %v730_v5 }
 0x2e6   :  { %v666_v20 = vld [vmem:[#allocation2 + $0xb0] sm:$0xff]  ;;  %v669_v21 = vld [vmem:[#allocation2 + $0xc8] sm:$0xff]  ;;  %v668_v22 = vld [vmem:[#allocation2 + $0xc0] sm:$0xff] }
 0x2e7   :  { %v671_v23 = vld [vmem:[#allocation2 + $0xd8] sm:$0xff]  ;;  %v670_v24 = vld [vmem:[#allocation2 + $0xd0] sm:$0xff]  ;;  %v673_v25 = vld [vmem:[#allocation2 + $0xe8] sm:$0xff] }
 0x2e8   :  { %742 = vmatpush1.bf16.msra.mxu0 %v648_v63  ;;  %v672_v27 = vld [vmem:[#allocation2 + $0xe0] sm:$0xff]  ;;  %v675_v28 = vld [vmem:[#allocation2 + $0xf8] sm:$0xff]  ;;  %v674_v29 = vld [vmem:[#allocation2 + $0xf0] sm:$0xff] }
 0x2e9   :  { %743 = vmatprep.subr.bf16.mxu0 %v651_v0  ;;  %v677_v30 = vld [vmem:[#allocation2 + $0x108] sm:$0xff]  ;;  %v676_v34 = vld [vmem:[#allocation2 + $0x100] sm:$0xff]  ;;  %v679_v35 = vld [vmem:[#allocation2 + $0x118] sm:$0xff] }
 0x2ea   :  { %v678_v36 = vld [vmem:[#allocation2 + $0x110] sm:$0xff]  ;;  %v681_v40 = vld [vmem:[#allocation2 + $0x128] sm:$0xff]  ;;  %v680_v41 = vld [vmem:[#allocation2 + $0x120] sm:$0xff] }
 0x2eb   :  { %v683_v42 = vld [vmem:[#allocation2 + $0x138] sm:$0xff]  ;;  %v682_v43 = vld [vmem:[#allocation2 + $0x130] sm:$0xff]  ;;  %v685_v44 = vld [vmem:[#allocation2 + $0x148] sm:$0xff] }
 0x2ec   :  { %744 = vmatpush1.bf16.msra.mxu0 %v650_v2  ;;  %v684_v45 = vld [vmem:[#allocation2 + $0x140] sm:$0xff]  ;;  %v687_v46 = vld [vmem:[#allocation2 + $0x158] sm:$0xff]  ;;  %v686_v47 = vld [vmem:[#allocation2 + $0x150] sm:$0xff] }
 0x2ed   :  { %745 = vmatprep.subr.bf16.mxu0 %v653_v4  ;;  %v689_v48 = vld [vmem:[#allocation2 + $0x168] sm:$0xff]  ;;  %v688_v49 = vld [vmem:[#allocation2 + $0x160] sm:$0xff]  ;;  %v691_v50 = vld [vmem:[#allocation2 + $0x178] sm:$0xff] }
 0x2ee   :  { %v690_v26 = vld [vmem:[#allocation2 + $0x170] sm:$0xff]  ;;  %v693_v51 = vld [vmem:[#allocation2 + $0x188] sm:$0xff]  ;;  %v692_v52 = vld [vmem:[#allocation2 + $0x180] sm:$0xff] }
 0x2ef   :  { %v695_v53 = vld [vmem:[#allocation2 + $0x198] sm:$0xff]  ;;  %v694_v54 = vld [vmem:[#allocation2 + $0x190] sm:$0xff]  ;;  %v697_v55 = vld [vmem:[#allocation2 + $0x1a8] sm:$0xff] }
 0x2f0   :  { %746 = vmatpush1.bf16.msra.mxu0 %v652_v6  ;;  %v696_v56 = vld [vmem:[#allocation2 + $0x1a0] sm:$0xff]  ;;  %v699_v57 = vld [vmem:[#allocation2 + $0x1b8] sm:$0xff]  ;;  %v698_v58 = vld [vmem:[#allocation2 + $0x1b0] sm:$0xff] }
 0x2f1   :  { %747 = vmatprep.subr.bf16.mxu0 %v655_v7  ;;  %v701_v59 = vld [vmem:[#allocation2 + $0x1c8] sm:$0xff]  ;;  %v700_v60 = vld [vmem:[#allocation2 + $0x1c0] sm:$0xff]  ;;  %v703_v61 = vld [vmem:[#allocation2 + $0x1d8] sm:$0xff] }
 0x2f2   :  { %v702_v62 = vld [vmem:[#allocation2 + $0x1d0] sm:$0xff]  ;;  %v705_v63 = vld [vmem:[#allocation2 + $0x1e8] sm:$0xff]  ;;  %v704_v0 = vld [vmem:[#allocation2 + $0x1e0] sm:$0xff] }
 0x2f3   :  { %v707_v1 = vld [vmem:[#allocation2 + $0x1f8] sm:$0xff]  ;;  %v706_v2 = vld [vmem:[#allocation2 + $0x1f0] sm:$0xff] }
 0x2f4   :  { %748 = vmatpush1.bf16.msra.mxu0 %v654_v8 }
 0x2f5   :  { %749 = vmatprep.subr.bf16.mxu0 %v657_v9 }
 0x2f8   :  { %750 = vmatpush1.bf16.msra.mxu0 %v656_v10 }
 0x2f9   :  { %751 = vmatprep.subr.bf16.mxu0 %v659_v11 }
 0x2fc   :  { %752 = vmatpush1.bf16.msra.mxu0 %v658_v12 }
 0x2fd   :  { %753 = vmatprep.subr.bf16.mxu0 %v661_v13 }
 0x300   :  { %754 = vmatpush1.bf16.msra.mxu0 %v660_v14 }
 0x301   :  { %755 = vmatprep.subr.bf16.mxu0 %v663_v15 }
 0x304   :  { %756 = vmatpush1.bf16.msra.mxu0 %v662_v16 }
 0x305   :  { %757 = vmatprep.subr.bf16.mxu0 %v665_v17 }
 0x308   :  { %758 = vmatpush1.bf16.msra.mxu0 %v664_v18 }
 0x309   :  { %759 = vmatprep.subr.bf16.mxu0 %v667_v19 }
 0x30c   :  { %760 = vmatpush1.bf16.msra.mxu0 %v666_v20 }
 0x30d   :  { %761 = vmatprep.subr.bf16.mxu0 %v669_v21 }
 0x310   :  { %762 = vmatpush1.bf16.msra.mxu0 %v668_v22 }
 0x311   :  { %763 = vmatprep.subr.bf16.mxu0 %v671_v23 }
 0x314   :  { %764 = vmatpush1.bf16.msra.mxu0 %v670_v24 }
 0x315   :  { %765 = vmatprep.subr.bf16.mxu0 %v673_v25 }
 0x318   :  { %766 = vmatpush1.bf16.msra.mxu0 %v672_v27 }
 0x319   :  { %767 = vmatprep.subr.bf16.mxu0 %v675_v28 }
 0x31c   :  { %768 = vmatpush1.bf16.msra.mxu0 %v674_v29 }
 0x31d   :  { %778 = vmatprep.subr.bf16.mxu0 %v677_v30 }
 0x31f   :  { %770 = vmatmul.mubr.bf16.vlgmr.msra.gmra.mrb[4].mxu0 %v5906_v32 }
 0x320   :  { %779 = vmatpush1.bf16.msra.mxu0 %v676_v34  ;;  %810 = vmatprep.mubr.bf16.mxu0 %v732_v33 }
 0x321   :  { %780 = vmatprep.subr.bf16.mxu0 %v679_v35 }
 0x324   :  { %781 = vmatpush1.bf16.msra.mxu0 %v678_v36 }
 0x325   :  { %782 = vmatprep.subr.bf16.mxu0 %v681_v40 }
 0x328   :  { %783 = vmatpush1.bf16.msra.mxu0 %v680_v41 }
 0x329   :  { %784 = vmatprep.subr.bf16.mxu0 %v683_v42 }
 0x32c   :  { %785 = vmatpush1.bf16.msra.mxu0 %v682_v43 }
 0x32d   :  { %786 = vmatprep.subr.bf16.mxu0 %v685_v44 }
 0x330   :  { %787 = vmatpush1.bf16.msra.mxu0 %v684_v45 }
 0x331   :  { %788 = vmatprep.subr.bf16.mxu0 %v687_v46 }
 0x334   :  { %789 = vmatpush1.bf16.msra.mxu0 %v686_v47 }
 0x335   :  { %790 = vmatprep.subr.bf16.mxu0 %v689_v48 }
 0x338   :  { %791 = vmatpush1.bf16.msra.mxu0 %v688_v49 }
 0x339   :  { %792 = vmatprep.subr.bf16.mxu0 %v691_v50 }
 0x33c   :  { %793 = vmatpush1.bf16.msra.mxu0 %v690_v26 }
 0x33d   :  { %794 = vmatprep.subr.bf16.mxu0 %v693_v51 }
 0x340   :  { %795 = vmatpush1.bf16.msra.mxu0 %v692_v52 }
 0x341   :  { %796 = vmatprep.subr.bf16.mxu0 %v695_v53 }
 0x344   :  { %797 = vmatpush1.bf16.msra.mxu0 %v694_v54 }
 0x345   :  { %798 = vmatprep.subr.bf16.mxu0 %v697_v55 }
 0x348   :  { %799 = vmatpush1.bf16.msra.mxu0 %v696_v56 }
 0x349   :  { %800 = vmatprep.subr.bf16.mxu0 %v699_v57 }
 0x34c   :  { %801 = vmatpush1.bf16.msra.mxu0 %v698_v58 }
 0x34d   :  { %802 = vmatprep.subr.bf16.mxu0 %v701_v59 }
 0x350   :  { %803 = vmatpush1.bf16.msra.mxu0 %v700_v60 }
 0x351   :  { %804 = vmatprep.subr.bf16.mxu0 %v703_v61 }
 0x354   :  { %805 = vmatpush1.bf16.msra.mxu0 %v702_v62 }
 0x355   :  { %806 = vmatprep.subr.bf16.mxu0 %v705_v63 }
 0x358   :  { %807 = vmatpush1.bf16.msra.mxu0 %v704_v0 }
 0x359   :  { %808 = vmatprep.subr.bf16.mxu0 %v707_v1 }
 0x35c   :  { %809 = vmatpush1.bf16.msra.mxu0 %v706_v2 }
 0x35f   :  { %811 = vmatmul.mubr.bf16.vlgmr.msra.gmra.mrb[4].mxu0 %v731_v3 }
 0x432   :  { %v812_v4 = vpop.f32.mrb[4].mxu0 }
 0x433   :  { %v814_v5 = vpop.f32.mrb[5].mxu0 }
 0x434   :  { %v821_v6 = vcombine.low %v812_v4, %v814_v5  ;;  %v816_v7 = vpop.f32.mrb[6].mxu0 }
 0x435   :  { %v817_v8 = vpop.f32.mrb[7].mxu0 }
 0x436   :  { %5315 = vst.sshfl [vmem:[#allocation5] sm:$0x33 pattern:$0x76325410] %v821_v6 }
 0x437   :  { %5607 = dma.done.wait [#allocation6 + $0x1], 8192 }
 0x438   :  { %5608 = vsyncadd [#allocation6 + $0x1], 4294959104  ;;  %848 = sst [smem:[#allocation20]] %s5646_s24  ;;  %s5661_s23 = smov [#allocation19]  }
 0x439   :  { %850 = sst [smem:[#allocation20 + $0x1]] %s5646_s24  ;;  %s6458_s1 = sld [smem:[#allocation78_spill]] }
 0x43a   :  { %852 = sst [smem:[#allocation20 + $0x2]] %s5647_s2 }
 0x43b   :  { %854 = sst [smem:[#allocation20 + $0x3]] %s5648_s26 }
 0x43c   :  { %856 = sst [smem:[#allocation20 + $0x4]] %s6456_s21 }
 0x43d   :  { %858 = sst [smem:[#allocation20 + $0x5]] %s5647_s2 }
 0x43e   :  { %860 = sst [smem:[#allocation20 + $0x6]] %s6456_s21 }
 0x43f   :  { %862 = sst [smem:[#allocation20 + $0x7]] %s5648_s26 }
 0x440   :  { %864 = sst [smem:[#allocation20 + $0x8]] %s6457_s30 }
 0x441   :  { %866 = dma.general %s6458_s1, 8192, %s5812_s3, %s5652_s4, %s5661_s23, [#allocation20], %s5808_s29, 0  }
 0x442   :  { %v869_v9 = vld [vmem:[#allocation2 + $0x208] sm:$0xff]  ;;  %v868_v10 = vld [vmem:[#allocation2 + $0x200] sm:$0xff]  ;;  %v871_v11 = vld [vmem:[#allocation2 + $0x218] sm:$0xff] }
 0x443   :  { %961 = vmatprep.subr.bf16.mxu1 %v869_v9  ;;  %v870_v12 = vld [vmem:[#allocation2 + $0x210] sm:$0xff]  ;;  %v873_v13 = vld [vmem:[#allocation2 + $0x228] sm:$0xff]  ;;  %v872_v14 = vld [vmem:[#allocation2 + $0x220] sm:$0xff] }
 0x444   :  { %962 = vmatpush1.bf16.msra.mxu1 %v868_v10  ;;  %v875_v15 = vld [vmem:[#allocation2 + $0x238] sm:$0xff]  ;;  %v5318_v16 = vld.sshfl [vmem:[#allocation7 + $0x4] sm:$0x33 pattern:$0x75316420]  ;;  %v877_v19 = vld [vmem:[#allocation2 + $0x248] sm:$0xff] }
 0x445   :  { %963 = vmatprep.subr.bf16.mxu1 %v871_v11  ;;  %v874_v17 = vld [vmem:[#allocation2 + $0x230] sm:$0xff]  ;;  %v940_v18 = vcombine.high %v5318_v16, %v5318_v16  ;;  %v876_v21 = vld [vmem:[#allocation2 + $0x240] sm:$0xff]  ;;  %v879_v22 = vld [vmem:[#allocation2 + $0x258] sm:$0xff]  ;;  %v5928_v50 = vrot.slane %v5318_v16, %v5840_v31 }
 0x446   :  { %v878_v23 = vld [vmem:[#allocation2 + $0x250] sm:$0xff]  ;;  %v881_v24 = vld [vmem:[#allocation2 + $0x268] sm:$0xff]  ;;  %v880_v25 = vld [vmem:[#allocation2 + $0x260] sm:$0xff] }
 0x447   :  { %v954_v20 = vrot.slane %v940_v18, %v5840_v31  ;;  %v883_v27 = vld [vmem:[#allocation2 + $0x278] sm:$0xff]  ;;  %v882_v28 = vld [vmem:[#allocation2 + $0x270] sm:$0xff]  ;;  %v885_v29 = vld [vmem:[#allocation2 + $0x288] sm:$0xff]  ;;  %v955_v18 = vcombine.high %v5928_v50, %v5928_v50 }
 0x448   :  { %964 = vmatpush1.bf16.msra.mxu1 %v870_v12  ;;  %v884_v30 = vld [vmem:[#allocation2 + $0x280] sm:$0xff]  ;;  %v887_v32 = vld [vmem:[#allocation2 + $0x298] sm:$0xff]  ;;  %v886_v33 = vld [vmem:[#allocation2 + $0x290] sm:$0xff] }
 0x449   :  { %965 = vmatprep.subr.bf16.mxu1 %v873_v13  ;;  %993 = vmatprep.mubr.bf16.mxu1 %v954_v20  ;;  %v889_v34 = vld [vmem:[#allocation2 + $0x2a8] sm:$0xff]  ;;  %v888_v35 = vld [vmem:[#allocation2 + $0x2a0] sm:$0xff]  ;;  %v891_v36 = vld [vmem:[#allocation2 + $0x2b8] sm:$0xff]  ;;  %v956_v26 = vcombine.high %v954_v20, %v954_v20 }
 0x44a   :  { %v890_v40 = vld [vmem:[#allocation2 + $0x2b0] sm:$0xff]  ;;  %v893_v41 = vld [vmem:[#allocation2 + $0x2c8] sm:$0xff]  ;;  %v892_v42 = vld [vmem:[#allocation2 + $0x2c0] sm:$0xff] }
 0x44b   :  { %v895_v43 = vld [vmem:[#allocation2 + $0x2d8] sm:$0xff]  ;;  %v894_v44 = vld [vmem:[#allocation2 + $0x2d0] sm:$0xff]  ;;  %v897_v45 = vld [vmem:[#allocation2 + $0x2e8] sm:$0xff] }
 0x44c   :  { %966 = vmatpush1.bf16.msra.mxu1 %v872_v14  ;;  %v896_v46 = vld [vmem:[#allocation2 + $0x2e0] sm:$0xff]  ;;  %v899_v47 = vld [vmem:[#allocation2 + $0x2f8] sm:$0xff]  ;;  %v898_v48 = vld [vmem:[#allocation2 + $0x2f0] sm:$0xff] }
 0x44d   :  { %967 = vmatprep.subr.bf16.mxu1 %v875_v15  ;;  %v901_v49 = vld [vmem:[#allocation2 + $0x308] sm:$0xff]  ;;  %v900_v51 = vld [vmem:[#allocation2 + $0x300] sm:$0xff]  ;;  %v903_v52 = vld [vmem:[#allocation2 + $0x318] sm:$0xff] }
 0x44e   :  { %v902_v53 = vld [vmem:[#allocation2 + $0x310] sm:$0xff]  ;;  %v905_v54 = vld [vmem:[#allocation2 + $0x328] sm:$0xff]  ;;  %v904_v55 = vld [vmem:[#allocation2 + $0x320] sm:$0xff] }
 0x44f   :  { %v907_v56 = vld [vmem:[#allocation2 + $0x338] sm:$0xff]  ;;  %v906_v57 = vld [vmem:[#allocation2 + $0x330] sm:$0xff]  ;;  %v909_v58 = vld [vmem:[#allocation2 + $0x348] sm:$0xff] }
 0x450   :  { %968 = vmatpush1.bf16.msra.mxu1 %v874_v17  ;;  %v908_v59 = vld [vmem:[#allocation2 + $0x340] sm:$0xff]  ;;  %v911_v60 = vld [vmem:[#allocation2 + $0x358] sm:$0xff]  ;;  %v910_v61 = vld [vmem:[#allocation2 + $0x350] sm:$0xff] }
 0x451   :  { %969 = vmatprep.subr.bf16.mxu1 %v877_v19  ;;  %v913_v62 = vld [vmem:[#allocation2 + $0x368] sm:$0xff]  ;;  %v912_v63 = vld [vmem:[#allocation2 + $0x360] sm:$0xff]  ;;  %v915_v0 = vld [vmem:[#allocation2 + $0x378] sm:$0xff] }
 0x452   :  { %v914_v1 = vld [vmem:[#allocation2 + $0x370] sm:$0xff]  ;;  %v917_v2 = vld [vmem:[#allocation2 + $0x388] sm:$0xff]  ;;  %v916_v3 = vld [vmem:[#allocation2 + $0x380] sm:$0xff] }
 0x453   :  { %v919_v4 = vld [vmem:[#allocation2 + $0x398] sm:$0xff]  ;;  %v918_v5 = vld [vmem:[#allocation2 + $0x390] sm:$0xff]  ;;  %v921_v6 = vld [vmem:[#allocation2 + $0x3a8] sm:$0xff] }
 0x454   :  { %970 = vmatpush1.bf16.msra.mxu1 %v876_v21  ;;  %v920_v7 = vld [vmem:[#allocation2 + $0x3a0] sm:$0xff]  ;;  %v923_v8 = vld [vmem:[#allocation2 + $0x3b8] sm:$0xff]  ;;  %v922_v9 = vld [vmem:[#allocation2 + $0x3b0] sm:$0xff] }
 0x455   :  { %971 = vmatprep.subr.bf16.mxu1 %v879_v22  ;;  %v925_v10 = vld [vmem:[#allocation2 + $0x3c8] sm:$0xff]  ;;  %v924_v11 = vld [vmem:[#allocation2 + $0x3c0] sm:$0xff]  ;;  %v927_v12 = vld [vmem:[#allocation2 + $0x3d8] sm:$0xff] }
 0x456   :  { %v926_v13 = vld [vmem:[#allocation2 + $0x3d0] sm:$0xff]  ;;  %v929_v14 = vld [vmem:[#allocation2 + $0x3e8] sm:$0xff]  ;;  %v928_v15 = vld [vmem:[#allocation2 + $0x3e0] sm:$0xff] }
 0x457   :  { %v931_v16 = vld [vmem:[#allocation2 + $0x3f8] sm:$0xff]  ;;  %v930_v17 = vld [vmem:[#allocation2 + $0x3f0] sm:$0xff]  ;;  %v1058_v21 = vld [vmem:[%s6425_s11 + $0x2] sm:$0x3] }
 0x458   :  { %972 = vmatpush1.bf16.msra.mxu1 %v878_v23 }
 0x459   :  { %973 = vmatprep.subr.bf16.mxu1 %v881_v24  ;;  %v1043_v24 = vld [vmem:[#allocation5] sm:$0xf] }
 0x45c   :  { %974 = vmatpush1.bf16.msra.mxu1 %v880_v25 }
 0x45d   :  { %975 = vmatprep.subr.bf16.mxu1 %v883_v27 }
 0x460   :  { %976 = vmatpush1.bf16.msra.mxu1 %v882_v28  ;;  %v1063_v28 = vrot.slane %v1058_v21, %v5875_v38 }
 0x461   :  { %977 = vmatprep.subr.bf16.mxu1 %v885_v29  ;;  %v1067_v29 = vrot.slane %v1058_v21, %v5878_v39 }
 0x464   :  { %978 = vmatpush1.bf16.msra.mxu1 %v884_v30 }
 0x465   :  { %979 = vmatprep.subr.bf16.mxu1 %v887_v32  ;;  %v1068_v32 = vcombine.low %v1063_v28, %v1067_v29 }
 0x468   :  { %980 = vmatpush1.bf16.msra.mxu1 %v886_v33  ;;  %v1075_v33 = vrot.slane %v1068_v32, %v5872_v37 }
 0x469   :  { %981 = vmatprep.subr.bf16.mxu1 %v889_v34 }
 0x46c   :  { %982 = vmatpush1.bf16.msra.mxu1 %v888_v35 }
 0x46d   :  { %983 = vmatprep.subr.bf16.mxu1 %v891_v36 }
 0x470   :  { %984 = vmatpush1.bf16.msra.mxu1 %v890_v40 }
 0x471   :  { %985 = vmatprep.subr.bf16.mxu1 %v893_v41 }
 0x474   :  { %986 = vmatpush1.bf16.msra.mxu1 %v892_v42 }
 0x475   :  { %987 = vmatprep.subr.bf16.mxu1 %v895_v43 }
 0x478   :  { %988 = vmatpush1.bf16.msra.mxu1 %v894_v44 }
 0x479   :  { %989 = vmatprep.subr.bf16.mxu1 %v897_v45 }
 0x47c   :  { %990 = vmatpush1.bf16.msra.mxu1 %v896_v46 }
 0x47d   :  { %991 = vmatprep.subr.bf16.mxu1 %v899_v47 }
 0x480   :  { %992 = vmatpush1.bf16.msra.mxu1 %v898_v48 }
 0x481   :  { %1002 = vmatprep.subr.bf16.mxu1 %v901_v49 }
 0x483   :  { %994 = vmatmul.mubr.bf16.vlgmr.msra.gmra.mrb[8].mxu1 %v5928_v50 }
 0x484   :  { %1003 = vmatpush1.bf16.msra.mxu1 %v900_v51  ;;  %1034 = vmatprep.mubr.bf16.mxu1 %v956_v26 }
 0x485   :  { %1004 = vmatprep.subr.bf16.mxu1 %v903_v52 }
 0x488   :  { %1005 = vmatpush1.bf16.msra.mxu1 %v902_v53 }
 0x489   :  { %1006 = vmatprep.subr.bf16.mxu1 %v905_v54 }
 0x48c   :  { %1007 = vmatpush1.bf16.msra.mxu1 %v904_v55 }
 0x48d   :  { %1008 = vmatprep.subr.bf16.mxu1 %v907_v56 }
 0x490   :  { %1009 = vmatpush1.bf16.msra.mxu1 %v906_v57 }
 0x491   :  { %1010 = vmatprep.subr.bf16.mxu1 %v909_v58 }
 0x494   :  { %1011 = vmatpush1.bf16.msra.mxu1 %v908_v59 }
 0x495   :  { %1012 = vmatprep.subr.bf16.mxu1 %v911_v60 }
 0x498   :  { %1013 = vmatpush1.bf16.msra.mxu1 %v910_v61 }
 0x499   :  { %1014 = vmatprep.subr.bf16.mxu1 %v913_v62 }
 0x49c   :  { %1015 = vmatpush1.bf16.msra.mxu1 %v912_v63 }
 0x49d   :  { %1016 = vmatprep.subr.bf16.mxu1 %v915_v0 }
 0x4a0   :  { %1017 = vmatpush1.bf16.msra.mxu1 %v914_v1 }
 0x4a1   :  { %1018 = vmatprep.subr.bf16.mxu1 %v917_v2 }
 0x4a4   :  { %1019 = vmatpush1.bf16.msra.mxu1 %v916_v3 }
 0x4a5   :  { %1020 = vmatprep.subr.bf16.mxu1 %v919_v4 }
 0x4a8   :  { %1021 = vmatpush1.bf16.msra.mxu1 %v918_v5 }
 0x4a9   :  { %1022 = vmatprep.subr.bf16.mxu1 %v921_v6 }
 0x4ac   :  { %1023 = vmatpush1.bf16.msra.mxu1 %v920_v7 }
 0x4ad   :  { %1024 = vmatprep.subr.bf16.mxu1 %v923_v8 }
 0x4b0   :  { %1025 = vmatpush1.bf16.msra.mxu1 %v922_v9 }
 0x4b1   :  { %1026 = vmatprep.subr.bf16.mxu1 %v925_v10 }
 0x4b4   :  { %1027 = vmatpush1.bf16.msra.mxu1 %v924_v11 }
 0x4b5   :  { %1028 = vmatprep.subr.bf16.mxu1 %v927_v12 }
 0x4b8   :  { %1029 = vmatpush1.bf16.msra.mxu1 %v926_v13 }
 0x4b9   :  { %1030 = vmatprep.subr.bf16.mxu1 %v929_v14 }
 0x4bc   :  { %1031 = vmatpush1.bf16.msra.mxu1 %v928_v15 }
 0x4bd   :  { %1032 = vmatprep.subr.bf16.mxu1 %v931_v16 }
 0x4c0   :  { %1033 = vmatpush1.bf16.msra.mxu1 %v930_v17 }
 0x4c3   :  { %1035 = vmatmul.mubr.bf16.vlgmr.msra.gmra.mrb[8].mxu1 %v955_v18 }
 0x596   :  { %v1036_v19 = vpop.f32.mrb[8].mxu1 }
 0x597   :  { %v1038_v20 = vpop.f32.mrb[9].mxu1 }
 0x598   :  { %v1046_v22 = vcombine.low %v1036_v19, %v1038_v20  ;;  %v1040_v23 = vpop.f32.mrb[10].mxu1 }
 0x599   :  { %v1041_v25 = vpop.f32.mrb[11].mxu1 }
 0x59a   :  { %v1053_v27 = vrot.slane %v1046_v22, %v5872_v37 }
 0x59c   :  { %v1055_v30 = vadd.f32 %v1053_v27, %v1043_v24 }
 0x59e   :  { %1056 = vst [vmem:[#allocation5] sm:$0xf] %v1055_v30 }
 0x5a5   :  { %v1057_v34 = vld [vmem:[#allocation5] sm:$0xf] }
 0x5a6   :  { %v1077_v35 = vadd.f32 %v1075_v33, %v1057_v34 }
 0x5a8   :  { %v1078_v36 = vmax.f32 %v1077_v35, 0.0 }
 0x5aa   :  { %v1086_v40 = vrot.slane %v1078_v36, %v5872_v37 }
 0x5ac   :  { %v1087_v41 = vcombine.high %v1086_v40, %v1086_v40 }
 0x5ae   :  { %v5319_v42 = vpack.c.bf16 %v1087_v41, %v1086_v40 }
 0x5b0   :  { %v1101_v43 = vrot.slane %v5319_v42, %v5840_v31 }
 0x5b2   :  { %5320 = vst.sshfl [vmem:[#allocation3 + $0x2] sm:$0x5 pattern:$0x73625140] %v1101_v43 }
 0x5b3   :  { %5609 = dma.done.wait [#allocation6], 8192 }
 0x5b4   :  { %5610 = vsyncadd [#allocation6], 4294959104  ;;  %1129 = sst [smem:[#allocation22]] %s5646_s24  ;;  %s1113_s27 = scalar_lea.hbm %s6458_s1, 8192 }
 0x5b5   :  { %1131 = sst [smem:[#allocation22 + $0x1]] %s5646_s24  ;;  %s5662_s0 = smov [#allocation21]  }
 0x5b6   :  { %1133 = sst [smem:[#allocation22 + $0x2]] %s5647_s2 }
 0x5b7   :  { %1135 = sst [smem:[#allocation22 + $0x3]] %s5648_s26 }
 0x5b8   :  { %1137 = sst [smem:[#allocation22 + $0x4]] %s6456_s21 }
 0x5b9   :  { %1139 = sst [smem:[#allocation22 + $0x5]] %s5647_s2 }
 0x5ba   :  { %1141 = sst [smem:[#allocation22 + $0x6]] %s6456_s21 }
 0x5bb   :  { %1143 = sst [smem:[#allocation22 + $0x7]] %s5648_s26 }
 0x5bc   :  { %1145 = sst [smem:[#allocation22 + $0x8]] %s6457_s30 }
 0x5bd   :  { %1147 = dma.general %s1113_s27, 8192, %s5828_s25, %s5655_s5, %s5662_s0, [#allocation22], %s5808_s29, 0  }
 0x5be   :  { %v1150_v37 = vld [vmem:[#allocation2 + $0x8] sm:$0xff]  ;;  %v1149_v44 = vld [vmem:[#allocation2] sm:$0xff]  ;;  %v1152_v45 = vld [vmem:[#allocation2 + $0x18] sm:$0xff] }
 0x5bf   :  { %1254 = vmatprep.subr.bf16.mxu0 %v1150_v37  ;;  %v1151_v46 = vld [vmem:[#allocation2 + $0x10] sm:$0xff]  ;;  %v1154_v47 = vld [vmem:[#allocation2 + $0x28] sm:$0xff]  ;;  %v1153_v48 = vld [vmem:[#allocation2 + $0x20] sm:$0xff] }
 0x5c0   :  { %1255 = vmatpush1.bf16.msra.mxu0 %v1149_v44  ;;  %v1156_v49 = vld [vmem:[#allocation2 + $0x38] sm:$0xff]  ;;  %v5323_v50 = vld.sshfl [vmem:[#allocation3] sm:$0x33 pattern:$0x75316420]  ;;  %v1155_v26 = vld [vmem:[#allocation2 + $0x30] sm:$0xff] }
 0x5c1   :  { %1256 = vmatprep.subr.bf16.mxu0 %v1152_v45  ;;  %v1233_v51 = vcombine.high %v5323_v50, %v5323_v50  ;;  %v1158_v52 = vld [vmem:[#allocation2 + $0x48] sm:$0xff]  ;;  %v1157_v54 = vld [vmem:[#allocation2 + $0x40] sm:$0xff]  ;;  %v1160_v55 = vld [vmem:[#allocation2 + $0x58] sm:$0xff]  ;;  %v5959_v14 = vrot.slane %v5323_v50, %v5840_v31 }
 0x5c2   :  { %v1159_v56 = vld [vmem:[#allocation2 + $0x50] sm:$0xff]  ;;  %v1162_v57 = vld [vmem:[#allocation2 + $0x68] sm:$0xff]  ;;  %v1161_v58 = vld [vmem:[#allocation2 + $0x60] sm:$0xff] }
 0x5c3   :  { %v1247_v53 = vrot.slane %v1233_v51, %v5840_v31  ;;  %v1164_v59 = vld [vmem:[#allocation2 + $0x78] sm:$0xff]  ;;  %v1163_v60 = vld [vmem:[#allocation2 + $0x70] sm:$0xff]  ;;  %v1166_v61 = vld [vmem:[#allocation2 + $0x88] sm:$0xff] }
 0x5c4   :  { %1257 = vmatpush1.bf16.msra.mxu0 %v1151_v46  ;;  %v1165_v62 = vld [vmem:[#allocation2 + $0x80] sm:$0xff]  ;;  %v1168_v63 = vld [vmem:[#allocation2 + $0x98] sm:$0xff]  ;;  %v1167_v0 = vld [vmem:[#allocation2 + $0x90] sm:$0xff] }
 0x5c5   :  { %1258 = vmatprep.subr.bf16.mxu0 %v1154_v47  ;;  %1286 = vmatprep.mubr.bf16.mxu0 %v1247_v53  ;;  %v1170_v1 = vld [vmem:[#allocation2 + $0xa8] sm:$0xff]  ;;  %v1169_v2 = vld [vmem:[#allocation2 + $0xa0] sm:$0xff]  ;;  %v1172_v3 = vld [vmem:[#allocation2 + $0xb8] sm:$0xff]  ;;  %v1249_v15 = vcombine.high %v1247_v53, %v1247_v53 }
 0x5c6   :  { %v1171_v4 = vld [vmem:[#allocation2 + $0xb0] sm:$0xff]  ;;  %v1174_v5 = vld [vmem:[#allocation2 + $0xc8] sm:$0xff]  ;;  %v1173_v6 = vld [vmem:[#allocation2 + $0xc0] sm:$0xff] }
 0x5c7   :  { %v1176_v7 = vld [vmem:[#allocation2 + $0xd8] sm:$0xff]  ;;  %v1175_v8 = vld [vmem:[#allocation2 + $0xd0] sm:$0xff]  ;;  %v1178_v9 = vld [vmem:[#allocation2 + $0xe8] sm:$0xff] }
 0x5c8   :  { %1259 = vmatpush1.bf16.msra.mxu0 %v1153_v48  ;;  %v1177_v10 = vld [vmem:[#allocation2 + $0xe0] sm:$0xff]  ;;  %v1180_v11 = vld [vmem:[#allocation2 + $0xf8] sm:$0xff]  ;;  %v1179_v12 = vld [vmem:[#allocation2 + $0xf0] sm:$0xff] }
 0x5c9   :  { %1260 = vmatprep.subr.bf16.mxu0 %v1156_v49  ;;  %v1182_v13 = vld [vmem:[#allocation2 + $0x108] sm:$0xff]  ;;  %v1181_v16 = vld [vmem:[#allocation2 + $0x100] sm:$0xff]  ;;  %v1184_v17 = vld [vmem:[#allocation2 + $0x118] sm:$0xff] }
 0x5ca   :  { %v1183_v18 = vld [vmem:[#allocation2 + $0x110] sm:$0xff]  ;;  %v1186_v19 = vld [vmem:[#allocation2 + $0x128] sm:$0xff]  ;;  %v1185_v20 = vld [vmem:[#allocation2 + $0x120] sm:$0xff] }
 0x5cb   :  { %v1188_v21 = vld [vmem:[#allocation2 + $0x138] sm:$0xff]  ;;  %v1187_v22 = vld [vmem:[#allocation2 + $0x130] sm:$0xff]  ;;  %v1190_v23 = vld [vmem:[#allocation2 + $0x148] sm:$0xff] }
 0x5cc   :  { %1261 = vmatpush1.bf16.msra.mxu0 %v1155_v26  ;;  %v1189_v24 = vld [vmem:[#allocation2 + $0x140] sm:$0xff]  ;;  %v1192_v25 = vld [vmem:[#allocation2 + $0x158] sm:$0xff]  ;;  %v1191_v27 = vld [vmem:[#allocation2 + $0x150] sm:$0xff]  ;;  %v1248_v26 = vcombine.high %v5959_v14, %v5959_v14 }
 0x5cd   :  { %1262 = vmatprep.subr.bf16.mxu0 %v1158_v52  ;;  %v1194_v28 = vld [vmem:[#allocation2 + $0x168] sm:$0xff]  ;;  %v1193_v29 = vld [vmem:[#allocation2 + $0x160] sm:$0xff]  ;;  %v1196_v30 = vld [vmem:[#allocation2 + $0x178] sm:$0xff] }
 0x5ce   :  { %v1195_v32 = vld [vmem:[#allocation2 + $0x170] sm:$0xff]  ;;  %v1198_v33 = vld [vmem:[#allocation2 + $0x188] sm:$0xff]  ;;  %v1197_v34 = vld [vmem:[#allocation2 + $0x180] sm:$0xff] }
 0x5cf   :  { %v1200_v35 = vld [vmem:[#allocation2 + $0x198] sm:$0xff]  ;;  %v1199_v36 = vld [vmem:[#allocation2 + $0x190] sm:$0xff]  ;;  %v1202_v40 = vld [vmem:[#allocation2 + $0x1a8] sm:$0xff] }
 0x5d0   :  { %1263 = vmatpush1.bf16.msra.mxu0 %v1157_v54  ;;  %v1201_v41 = vld [vmem:[#allocation2 + $0x1a0] sm:$0xff]  ;;  %v1204_v42 = vld [vmem:[#allocation2 + $0x1b8] sm:$0xff]  ;;  %v1203_v43 = vld [vmem:[#allocation2 + $0x1b0] sm:$0xff] }
 0x5d1   :  { %1264 = vmatprep.subr.bf16.mxu0 %v1160_v55  ;;  %v1206_v37 = vld [vmem:[#allocation2 + $0x1c8] sm:$0xff]  ;;  %v1205_v44 = vld [vmem:[#allocation2 + $0x1c0] sm:$0xff]  ;;  %v1208_v45 = vld [vmem:[#allocation2 + $0x1d8] sm:$0xff] }
 0x5d2   :  { %v1207_v46 = vld [vmem:[#allocation2 + $0x1d0] sm:$0xff]  ;;  %v1210_v47 = vld [vmem:[#allocation2 + $0x1e8] sm:$0xff]  ;;  %v1209_v48 = vld [vmem:[#allocation2 + $0x1e0] sm:$0xff] }
 0x5d3   :  { %v1212_v49 = vld [vmem:[#allocation2 + $0x1f8] sm:$0xff]  ;;  %v1211_v50 = vld [vmem:[#allocation2 + $0x1f0] sm:$0xff]  ;;  %v1213_v51 = vld [vmem:[%s6426_s12] sm:$0x3] }
 0x5d4   :  { %1265 = vmatpush1.bf16.msra.mxu0 %v1159_v56  ;;  %v1218_v52 = vrot.slane %v1213_v51, %v5875_v38  ;;  %v1222_v53 = vrot.slane %v1213_v51, %v5878_v39 }
 0x5d5   :  { %1266 = vmatprep.subr.bf16.mxu0 %v1162_v57 }
 0x5d8   :  { %1267 = vmatpush1.bf16.msra.mxu0 %v1161_v58 }
 0x5d9   :  { %1268 = vmatprep.subr.bf16.mxu0 %v1164_v59 }
 0x5dc   :  { %1269 = vmatpush1.bf16.msra.mxu0 %v1163_v60 }
 0x5dd   :  { %1270 = vmatprep.subr.bf16.mxu0 %v1166_v61 }
 0x5e0   :  { %1271 = vmatpush1.bf16.msra.mxu0 %v1165_v62 }
 0x5e1   :  { %1272 = vmatprep.subr.bf16.mxu0 %v1168_v63 }
 0x5e4   :  { %1273 = vmatpush1.bf16.msra.mxu0 %v1167_v0 }
 0x5e5   :  { %1274 = vmatprep.subr.bf16.mxu0 %v1170_v1 }
 0x5e8   :  { %1275 = vmatpush1.bf16.msra.mxu0 %v1169_v2 }
 0x5e9   :  { %1276 = vmatprep.subr.bf16.mxu0 %v1172_v3 }
 0x5ec   :  { %1277 = vmatpush1.bf16.msra.mxu0 %v1171_v4 }
 0x5ed   :  { %1278 = vmatprep.subr.bf16.mxu0 %v1174_v5 }
 0x5f0   :  { %1279 = vmatpush1.bf16.msra.mxu0 %v1173_v6 }
 0x5f1   :  { %1280 = vmatprep.subr.bf16.mxu0 %v1176_v7 }
 0x5f4   :  { %1281 = vmatpush1.bf16.msra.mxu0 %v1175_v8 }
 0x5f5   :  { %1282 = vmatprep.subr.bf16.mxu0 %v1178_v9 }
 0x5f8   :  { %1283 = vmatpush1.bf16.msra.mxu0 %v1177_v10 }
 0x5f9   :  { %1284 = vmatprep.subr.bf16.mxu0 %v1180_v11 }
 0x5fc   :  { %1285 = vmatpush1.bf16.msra.mxu0 %v1179_v12 }
 0x5fd   :  { %1295 = vmatprep.subr.bf16.mxu0 %v1182_v13 }
 0x5ff   :  { %1287 = vmatmul.mubr.bf16.vlgmr.msra.gmra.mrb[8].mxu0 %v5959_v14 }
 0x600   :  { %1296 = vmatpush1.bf16.msra.mxu0 %v1181_v16  ;;  %1327 = vmatprep.mubr.bf16.mxu0 %v1249_v15 }
 0x601   :  { %1297 = vmatprep.subr.bf16.mxu0 %v1184_v17 }
 0x604   :  { %1298 = vmatpush1.bf16.msra.mxu0 %v1183_v18 }
 0x605   :  { %1299 = vmatprep.subr.bf16.mxu0 %v1186_v19 }
 0x608   :  { %1300 = vmatpush1.bf16.msra.mxu0 %v1185_v20 }
 0x609   :  { %1301 = vmatprep.subr.bf16.mxu0 %v1188_v21 }
 0x60c   :  { %1302 = vmatpush1.bf16.msra.mxu0 %v1187_v22 }
 0x60d   :  { %1303 = vmatprep.subr.bf16.mxu0 %v1190_v23 }
 0x610   :  { %1304 = vmatpush1.bf16.msra.mxu0 %v1189_v24 }
 0x611   :  { %1305 = vmatprep.subr.bf16.mxu0 %v1192_v25 }
 0x614   :  { %1306 = vmatpush1.bf16.msra.mxu0 %v1191_v27 }
 0x615   :  { %1307 = vmatprep.subr.bf16.mxu0 %v1194_v28 }
 0x618   :  { %1308 = vmatpush1.bf16.msra.mxu0 %v1193_v29 }
 0x619   :  { %1309 = vmatprep.subr.bf16.mxu0 %v1196_v30 }
 0x61c   :  { %1310 = vmatpush1.bf16.msra.mxu0 %v1195_v32 }
 0x61d   :  { %1311 = vmatprep.subr.bf16.mxu0 %v1198_v33 }
 0x620   :  { %1312 = vmatpush1.bf16.msra.mxu0 %v1197_v34 }
 0x621   :  { %1313 = vmatprep.subr.bf16.mxu0 %v1200_v35 }
 0x624   :  { %1314 = vmatpush1.bf16.msra.mxu0 %v1199_v36 }
 0x625   :  { %1315 = vmatprep.subr.bf16.mxu0 %v1202_v40 }
 0x628   :  { %1316 = vmatpush1.bf16.msra.mxu0 %v1201_v41 }
 0x629   :  { %1317 = vmatprep.subr.bf16.mxu0 %v1204_v42 }
 0x62c   :  { %1318 = vmatpush1.bf16.msra.mxu0 %v1203_v43 }
 0x62d   :  { %1319 = vmatprep.subr.bf16.mxu0 %v1206_v37 }
 0x630   :  { %1320 = vmatpush1.bf16.msra.mxu0 %v1205_v44 }
 0x631   :  { %1321 = vmatprep.subr.bf16.mxu0 %v1208_v45 }
 0x634   :  { %1322 = vmatpush1.bf16.msra.mxu0 %v1207_v46 }
 0x635   :  { %1323 = vmatprep.subr.bf16.mxu0 %v1210_v47 }
 0x638   :  { %1324 = vmatpush1.bf16.msra.mxu0 %v1209_v48 }
 0x639   :  { %1325 = vmatprep.subr.bf16.mxu0 %v1212_v49 }
 0x63c   :  { %1326 = vmatpush1.bf16.msra.mxu0 %v1211_v50 }
 0x63f   :  { %1328 = vmatmul.mubr.bf16.vlgmr.msra.gmra.mrb[8].mxu0 %v1248_v26 }
 0x712   :  { %v1329_v54 = vpop.f32.mrb[8].mxu0 }
 0x713   :  { %v5407_v55 = vadd.f32 %v1329_v54, %v1218_v52  ;;  %v1331_v56 = vpop.f32.mrb[9].mxu0 }
 0x714   :  { %v5408_v57 = vadd.f32 %v1331_v56, %v1222_v53  ;;  %v1333_v58 = vpop.f32.mrb[10].mxu0 }
 0x715   :  { %v1336_v59 = vmax.f32 %v5407_v55, 0.0  ;;  %v1334_v60 = vpop.f32.mrb[11].mxu0 }
 0x716   :  { %v1337_v61 = vmax.f32 %v5408_v57, 0.0 }
 0x718   :  { %v5324_v62 = vpack.c.bf16 %v1337_v61, %v1336_v59 }
 0x71a   :  { %v1349_v63 = vrot.slane %v5324_v62, %v5840_v31 }
 0x71c   :  { %5325 = vst.sshfl [vmem:[#allocation4] sm:$0x5 pattern:$0x73625140] %v1349_v63 }
 0x71d   :  { %5611 = dma.done.wait [#allocation6 + $0x1], 8192 }
 0x71e   :  { %5612 = vsyncadd [#allocation6 + $0x1], 4294959104  ;;  %1376 = sst [smem:[#allocation24]] %s5646_s24  ;;  %s5663_s22 = smov [#allocation23]  }
 0x71f   :  { %1378 = sst [smem:[#allocation24 + $0x1]] %s5646_s24  ;;  %s6459_s27 = sld [smem:[#allocation79_spill]] }
 0x720   :  { %1380 = sst [smem:[#allocation24 + $0x2]] %s5647_s2 }
 0x721   :  { %1382 = sst [smem:[#allocation24 + $0x3]] %s5648_s26 }
 0x722   :  { %1384 = sst [smem:[#allocation24 + $0x4]] %s6456_s21 }
 0x723   :  { %1386 = sst [smem:[#allocation24 + $0x5]] %s5647_s2 }
 0x724   :  { %1388 = sst [smem:[#allocation24 + $0x6]] %s6456_s21 }
 0x725   :  { %1390 = sst [smem:[#allocation24 + $0x7]] %s5648_s26 }
 0x726   :  { %1392 = sst [smem:[#allocation24 + $0x8]] %s6457_s30 }
 0x727   :  { %1394 = dma.general %s6459_s27, 8192, %s5812_s3, %s5652_s4, %s5663_s22, [#allocation24], %s5808_s29, 0  }
 0x728   :  { %v1397_v0 = vld [vmem:[#allocation2 + $0x208] sm:$0xff]  ;;  %v1396_v1 = vld [vmem:[#allocation2 + $0x200] sm:$0xff]  ;;  %v1399_v2 = vld [vmem:[#allocation2 + $0x218] sm:$0xff] }
 0x729   :  { %1501 = vmatprep.subr.bf16.mxu1 %v1397_v0  ;;  %v1398_v3 = vld [vmem:[#allocation2 + $0x210] sm:$0xff]  ;;  %v1401_v4 = vld [vmem:[#allocation2 + $0x228] sm:$0xff]  ;;  %v1400_v5 = vld [vmem:[#allocation2 + $0x220] sm:$0xff] }
 0x72a   :  { %1502 = vmatpush1.bf16.msra.mxu1 %v1396_v1  ;;  %v1403_v6 = vld [vmem:[#allocation2 + $0x238] sm:$0xff]  ;;  %v5328_v7 = vld.sshfl [vmem:[#allocation3] sm:$0x33 pattern:$0x75316420]  ;;  %v1402_v8 = vld [vmem:[#allocation2 + $0x230] sm:$0xff] }
 0x72b   :  { %1503 = vmatprep.subr.bf16.mxu1 %v1399_v2  ;;  %v1480_v9 = vcombine.high %v5328_v7, %v5328_v7  ;;  %v1405_v10 = vld [vmem:[#allocation2 + $0x248] sm:$0xff]  ;;  %v1404_v12 = vld [vmem:[#allocation2 + $0x240] sm:$0xff]  ;;  %v1407_v13 = vld [vmem:[#allocation2 + $0x258] sm:$0xff]  ;;  %v5987_v41 = vrot.slane %v5328_v7, %v5840_v31 }
 0x72c   :  { %v1406_v14 = vld [vmem:[#allocation2 + $0x250] sm:$0xff]  ;;  %v1409_v15 = vld [vmem:[#allocation2 + $0x268] sm:$0xff]  ;;  %v1408_v16 = vld [vmem:[#allocation2 + $0x260] sm:$0xff] }
 0x72d   :  { %v1494_v11 = vrot.slane %v1480_v9, %v5840_v31  ;;  %v1411_v17 = vld [vmem:[#allocation2 + $0x278] sm:$0xff]  ;;  %v1410_v18 = vld [vmem:[#allocation2 + $0x270] sm:$0xff]  ;;  %v1413_v19 = vld [vmem:[#allocation2 + $0x288] sm:$0xff] }
 0x72e   :  { %1504 = vmatpush1.bf16.msra.mxu1 %v1398_v3  ;;  %v1412_v20 = vld [vmem:[#allocation2 + $0x280] sm:$0xff]  ;;  %v1415_v21 = vld [vmem:[#allocation2 + $0x298] sm:$0xff]  ;;  %v1414_v22 = vld [vmem:[#allocation2 + $0x290] sm:$0xff] }
 0x72f   :  { %1505 = vmatprep.subr.bf16.mxu1 %v1401_v4  ;;  %1533 = vmatprep.mubr.bf16.mxu1 %v1494_v11  ;;  %v1417_v23 = vld [vmem:[#allocation2 + $0x2a8] sm:$0xff]  ;;  %v1416_v24 = vld [vmem:[#allocation2 + $0x2a0] sm:$0xff]  ;;  %v1419_v25 = vld [vmem:[#allocation2 + $0x2b8] sm:$0xff]  ;;  %v1496_v42 = vcombine.high %v1494_v11, %v1494_v11 }
 0x730   :  { %v1418_v27 = vld [vmem:[#allocation2 + $0x2b0] sm:$0xff]  ;;  %v1421_v28 = vld [vmem:[#allocation2 + $0x2c8] sm:$0xff]  ;;  %v1420_v29 = vld [vmem:[#allocation2 + $0x2c0] sm:$0xff] }
 0x731   :  { %v1423_v30 = vld [vmem:[#allocation2 + $0x2d8] sm:$0xff]  ;;  %v1422_v32 = vld [vmem:[#allocation2 + $0x2d0] sm:$0xff]  ;;  %v1425_v33 = vld [vmem:[#allocation2 + $0x2e8] sm:$0xff] }
 0x732   :  { %1506 = vmatpush1.bf16.msra.mxu1 %v1400_v5  ;;  %v1424_v34 = vld [vmem:[#allocation2 + $0x2e0] sm:$0xff]  ;;  %v1427_v35 = vld [vmem:[#allocation2 + $0x2f8] sm:$0xff]  ;;  %v1426_v36 = vld [vmem:[#allocation2 + $0x2f0] sm:$0xff] }
 0x733   :  { %1507 = vmatprep.subr.bf16.mxu1 %v1403_v6  ;;  %v1429_v40 = vld [vmem:[#allocation2 + $0x308] sm:$0xff]  ;;  %v1428_v43 = vld [vmem:[#allocation2 + $0x300] sm:$0xff]  ;;  %v1431_v37 = vld [vmem:[#allocation2 + $0x318] sm:$0xff] }
 0x734   :  { %v1430_v44 = vld [vmem:[#allocation2 + $0x310] sm:$0xff]  ;;  %v1433_v45 = vld [vmem:[#allocation2 + $0x328] sm:$0xff]  ;;  %v1432_v46 = vld [vmem:[#allocation2 + $0x320] sm:$0xff] }
 0x735   :  { %v1435_v47 = vld [vmem:[#allocation2 + $0x338] sm:$0xff]  ;;  %v1434_v48 = vld [vmem:[#allocation2 + $0x330] sm:$0xff]  ;;  %v1437_v49 = vld [vmem:[#allocation2 + $0x348] sm:$0xff] }
 0x736   :  { %1508 = vmatpush1.bf16.msra.mxu1 %v1402_v8  ;;  %v1436_v50 = vld [vmem:[#allocation2 + $0x340] sm:$0xff]  ;;  %v1439_v26 = vld [vmem:[#allocation2 + $0x358] sm:$0xff]  ;;  %v1438_v51 = vld [vmem:[#allocation2 + $0x350] sm:$0xff]  ;;  %v1495_v8 = vcombine.high %v5987_v41, %v5987_v41 }
 0x737   :  { %1509 = vmatprep.subr.bf16.mxu1 %v1405_v10  ;;  %v1441_v52 = vld [vmem:[#allocation2 + $0x368] sm:$0xff]  ;;  %v1440_v53 = vld [vmem:[#allocation2 + $0x360] sm:$0xff]  ;;  %v1443_v54 = vld [vmem:[#allocation2 + $0x378] sm:$0xff] }
 0x738   :  { %v1442_v55 = vld [vmem:[#allocation2 + $0x370] sm:$0xff]  ;;  %v1445_v56 = vld [vmem:[#allocation2 + $0x388] sm:$0xff]  ;;  %v1444_v57 = vld [vmem:[#allocation2 + $0x380] sm:$0xff] }
 0x739   :  { %v1447_v58 = vld [vmem:[#allocation2 + $0x398] sm:$0xff]  ;;  %v1446_v59 = vld [vmem:[#allocation2 + $0x390] sm:$0xff]  ;;  %v1449_v60 = vld [vmem:[#allocation2 + $0x3a8] sm:$0xff] }
 0x73a   :  { %1510 = vmatpush1.bf16.msra.mxu1 %v1404_v12  ;;  %v1448_v61 = vld [vmem:[#allocation2 + $0x3a0] sm:$0xff]  ;;  %v1451_v62 = vld [vmem:[#allocation2 + $0x3b8] sm:$0xff]  ;;  %v1450_v63 = vld [vmem:[#allocation2 + $0x3b0] sm:$0xff] }
 0x73b   :  { %1511 = vmatprep.subr.bf16.mxu1 %v1407_v13  ;;  %v1453_v0 = vld [vmem:[#allocation2 + $0x3c8] sm:$0xff]  ;;  %v1452_v1 = vld [vmem:[#allocation2 + $0x3c0] sm:$0xff]  ;;  %v1455_v2 = vld [vmem:[#allocation2 + $0x3d8] sm:$0xff] }
 0x73c   :  { %v1454_v3 = vld [vmem:[#allocation2 + $0x3d0] sm:$0xff]  ;;  %v1457_v4 = vld [vmem:[#allocation2 + $0x3e8] sm:$0xff]  ;;  %v1456_v5 = vld [vmem:[#allocation2 + $0x3e0] sm:$0xff] }
 0x73d   :  { %v1459_v6 = vld [vmem:[#allocation2 + $0x3f8] sm:$0xff]  ;;  %v1458_v7 = vld [vmem:[#allocation2 + $0x3f0] sm:$0xff]  ;;  %v1460_v9 = vld [vmem:[%s6426_s12 + $0x2] sm:$0x3] }
 0x73e   :  { %1512 = vmatpush1.bf16.msra.mxu1 %v1406_v14  ;;  %v1465_v10 = vrot.slane %v1460_v9, %v5875_v38  ;;  %v1469_v11 = vrot.slane %v1460_v9, %v5878_v39 }
 0x73f   :  { %1513 = vmatprep.subr.bf16.mxu1 %v1409_v15 }
 0x742   :  { %1514 = vmatpush1.bf16.msra.mxu1 %v1408_v16 }
 0x743   :  { %1515 = vmatprep.subr.bf16.mxu1 %v1411_v17 }
 0x746   :  { %1516 = vmatpush1.bf16.msra.mxu1 %v1410_v18 }
 0x747   :  { %1517 = vmatprep.subr.bf16.mxu1 %v1413_v19 }
 0x74a   :  { %1518 = vmatpush1.bf16.msra.mxu1 %v1412_v20 }
 0x74b   :  { %1519 = vmatprep.subr.bf16.mxu1 %v1415_v21 }
 0x74e   :  { %1520 = vmatpush1.bf16.msra.mxu1 %v1414_v22 }
 0x74f   :  { %1521 = vmatprep.subr.bf16.mxu1 %v1417_v23 }
 0x752   :  { %1522 = vmatpush1.bf16.msra.mxu1 %v1416_v24 }
 0x753   :  { %1523 = vmatprep.subr.bf16.mxu1 %v1419_v25 }
 0x756   :  { %1524 = vmatpush1.bf16.msra.mxu1 %v1418_v27 }
 0x757   :  { %1525 = vmatprep.subr.bf16.mxu1 %v1421_v28 }
 0x75a   :  { %1526 = vmatpush1.bf16.msra.mxu1 %v1420_v29 }
 0x75b   :  { %1527 = vmatprep.subr.bf16.mxu1 %v1423_v30 }
 0x75e   :  { %1528 = vmatpush1.bf16.msra.mxu1 %v1422_v32 }
 0x75f   :  { %1529 = vmatprep.subr.bf16.mxu1 %v1425_v33 }
 0x762   :  { %1530 = vmatpush1.bf16.msra.mxu1 %v1424_v34 }
 0x763   :  { %1531 = vmatprep.subr.bf16.mxu1 %v1427_v35 }
 0x766   :  { %1532 = vmatpush1.bf16.msra.mxu1 %v1426_v36 }
 0x767   :  { %1542 = vmatprep.subr.bf16.mxu1 %v1429_v40 }
 0x769   :  { %1534 = vmatmul.mubr.bf16.vlgmr.msra.gmra.mrb[12].mxu1 %v5987_v41 }
 0x76a   :  { %1543 = vmatpush1.bf16.msra.mxu1 %v1428_v43  ;;  %1574 = vmatprep.mubr.bf16.mxu1 %v1496_v42 }
 0x76b   :  { %1544 = vmatprep.subr.bf16.mxu1 %v1431_v37 }
 0x76e   :  { %1545 = vmatpush1.bf16.msra.mxu1 %v1430_v44 }
 0x76f   :  { %1546 = vmatprep.subr.bf16.mxu1 %v1433_v45 }
 0x772   :  { %1547 = vmatpush1.bf16.msra.mxu1 %v1432_v46 }
 0x773   :  { %1548 = vmatprep.subr.bf16.mxu1 %v1435_v47 }
 0x776   :  { %1549 = vmatpush1.bf16.msra.mxu1 %v1434_v48 }
 0x777   :  { %1550 = vmatprep.subr.bf16.mxu1 %v1437_v49 }
 0x77a   :  { %1551 = vmatpush1.bf16.msra.mxu1 %v1436_v50 }
 0x77b   :  { %1552 = vmatprep.subr.bf16.mxu1 %v1439_v26 }
 0x77e   :  { %1553 = vmatpush1.bf16.msra.mxu1 %v1438_v51 }
 0x77f   :  { %1554 = vmatprep.subr.bf16.mxu1 %v1441_v52 }
 0x782   :  { %1555 = vmatpush1.bf16.msra.mxu1 %v1440_v53 }
 0x783   :  { %1556 = vmatprep.subr.bf16.mxu1 %v1443_v54 }
 0x786   :  { %1557 = vmatpush1.bf16.msra.mxu1 %v1442_v55 }
 0x787   :  { %1558 = vmatprep.subr.bf16.mxu1 %v1445_v56 }
 0x78a   :  { %1559 = vmatpush1.bf16.msra.mxu1 %v1444_v57 }
 0x78b   :  { %1560 = vmatprep.subr.bf16.mxu1 %v1447_v58 }
 0x78e   :  { %1561 = vmatpush1.bf16.msra.mxu1 %v1446_v59 }
 0x78f   :  { %1562 = vmatprep.subr.bf16.mxu1 %v1449_v60 }
 0x792   :  { %1563 = vmatpush1.bf16.msra.mxu1 %v1448_v61 }
 0x793   :  { %1564 = vmatprep.subr.bf16.mxu1 %v1451_v62 }
 0x796   :  { %1565 = vmatpush1.bf16.msra.mxu1 %v1450_v63 }
 0x797   :  { %1566 = vmatprep.subr.bf16.mxu1 %v1453_v0 }
 0x79a   :  { %1567 = vmatpush1.bf16.msra.mxu1 %v1452_v1 }
 0x79b   :  { %1568 = vmatprep.subr.bf16.mxu1 %v1455_v2 }
 0x79e   :  { %1569 = vmatpush1.bf16.msra.mxu1 %v1454_v3 }
 0x79f   :  { %1570 = vmatprep.subr.bf16.mxu1 %v1457_v4 }
 0x7a2   :  { %1571 = vmatpush1.bf16.msra.mxu1 %v1456_v5 }
 0x7a3   :  { %1572 = vmatprep.subr.bf16.mxu1 %v1459_v6 }
 0x7a6   :  { %1573 = vmatpush1.bf16.msra.mxu1 %v1458_v7 }
 0x7a9   :  { %1575 = vmatmul.mubr.bf16.vlgmr.msra.gmra.mrb[12].mxu1 %v1495_v8 }
 0x87c   :  { %v1576_v12 = vpop.f32.mrb[12].mxu1 }
 0x87d   :  { %v5409_v13 = vadd.f32 %v1576_v12, %v1465_v10  ;;  %v1578_v14 = vpop.f32.mrb[13].mxu1 }
 0x87e   :  { %v5410_v15 = vadd.f32 %v1578_v14, %v1469_v11  ;;  %v1580_v16 = vpop.f32.mrb[14].mxu1 }
 0x87f   :  { %v1583_v17 = vmax.f32 %v5409_v13, 0.0  ;;  %v1581_v18 = vpop.f32.mrb[15].mxu1 }
 0x880   :  { %v1584_v19 = vmax.f32 %v5410_v15, 0.0 }
 0x882   :  { %v5329_v20 = vpack.c.bf16 %v1584_v19, %v1583_v17 }
 0x884   :  { %v1596_v21 = vrot.slane %v5329_v20, %v5840_v31 }
 0x886   :  { %5330 = vst.sshfl [vmem:[#allocation4 + $0x2] sm:$0x5 pattern:$0x73625140] %v1596_v21 }
 0x887   :  { %5613 = dma.done.wait [#allocation6], 8192 }
 0x888   :  { %5614 = vsyncadd [#allocation6], 4294959104  ;;  %1624 = sst [smem:[#allocation26]] %s5646_s24  ;;  %s1608_s22 = scalar_lea.hbm %s6459_s27, 8192 }
 0x889   :  { %1626 = sst [smem:[#allocation26 + $0x1]] %s5646_s24  ;;  %s5664_s11 = smov [#allocation25]  }
 0x88a   :  { %1628 = sst [smem:[#allocation26 + $0x2]] %s5647_s2 }
 0x88b   :  { %1630 = sst [smem:[#allocation26 + $0x3]] %s5648_s26 }
 0x88c   :  { %1632 = sst [smem:[#allocation26 + $0x4]] %s6456_s21 }
 0x88d   :  { %1634 = sst [smem:[#allocation26 + $0x5]] %s5647_s2 }
 0x88e   :  { %1636 = sst [smem:[#allocation26 + $0x6]] %s6456_s21 }
 0x88f   :  { %1638 = sst [smem:[#allocation26 + $0x7]] %s5648_s26 }
 0x890   :  { %1640 = sst [smem:[#allocation26 + $0x8]] %s6457_s30 }
 0x891   :  { %1642 = dma.general %s1608_s22, 8192, %s5828_s25, %s5655_s5, %s5664_s11, [#allocation26], %s5808_s29, 0  }
 0x892   :  { %v1645_v22 = vld [vmem:[#allocation2 + $0x8] sm:$0xff]  ;;  %v1644_v23 = vld [vmem:[#allocation2] sm:$0xff]  ;;  %v1647_v24 = vld [vmem:[#allocation2 + $0x18] sm:$0xff] }
 0x893   :  { %1749 = vmatprep.subr.bf16.mxu0 %v1645_v22  ;;  %v1646_v25 = vld [vmem:[#allocation2 + $0x10] sm:$0xff]  ;;  %v1649_v27 = vld [vmem:[#allocation2 + $0x28] sm:$0xff]  ;;  %v1648_v28 = vld [vmem:[#allocation2 + $0x20] sm:$0xff] }
 0x894   :  { %1750 = vmatpush1.bf16.msra.mxu0 %v1644_v23  ;;  %v1651_v29 = vld [vmem:[#allocation2 + $0x38] sm:$0xff]  ;;  %v5333_v30 = vld.sshfl [vmem:[#allocation4] sm:$0x33 pattern:$0x75316420]  ;;  %v1650_v32 = vld [vmem:[#allocation2 + $0x30] sm:$0xff] }
 0x895   :  { %1751 = vmatprep.subr.bf16.mxu0 %v1647_v24  ;;  %v1728_v33 = vcombine.high %v5333_v30, %v5333_v30  ;;  %v1653_v34 = vld [vmem:[#allocation2 + $0x48] sm:$0xff]  ;;  %v1652_v36 = vld [vmem:[#allocation2 + $0x40] sm:$0xff]  ;;  %v1655_v40 = vld [vmem:[#allocation2 + $0x58] sm:$0xff]  ;;  %v6015_v61 = vrot.slane %v5333_v30, %v5840_v31 }
 0x896   :  { %v1654_v41 = vld [vmem:[#allocation2 + $0x50] sm:$0xff]  ;;  %v1657_v42 = vld [vmem:[#allocation2 + $0x68] sm:$0xff]  ;;  %v1656_v43 = vld [vmem:[#allocation2 + $0x60] sm:$0xff] }
 0x897   :  { %v1742_v35 = vrot.slane %v1728_v33, %v5840_v31  ;;  %v1659_v37 = vld [vmem:[#allocation2 + $0x78] sm:$0xff]  ;;  %v1658_v44 = vld [vmem:[#allocation2 + $0x70] sm:$0xff]  ;;  %v1661_v45 = vld [vmem:[#allocation2 + $0x88] sm:$0xff] }
 0x898   :  { %1752 = vmatpush1.bf16.msra.mxu0 %v1646_v25  ;;  %v1660_v46 = vld [vmem:[#allocation2 + $0x80] sm:$0xff]  ;;  %v1663_v47 = vld [vmem:[#allocation2 + $0x98] sm:$0xff]  ;;  %v1662_v48 = vld [vmem:[#allocation2 + $0x90] sm:$0xff] }
 0x899   :  { %1753 = vmatprep.subr.bf16.mxu0 %v1649_v27  ;;  %1781 = vmatprep.mubr.bf16.mxu0 %v1742_v35  ;;  %v1665_v49 = vld [vmem:[#allocation2 + $0xa8] sm:$0xff]  ;;  %v1664_v50 = vld [vmem:[#allocation2 + $0xa0] sm:$0xff]  ;;  %v1667_v26 = vld [vmem:[#allocation2 + $0xb8] sm:$0xff]  ;;  %v1744_v62 = vcombine.high %v1742_v35, %v1742_v35 }
 0x89a   :  { %v1666_v51 = vld [vmem:[#allocation2 + $0xb0] sm:$0xff]  ;;  %v1669_v52 = vld [vmem:[#allocation2 + $0xc8] sm:$0xff]  ;;  %v1668_v53 = vld [vmem:[#allocation2 + $0xc0] sm:$0xff] }
 0x89b   :  { %v1671_v54 = vld [vmem:[#allocation2 + $0xd8] sm:$0xff]  ;;  %v1670_v55 = vld [vmem:[#allocation2 + $0xd0] sm:$0xff]  ;;  %v1673_v56 = vld [vmem:[#allocation2 + $0xe8] sm:$0xff] }
 0x89c   :  { %1754 = vmatpush1.bf16.msra.mxu0 %v1648_v28  ;;  %v1672_v57 = vld [vmem:[#allocation2 + $0xe0] sm:$0xff]  ;;  %v1675_v58 = vld [vmem:[#allocation2 + $0xf8] sm:$0xff]  ;;  %v1674_v59 = vld [vmem:[#allocation2 + $0xf0] sm:$0xff] }
 0x89d   :  { %1755 = vmatprep.subr.bf16.mxu0 %v1651_v29  ;;  %v1677_v60 = vld [vmem:[#allocation2 + $0x108] sm:$0xff]  ;;  %v1676_v63 = vld [vmem:[#allocation2 + $0x100] sm:$0xff]  ;;  %v1679_v0 = vld [vmem:[#allocation2 + $0x118] sm:$0xff] }
 0x89e   :  { %v1678_v1 = vld [vmem:[#allocation2 + $0x110] sm:$0xff]  ;;  %v1681_v2 = vld [vmem:[#allocation2 + $0x128] sm:$0xff]  ;;  %v1680_v3 = vld [vmem:[#allocation2 + $0x120] sm:$0xff] }
 0x89f   :  { %v1683_v4 = vld [vmem:[#allocation2 + $0x138] sm:$0xff]  ;;  %v1682_v5 = vld [vmem:[#allocation2 + $0x130] sm:$0xff]  ;;  %v1685_v6 = vld [vmem:[#allocation2 + $0x148] sm:$0xff] }
 0x8a0   :  { %1756 = vmatpush1.bf16.msra.mxu0 %v1650_v32  ;;  %v1684_v7 = vld [vmem:[#allocation2 + $0x140] sm:$0xff]  ;;  %v1687_v8 = vld [vmem:[#allocation2 + $0x158] sm:$0xff]  ;;  %v1686_v9 = vld [vmem:[#allocation2 + $0x150] sm:$0xff]  ;;  %v1743_v32 = vcombine.high %v6015_v61, %v6015_v61 }
 0x8a1   :  { %1757 = vmatprep.subr.bf16.mxu0 %v1653_v34  ;;  %v1689_v10 = vld [vmem:[#allocation2 + $0x168] sm:$0xff]  ;;  %v1688_v11 = vld [vmem:[#allocation2 + $0x160] sm:$0xff]  ;;  %v1691_v12 = vld [vmem:[#allocation2 + $0x178] sm:$0xff] }
 0x8a2   :  { %v1690_v13 = vld [vmem:[#allocation2 + $0x170] sm:$0xff]  ;;  %v1693_v14 = vld [vmem:[#allocation2 + $0x188] sm:$0xff]  ;;  %v1692_v15 = vld [vmem:[#allocation2 + $0x180] sm:$0xff] }
 0x8a3   :  { %v1695_v16 = vld [vmem:[#allocation2 + $0x198] sm:$0xff]  ;;  %v1694_v17 = vld [vmem:[#allocation2 + $0x190] sm:$0xff]  ;;  %v1697_v18 = vld [vmem:[#allocation2 + $0x1a8] sm:$0xff] }
 0x8a4   :  { %1758 = vmatpush1.bf16.msra.mxu0 %v1652_v36  ;;  %v1696_v19 = vld [vmem:[#allocation2 + $0x1a0] sm:$0xff]  ;;  %v1699_v20 = vld [vmem:[#allocation2 + $0x1b8] sm:$0xff]  ;;  %v1698_v21 = vld [vmem:[#allocation2 + $0x1b0] sm:$0xff] }
 0x8a5   :  { %1759 = vmatprep.subr.bf16.mxu0 %v1655_v40  ;;  %v1701_v22 = vld [vmem:[#allocation2 + $0x1c8] sm:$0xff]  ;;  %v1700_v23 = vld [vmem:[#allocation2 + $0x1c0] sm:$0xff]  ;;  %v1703_v24 = vld [vmem:[#allocation2 + $0x1d8] sm:$0xff] }
 0x8a6   :  { %v1702_v25 = vld [vmem:[#allocation2 + $0x1d0] sm:$0xff]  ;;  %v1705_v27 = vld [vmem:[#allocation2 + $0x1e8] sm:$0xff]  ;;  %v1704_v28 = vld [vmem:[#allocation2 + $0x1e0] sm:$0xff] }
 0x8a7   :  { %v1707_v29 = vld [vmem:[#allocation2 + $0x1f8] sm:$0xff]  ;;  %v1706_v30 = vld [vmem:[#allocation2 + $0x1f0] sm:$0xff]  ;;  %v1708_v33 = vld [vmem:[%s6427_s13] sm:$0x3] }
 0x8a8   :  { %1760 = vmatpush1.bf16.msra.mxu0 %v1654_v41  ;;  %v1713_v34 = vrot.slane %v1708_v33, %v5875_v38  ;;  %v1717_v35 = vrot.slane %v1708_v33, %v5878_v39 }
 0x8a9   :  { %1761 = vmatprep.subr.bf16.mxu0 %v1657_v42 }
 0x8ac   :  { %1762 = vmatpush1.bf16.msra.mxu0 %v1656_v43 }
 0x8ad   :  { %1763 = vmatprep.subr.bf16.mxu0 %v1659_v37 }
 0x8b0   :  { %1764 = vmatpush1.bf16.msra.mxu0 %v1658_v44 }
 0x8b1   :  { %1765 = vmatprep.subr.bf16.mxu0 %v1661_v45 }
 0x8b4   :  { %1766 = vmatpush1.bf16.msra.mxu0 %v1660_v46 }
 0x8b5   :  { %1767 = vmatprep.subr.bf16.mxu0 %v1663_v47 }
 0x8b8   :  { %1768 = vmatpush1.bf16.msra.mxu0 %v1662_v48 }
 0x8b9   :  { %1769 = vmatprep.subr.bf16.mxu0 %v1665_v49 }
 0x8bc   :  { %1770 = vmatpush1.bf16.msra.mxu0 %v1664_v50 }
 0x8bd   :  { %1771 = vmatprep.subr.bf16.mxu0 %v1667_v26 }
 0x8c0   :  { %1772 = vmatpush1.bf16.msra.mxu0 %v1666_v51 }
 0x8c1   :  { %1773 = vmatprep.subr.bf16.mxu0 %v1669_v52 }
 0x8c4   :  { %1774 = vmatpush1.bf16.msra.mxu0 %v1668_v53 }
 0x8c5   :  { %1775 = vmatprep.subr.bf16.mxu0 %v1671_v54 }
 0x8c8   :  { %1776 = vmatpush1.bf16.msra.mxu0 %v1670_v55 }
 0x8c9   :  { %1777 = vmatprep.subr.bf16.mxu0 %v1673_v56 }
 0x8cc   :  { %1778 = vmatpush1.bf16.msra.mxu0 %v1672_v57 }
 0x8cd   :  { %1779 = vmatprep.subr.bf16.mxu0 %v1675_v58 }
 0x8d0   :  { %1780 = vmatpush1.bf16.msra.mxu0 %v1674_v59 }
 0x8d1   :  { %1790 = vmatprep.subr.bf16.mxu0 %v1677_v60 }
 0x8d3   :  { %1782 = vmatmul.mubr.bf16.vlgmr.msra.gmra.mrb[12].mxu0 %v6015_v61 }
 0x8d4   :  { %1791 = vmatpush1.bf16.msra.mxu0 %v1676_v63  ;;  %1822 = vmatprep.mubr.bf16.mxu0 %v1744_v62 }
 0x8d5   :  { %1792 = vmatprep.subr.bf16.mxu0 %v1679_v0 }
 0x8d8   :  { %1793 = vmatpush1.bf16.msra.mxu0 %v1678_v1 }
 0x8d9   :  { %1794 = vmatprep.subr.bf16.mxu0 %v1681_v2 }
 0x8dc   :  { %1795 = vmatpush1.bf16.msra.mxu0 %v1680_v3 }
 0x8dd   :  { %1796 = vmatprep.subr.bf16.mxu0 %v1683_v4 }
 0x8e0   :  { %1797 = vmatpush1.bf16.msra.mxu0 %v1682_v5 }
 0x8e1   :  { %1798 = vmatprep.subr.bf16.mxu0 %v1685_v6 }
 0x8e4   :  { %1799 = vmatpush1.bf16.msra.mxu0 %v1684_v7 }
 0x8e5   :  { %1800 = vmatprep.subr.bf16.mxu0 %v1687_v8 }
 0x8e8   :  { %1801 = vmatpush1.bf16.msra.mxu0 %v1686_v9 }
 0x8e9   :  { %1802 = vmatprep.subr.bf16.mxu0 %v1689_v10 }
 0x8ec   :  { %1803 = vmatpush1.bf16.msra.mxu0 %v1688_v11 }
 0x8ed   :  { %1804 = vmatprep.subr.bf16.mxu0 %v1691_v12 }
 0x8f0   :  { %1805 = vmatpush1.bf16.msra.mxu0 %v1690_v13 }
 0x8f1   :  { %1806 = vmatprep.subr.bf16.mxu0 %v1693_v14 }
 0x8f4   :  { %1807 = vmatpush1.bf16.msra.mxu0 %v1692_v15 }
 0x8f5   :  { %1808 = vmatprep.subr.bf16.mxu0 %v1695_v16 }
 0x8f8   :  { %1809 = vmatpush1.bf16.msra.mxu0 %v1694_v17 }
 0x8f9   :  { %1810 = vmatprep.subr.bf16.mxu0 %v1697_v18 }
 0x8fc   :  { %1811 = vmatpush1.bf16.msra.mxu0 %v1696_v19 }
 0x8fd   :  { %1812 = vmatprep.subr.bf16.mxu0 %v1699_v20 }
 0x900   :  { %1813 = vmatpush1.bf16.msra.mxu0 %v1698_v21 }
 0x901   :  { %1814 = vmatprep.subr.bf16.mxu0 %v1701_v22 }
 0x904   :  { %1815 = vmatpush1.bf16.msra.mxu0 %v1700_v23 }
 0x905   :  { %1816 = vmatprep.subr.bf16.mxu0 %v1703_v24 }
 0x908   :  { %1817 = vmatpush1.bf16.msra.mxu0 %v1702_v25 }
 0x909   :  { %1818 = vmatprep.subr.bf16.mxu0 %v1705_v27 }
 0x90c   :  { %1819 = vmatpush1.bf16.msra.mxu0 %v1704_v28 }
 0x90d   :  { %1820 = vmatprep.subr.bf16.mxu0 %v1707_v29 }
 0x910   :  { %1821 = vmatpush1.bf16.msra.mxu0 %v1706_v30 }
 0x913   :  { %1823 = vmatmul.mubr.bf16.vlgmr.msra.gmra.mrb[12].mxu0 %v1743_v32 }
 0x9e6   :  { %v1824_v36 = vpop.f32.mrb[12].mxu0 }
 0x9e7   :  { %v5411_v40 = vadd.f32 %v1824_v36, %v1713_v34  ;;  %v1826_v41 = vpop.f32.mrb[13].mxu0 }
 0x9e8   :  { %v5412_v42 = vadd.f32 %v1826_v41, %v1717_v35  ;;  %v1828_v43 = vpop.f32.mrb[14].mxu0 }
 0x9e9   :  { %v1831_v37 = vmax.f32 %v5411_v40, 0.0  ;;  %v1829_v44 = vpop.f32.mrb[15].mxu0 }
 0x9ea   :  { %v1832_v45 = vmax.f32 %v5412_v42, 0.0 }
 0x9ec   :  { %v5334_v46 = vpack.c.bf16 %v1832_v45, %v1831_v37 }
 0x9ee   :  { %v1844_v47 = vrot.slane %v5334_v46, %v5840_v31 }
 0x9f0   :  { %5335 = vst.sshfl [vmem:[#allocation3] sm:$0x5 pattern:$0x73625140] %v1844_v47 }
 0x9f1   :  { %5615 = dma.done.wait [#allocation6 + $0x1], 8192 }
 0x9f2   :  { %5616 = vsyncadd [#allocation6 + $0x1], 4294959104  ;;  %1871 = sst [smem:[#allocation28]] %s5646_s24  ;;  %s5665_s0 = smov [#allocation27]  }
 0x9f3   :  { %1873 = sst [smem:[#allocation28 + $0x1]] %s5646_s24  ;;  %s6460_s28 = sld [smem:[#allocation80_spill]] }
 0x9f4   :  { %1875 = sst [smem:[#allocation28 + $0x2]] %s5647_s2 }
 0x9f5   :  { %1877 = sst [smem:[#allocation28 + $0x3]] %s5648_s26 }
 0x9f6   :  { %1879 = sst [smem:[#allocation28 + $0x4]] %s6456_s21 }
 0x9f7   :  { %1881 = sst [smem:[#allocation28 + $0x5]] %s5647_s2 }
 0x9f8   :  { %1883 = sst [smem:[#allocation28 + $0x6]] %s6456_s21 }
 0x9f9   :  { %1885 = sst [smem:[#allocation28 + $0x7]] %s5648_s26 }
 0x9fa   :  { %1887 = sst [smem:[#allocation28 + $0x8]] %s6457_s30 }
 0x9fb   :  { %1889 = dma.general %s6460_s28, 8192, %s5812_s3, %s5652_s4, %s5665_s0, [#allocation28], %s5808_s29, 0  }
 0x9fc   :  { %v1892_v48 = vld [vmem:[#allocation2 + $0x208] sm:$0xff]  ;;  %v1891_v49 = vld [vmem:[#allocation2 + $0x200] sm:$0xff]  ;;  %v1894_v50 = vld [vmem:[#allocation2 + $0x218] sm:$0xff] }
 0x9fd   :  { %1996 = vmatprep.subr.bf16.mxu1 %v1892_v48  ;;  %v1893_v26 = vld [vmem:[#allocation2 + $0x210] sm:$0xff]  ;;  %v1896_v51 = vld [vmem:[#allocation2 + $0x228] sm:$0xff]  ;;  %v1895_v52 = vld [vmem:[#allocation2 + $0x220] sm:$0xff] }
 0x9fe   :  { %1997 = vmatpush1.bf16.msra.mxu1 %v1891_v49  ;;  %v1898_v53 = vld [vmem:[#allocation2 + $0x238] sm:$0xff]  ;;  %v5338_v54 = vld.sshfl [vmem:[#allocation4] sm:$0x33 pattern:$0x75316420]  ;;  %v1897_v55 = vld [vmem:[#allocation2 + $0x230] sm:$0xff] }
 0x9ff   :  { %1998 = vmatprep.subr.bf16.mxu1 %v1894_v50  ;;  %v1975_v56 = vcombine.high %v5338_v54, %v5338_v54  ;;  %v1900_v57 = vld [vmem:[#allocation2 + $0x248] sm:$0xff]  ;;  %v1899_v59 = vld [vmem:[#allocation2 + $0x240] sm:$0xff]  ;;  %v1902_v60 = vld [vmem:[#allocation2 + $0x258] sm:$0xff]  ;;  %v6043_v19 = vrot.slane %v5338_v54, %v5840_v31 }
 0xa00   :  { %v1901_v61 = vld [vmem:[#allocation2 + $0x250] sm:$0xff]  ;;  %v1904_v62 = vld [vmem:[#allocation2 + $0x268] sm:$0xff]  ;;  %v1903_v63 = vld [vmem:[#allocation2 + $0x260] sm:$0xff] }
 0xa01   :  { %v1989_v58 = vrot.slane %v1975_v56, %v5840_v31  ;;  %v1906_v0 = vld [vmem:[#allocation2 + $0x278] sm:$0xff]  ;;  %v1905_v1 = vld [vmem:[#allocation2 + $0x270] sm:$0xff]  ;;  %v1908_v2 = vld [vmem:[#allocation2 + $0x288] sm:$0xff] }
 0xa02   :  { %1999 = vmatpush1.bf16.msra.mxu1 %v1893_v26  ;;  %v1907_v3 = vld [vmem:[#allocation2 + $0x280] sm:$0xff]  ;;  %v1910_v4 = vld [vmem:[#allocation2 + $0x298] sm:$0xff]  ;;  %v1909_v5 = vld [vmem:[#allocation2 + $0x290] sm:$0xff] }
 0xa03   :  { %2000 = vmatprep.subr.bf16.mxu1 %v1896_v51  ;;  %2028 = vmatprep.mubr.bf16.mxu1 %v1989_v58  ;;  %v1912_v6 = vld [vmem:[#allocation2 + $0x2a8] sm:$0xff]  ;;  %v1911_v7 = vld [vmem:[#allocation2 + $0x2a0] sm:$0xff]  ;;  %v1914_v8 = vld [vmem:[#allocation2 + $0x2b8] sm:$0xff]  ;;  %v1991_v20 = vcombine.high %v1989_v58, %v1989_v58 }
 0xa04   :  { %v1913_v9 = vld [vmem:[#allocation2 + $0x2b0] sm:$0xff]  ;;  %v1916_v10 = vld [vmem:[#allocation2 + $0x2c8] sm:$0xff]  ;;  %v1915_v11 = vld [vmem:[#allocation2 + $0x2c0] sm:$0xff] }
 0xa05   :  { %v1918_v12 = vld [vmem:[#allocation2 + $0x2d8] sm:$0xff]  ;;  %v1917_v13 = vld [vmem:[#allocation2 + $0x2d0] sm:$0xff]  ;;  %v1920_v14 = vld [vmem:[#allocation2 + $0x2e8] sm:$0xff] }
 0xa06   :  { %2001 = vmatpush1.bf16.msra.mxu1 %v1895_v52  ;;  %v1919_v15 = vld [vmem:[#allocation2 + $0x2e0] sm:$0xff]  ;;  %v1922_v16 = vld [vmem:[#allocation2 + $0x2f8] sm:$0xff]  ;;  %v1921_v17 = vld [vmem:[#allocation2 + $0x2f0] sm:$0xff] }
 0xa07   :  { %2002 = vmatprep.subr.bf16.mxu1 %v1898_v53  ;;  %v1924_v18 = vld [vmem:[#allocation2 + $0x308] sm:$0xff]  ;;  %v1923_v21 = vld [vmem:[#allocation2 + $0x300] sm:$0xff]  ;;  %v1926_v22 = vld [vmem:[#allocation2 + $0x318] sm:$0xff] }
 0xa08   :  { %v1925_v23 = vld [vmem:[#allocation2 + $0x310] sm:$0xff]  ;;  %v1928_v24 = vld [vmem:[#allocation2 + $0x328] sm:$0xff]  ;;  %v1927_v25 = vld [vmem:[#allocation2 + $0x320] sm:$0xff] }
 0xa09   :  { %v1930_v27 = vld [vmem:[#allocation2 + $0x338] sm:$0xff]  ;;  %v1929_v28 = vld [vmem:[#allocation2 + $0x330] sm:$0xff]  ;;  %v1932_v29 = vld [vmem:[#allocation2 + $0x348] sm:$0xff] }
 0xa0a   :  { %2003 = vmatpush1.bf16.msra.mxu1 %v1897_v55  ;;  %v1931_v30 = vld [vmem:[#allocation2 + $0x340] sm:$0xff]  ;;  %v1934_v32 = vld [vmem:[#allocation2 + $0x358] sm:$0xff]  ;;  %v1933_v33 = vld [vmem:[#allocation2 + $0x350] sm:$0xff]  ;;  %v1990_v55 = vcombine.high %v6043_v19, %v6043_v19 }
 0xa0b   :  { %2004 = vmatprep.subr.bf16.mxu1 %v1900_v57  ;;  %v1936_v34 = vld [vmem:[#allocation2 + $0x368] sm:$0xff]  ;;  %v1935_v35 = vld [vmem:[#allocation2 + $0x360] sm:$0xff]  ;;  %v1938_v36 = vld [vmem:[#allocation2 + $0x378] sm:$0xff] }
 0xa0c   :  { %v1937_v40 = vld [vmem:[#allocation2 + $0x370] sm:$0xff]  ;;  %v1940_v41 = vld [vmem:[#allocation2 + $0x388] sm:$0xff]  ;;  %v1939_v42 = vld [vmem:[#allocation2 + $0x380] sm:$0xff] }
 0xa0d   :  { %v1942_v43 = vld [vmem:[#allocation2 + $0x398] sm:$0xff]  ;;  %v1941_v37 = vld [vmem:[#allocation2 + $0x390] sm:$0xff]  ;;  %v1944_v44 = vld [vmem:[#allocation2 + $0x3a8] sm:$0xff] }
 0xa0e   :  { %2005 = vmatpush1.bf16.msra.mxu1 %v1899_v59  ;;  %v1943_v45 = vld [vmem:[#allocation2 + $0x3a0] sm:$0xff]  ;;  %v1946_v46 = vld [vmem:[#allocation2 + $0x3b8] sm:$0xff]  ;;  %v1945_v47 = vld [vmem:[#allocation2 + $0x3b0] sm:$0xff] }
 0xa0f   :  { %2006 = vmatprep.subr.bf16.mxu1 %v1902_v60  ;;  %v1948_v48 = vld [vmem:[#allocation2 + $0x3c8] sm:$0xff]  ;;  %v1947_v49 = vld [vmem:[#allocation2 + $0x3c0] sm:$0xff]  ;;  %v1950_v50 = vld [vmem:[#allocation2 + $0x3d8] sm:$0xff] }
 0xa10   :  { %v1949_v26 = vld [vmem:[#allocation2 + $0x3d0] sm:$0xff]  ;;  %v1952_v51 = vld [vmem:[#allocation2 + $0x3e8] sm:$0xff]  ;;  %v1951_v52 = vld [vmem:[#allocation2 + $0x3e0] sm:$0xff] }
 0xa11   :  { %v1954_v53 = vld [vmem:[#allocation2 + $0x3f8] sm:$0xff]  ;;  %v1953_v54 = vld [vmem:[#allocation2 + $0x3f0] sm:$0xff]  ;;  %v1955_v56 = vld [vmem:[%s6427_s13 + $0x2] sm:$0x3] }
 0xa12   :  { %2007 = vmatpush1.bf16.msra.mxu1 %v1901_v61  ;;  %v1960_v57 = vrot.slane %v1955_v56, %v5875_v38  ;;  %v1964_v58 = vrot.slane %v1955_v56, %v5878_v39 }
 0xa13   :  { %2008 = vmatprep.subr.bf16.mxu1 %v1904_v62 }
 0xa16   :  { %2009 = vmatpush1.bf16.msra.mxu1 %v1903_v63 }
 0xa17   :  { %2010 = vmatprep.subr.bf16.mxu1 %v1906_v0 }
 0xa1a   :  { %2011 = vmatpush1.bf16.msra.mxu1 %v1905_v1 }
 0xa1b   :  { %2012 = vmatprep.subr.bf16.mxu1 %v1908_v2 }
 0xa1e   :  { %2013 = vmatpush1.bf16.msra.mxu1 %v1907_v3 }
 0xa1f   :  { %2014 = vmatprep.subr.bf16.mxu1 %v1910_v4 }
 0xa22   :  { %2015 = vmatpush1.bf16.msra.mxu1 %v1909_v5 }
 0xa23   :  { %2016 = vmatprep.subr.bf16.mxu1 %v1912_v6 }
 0xa26   :  { %2017 = vmatpush1.bf16.msra.mxu1 %v1911_v7 }
 0xa27   :  { %2018 = vmatprep.subr.bf16.mxu1 %v1914_v8 }
 0xa2a   :  { %2019 = vmatpush1.bf16.msra.mxu1 %v1913_v9 }
 0xa2b   :  { %2020 = vmatprep.subr.bf16.mxu1 %v1916_v10 }
 0xa2e   :  { %2021 = vmatpush1.bf16.msra.mxu1 %v1915_v11 }
 0xa2f   :  { %2022 = vmatprep.subr.bf16.mxu1 %v1918_v12 }
 0xa32   :  { %2023 = vmatpush1.bf16.msra.mxu1 %v1917_v13 }
 0xa33   :  { %2024 = vmatprep.subr.bf16.mxu1 %v1920_v14 }
 0xa36   :  { %2025 = vmatpush1.bf16.msra.mxu1 %v1919_v15 }
 0xa37   :  { %2026 = vmatprep.subr.bf16.mxu1 %v1922_v16 }
 0xa3a   :  { %2027 = vmatpush1.bf16.msra.mxu1 %v1921_v17 }
 0xa3b   :  { %2037 = vmatprep.subr.bf16.mxu1 %v1924_v18 }
 0xa3d   :  { %2029 = vmatmul.mubr.bf16.vlgmr.msra.gmra.mrb[16].mxu1 %v6043_v19 }
 0xa3e   :  { %2038 = vmatpush1.bf16.msra.mxu1 %v1923_v21  ;;  %2069 = vmatprep.mubr.bf16.mxu1 %v1991_v20 }
 0xa3f   :  { %2039 = vmatprep.subr.bf16.mxu1 %v1926_v22 }
 0xa42   :  { %2040 = vmatpush1.bf16.msra.mxu1 %v1925_v23 }
 0xa43   :  { %2041 = vmatprep.subr.bf16.mxu1 %v1928_v24 }
 0xa46   :  { %2042 = vmatpush1.bf16.msra.mxu1 %v1927_v25 }
 0xa47   :  { %2043 = vmatprep.subr.bf16.mxu1 %v1930_v27 }
 0xa4a   :  { %2044 = vmatpush1.bf16.msra.mxu1 %v1929_v28 }
 0xa4b   :  { %2045 = vmatprep.subr.bf16.mxu1 %v1932_v29 }
 0xa4e   :  { %2046 = vmatpush1.bf16.msra.mxu1 %v1931_v30 }
 0xa4f   :  { %2047 = vmatprep.subr.bf16.mxu1 %v1934_v32 }
 0xa52   :  { %2048 = vmatpush1.bf16.msra.mxu1 %v1933_v33 }
 0xa53   :  { %2049 = vmatprep.subr.bf16.mxu1 %v1936_v34 }
 0xa56   :  { %2050 = vmatpush1.bf16.msra.mxu1 %v1935_v35 }
 0xa57   :  { %2051 = vmatprep.subr.bf16.mxu1 %v1938_v36 }
 0xa5a   :  { %2052 = vmatpush1.bf16.msra.mxu1 %v1937_v40 }
 0xa5b   :  { %2053 = vmatprep.subr.bf16.mxu1 %v1940_v41 }
 0xa5e   :  { %2054 = vmatpush1.bf16.msra.mxu1 %v1939_v42 }
 0xa5f   :  { %2055 = vmatprep.subr.bf16.mxu1 %v1942_v43 }
 0xa62   :  { %2056 = vmatpush1.bf16.msra.mxu1 %v1941_v37 }
 0xa63   :  { %2057 = vmatprep.subr.bf16.mxu1 %v1944_v44 }
 0xa66   :  { %2058 = vmatpush1.bf16.msra.mxu1 %v1943_v45 }
 0xa67   :  { %2059 = vmatprep.subr.bf16.mxu1 %v1946_v46 }
 0xa6a   :  { %2060 = vmatpush1.bf16.msra.mxu1 %v1945_v47 }
 0xa6b   :  { %2061 = vmatprep.subr.bf16.mxu1 %v1948_v48 }
 0xa6e   :  { %2062 = vmatpush1.bf16.msra.mxu1 %v1947_v49 }
 0xa6f   :  { %2063 = vmatprep.subr.bf16.mxu1 %v1950_v50 }
 0xa72   :  { %2064 = vmatpush1.bf16.msra.mxu1 %v1949_v26 }
 0xa73   :  { %2065 = vmatprep.subr.bf16.mxu1 %v1952_v51 }
 0xa76   :  { %2066 = vmatpush1.bf16.msra.mxu1 %v1951_v52 }
 0xa77   :  { %2067 = vmatprep.subr.bf16.mxu1 %v1954_v53 }
 0xa7a   :  { %2068 = vmatpush1.bf16.msra.mxu1 %v1953_v54 }
 0xa7d   :  { %2070 = vmatmul.mubr.bf16.vlgmr.msra.gmra.mrb[16].mxu1 %v1990_v55 }
 0xb50   :  { %v2071_v59 = vpop.f32.mrb[16].mxu1 }
 0xb51   :  { %v5413_v60 = vadd.f32 %v2071_v59, %v1960_v57  ;;  %v2073_v61 = vpop.f32.mrb[17].mxu1 }
 0xb52   :  { %v5414_v62 = vadd.f32 %v2073_v61, %v1964_v58  ;;  %v2075_v63 = vpop.f32.mrb[18].mxu1 }
 0xb53   :  { %v2078_v0 = vmax.f32 %v5413_v60, 0.0  ;;  %v2076_v1 = vpop.f32.mrb[19].mxu1 }
 0xb54   :  { %v2079_v2 = vmax.f32 %v5414_v62, 0.0 }
 0xb56   :  { %v5339_v3 = vpack.c.bf16 %v2079_v2, %v2078_v0 }
 0xb58   :  { %v2091_v4 = vrot.slane %v5339_v3, %v5840_v31 }
 0xb5a   :  { %5340 = vst.sshfl [vmem:[#allocation3 + $0x2] sm:$0x5 pattern:$0x73625140] %v2091_v4 }
 0xb5b   :  { %5617 = dma.done.wait [#allocation6], 8192 }
 0xb5c   :  { %5618 = vsyncadd [#allocation6], 4294959104  ;;  %2119 = sst [smem:[#allocation30]] %s5646_s24  ;;  %s2103_s27 = scalar_lea.hbm %s6460_s28, 8192 }
 0xb5d   :  { %2121 = sst [smem:[#allocation30 + $0x1]] %s5646_s24  ;;  %s5666_s0 = smov [#allocation29]  }
 0xb5e   :  { %2123 = sst [smem:[#allocation30 + $0x2]] %s5647_s2 }
 0xb5f   :  { %2125 = sst [smem:[#allocation30 + $0x3]] %s5648_s26 }
 0xb60   :  { %2127 = sst [smem:[#allocation30 + $0x4]] %s6456_s21 }
 0xb61   :  { %2129 = sst [smem:[#allocation30 + $0x5]] %s5647_s2 }
 0xb62   :  { %2131 = sst [smem:[#allocation30 + $0x6]] %s6456_s21 }
 0xb63   :  { %2133 = sst [smem:[#allocation30 + $0x7]] %s5648_s26 }
 0xb64   :  { %2135 = sst [smem:[#allocation30 + $0x8]] %s6457_s30 }
 0xb65   :  { %2137 = dma.general %s2103_s27, 8192, %s5828_s25, %s5655_s5, %s5666_s0, [#allocation30], %s5808_s29, 0  }
 0xb66   :  { %v2140_v5 = vld [vmem:[#allocation2 + $0x8] sm:$0xff]  ;;  %v2139_v6 = vld [vmem:[#allocation2] sm:$0xff]  ;;  %v2142_v7 = vld [vmem:[#allocation2 + $0x18] sm:$0xff] }
 0xb67   :  { %2244 = vmatprep.subr.bf16.mxu0 %v2140_v5  ;;  %v2141_v8 = vld [vmem:[#allocation2 + $0x10] sm:$0xff]  ;;  %v2144_v9 = vld [vmem:[#allocation2 + $0x28] sm:$0xff]  ;;  %v2143_v10 = vld [vmem:[#allocation2 + $0x20] sm:$0xff] }
 0xb68   :  { %2245 = vmatpush1.bf16.msra.mxu0 %v2139_v6  ;;  %v2146_v11 = vld [vmem:[#allocation2 + $0x38] sm:$0xff]  ;;  %v5343_v12 = vld.sshfl [vmem:[#allocation3] sm:$0x33 pattern:$0x75316420]  ;;  %v2145_v13 = vld [vmem:[#allocation2 + $0x30] sm:$0xff] }
 0xb69   :  { %2246 = vmatprep.subr.bf16.mxu0 %v2142_v7  ;;  %v2223_v14 = vcombine.high %v5343_v12, %v5343_v12  ;;  %v2148_v15 = vld [vmem:[#allocation2 + $0x48] sm:$0xff]  ;;  %v2147_v17 = vld [vmem:[#allocation2 + $0x40] sm:$0xff]  ;;  %v2150_v18 = vld [vmem:[#allocation2 + $0x58] sm:$0xff]  ;;  %v6071_v45 = vrot.slane %v5343_v12, %v5840_v31 }
 0xb6a   :  { %v2149_v19 = vld [vmem:[#allocation2 + $0x50] sm:$0xff]  ;;  %v2152_v20 = vld [vmem:[#allocation2 + $0x68] sm:$0xff]  ;;  %v2151_v21 = vld [vmem:[#allocation2 + $0x60] sm:$0xff] }
 0xb6b   :  { %v2237_v16 = vrot.slane %v2223_v14, %v5840_v31  ;;  %v2154_v22 = vld [vmem:[#allocation2 + $0x78] sm:$0xff]  ;;  %v2153_v23 = vld [vmem:[#allocation2 + $0x70] sm:$0xff]  ;;  %v2156_v24 = vld [vmem:[#allocation2 + $0x88] sm:$0xff] }
 0xb6c   :  { %2247 = vmatpush1.bf16.msra.mxu0 %v2141_v8  ;;  %v2155_v25 = vld [vmem:[#allocation2 + $0x80] sm:$0xff]  ;;  %v2158_v27 = vld [vmem:[#allocation2 + $0x98] sm:$0xff]  ;;  %v2157_v28 = vld [vmem:[#allocation2 + $0x90] sm:$0xff] }
 0xb6d   :  { %2248 = vmatprep.subr.bf16.mxu0 %v2144_v9  ;;  %2276 = vmatprep.mubr.bf16.mxu0 %v2237_v16  ;;  %v2160_v29 = vld [vmem:[#allocation2 + $0xa8] sm:$0xff]  ;;  %v2159_v30 = vld [vmem:[#allocation2 + $0xa0] sm:$0xff]  ;;  %v2162_v32 = vld [vmem:[#allocation2 + $0xb8] sm:$0xff]  ;;  %v2239_v46 = vcombine.high %v2237_v16, %v2237_v16 }
 0xb6e   :  { %v2161_v33 = vld [vmem:[#allocation2 + $0xb0] sm:$0xff]  ;;  %v2164_v34 = vld [vmem:[#allocation2 + $0xc8] sm:$0xff]  ;;  %v2163_v35 = vld [vmem:[#allocation2 + $0xc0] sm:$0xff] }
 0xb6f   :  { %v2166_v36 = vld [vmem:[#allocation2 + $0xd8] sm:$0xff]  ;;  %v2165_v40 = vld [vmem:[#allocation2 + $0xd0] sm:$0xff]  ;;  %v2168_v41 = vld [vmem:[#allocation2 + $0xe8] sm:$0xff] }
 0xb70   :  { %2249 = vmatpush1.bf16.msra.mxu0 %v2143_v10  ;;  %v2167_v42 = vld [vmem:[#allocation2 + $0xe0] sm:$0xff]  ;;  %v2170_v43 = vld [vmem:[#allocation2 + $0xf8] sm:$0xff]  ;;  %v2169_v37 = vld [vmem:[#allocation2 + $0xf0] sm:$0xff] }
 0xb71   :  { %2250 = vmatprep.subr.bf16.mxu0 %v2146_v11  ;;  %v2172_v44 = vld [vmem:[#allocation2 + $0x108] sm:$0xff]  ;;  %v2171_v47 = vld [vmem:[#allocation2 + $0x100] sm:$0xff]  ;;  %v2174_v48 = vld [vmem:[#allocation2 + $0x118] sm:$0xff] }
 0xb72   :  { %v2173_v49 = vld [vmem:[#allocation2 + $0x110] sm:$0xff]  ;;  %v2176_v50 = vld [vmem:[#allocation2 + $0x128] sm:$0xff]  ;;  %v2175_v26 = vld [vmem:[#allocation2 + $0x120] sm:$0xff] }
 0xb73   :  { %v2178_v51 = vld [vmem:[#allocation2 + $0x138] sm:$0xff]  ;;  %v2177_v52 = vld [vmem:[#allocation2 + $0x130] sm:$0xff]  ;;  %v2180_v53 = vld [vmem:[#allocation2 + $0x148] sm:$0xff] }
 0xb74   :  { %2251 = vmatpush1.bf16.msra.mxu0 %v2145_v13  ;;  %v2179_v54 = vld [vmem:[#allocation2 + $0x140] sm:$0xff]  ;;  %v2182_v55 = vld [vmem:[#allocation2 + $0x158] sm:$0xff]  ;;  %v2181_v56 = vld [vmem:[#allocation2 + $0x150] sm:$0xff]  ;;  %v2238_v13 = vcombine.high %v6071_v45, %v6071_v45 }
 0xb75   :  { %2252 = vmatprep.subr.bf16.mxu0 %v2148_v15  ;;  %v2184_v57 = vld [vmem:[#allocation2 + $0x168] sm:$0xff]  ;;  %v2183_v58 = vld [vmem:[#allocation2 + $0x160] sm:$0xff]  ;;  %v2186_v59 = vld [vmem:[#allocation2 + $0x178] sm:$0xff] }
 0xb76   :  { %v2185_v60 = vld [vmem:[#allocation2 + $0x170] sm:$0xff]  ;;  %v2188_v61 = vld [vmem:[#allocation2 + $0x188] sm:$0xff]  ;;  %v2187_v62 = vld [vmem:[#allocation2 + $0x180] sm:$0xff] }
 0xb77   :  { %v2190_v63 = vld [vmem:[#allocation2 + $0x198] sm:$0xff]  ;;  %v2189_v0 = vld [vmem:[#allocation2 + $0x190] sm:$0xff]  ;;  %v2192_v1 = vld [vmem:[#allocation2 + $0x1a8] sm:$0xff] }
 0xb78   :  { %2253 = vmatpush1.bf16.msra.mxu0 %v2147_v17  ;;  %v2191_v2 = vld [vmem:[#allocation2 + $0x1a0] sm:$0xff]  ;;  %v2194_v3 = vld [vmem:[#allocation2 + $0x1b8] sm:$0xff]  ;;  %v2193_v4 = vld [vmem:[#allocation2 + $0x1b0] sm:$0xff] }
 0xb79   :  { %2254 = vmatprep.subr.bf16.mxu0 %v2150_v18  ;;  %v2196_v5 = vld [vmem:[#allocation2 + $0x1c8] sm:$0xff]  ;;  %v2195_v6 = vld [vmem:[#allocation2 + $0x1c0] sm:$0xff]  ;;  %v2198_v7 = vld [vmem:[#allocation2 + $0x1d8] sm:$0xff] }
 0xb7a   :  { %v2197_v8 = vld [vmem:[#allocation2 + $0x1d0] sm:$0xff]  ;;  %v2200_v9 = vld [vmem:[#allocation2 + $0x1e8] sm:$0xff]  ;;  %v2199_v10 = vld [vmem:[#allocation2 + $0x1e0] sm:$0xff] }
 0xb7b   :  { %v2202_v11 = vld [vmem:[#allocation2 + $0x1f8] sm:$0xff]  ;;  %v2201_v12 = vld [vmem:[#allocation2 + $0x1f0] sm:$0xff]  ;;  %v2203_v14 = vld [vmem:[%s6428_s14] sm:$0x3] }
 0xb7c   :  { %2255 = vmatpush1.bf16.msra.mxu0 %v2149_v19  ;;  %v2208_v15 = vrot.slane %v2203_v14, %v5875_v38  ;;  %v2212_v16 = vrot.slane %v2203_v14, %v5878_v39 }
 0xb7d   :  { %2256 = vmatprep.subr.bf16.mxu0 %v2152_v20 }
 0xb80   :  { %2257 = vmatpush1.bf16.msra.mxu0 %v2151_v21 }
 0xb81   :  { %2258 = vmatprep.subr.bf16.mxu0 %v2154_v22 }
 0xb84   :  { %2259 = vmatpush1.bf16.msra.mxu0 %v2153_v23 }
 0xb85   :  { %2260 = vmatprep.subr.bf16.mxu0 %v2156_v24 }
 0xb88   :  { %2261 = vmatpush1.bf16.msra.mxu0 %v2155_v25 }
 0xb89   :  { %2262 = vmatprep.subr.bf16.mxu0 %v2158_v27 }
 0xb8c   :  { %2263 = vmatpush1.bf16.msra.mxu0 %v2157_v28 }
 0xb8d   :  { %2264 = vmatprep.subr.bf16.mxu0 %v2160_v29 }
 0xb90   :  { %2265 = vmatpush1.bf16.msra.mxu0 %v2159_v30 }
 0xb91   :  { %2266 = vmatprep.subr.bf16.mxu0 %v2162_v32 }
 0xb94   :  { %2267 = vmatpush1.bf16.msra.mxu0 %v2161_v33 }
 0xb95   :  { %2268 = vmatprep.subr.bf16.mxu0 %v2164_v34 }
 0xb98   :  { %2269 = vmatpush1.bf16.msra.mxu0 %v2163_v35 }
 0xb99   :  { %2270 = vmatprep.subr.bf16.mxu0 %v2166_v36 }
 0xb9c   :  { %2271 = vmatpush1.bf16.msra.mxu0 %v2165_v40 }
 0xb9d   :  { %2272 = vmatprep.subr.bf16.mxu0 %v2168_v41 }
 0xba0   :  { %2273 = vmatpush1.bf16.msra.mxu0 %v2167_v42 }
 0xba1   :  { %2274 = vmatprep.subr.bf16.mxu0 %v2170_v43 }
 0xba4   :  { %2275 = vmatpush1.bf16.msra.mxu0 %v2169_v37 }
 0xba5   :  { %2285 = vmatprep.subr.bf16.mxu0 %v2172_v44 }
 0xba7   :  { %2277 = vmatmul.mubr.bf16.vlgmr.msra.gmra.mrb[16].mxu0 %v6071_v45 }
 0xba8   :  { %2286 = vmatpush1.bf16.msra.mxu0 %v2171_v47  ;;  %2317 = vmatprep.mubr.bf16.mxu0 %v2239_v46 }
 0xba9   :  { %2287 = vmatprep.subr.bf16.mxu0 %v2174_v48 }
 0xbac   :  { %2288 = vmatpush1.bf16.msra.mxu0 %v2173_v49 }
 0xbad   :  { %2289 = vmatprep.subr.bf16.mxu0 %v2176_v50 }
 0xbb0   :  { %2290 = vmatpush1.bf16.msra.mxu0 %v2175_v26 }
 0xbb1   :  { %2291 = vmatprep.subr.bf16.mxu0 %v2178_v51 }
 0xbb4   :  { %2292 = vmatpush1.bf16.msra.mxu0 %v2177_v52 }
 0xbb5   :  { %2293 = vmatprep.subr.bf16.mxu0 %v2180_v53 }
 0xbb8   :  { %2294 = vmatpush1.bf16.msra.mxu0 %v2179_v54 }
 0xbb9   :  { %2295 = vmatprep.subr.bf16.mxu0 %v2182_v55 }
 0xbbc   :  { %2296 = vmatpush1.bf16.msra.mxu0 %v2181_v56 }
 0xbbd   :  { %2297 = vmatprep.subr.bf16.mxu0 %v2184_v57 }
 0xbc0   :  { %2298 = vmatpush1.bf16.msra.mxu0 %v2183_v58 }
 0xbc1   :  { %2299 = vmatprep.subr.bf16.mxu0 %v2186_v59 }
 0xbc4   :  { %2300 = vmatpush1.bf16.msra.mxu0 %v2185_v60 }
 0xbc5   :  { %2301 = vmatprep.subr.bf16.mxu0 %v2188_v61 }
 0xbc8   :  { %2302 = vmatpush1.bf16.msra.mxu0 %v2187_v62 }
 0xbc9   :  { %2303 = vmatprep.subr.bf16.mxu0 %v2190_v63 }
 0xbcc   :  { %2304 = vmatpush1.bf16.msra.mxu0 %v2189_v0 }
 0xbcd   :  { %2305 = vmatprep.subr.bf16.mxu0 %v2192_v1 }
 0xbd0   :  { %2306 = vmatpush1.bf16.msra.mxu0 %v2191_v2 }
 0xbd1   :  { %2307 = vmatprep.subr.bf16.mxu0 %v2194_v3 }
 0xbd4   :  { %2308 = vmatpush1.bf16.msra.mxu0 %v2193_v4 }
 0xbd5   :  { %2309 = vmatprep.subr.bf16.mxu0 %v2196_v5 }
 0xbd8   :  { %2310 = vmatpush1.bf16.msra.mxu0 %v2195_v6 }
 0xbd9   :  { %2311 = vmatprep.subr.bf16.mxu0 %v2198_v7 }
 0xbdc   :  { %2312 = vmatpush1.bf16.msra.mxu0 %v2197_v8 }
 0xbdd   :  { %2313 = vmatprep.subr.bf16.mxu0 %v2200_v9 }
 0xbe0   :  { %2314 = vmatpush1.bf16.msra.mxu0 %v2199_v10 }
 0xbe1   :  { %2315 = vmatprep.subr.bf16.mxu0 %v2202_v11 }
 0xbe4   :  { %2316 = vmatpush1.bf16.msra.mxu0 %v2201_v12 }
 0xbe7   :  { %2318 = vmatmul.mubr.bf16.vlgmr.msra.gmra.mrb[16].mxu0 %v2238_v13 }
 0xcba   :  { %v2319_v17 = vpop.f32.mrb[16].mxu0 }
 0xcbb   :  { %v5415_v18 = vadd.f32 %v2319_v17, %v2208_v15  ;;  %v2321_v19 = vpop.f32.mrb[17].mxu0 }
 0xcbc   :  { %v5416_v20 = vadd.f32 %v2321_v19, %v2212_v16  ;;  %v2323_v21 = vpop.f32.mrb[18].mxu0 }
 0xcbd   :  { %v2326_v22 = vmax.f32 %v5415_v18, 0.0  ;;  %v2324_v23 = vpop.f32.mrb[19].mxu0 }
 0xcbe   :  { %v2327_v24 = vmax.f32 %v5416_v20, 0.0 }
 0xcc0   :  { %v5344_v25 = vpack.c.bf16 %v2327_v24, %v2326_v22 }
 0xcc2   :  { %v2339_v27 = vrot.slane %v5344_v25, %v5840_v31 }
 0xcc4   :  { %5345 = vst.sshfl [vmem:[#allocation4] sm:$0x5 pattern:$0x73625140] %v2339_v27 }
 0xcc5   :  { %5619 = dma.done.wait [#allocation6 + $0x1], 8192 }
 0xcc6   :  { %5620 = vsyncadd [#allocation6 + $0x1], 4294959104  ;;  %2366 = sst [smem:[#allocation32]] %s5646_s24  ;;  %s5667_s28 = smov [#allocation31]  }
 0xcc7   :  { %2368 = sst [smem:[#allocation32 + $0x1]] %s5646_s24  ;;  %s6461_s13 = sld [smem:[#allocation81_spill]] }
 0xcc8   :  { %2370 = sst [smem:[#allocation32 + $0x2]] %s5647_s2 }
 0xcc9   :  { %2372 = sst [smem:[#allocation32 + $0x3]] %s5648_s26 }
 0xcca   :  { %2374 = sst [smem:[#allocation32 + $0x4]] %s6456_s21 }
 0xccb   :  { %2376 = sst [smem:[#allocation32 + $0x5]] %s5647_s2 }
 0xccc   :  { %2378 = sst [smem:[#allocation32 + $0x6]] %s6456_s21 }
 0xccd   :  { %2380 = sst [smem:[#allocation32 + $0x7]] %s5648_s26 }
 0xcce   :  { %2382 = sst [smem:[#allocation32 + $0x8]] %s6457_s30 }
 0xccf   :  { %2384 = dma.general %s6461_s13, 8192, %s5812_s3, %s5652_s4, %s5667_s28, [#allocation32], %s5808_s29, 0  }
 0xcd0   :  { %v2387_v28 = vld [vmem:[#allocation2 + $0x208] sm:$0xff]  ;;  %v2386_v29 = vld [vmem:[#allocation2 + $0x200] sm:$0xff]  ;;  %v2389_v30 = vld [vmem:[#allocation2 + $0x218] sm:$0xff] }
 0xcd1   :  { %2491 = vmatprep.subr.bf16.mxu1 %v2387_v28  ;;  %v2388_v32 = vld [vmem:[#allocation2 + $0x210] sm:$0xff]  ;;  %v2391_v33 = vld [vmem:[#allocation2 + $0x228] sm:$0xff]  ;;  %v2390_v34 = vld [vmem:[#allocation2 + $0x220] sm:$0xff] }
 0xcd2   :  { %2492 = vmatpush1.bf16.msra.mxu1 %v2386_v29  ;;  %v2393_v35 = vld [vmem:[#allocation2 + $0x238] sm:$0xff]  ;;  %v5348_v36 = vld.sshfl [vmem:[#allocation3] sm:$0x33 pattern:$0x75316420]  ;;  %v2392_v40 = vld [vmem:[#allocation2 + $0x230] sm:$0xff] }
 0xcd3   :  { %2493 = vmatprep.subr.bf16.mxu1 %v2389_v30  ;;  %v2470_v41 = vcombine.high %v5348_v36, %v5348_v36  ;;  %v2395_v42 = vld [vmem:[#allocation2 + $0x248] sm:$0xff]  ;;  %v2394_v37 = vld [vmem:[#allocation2 + $0x240] sm:$0xff]  ;;  %v2397_v44 = vld [vmem:[#allocation2 + $0x258] sm:$0xff]  ;;  %v6099_v2 = vrot.slane %v5348_v36, %v5840_v31 }
 0xcd4   :  { %v2396_v45 = vld [vmem:[#allocation2 + $0x250] sm:$0xff]  ;;  %v2399_v46 = vld [vmem:[#allocation2 + $0x268] sm:$0xff]  ;;  %v2398_v47 = vld [vmem:[#allocation2 + $0x260] sm:$0xff] }
 0xcd5   :  { %v2484_v43 = vrot.slane %v2470_v41, %v5840_v31  ;;  %v2401_v48 = vld [vmem:[#allocation2 + $0x278] sm:$0xff]  ;;  %v2400_v49 = vld [vmem:[#allocation2 + $0x270] sm:$0xff]  ;;  %v2403_v50 = vld [vmem:[#allocation2 + $0x288] sm:$0xff] }
 0xcd6   :  { %2494 = vmatpush1.bf16.msra.mxu1 %v2388_v32  ;;  %v2402_v26 = vld [vmem:[#allocation2 + $0x280] sm:$0xff]  ;;  %v2405_v51 = vld [vmem:[#allocation2 + $0x298] sm:$0xff]  ;;  %v2404_v52 = vld [vmem:[#allocation2 + $0x290] sm:$0xff] }
 0xcd7   :  { %2495 = vmatprep.subr.bf16.mxu1 %v2391_v33  ;;  %2523 = vmatprep.mubr.bf16.mxu1 %v2484_v43  ;;  %v2407_v53 = vld [vmem:[#allocation2 + $0x2a8] sm:$0xff]  ;;  %v2406_v54 = vld [vmem:[#allocation2 + $0x2a0] sm:$0xff]  ;;  %v2409_v55 = vld [vmem:[#allocation2 + $0x2b8] sm:$0xff]  ;;  %v2486_v3 = vcombine.high %v2484_v43, %v2484_v43 }
 0xcd8   :  { %v2408_v56 = vld [vmem:[#allocation2 + $0x2b0] sm:$0xff]  ;;  %v2411_v57 = vld [vmem:[#allocation2 + $0x2c8] sm:$0xff]  ;;  %v2410_v58 = vld [vmem:[#allocation2 + $0x2c0] sm:$0xff] }
 0xcd9   :  { %v2413_v59 = vld [vmem:[#allocation2 + $0x2d8] sm:$0xff]  ;;  %v2412_v60 = vld [vmem:[#allocation2 + $0x2d0] sm:$0xff]  ;;  %v2415_v61 = vld [vmem:[#allocation2 + $0x2e8] sm:$0xff] }
 0xcda   :  { %2496 = vmatpush1.bf16.msra.mxu1 %v2390_v34  ;;  %v2414_v62 = vld [vmem:[#allocation2 + $0x2e0] sm:$0xff]  ;;  %v2417_v63 = vld [vmem:[#allocation2 + $0x2f8] sm:$0xff]  ;;  %v2416_v0 = vld [vmem:[#allocation2 + $0x2f0] sm:$0xff] }
 0xcdb   :  { %2497 = vmatprep.subr.bf16.mxu1 %v2393_v35  ;;  %v2419_v1 = vld [vmem:[#allocation2 + $0x308] sm:$0xff]  ;;  %v2418_v4 = vld [vmem:[#allocation2 + $0x300] sm:$0xff]  ;;  %v2421_v5 = vld [vmem:[#allocation2 + $0x318] sm:$0xff] }
 0xcdc   :  { %v2420_v6 = vld [vmem:[#allocation2 + $0x310] sm:$0xff]  ;;  %v2423_v7 = vld [vmem:[#allocation2 + $0x328] sm:$0xff]  ;;  %v2422_v8 = vld [vmem:[#allocation2 + $0x320] sm:$0xff] }
 0xcdd   :  { %v2425_v9 = vld [vmem:[#allocation2 + $0x338] sm:$0xff]  ;;  %v2424_v10 = vld [vmem:[#allocation2 + $0x330] sm:$0xff]  ;;  %v2427_v11 = vld [vmem:[#allocation2 + $0x348] sm:$0xff] }
 0xcde   :  { %2498 = vmatpush1.bf16.msra.mxu1 %v2392_v40  ;;  %v2426_v12 = vld [vmem:[#allocation2 + $0x340] sm:$0xff]  ;;  %v2429_v13 = vld [vmem:[#allocation2 + $0x358] sm:$0xff]  ;;  %v2428_v14 = vld [vmem:[#allocation2 + $0x350] sm:$0xff]  ;;  %v2485_v40 = vcombine.high %v6099_v2, %v6099_v2 }
 0xcdf   :  { %2499 = vmatprep.subr.bf16.mxu1 %v2395_v42  ;;  %v2431_v15 = vld [vmem:[#allocation2 + $0x368] sm:$0xff]  ;;  %v2430_v16 = vld [vmem:[#allocation2 + $0x360] sm:$0xff]  ;;  %v2433_v17 = vld [vmem:[#allocation2 + $0x378] sm:$0xff] }
 0xce0   :  { %v2432_v18 = vld [vmem:[#allocation2 + $0x370] sm:$0xff]  ;;  %v2435_v19 = vld [vmem:[#allocation2 + $0x388] sm:$0xff]  ;;  %v2434_v20 = vld [vmem:[#allocation2 + $0x380] sm:$0xff] }
 0xce1   :  { %v2437_v21 = vld [vmem:[#allocation2 + $0x398] sm:$0xff]  ;;  %v2436_v22 = vld [vmem:[#allocation2 + $0x390] sm:$0xff]  ;;  %v2439_v23 = vld [vmem:[#allocation2 + $0x3a8] sm:$0xff] }
 0xce2   :  { %2500 = vmatpush1.bf16.msra.mxu1 %v2394_v37  ;;  %v2438_v24 = vld [vmem:[#allocation2 + $0x3a0] sm:$0xff]  ;;  %v2441_v25 = vld [vmem:[#allocation2 + $0x3b8] sm:$0xff]  ;;  %v2440_v27 = vld [vmem:[#allocation2 + $0x3b0] sm:$0xff] }
 0xce3   :  { %2501 = vmatprep.subr.bf16.mxu1 %v2397_v44  ;;  %v2443_v28 = vld [vmem:[#allocation2 + $0x3c8] sm:$0xff]  ;;  %v2442_v29 = vld [vmem:[#allocation2 + $0x3c0] sm:$0xff]  ;;  %v2445_v30 = vld [vmem:[#allocation2 + $0x3d8] sm:$0xff] }
 0xce4   :  { %v2444_v32 = vld [vmem:[#allocation2 + $0x3d0] sm:$0xff]  ;;  %v2447_v33 = vld [vmem:[#allocation2 + $0x3e8] sm:$0xff]  ;;  %v2446_v34 = vld [vmem:[#allocation2 + $0x3e0] sm:$0xff] }
 0xce5   :  { %v2449_v35 = vld [vmem:[#allocation2 + $0x3f8] sm:$0xff]  ;;  %v2448_v36 = vld [vmem:[#allocation2 + $0x3f0] sm:$0xff]  ;;  %v2450_v41 = vld [vmem:[%s6428_s14 + $0x2] sm:$0x3] }
 0xce6   :  { %2502 = vmatpush1.bf16.msra.mxu1 %v2396_v45  ;;  %v2455_v42 = vrot.slane %v2450_v41, %v5875_v38  ;;  %v2459_v43 = vrot.slane %v2450_v41, %v5878_v39 }
 0xce7   :  { %2503 = vmatprep.subr.bf16.mxu1 %v2399_v46 }
 0xcea   :  { %2504 = vmatpush1.bf16.msra.mxu1 %v2398_v47 }
 0xceb   :  { %2505 = vmatprep.subr.bf16.mxu1 %v2401_v48 }
 0xcee   :  { %2506 = vmatpush1.bf16.msra.mxu1 %v2400_v49 }
 0xcef   :  { %2507 = vmatprep.subr.bf16.mxu1 %v2403_v50 }
 0xcf2   :  { %2508 = vmatpush1.bf16.msra.mxu1 %v2402_v26 }
 0xcf3   :  { %2509 = vmatprep.subr.bf16.mxu1 %v2405_v51 }
 0xcf6   :  { %2510 = vmatpush1.bf16.msra.mxu1 %v2404_v52 }
 0xcf7   :  { %2511 = vmatprep.subr.bf16.mxu1 %v2407_v53 }
 0xcfa   :  { %2512 = vmatpush1.bf16.msra.mxu1 %v2406_v54 }
 0xcfb   :  { %2513 = vmatprep.subr.bf16.mxu1 %v2409_v55 }
 0xcfe   :  { %2514 = vmatpush1.bf16.msra.mxu1 %v2408_v56 }
 0xcff   :  { %2515 = vmatprep.subr.bf16.mxu1 %v2411_v57 }
 0xd02   :  { %2516 = vmatpush1.bf16.msra.mxu1 %v2410_v58 }
 0xd03   :  { %2517 = vmatprep.subr.bf16.mxu1 %v2413_v59 }
 0xd06   :  { %2518 = vmatpush1.bf16.msra.mxu1 %v2412_v60 }
 0xd07   :  { %2519 = vmatprep.subr.bf16.mxu1 %v2415_v61 }
 0xd0a   :  { %2520 = vmatpush1.bf16.msra.mxu1 %v2414_v62 }
 0xd0b   :  { %2521 = vmatprep.subr.bf16.mxu1 %v2417_v63 }
 0xd0e   :  { %2522 = vmatpush1.bf16.msra.mxu1 %v2416_v0 }
 0xd0f   :  { %2532 = vmatprep.subr.bf16.mxu1 %v2419_v1 }
 0xd11   :  { %2524 = vmatmul.mubr.bf16.vlgmr.msra.gmra.mrb[20].mxu1 %v6099_v2 }
 0xd12   :  { %2533 = vmatpush1.bf16.msra.mxu1 %v2418_v4  ;;  %2564 = vmatprep.mubr.bf16.mxu1 %v2486_v3 }
 0xd13   :  { %2534 = vmatprep.subr.bf16.mxu1 %v2421_v5 }
 0xd16   :  { %2535 = vmatpush1.bf16.msra.mxu1 %v2420_v6 }
 0xd17   :  { %2536 = vmatprep.subr.bf16.mxu1 %v2423_v7 }
 0xd1a   :  { %2537 = vmatpush1.bf16.msra.mxu1 %v2422_v8 }
 0xd1b   :  { %2538 = vmatprep.subr.bf16.mxu1 %v2425_v9 }
 0xd1e   :  { %2539 = vmatpush1.bf16.msra.mxu1 %v2424_v10 }
 0xd1f   :  { %2540 = vmatprep.subr.bf16.mxu1 %v2427_v11 }
 0xd22   :  { %2541 = vmatpush1.bf16.msra.mxu1 %v2426_v12 }
 0xd23   :  { %2542 = vmatprep.subr.bf16.mxu1 %v2429_v13 }
 0xd26   :  { %2543 = vmatpush1.bf16.msra.mxu1 %v2428_v14 }
 0xd27   :  { %2544 = vmatprep.subr.bf16.mxu1 %v2431_v15 }
 0xd2a   :  { %2545 = vmatpush1.bf16.msra.mxu1 %v2430_v16 }
 0xd2b   :  { %2546 = vmatprep.subr.bf16.mxu1 %v2433_v17 }
 0xd2e   :  { %2547 = vmatpush1.bf16.msra.mxu1 %v2432_v18 }
 0xd2f   :  { %2548 = vmatprep.subr.bf16.mxu1 %v2435_v19 }
 0xd32   :  { %2549 = vmatpush1.bf16.msra.mxu1 %v2434_v20 }
 0xd33   :  { %2550 = vmatprep.subr.bf16.mxu1 %v2437_v21 }
 0xd36   :  { %2551 = vmatpush1.bf16.msra.mxu1 %v2436_v22 }
 0xd37   :  { %2552 = vmatprep.subr.bf16.mxu1 %v2439_v23 }
 0xd3a   :  { %2553 = vmatpush1.bf16.msra.mxu1 %v2438_v24 }
 0xd3b   :  { %2554 = vmatprep.subr.bf16.mxu1 %v2441_v25 }
 0xd3e   :  { %2555 = vmatpush1.bf16.msra.mxu1 %v2440_v27 }
 0xd3f   :  { %2556 = vmatprep.subr.bf16.mxu1 %v2443_v28 }
 0xd42   :  { %2557 = vmatpush1.bf16.msra.mxu1 %v2442_v29 }
 0xd43   :  { %2558 = vmatprep.subr.bf16.mxu1 %v2445_v30 }
 0xd46   :  { %2559 = vmatpush1.bf16.msra.mxu1 %v2444_v32 }
 0xd47   :  { %2560 = vmatprep.subr.bf16.mxu1 %v2447_v33 }
 0xd4a   :  { %2561 = vmatpush1.bf16.msra.mxu1 %v2446_v34 }
 0xd4b   :  { %2562 = vmatprep.subr.bf16.mxu1 %v2449_v35 }
 0xd4e   :  { %2563 = vmatpush1.bf16.msra.mxu1 %v2448_v36 }
 0xd51   :  { %2565 = vmatmul.mubr.bf16.vlgmr.msra.gmra.mrb[20].mxu1 %v2485_v40 }
 0xe24   :  { %v2566_v37 = vpop.f32.mrb[20].mxu1 }
 0xe25   :  { %v5417_v44 = vadd.f32 %v2566_v37, %v2455_v42  ;;  %v2568_v45 = vpop.f32.mrb[21].mxu1 }
 0xe26   :  { %v5418_v46 = vadd.f32 %v2568_v45, %v2459_v43  ;;  %v2570_v47 = vpop.f32.mrb[22].mxu1 }
 0xe27   :  { %v2573_v48 = vmax.f32 %v5417_v44, 0.0  ;;  %v2571_v49 = vpop.f32.mrb[23].mxu1 }
 0xe28   :  { %v2574_v50 = vmax.f32 %v5418_v46, 0.0 }
 0xe2a   :  { %v5349_v26 = vpack.c.bf16 %v2574_v50, %v2573_v48 }
 0xe2c   :  { %v2586_v51 = vrot.slane %v5349_v26, %v5840_v31 }
 0xe2e   :  { %5350 = vst.sshfl [vmem:[#allocation4 + $0x2] sm:$0x5 pattern:$0x73625140] %v2586_v51 }
 0xe2f   :  { %5621 = dma.done.wait [#allocation6], 8192 }
 0xe30   :  { %5622 = vsyncadd [#allocation6], 4294959104  ;;  %2614 = sst [smem:[#allocation34]] %s5646_s24  ;;  %s2598_s1 = scalar_lea.hbm %s6461_s13, 8192 }
 0xe31   :  { %2616 = sst [smem:[#allocation34 + $0x1]] %s5646_s24  ;;  %s5668_s12 = smov [#allocation33]  }
 0xe32   :  { %2618 = sst [smem:[#allocation34 + $0x2]] %s5647_s2 }
 0xe33   :  { %2620 = sst [smem:[#allocation34 + $0x3]] %s5648_s26 }
 0xe34   :  { %2622 = sst [smem:[#allocation34 + $0x4]] %s6456_s21 }
 0xe35   :  { %2624 = sst [smem:[#allocation34 + $0x5]] %s5647_s2 }
 0xe36   :  { %2626 = sst [smem:[#allocation34 + $0x6]] %s6456_s21 }
 0xe37   :  { %2628 = sst [smem:[#allocation34 + $0x7]] %s5648_s26 }
 0xe38   :  { %2630 = sst [smem:[#allocation34 + $0x8]] %s6457_s30 }
 0xe39   :  { %2632 = dma.general %s2598_s1, 8192, %s5828_s25, %s5655_s5, %s5668_s12, [#allocation34], %s5808_s29, 0  }
 0xe3a   :  { %v2635_v52 = vld [vmem:[#allocation2 + $0x8] sm:$0xff]  ;;  %v2634_v53 = vld [vmem:[#allocation2] sm:$0xff]  ;;  %v2637_v54 = vld [vmem:[#allocation2 + $0x18] sm:$0xff] }
 0xe3b   :  { %2739 = vmatprep.subr.bf16.mxu0 %v2635_v52  ;;  %v2636_v55 = vld [vmem:[#allocation2 + $0x10] sm:$0xff]  ;;  %v2639_v56 = vld [vmem:[#allocation2 + $0x28] sm:$0xff]  ;;  %v2638_v57 = vld [vmem:[#allocation2 + $0x20] sm:$0xff] }
 0xe3c   :  { %2740 = vmatpush1.bf16.msra.mxu0 %v2634_v53  ;;  %v2641_v58 = vld [vmem:[#allocation2 + $0x38] sm:$0xff]  ;;  %v5353_v59 = vld.sshfl [vmem:[#allocation4] sm:$0x33 pattern:$0x75316420]  ;;  %v2640_v60 = vld [vmem:[#allocation2 + $0x30] sm:$0xff] }
 0xe3d   :  { %2741 = vmatprep.subr.bf16.mxu0 %v2637_v54  ;;  %v2718_v61 = vcombine.high %v5353_v59, %v5353_v59  ;;  %v2643_v62 = vld [vmem:[#allocation2 + $0x48] sm:$0xff]  ;;  %v2642_v0 = vld [vmem:[#allocation2 + $0x40] sm:$0xff]  ;;  %v2645_v1 = vld [vmem:[#allocation2 + $0x58] sm:$0xff]  ;;  %v6127_v24 = vrot.slane %v5353_v59, %v5840_v31 }
 0xe3e   :  { %v2644_v2 = vld [vmem:[#allocation2 + $0x50] sm:$0xff]  ;;  %v2647_v3 = vld [vmem:[#allocation2 + $0x68] sm:$0xff]  ;;  %v2646_v4 = vld [vmem:[#allocation2 + $0x60] sm:$0xff] }
 0xe3f   :  { %v2732_v63 = vrot.slane %v2718_v61, %v5840_v31  ;;  %v2649_v5 = vld [vmem:[#allocation2 + $0x78] sm:$0xff]  ;;  %v2648_v6 = vld [vmem:[#allocation2 + $0x70] sm:$0xff]  ;;  %v2651_v7 = vld [vmem:[#allocation2 + $0x88] sm:$0xff] }
 0xe40   :  { %2742 = vmatpush1.bf16.msra.mxu0 %v2636_v55  ;;  %v2650_v8 = vld [vmem:[#allocation2 + $0x80] sm:$0xff]  ;;  %v2653_v9 = vld [vmem:[#allocation2 + $0x98] sm:$0xff]  ;;  %v2652_v10 = vld [vmem:[#allocation2 + $0x90] sm:$0xff] }
 0xe41   :  { %2743 = vmatprep.subr.bf16.mxu0 %v2639_v56  ;;  %2771 = vmatprep.mubr.bf16.mxu0 %v2732_v63  ;;  %v2655_v11 = vld [vmem:[#allocation2 + $0xa8] sm:$0xff]  ;;  %v2654_v12 = vld [vmem:[#allocation2 + $0xa0] sm:$0xff]  ;;  %v2657_v13 = vld [vmem:[#allocation2 + $0xb8] sm:$0xff]  ;;  %v2734_v25 = vcombine.high %v2732_v63, %v2732_v63 }
 0xe42   :  { %v2656_v14 = vld [vmem:[#allocation2 + $0xb0] sm:$0xff]  ;;  %v2659_v15 = vld [vmem:[#allocation2 + $0xc8] sm:$0xff]  ;;  %v2658_v16 = vld [vmem:[#allocation2 + $0xc0] sm:$0xff] }
 0xe43   :  { %v2661_v17 = vld [vmem:[#allocation2 + $0xd8] sm:$0xff]  ;;  %v2660_v18 = vld [vmem:[#allocation2 + $0xd0] sm:$0xff]  ;;  %v2663_v19 = vld [vmem:[#allocation2 + $0xe8] sm:$0xff] }
 0xe44   :  { %2744 = vmatpush1.bf16.msra.mxu0 %v2638_v57  ;;  %v2662_v20 = vld [vmem:[#allocation2 + $0xe0] sm:$0xff]  ;;  %v2665_v21 = vld [vmem:[#allocation2 + $0xf8] sm:$0xff]  ;;  %v2664_v22 = vld [vmem:[#allocation2 + $0xf0] sm:$0xff] }
 0xe45   :  { %2745 = vmatprep.subr.bf16.mxu0 %v2641_v58  ;;  %v2667_v23 = vld [vmem:[#allocation2 + $0x108] sm:$0xff]  ;;  %v2666_v27 = vld [vmem:[#allocation2 + $0x100] sm:$0xff]  ;;  %v2669_v28 = vld [vmem:[#allocation2 + $0x118] sm:$0xff] }
 0xe46   :  { %v2668_v29 = vld [vmem:[#allocation2 + $0x110] sm:$0xff]  ;;  %v2671_v30 = vld [vmem:[#allocation2 + $0x128] sm:$0xff]  ;;  %v2670_v32 = vld [vmem:[#allocation2 + $0x120] sm:$0xff] }
 0xe47   :  { %v2673_v33 = vld [vmem:[#allocation2 + $0x138] sm:$0xff]  ;;  %v2672_v34 = vld [vmem:[#allocation2 + $0x130] sm:$0xff]  ;;  %v2675_v35 = vld [vmem:[#allocation2 + $0x148] sm:$0xff] }
 0xe48   :  { %2746 = vmatpush1.bf16.msra.mxu0 %v2640_v60  ;;  %v2674_v36 = vld [vmem:[#allocation2 + $0x140] sm:$0xff]  ;;  %v2677_v40 = vld [vmem:[#allocation2 + $0x158] sm:$0xff]  ;;  %v2676_v41 = vld [vmem:[#allocation2 + $0x150] sm:$0xff]  ;;  %v2733_v60 = vcombine.high %v6127_v24, %v6127_v24 }
 0xe49   :  { %2747 = vmatprep.subr.bf16.mxu0 %v2643_v62  ;;  %v2679_v42 = vld [vmem:[#allocation2 + $0x168] sm:$0xff]  ;;  %v2678_v43 = vld [vmem:[#allocation2 + $0x160] sm:$0xff]  ;;  %v2681_v37 = vld [vmem:[#allocation2 + $0x178] sm:$0xff] }
 0xe4a   :  { %v2680_v44 = vld [vmem:[#allocation2 + $0x170] sm:$0xff]  ;;  %v2683_v45 = vld [vmem:[#allocation2 + $0x188] sm:$0xff]  ;;  %v2682_v46 = vld [vmem:[#allocation2 + $0x180] sm:$0xff] }
 0xe4b   :  { %v2685_v47 = vld [vmem:[#allocation2 + $0x198] sm:$0xff]  ;;  %v2684_v48 = vld [vmem:[#allocation2 + $0x190] sm:$0xff]  ;;  %v2687_v49 = vld [vmem:[#allocation2 + $0x1a8] sm:$0xff] }
 0xe4c   :  { %2748 = vmatpush1.bf16.msra.mxu0 %v2642_v0  ;;  %v2686_v50 = vld [vmem:[#allocation2 + $0x1a0] sm:$0xff]  ;;  %v2689_v26 = vld [vmem:[#allocation2 + $0x1b8] sm:$0xff]  ;;  %v2688_v51 = vld [vmem:[#allocation2 + $0x1b0] sm:$0xff] }
 0xe4d   :  { %2749 = vmatprep.subr.bf16.mxu0 %v2645_v1  ;;  %v2691_v52 = vld [vmem:[#allocation2 + $0x1c8] sm:$0xff]  ;;  %v2690_v53 = vld [vmem:[#allocation2 + $0x1c0] sm:$0xff]  ;;  %v2693_v54 = vld [vmem:[#allocation2 + $0x1d8] sm:$0xff] }
 0xe4e   :  { %v2692_v55 = vld [vmem:[#allocation2 + $0x1d0] sm:$0xff]  ;;  %v2695_v56 = vld [vmem:[#allocation2 + $0x1e8] sm:$0xff]  ;;  %v2694_v57 = vld [vmem:[#allocation2 + $0x1e0] sm:$0xff] }
 0xe4f   :  { %v2697_v58 = vld [vmem:[#allocation2 + $0x1f8] sm:$0xff]  ;;  %v2696_v59 = vld [vmem:[#allocation2 + $0x1f0] sm:$0xff]  ;;  %v2698_v61 = vld [vmem:[%s6429_s15] sm:$0x3] }
 0xe50   :  { %2750 = vmatpush1.bf16.msra.mxu0 %v2644_v2  ;;  %v2703_v62 = vrot.slane %v2698_v61, %v5875_v38  ;;  %v2707_v63 = vrot.slane %v2698_v61, %v5878_v39 }
 0xe51   :  { %2751 = vmatprep.subr.bf16.mxu0 %v2647_v3 }
 0xe54   :  { %2752 = vmatpush1.bf16.msra.mxu0 %v2646_v4 }
 0xe55   :  { %2753 = vmatprep.subr.bf16.mxu0 %v2649_v5 }
 0xe58   :  { %2754 = vmatpush1.bf16.msra.mxu0 %v2648_v6 }
 0xe59   :  { %2755 = vmatprep.subr.bf16.mxu0 %v2651_v7 }
 0xe5c   :  { %2756 = vmatpush1.bf16.msra.mxu0 %v2650_v8 }
 0xe5d   :  { %2757 = vmatprep.subr.bf16.mxu0 %v2653_v9 }
 0xe60   :  { %2758 = vmatpush1.bf16.msra.mxu0 %v2652_v10 }
 0xe61   :  { %2759 = vmatprep.subr.bf16.mxu0 %v2655_v11 }
 0xe64   :  { %2760 = vmatpush1.bf16.msra.mxu0 %v2654_v12 }
 0xe65   :  { %2761 = vmatprep.subr.bf16.mxu0 %v2657_v13 }
 0xe68   :  { %2762 = vmatpush1.bf16.msra.mxu0 %v2656_v14 }
 0xe69   :  { %2763 = vmatprep.subr.bf16.mxu0 %v2659_v15 }
 0xe6c   :  { %2764 = vmatpush1.bf16.msra.mxu0 %v2658_v16 }
 0xe6d   :  { %2765 = vmatprep.subr.bf16.mxu0 %v2661_v17 }
 0xe70   :  { %2766 = vmatpush1.bf16.msra.mxu0 %v2660_v18 }
 0xe71   :  { %2767 = vmatprep.subr.bf16.mxu0 %v2663_v19 }
 0xe74   :  { %2768 = vmatpush1.bf16.msra.mxu0 %v2662_v20 }
 0xe75   :  { %2769 = vmatprep.subr.bf16.mxu0 %v2665_v21 }
 0xe78   :  { %2770 = vmatpush1.bf16.msra.mxu0 %v2664_v22 }
 0xe79   :  { %2780 = vmatprep.subr.bf16.mxu0 %v2667_v23 }
 0xe7b   :  { %2772 = vmatmul.mubr.bf16.vlgmr.msra.gmra.mrb[20].mxu0 %v6127_v24 }
 0xe7c   :  { %2781 = vmatpush1.bf16.msra.mxu0 %v2666_v27  ;;  %2812 = vmatprep.mubr.bf16.mxu0 %v2734_v25 }
 0xe7d   :  { %2782 = vmatprep.subr.bf16.mxu0 %v2669_v28 }
 0xe80   :  { %2783 = vmatpush1.bf16.msra.mxu0 %v2668_v29 }
 0xe81   :  { %2784 = vmatprep.subr.bf16.mxu0 %v2671_v30 }
 0xe84   :  { %2785 = vmatpush1.bf16.msra.mxu0 %v2670_v32 }
 0xe85   :  { %2786 = vmatprep.subr.bf16.mxu0 %v2673_v33 }
 0xe88   :  { %2787 = vmatpush1.bf16.msra.mxu0 %v2672_v34 }
 0xe89   :  { %2788 = vmatprep.subr.bf16.mxu0 %v2675_v35 }
 0xe8c   :  { %2789 = vmatpush1.bf16.msra.mxu0 %v2674_v36 }
 0xe8d   :  { %2790 = vmatprep.subr.bf16.mxu0 %v2677_v40 }
 0xe90   :  { %2791 = vmatpush1.bf16.msra.mxu0 %v2676_v41 }
 0xe91   :  { %2792 = vmatprep.subr.bf16.mxu0 %v2679_v42 }
 0xe94   :  { %2793 = vmatpush1.bf16.msra.mxu0 %v2678_v43 }
 0xe95   :  { %2794 = vmatprep.subr.bf16.mxu0 %v2681_v37 }
 0xe98   :  { %2795 = vmatpush1.bf16.msra.mxu0 %v2680_v44 }
 0xe99   :  { %2796 = vmatprep.subr.bf16.mxu0 %v2683_v45 }
 0xe9c   :  { %2797 = vmatpush1.bf16.msra.mxu0 %v2682_v46 }
 0xe9d   :  { %2798 = vmatprep.subr.bf16.mxu0 %v2685_v47 }
 0xea0   :  { %2799 = vmatpush1.bf16.msra.mxu0 %v2684_v48 }
 0xea1   :  { %2800 = vmatprep.subr.bf16.mxu0 %v2687_v49 }
 0xea4   :  { %2801 = vmatpush1.bf16.msra.mxu0 %v2686_v50 }
 0xea5   :  { %2802 = vmatprep.subr.bf16.mxu0 %v2689_v26 }
 0xea8   :  { %2803 = vmatpush1.bf16.msra.mxu0 %v2688_v51 }
 0xea9   :  { %2804 = vmatprep.subr.bf16.mxu0 %v2691_v52 }
 0xeac   :  { %2805 = vmatpush1.bf16.msra.mxu0 %v2690_v53 }
 0xead   :  { %2806 = vmatprep.subr.bf16.mxu0 %v2693_v54 }
 0xeb0   :  { %2807 = vmatpush1.bf16.msra.mxu0 %v2692_v55 }
 0xeb1   :  { %2808 = vmatprep.subr.bf16.mxu0 %v2695_v56 }
 0xeb4   :  { %2809 = vmatpush1.bf16.msra.mxu0 %v2694_v57 }
 0xeb5   :  { %2810 = vmatprep.subr.bf16.mxu0 %v2697_v58 }
 0xeb8   :  { %2811 = vmatpush1.bf16.msra.mxu0 %v2696_v59 }
 0xebb   :  { %2813 = vmatmul.mubr.bf16.vlgmr.msra.gmra.mrb[20].mxu0 %v2733_v60 }
 0xf8e   :  { %v2814_v0 = vpop.f32.mrb[20].mxu0 }
 0xf8f   :  { %v5419_v1 = vadd.f32 %v2814_v0, %v2703_v62  ;;  %v2816_v2 = vpop.f32.mrb[21].mxu0 }
 0xf90   :  { %v5420_v3 = vadd.f32 %v2816_v2, %v2707_v63  ;;  %v2818_v4 = vpop.f32.mrb[22].mxu0 }
 0xf91   :  { %v2821_v5 = vmax.f32 %v5419_v1, 0.0  ;;  %v2819_v6 = vpop.f32.mrb[23].mxu0 }
 0xf92   :  { %v2822_v7 = vmax.f32 %v5420_v3, 0.0 }
 0xf94   :  { %v5354_v8 = vpack.c.bf16 %v2822_v7, %v2821_v5 }
 0xf96   :  { %v2834_v9 = vrot.slane %v5354_v8, %v5840_v31 }
 0xf98   :  { %5355 = vst.sshfl [vmem:[#allocation3] sm:$0x5 pattern:$0x73625140] %v2834_v9 }
 0xf99   :  { %5623 = dma.done.wait [#allocation6 + $0x1], 8192 }
 0xf9a   :  { %5624 = vsyncadd [#allocation6 + $0x1], 4294959104  ;;  %2861 = sst [smem:[#allocation36]] %s5646_s24  ;;  %s5669_s11 = smov [#allocation35]  }
 0xf9b   :  { %2863 = sst [smem:[#allocation36 + $0x1]] %s5646_s24 }
 0xf9c   :  { %2865 = sst [smem:[#allocation36 + $0x2]] %s5647_s2 }
 0xf9d   :  { %2867 = sst [smem:[#allocation36 + $0x3]] %s5648_s26 }
 0xf9e   :  { %2869 = sst [smem:[#allocation36 + $0x4]] %s6456_s21 }
 0xf9f   :  { %2871 = sst [smem:[#allocation36 + $0x5]] %s5647_s2 }
 0xfa0   :  { %2873 = sst [smem:[#allocation36 + $0x6]] %s6456_s21 }
 0xfa1   :  { %2875 = sst [smem:[#allocation36 + $0x7]] %s5648_s26 }
 0xfa2   :  { %2877 = sst [smem:[#allocation36 + $0x8]] %s6457_s30 }
 0xfa3   :  { %2879 = dma.general %s6420_s6, 8192, %s5812_s3, %s5652_s4, %s5669_s11, [#allocation36], %s5808_s29, 0  }
 0xfa4   :  { %v2882_v10 = vld [vmem:[#allocation2 + $0x208] sm:$0xff]  ;;  %v2881_v11 = vld [vmem:[#allocation2 + $0x200] sm:$0xff]  ;;  %v2884_v12 = vld [vmem:[#allocation2 + $0x218] sm:$0xff] }
 0xfa5   :  { %2986 = vmatprep.subr.bf16.mxu1 %v2882_v10  ;;  %v2883_v13 = vld [vmem:[#allocation2 + $0x210] sm:$0xff]  ;;  %v2886_v14 = vld [vmem:[#allocation2 + $0x228] sm:$0xff]  ;;  %v2885_v15 = vld [vmem:[#allocation2 + $0x220] sm:$0xff] }
 0xfa6   :  { %2987 = vmatpush1.bf16.msra.mxu1 %v2881_v11  ;;  %v2888_v16 = vld [vmem:[#allocation2 + $0x238] sm:$0xff]  ;;  %v5358_v17 = vld.sshfl [vmem:[#allocation4] sm:$0x33 pattern:$0x75316420]  ;;  %v2887_v18 = vld [vmem:[#allocation2 + $0x230] sm:$0xff] }
 0xfa7   :  { %2988 = vmatprep.subr.bf16.mxu1 %v2884_v12  ;;  %v2965_v19 = vcombine.high %v5358_v17, %v5358_v17  ;;  %v2890_v20 = vld [vmem:[#allocation2 + $0x248] sm:$0xff]  ;;  %v2889_v22 = vld [vmem:[#allocation2 + $0x240] sm:$0xff]  ;;  %v2892_v23 = vld [vmem:[#allocation2 + $0x258] sm:$0xff]  ;;  %v6155_v50 = vrot.slane %v5358_v17, %v5840_v31 }
 0xfa8   :  { %v2891_v24 = vld [vmem:[#allocation2 + $0x250] sm:$0xff]  ;;  %v2894_v25 = vld [vmem:[#allocation2 + $0x268] sm:$0xff]  ;;  %v2893_v27 = vld [vmem:[#allocation2 + $0x260] sm:$0xff] }
 0xfa9   :  { %v2979_v21 = vrot.slane %v2965_v19, %v5840_v31  ;;  %v2896_v28 = vld [vmem:[#allocation2 + $0x278] sm:$0xff]  ;;  %v2895_v29 = vld [vmem:[#allocation2 + $0x270] sm:$0xff]  ;;  %v2898_v30 = vld [vmem:[#allocation2 + $0x288] sm:$0xff] }
 0xfaa   :  { %2989 = vmatpush1.bf16.msra.mxu1 %v2883_v13  ;;  %v2897_v32 = vld [vmem:[#allocation2 + $0x280] sm:$0xff]  ;;  %v2900_v33 = vld [vmem:[#allocation2 + $0x298] sm:$0xff]  ;;  %v2899_v34 = vld [vmem:[#allocation2 + $0x290] sm:$0xff] }
 0xfab   :  { %2990 = vmatprep.subr.bf16.mxu1 %v2886_v14  ;;  %3018 = vmatprep.mubr.bf16.mxu1 %v2979_v21  ;;  %v2902_v35 = vld [vmem:[#allocation2 + $0x2a8] sm:$0xff]  ;;  %v2901_v36 = vld [vmem:[#allocation2 + $0x2a0] sm:$0xff]  ;;  %v2904_v40 = vld [vmem:[#allocation2 + $0x2b8] sm:$0xff]  ;;  %v2981_v26 = vcombine.high %v2979_v21, %v2979_v21 }
 0xfac   :  { %v2903_v41 = vld [vmem:[#allocation2 + $0x2b0] sm:$0xff]  ;;  %v2906_v42 = vld [vmem:[#allocation2 + $0x2c8] sm:$0xff]  ;;  %v2905_v43 = vld [vmem:[#allocation2 + $0x2c0] sm:$0xff] }
 0xfad   :  { %v2908_v37 = vld [vmem:[#allocation2 + $0x2d8] sm:$0xff]  ;;  %v2907_v44 = vld [vmem:[#allocation2 + $0x2d0] sm:$0xff]  ;;  %v2910_v45 = vld [vmem:[#allocation2 + $0x2e8] sm:$0xff] }
 0xfae   :  { %2991 = vmatpush1.bf16.msra.mxu1 %v2885_v15  ;;  %v2909_v46 = vld [vmem:[#allocation2 + $0x2e0] sm:$0xff]  ;;  %v2912_v47 = vld [vmem:[#allocation2 + $0x2f8] sm:$0xff]  ;;  %v2911_v48 = vld [vmem:[#allocation2 + $0x2f0] sm:$0xff] }
 0xfaf   :  { %2992 = vmatprep.subr.bf16.mxu1 %v2888_v16  ;;  %v2914_v49 = vld [vmem:[#allocation2 + $0x308] sm:$0xff]  ;;  %v2913_v51 = vld [vmem:[#allocation2 + $0x300] sm:$0xff]  ;;  %v2916_v52 = vld [vmem:[#allocation2 + $0x318] sm:$0xff] }
 0xfb0   :  { %v2915_v53 = vld [vmem:[#allocation2 + $0x310] sm:$0xff]  ;;  %v2918_v54 = vld [vmem:[#allocation2 + $0x328] sm:$0xff]  ;;  %v2917_v55 = vld [vmem:[#allocation2 + $0x320] sm:$0xff] }
 0xfb1   :  { %v2920_v56 = vld [vmem:[#allocation2 + $0x338] sm:$0xff]  ;;  %v2919_v57 = vld [vmem:[#allocation2 + $0x330] sm:$0xff]  ;;  %v2922_v58 = vld [vmem:[#allocation2 + $0x348] sm:$0xff] }
 0xfb2   :  { %2993 = vmatpush1.bf16.msra.mxu1 %v2887_v18  ;;  %v2921_v59 = vld [vmem:[#allocation2 + $0x340] sm:$0xff]  ;;  %v2924_v60 = vld [vmem:[#allocation2 + $0x358] sm:$0xff]  ;;  %v2923_v61 = vld [vmem:[#allocation2 + $0x350] sm:$0xff]  ;;  %v2980_v18 = vcombine.high %v6155_v50, %v6155_v50 }
 0xfb3   :  { %2994 = vmatprep.subr.bf16.mxu1 %v2890_v20  ;;  %v2926_v62 = vld [vmem:[#allocation2 + $0x368] sm:$0xff]  ;;  %v2925_v63 = vld [vmem:[#allocation2 + $0x360] sm:$0xff]  ;;  %v2928_v0 = vld [vmem:[#allocation2 + $0x378] sm:$0xff] }
 0xfb4   :  { %v2927_v1 = vld [vmem:[#allocation2 + $0x370] sm:$0xff]  ;;  %v2930_v2 = vld [vmem:[#allocation2 + $0x388] sm:$0xff]  ;;  %v2929_v3 = vld [vmem:[#allocation2 + $0x380] sm:$0xff] }
 0xfb5   :  { %v2932_v4 = vld [vmem:[#allocation2 + $0x398] sm:$0xff]  ;;  %v2931_v5 = vld [vmem:[#allocation2 + $0x390] sm:$0xff]  ;;  %v2934_v6 = vld [vmem:[#allocation2 + $0x3a8] sm:$0xff] }
 0xfb6   :  { %2995 = vmatpush1.bf16.msra.mxu1 %v2889_v22  ;;  %v2933_v7 = vld [vmem:[#allocation2 + $0x3a0] sm:$0xff]  ;;  %v2936_v8 = vld [vmem:[#allocation2 + $0x3b8] sm:$0xff]  ;;  %v2935_v9 = vld [vmem:[#allocation2 + $0x3b0] sm:$0xff] }
 0xfb7   :  { %2996 = vmatprep.subr.bf16.mxu1 %v2892_v23  ;;  %v2938_v10 = vld [vmem:[#allocation2 + $0x3c8] sm:$0xff]  ;;  %v2937_v11 = vld [vmem:[#allocation2 + $0x3c0] sm:$0xff]  ;;  %v2940_v12 = vld [vmem:[#allocation2 + $0x3d8] sm:$0xff] }
 0xfb8   :  { %v2939_v13 = vld [vmem:[#allocation2 + $0x3d0] sm:$0xff]  ;;  %v2942_v14 = vld [vmem:[#allocation2 + $0x3e8] sm:$0xff]  ;;  %v2941_v15 = vld [vmem:[#allocation2 + $0x3e0] sm:$0xff] }
 0xfb9   :  { %v2944_v16 = vld [vmem:[#allocation2 + $0x3f8] sm:$0xff]  ;;  %v2943_v17 = vld [vmem:[#allocation2 + $0x3f0] sm:$0xff]  ;;  %v2945_v19 = vld [vmem:[%s6429_s15 + $0x2] sm:$0x3] }
 0xfba   :  { %2997 = vmatpush1.bf16.msra.mxu1 %v2891_v24  ;;  %v2950_v20 = vrot.slane %v2945_v19, %v5875_v38  ;;  %v2954_v21 = vrot.slane %v2945_v19, %v5878_v39 }
 0xfbb   :  { %2998 = vmatprep.subr.bf16.mxu1 %v2894_v25 }
 0xfbe   :  { %2999 = vmatpush1.bf16.msra.mxu1 %v2893_v27 }
 0xfbf   :  { %3000 = vmatprep.subr.bf16.mxu1 %v2896_v28 }
 0xfc2   :  { %3001 = vmatpush1.bf16.msra.mxu1 %v2895_v29 }
 0xfc3   :  { %3002 = vmatprep.subr.bf16.mxu1 %v2898_v30 }
 0xfc6   :  { %3003 = vmatpush1.bf16.msra.mxu1 %v2897_v32 }
 0xfc7   :  { %3004 = vmatprep.subr.bf16.mxu1 %v2900_v33 }
 0xfca   :  { %3005 = vmatpush1.bf16.msra.mxu1 %v2899_v34 }
 0xfcb   :  { %3006 = vmatprep.subr.bf16.mxu1 %v2902_v35 }
 0xfce   :  { %3007 = vmatpush1.bf16.msra.mxu1 %v2901_v36 }
 0xfcf   :  { %3008 = vmatprep.subr.bf16.mxu1 %v2904_v40 }
 0xfd2   :  { %3009 = vmatpush1.bf16.msra.mxu1 %v2903_v41 }
 0xfd3   :  { %3010 = vmatprep.subr.bf16.mxu1 %v2906_v42 }
 0xfd6   :  { %3011 = vmatpush1.bf16.msra.mxu1 %v2905_v43 }
 0xfd7   :  { %3012 = vmatprep.subr.bf16.mxu1 %v2908_v37 }
 0xfda   :  { %3013 = vmatpush1.bf16.msra.mxu1 %v2907_v44 }
 0xfdb   :  { %3014 = vmatprep.subr.bf16.mxu1 %v2910_v45 }
 0xfde   :  { %3015 = vmatpush1.bf16.msra.mxu1 %v2909_v46 }
 0xfdf   :  { %3016 = vmatprep.subr.bf16.mxu1 %v2912_v47 }
 0xfe2   :  { %3017 = vmatpush1.bf16.msra.mxu1 %v2911_v48 }
 0xfe3   :  { %3027 = vmatprep.subr.bf16.mxu1 %v2914_v49 }
 0xfe5   :  { %3019 = vmatmul.mubr.bf16.vlgmr.msra.gmra.mrb[24].mxu1 %v6155_v50 }
 0xfe6   :  { %3028 = vmatpush1.bf16.msra.mxu1 %v2913_v51  ;;  %3059 = vmatprep.mubr.bf16.mxu1 %v2981_v26 }
 0xfe7   :  { %3029 = vmatprep.subr.bf16.mxu1 %v2916_v52 }
 0xfea   :  { %3030 = vmatpush1.bf16.msra.mxu1 %v2915_v53 }
 0xfeb   :  { %3031 = vmatprep.subr.bf16.mxu1 %v2918_v54 }
 0xfee   :  { %3032 = vmatpush1.bf16.msra.mxu1 %v2917_v55 }
 0xfef   :  { %3033 = vmatprep.subr.bf16.mxu1 %v2920_v56 }
 0xff2   :  { %3034 = vmatpush1.bf16.msra.mxu1 %v2919_v57 }
 0xff3   :  { %3035 = vmatprep.subr.bf16.mxu1 %v2922_v58 }
 0xff6   :  { %3036 = vmatpush1.bf16.msra.mxu1 %v2921_v59 }
 0xff7   :  { %3037 = vmatprep.subr.bf16.mxu1 %v2924_v60 }
 0xffa   :  { %3038 = vmatpush1.bf16.msra.mxu1 %v2923_v61 }
 0xffb   :  { %3039 = vmatprep.subr.bf16.mxu1 %v2926_v62 }
 0xffe   :  { %3040 = vmatpush1.bf16.msra.mxu1 %v2925_v63 }
 0xfff   :  { %3041 = vmatprep.subr.bf16.mxu1 %v2928_v0 }
0x1002   :  { %3042 = vmatpush1.bf16.msra.mxu1 %v2927_v1 }
0x1003   :  { %3043 = vmatprep.subr.bf16.mxu1 %v2930_v2 }
0x1006   :  { %3044 = vmatpush1.bf16.msra.mxu1 %v2929_v3 }
0x1007   :  { %3045 = vmatprep.subr.bf16.mxu1 %v2932_v4 }
0x100a   :  { %3046 = vmatpush1.bf16.msra.mxu1 %v2931_v5 }
0x100b   :  { %3047 = vmatprep.subr.bf16.mxu1 %v2934_v6 }
0x100e   :  { %3048 = vmatpush1.bf16.msra.mxu1 %v2933_v7 }
0x100f   :  { %3049 = vmatprep.subr.bf16.mxu1 %v2936_v8 }
0x1012   :  { %3050 = vmatpush1.bf16.msra.mxu1 %v2935_v9 }
0x1013   :  { %3051 = vmatprep.subr.bf16.mxu1 %v2938_v10 }
0x1016   :  { %3052 = vmatpush1.bf16.msra.mxu1 %v2937_v11 }
0x1017   :  { %3053 = vmatprep.subr.bf16.mxu1 %v2940_v12 }
0x101a   :  { %3054 = vmatpush1.bf16.msra.mxu1 %v2939_v13 }
0x101b   :  { %3055 = vmatprep.subr.bf16.mxu1 %v2942_v14 }
0x101e   :  { %3056 = vmatpush1.bf16.msra.mxu1 %v2941_v15 }
0x101f   :  { %3057 = vmatprep.subr.bf16.mxu1 %v2944_v16 }
0x1022   :  { %3058 = vmatpush1.bf16.msra.mxu1 %v2943_v17 }
0x1025   :  { %3060 = vmatmul.mubr.bf16.vlgmr.msra.gmra.mrb[24].mxu1 %v2980_v18 }
0x10f8   :  { %v3061_v22 = vpop.f32.mrb[24].mxu1 }
0x10f9   :  { %v5421_v23 = vadd.f32 %v3061_v22, %v2950_v20  ;;  %v3063_v24 = vpop.f32.mrb[25].mxu1 }
0x10fa   :  { %v5422_v25 = vadd.f32 %v3063_v24, %v2954_v21  ;;  %v3065_v27 = vpop.f32.mrb[26].mxu1 }
0x10fb   :  { %v3068_v28 = vmax.f32 %v5421_v23, 0.0  ;;  %v3066_v29 = vpop.f32.mrb[27].mxu1 }
0x10fc   :  { %v3069_v30 = vmax.f32 %v5422_v25, 0.0 }
0x10fe   :  { %v5359_v32 = vpack.c.bf16 %v3069_v30, %v3068_v28 }
0x1100   :  { %v3081_v33 = vrot.slane %v5359_v32, %v5840_v31 }
0x1102   :  { %5360 = vst.sshfl [vmem:[#allocation3 + $0x2] sm:$0x5 pattern:$0x73625140] %v3081_v33 }
0x1103   :  { %5625 = dma.done.wait [#allocation6], 8192 }
0x1104   :  { %5626 = vsyncadd [#allocation6], 4294959104  ;;  %3109 = sst [smem:[#allocation38]] %s5646_s24  ;;  %s3093_s1 = scalar_lea.hbm %s6420_s6, 8192 }
0x1105   :  { %3111 = sst [smem:[#allocation38 + $0x1]] %s5646_s24  ;;  %s5670_s12 = smov [#allocation37]  }
0x1106   :  { %3113 = sst [smem:[#allocation38 + $0x2]] %s5647_s2 }
0x1107   :  { %3115 = sst [smem:[#allocation38 + $0x3]] %s5648_s26 }
0x1108   :  { %3117 = sst [smem:[#allocation38 + $0x4]] %s6456_s21 }
0x1109   :  { %3119 = sst [smem:[#allocation38 + $0x5]] %s5647_s2 }
0x110a   :  { %3121 = sst [smem:[#allocation38 + $0x6]] %s6456_s21 }
0x110b   :  { %3123 = sst [smem:[#allocation38 + $0x7]] %s5648_s26 }
0x110c   :  { %3125 = sst [smem:[#allocation38 + $0x8]] %s6457_s30 }
0x110d   :  { %3127 = dma.general %s3093_s1, 8192, %s5828_s25, %s5655_s5, %s5670_s12, [#allocation38], %s5808_s29, 0  }
0x110e   :  { %v3130_v34 = vld [vmem:[#allocation2 + $0x8] sm:$0xff]  ;;  %v3129_v35 = vld [vmem:[#allocation2] sm:$0xff]  ;;  %v3132_v36 = vld [vmem:[#allocation2 + $0x18] sm:$0xff] }
0x110f   :  { %3234 = vmatprep.subr.bf16.mxu0 %v3130_v34  ;;  %v3131_v40 = vld [vmem:[#allocation2 + $0x10] sm:$0xff]  ;;  %v3134_v41 = vld [vmem:[#allocation2 + $0x28] sm:$0xff]  ;;  %v3133_v42 = vld [vmem:[#allocation2 + $0x20] sm:$0xff] }
0x1110   :  { %3235 = vmatpush1.bf16.msra.mxu0 %v3129_v35  ;;  %v3136_v43 = vld [vmem:[#allocation2 + $0x38] sm:$0xff]  ;;  %v5363_v37 = vld.sshfl [vmem:[#allocation3] sm:$0x33 pattern:$0x75316420]  ;;  %v3135_v44 = vld [vmem:[#allocation2 + $0x30] sm:$0xff] }
0x1111   :  { %3236 = vmatprep.subr.bf16.mxu0 %v3132_v36  ;;  %v3213_v45 = vcombine.high %v5363_v37, %v5363_v37  ;;  %v3138_v46 = vld [vmem:[#allocation2 + $0x48] sm:$0xff]  ;;  %v3137_v48 = vld [vmem:[#allocation2 + $0x40] sm:$0xff]  ;;  %v3140_v49 = vld [vmem:[#allocation2 + $0x58] sm:$0xff]  ;;  %v6183_v7 = vrot.slane %v5363_v37, %v5840_v31 }
0x1112   :  { %v3139_v50 = vld [vmem:[#allocation2 + $0x50] sm:$0xff]  ;;  %v3142_v26 = vld [vmem:[#allocation2 + $0x68] sm:$0xff]  ;;  %v3141_v51 = vld [vmem:[#allocation2 + $0x60] sm:$0xff] }
0x1113   :  { %v3227_v47 = vrot.slane %v3213_v45, %v5840_v31  ;;  %v3144_v52 = vld [vmem:[#allocation2 + $0x78] sm:$0xff]  ;;  %v3143_v53 = vld [vmem:[#allocation2 + $0x70] sm:$0xff]  ;;  %v3146_v54 = vld [vmem:[#allocation2 + $0x88] sm:$0xff] }
0x1114   :  { %3237 = vmatpush1.bf16.msra.mxu0 %v3131_v40  ;;  %v3145_v55 = vld [vmem:[#allocation2 + $0x80] sm:$0xff]  ;;  %v3148_v56 = vld [vmem:[#allocation2 + $0x98] sm:$0xff]  ;;  %v3147_v57 = vld [vmem:[#allocation2 + $0x90] sm:$0xff] }
0x1115   :  { %3238 = vmatprep.subr.bf16.mxu0 %v3134_v41  ;;  %3266 = vmatprep.mubr.bf16.mxu0 %v3227_v47  ;;  %v3150_v58 = vld [vmem:[#allocation2 + $0xa8] sm:$0xff]  ;;  %v3149_v59 = vld [vmem:[#allocation2 + $0xa0] sm:$0xff]  ;;  %v3152_v60 = vld [vmem:[#allocation2 + $0xb8] sm:$0xff]  ;;  %v3229_v8 = vcombine.high %v3227_v47, %v3227_v47 }
0x1116   :  { %v3151_v61 = vld [vmem:[#allocation2 + $0xb0] sm:$0xff]  ;;  %v3154_v62 = vld [vmem:[#allocation2 + $0xc8] sm:$0xff]  ;;  %v3153_v63 = vld [vmem:[#allocation2 + $0xc0] sm:$0xff] }
0x1117   :  { %v3156_v0 = vld [vmem:[#allocation2 + $0xd8] sm:$0xff]  ;;  %v3155_v1 = vld [vmem:[#allocation2 + $0xd0] sm:$0xff]  ;;  %v3158_v2 = vld [vmem:[#allocation2 + $0xe8] sm:$0xff] }
0x1118   :  { %3239 = vmatpush1.bf16.msra.mxu0 %v3133_v42  ;;  %v3157_v3 = vld [vmem:[#allocation2 + $0xe0] sm:$0xff]  ;;  %v3160_v4 = vld [vmem:[#allocation2 + $0xf8] sm:$0xff]  ;;  %v3159_v5 = vld [vmem:[#allocation2 + $0xf0] sm:$0xff] }
0x1119   :  { %3240 = vmatprep.subr.bf16.mxu0 %v3136_v43  ;;  %v3162_v6 = vld [vmem:[#allocation2 + $0x108] sm:$0xff]  ;;  %v3161_v9 = vld [vmem:[#allocation2 + $0x100] sm:$0xff]  ;;  %v3164_v10 = vld [vmem:[#allocation2 + $0x118] sm:$0xff] }
0x111a   :  { %v3163_v11 = vld [vmem:[#allocation2 + $0x110] sm:$0xff]  ;;  %v3166_v12 = vld [vmem:[#allocation2 + $0x128] sm:$0xff]  ;;  %v3165_v13 = vld [vmem:[#allocation2 + $0x120] sm:$0xff] }
0x111b   :  { %v3168_v14 = vld [vmem:[#allocation2 + $0x138] sm:$0xff]  ;;  %v3167_v15 = vld [vmem:[#allocation2 + $0x130] sm:$0xff]  ;;  %v3170_v16 = vld [vmem:[#allocation2 + $0x148] sm:$0xff] }
0x111c   :  { %3241 = vmatpush1.bf16.msra.mxu0 %v3135_v44  ;;  %v3169_v17 = vld [vmem:[#allocation2 + $0x140] sm:$0xff]  ;;  %v3172_v18 = vld [vmem:[#allocation2 + $0x158] sm:$0xff]  ;;  %v3171_v19 = vld [vmem:[#allocation2 + $0x150] sm:$0xff]  ;;  %v3228_v44 = vcombine.high %v6183_v7, %v6183_v7 }
0x111d   :  { %3242 = vmatprep.subr.bf16.mxu0 %v3138_v46  ;;  %v3174_v20 = vld [vmem:[#allocation2 + $0x168] sm:$0xff]  ;;  %v3173_v21 = vld [vmem:[#allocation2 + $0x160] sm:$0xff]  ;;  %v3176_v22 = vld [vmem:[#allocation2 + $0x178] sm:$0xff] }
0x111e   :  { %v3175_v23 = vld [vmem:[#allocation2 + $0x170] sm:$0xff]  ;;  %v3178_v24 = vld [vmem:[#allocation2 + $0x188] sm:$0xff]  ;;  %v3177_v25 = vld [vmem:[#allocation2 + $0x180] sm:$0xff] }
0x111f   :  { %v3180_v27 = vld [vmem:[#allocation2 + $0x198] sm:$0xff]  ;;  %v3179_v28 = vld [vmem:[#allocation2 + $0x190] sm:$0xff]  ;;  %v3182_v29 = vld [vmem:[#allocation2 + $0x1a8] sm:$0xff] }
0x1120   :  { %3243 = vmatpush1.bf16.msra.mxu0 %v3137_v48  ;;  %v3181_v30 = vld [vmem:[#allocation2 + $0x1a0] sm:$0xff]  ;;  %v3184_v32 = vld [vmem:[#allocation2 + $0x1b8] sm:$0xff]  ;;  %v3183_v33 = vld [vmem:[#allocation2 + $0x1b0] sm:$0xff] }
0x1121   :  { %3244 = vmatprep.subr.bf16.mxu0 %v3140_v49  ;;  %v3186_v34 = vld [vmem:[#allocation2 + $0x1c8] sm:$0xff]  ;;  %v3185_v35 = vld [vmem:[#allocation2 + $0x1c0] sm:$0xff]  ;;  %v3188_v36 = vld [vmem:[#allocation2 + $0x1d8] sm:$0xff] }
0x1122   :  { %v3187_v40 = vld [vmem:[#allocation2 + $0x1d0] sm:$0xff]  ;;  %v3190_v41 = vld [vmem:[#allocation2 + $0x1e8] sm:$0xff]  ;;  %v3189_v42 = vld [vmem:[#allocation2 + $0x1e0] sm:$0xff] }
0x1123   :  { %v3192_v43 = vld [vmem:[#allocation2 + $0x1f8] sm:$0xff]  ;;  %v3191_v37 = vld [vmem:[#allocation2 + $0x1f0] sm:$0xff]  ;;  %v3193_v45 = vld [vmem:[%s6430_s16] sm:$0x3] }
0x1124   :  { %3245 = vmatpush1.bf16.msra.mxu0 %v3139_v50  ;;  %v3198_v46 = vrot.slane %v3193_v45, %v5875_v38  ;;  %v3202_v47 = vrot.slane %v3193_v45, %v5878_v39 }
0x1125   :  { %3246 = vmatprep.subr.bf16.mxu0 %v3142_v26 }
0x1128   :  { %3247 = vmatpush1.bf16.msra.mxu0 %v3141_v51 }
0x1129   :  { %3248 = vmatprep.subr.bf16.mxu0 %v3144_v52 }
0x112c   :  { %3249 = vmatpush1.bf16.msra.mxu0 %v3143_v53 }
0x112d   :  { %3250 = vmatprep.subr.bf16.mxu0 %v3146_v54 }
0x1130   :  { %3251 = vmatpush1.bf16.msra.mxu0 %v3145_v55 }
0x1131   :  { %3252 = vmatprep.subr.bf16.mxu0 %v3148_v56 }
0x1134   :  { %3253 = vmatpush1.bf16.msra.mxu0 %v3147_v57 }
0x1135   :  { %3254 = vmatprep.subr.bf16.mxu0 %v3150_v58 }
0x1138   :  { %3255 = vmatpush1.bf16.msra.mxu0 %v3149_v59 }
0x1139   :  { %3256 = vmatprep.subr.bf16.mxu0 %v3152_v60 }
0x113c   :  { %3257 = vmatpush1.bf16.msra.mxu0 %v3151_v61 }
0x113d   :  { %3258 = vmatprep.subr.bf16.mxu0 %v3154_v62 }
0x1140   :  { %3259 = vmatpush1.bf16.msra.mxu0 %v3153_v63 }
0x1141   :  { %3260 = vmatprep.subr.bf16.mxu0 %v3156_v0 }
0x1144   :  { %3261 = vmatpush1.bf16.msra.mxu0 %v3155_v1 }
0x1145   :  { %3262 = vmatprep.subr.bf16.mxu0 %v3158_v2 }
0x1148   :  { %3263 = vmatpush1.bf16.msra.mxu0 %v3157_v3 }
0x1149   :  { %3264 = vmatprep.subr.bf16.mxu0 %v3160_v4 }
0x114c   :  { %3265 = vmatpush1.bf16.msra.mxu0 %v3159_v5 }
0x114d   :  { %3275 = vmatprep.subr.bf16.mxu0 %v3162_v6 }
0x114f   :  { %3267 = vmatmul.mubr.bf16.vlgmr.msra.gmra.mrb[24].mxu0 %v6183_v7 }
0x1150   :  { %3276 = vmatpush1.bf16.msra.mxu0 %v3161_v9  ;;  %3307 = vmatprep.mubr.bf16.mxu0 %v3229_v8 }
0x1151   :  { %3277 = vmatprep.subr.bf16.mxu0 %v3164_v10 }
0x1154   :  { %3278 = vmatpush1.bf16.msra.mxu0 %v3163_v11 }
0x1155   :  { %3279 = vmatprep.subr.bf16.mxu0 %v3166_v12 }
0x1158   :  { %3280 = vmatpush1.bf16.msra.mxu0 %v3165_v13 }
0x1159   :  { %3281 = vmatprep.subr.bf16.mxu0 %v3168_v14 }
0x115c   :  { %3282 = vmatpush1.bf16.msra.mxu0 %v3167_v15 }
0x115d   :  { %3283 = vmatprep.subr.bf16.mxu0 %v3170_v16 }
0x1160   :  { %3284 = vmatpush1.bf16.msra.mxu0 %v3169_v17 }
0x1161   :  { %3285 = vmatprep.subr.bf16.mxu0 %v3172_v18 }
0x1164   :  { %3286 = vmatpush1.bf16.msra.mxu0 %v3171_v19 }
0x1165   :  { %3287 = vmatprep.subr.bf16.mxu0 %v3174_v20 }
0x1168   :  { %3288 = vmatpush1.bf16.msra.mxu0 %v3173_v21 }
0x1169   :  { %3289 = vmatprep.subr.bf16.mxu0 %v3176_v22 }
0x116c   :  { %3290 = vmatpush1.bf16.msra.mxu0 %v3175_v23 }
0x116d   :  { %3291 = vmatprep.subr.bf16.mxu0 %v3178_v24 }
0x1170   :  { %3292 = vmatpush1.bf16.msra.mxu0 %v3177_v25 }
0x1171   :  { %3293 = vmatprep.subr.bf16.mxu0 %v3180_v27 }
0x1174   :  { %3294 = vmatpush1.bf16.msra.mxu0 %v3179_v28 }
0x1175   :  { %3295 = vmatprep.subr.bf16.mxu0 %v3182_v29 }
0x1178   :  { %3296 = vmatpush1.bf16.msra.mxu0 %v3181_v30 }
0x1179   :  { %3297 = vmatprep.subr.bf16.mxu0 %v3184_v32 }
0x117c   :  { %3298 = vmatpush1.bf16.msra.mxu0 %v3183_v33 }
0x117d   :  { %3299 = vmatprep.subr.bf16.mxu0 %v3186_v34 }
0x1180   :  { %3300 = vmatpush1.bf16.msra.mxu0 %v3185_v35 }
0x1181   :  { %3301 = vmatprep.subr.bf16.mxu0 %v3188_v36 }
0x1184   :  { %3302 = vmatpush1.bf16.msra.mxu0 %v3187_v40 }
0x1185   :  { %3303 = vmatprep.subr.bf16.mxu0 %v3190_v41 }
0x1188   :  { %3304 = vmatpush1.bf16.msra.mxu0 %v3189_v42 }
0x1189   :  { %3305 = vmatprep.subr.bf16.mxu0 %v3192_v43 }
0x118c   :  { %3306 = vmatpush1.bf16.msra.mxu0 %v3191_v37 }
0x118f   :  { %3308 = vmatmul.mubr.bf16.vlgmr.msra.gmra.mrb[24].mxu0 %v3228_v44 }
0x1262   :  { %v3309_v48 = vpop.f32.mrb[24].mxu0 }
0x1263   :  { %v5423_v49 = vadd.f32 %v3309_v48, %v3198_v46  ;;  %v3311_v50 = vpop.f32.mrb[25].mxu0 }
0x1264   :  { %v5424_v26 = vadd.f32 %v3311_v50, %v3202_v47  ;;  %v3313_v51 = vpop.f32.mrb[26].mxu0 }
0x1265   :  { %v3316_v52 = vmax.f32 %v5423_v49, 0.0  ;;  %v3314_v53 = vpop.f32.mrb[27].mxu0 }
0x1266   :  { %v3317_v54 = vmax.f32 %v5424_v26, 0.0 }
0x1268   :  { %v5364_v55 = vpack.c.bf16 %v3317_v54, %v3316_v52 }
0x126a   :  { %v3329_v56 = vrot.slane %v5364_v55, %v5840_v31 }
0x126c   :  { %5365 = vst.sshfl [vmem:[#allocation4] sm:$0x5 pattern:$0x73625140] %v3329_v56 }
0x126d   :  { %5627 = dma.done.wait [#allocation6 + $0x1], 8192 }
0x126e   :  { %5628 = vsyncadd [#allocation6 + $0x1], 4294959104  ;;  %3356 = sst [smem:[#allocation40]] %s5646_s24  ;;  %s5671_s22 = smov [#allocation39]  }
0x126f   :  { %3358 = sst [smem:[#allocation40 + $0x1]] %s5646_s24 }
0x1270   :  { %3360 = sst [smem:[#allocation40 + $0x2]] %s5647_s2 }
0x1271   :  { %3362 = sst [smem:[#allocation40 + $0x3]] %s5648_s26 }
0x1272   :  { %3364 = sst [smem:[#allocation40 + $0x4]] %s6456_s21 }
0x1273   :  { %3366 = sst [smem:[#allocation40 + $0x5]] %s5647_s2 }
0x1274   :  { %3368 = sst [smem:[#allocation40 + $0x6]] %s6456_s21 }
0x1275   :  { %3370 = sst [smem:[#allocation40 + $0x7]] %s5648_s26 }
0x1276   :  { %3372 = sst [smem:[#allocation40 + $0x8]] %s6457_s30 }
0x1277   :  { %3374 = dma.general %s6421_s7, 8192, %s5812_s3, %s5652_s4, %s5671_s22, [#allocation40], %s5808_s29, 0  }
0x1278   :  { %v3377_v57 = vld [vmem:[#allocation2 + $0x208] sm:$0xff]  ;;  %v3376_v58 = vld [vmem:[#allocation2 + $0x200] sm:$0xff]  ;;  %v3379_v59 = vld [vmem:[#allocation2 + $0x218] sm:$0xff] }
0x1279   :  { %3481 = vmatprep.subr.bf16.mxu1 %v3377_v57  ;;  %v3378_v60 = vld [vmem:[#allocation2 + $0x210] sm:$0xff]  ;;  %v3381_v61 = vld [vmem:[#allocation2 + $0x228] sm:$0xff]  ;;  %v3380_v62 = vld [vmem:[#allocation2 + $0x220] sm:$0xff] }
0x127a   :  { %3482 = vmatpush1.bf16.msra.mxu1 %v3376_v58  ;;  %v3383_v63 = vld [vmem:[#allocation2 + $0x238] sm:$0xff]  ;;  %v5368_v0 = vld.sshfl [vmem:[#allocation3] sm:$0x33 pattern:$0x75316420]  ;;  %v3382_v1 = vld [vmem:[#allocation2 + $0x230] sm:$0xff] }
0x127b   :  { %3483 = vmatprep.subr.bf16.mxu1 %v3379_v59  ;;  %v3460_v2 = vcombine.high %v5368_v0, %v5368_v0  ;;  %v3385_v3 = vld [vmem:[#allocation2 + $0x248] sm:$0xff]  ;;  %v3384_v5 = vld [vmem:[#allocation2 + $0x240] sm:$0xff]  ;;  %v3387_v6 = vld [vmem:[#allocation2 + $0x258] sm:$0xff]  ;;  %v6211_v30 = vrot.slane %v5368_v0, %v5840_v31 }
0x127c   :  { %v3386_v7 = vld [vmem:[#allocation2 + $0x250] sm:$0xff]  ;;  %v3389_v8 = vld [vmem:[#allocation2 + $0x268] sm:$0xff]  ;;  %v3388_v9 = vld [vmem:[#allocation2 + $0x260] sm:$0xff] }
0x127d   :  { %v3474_v4 = vrot.slane %v3460_v2, %v5840_v31  ;;  %v3391_v10 = vld [vmem:[#allocation2 + $0x278] sm:$0xff]  ;;  %v3390_v11 = vld [vmem:[#allocation2 + $0x270] sm:$0xff]  ;;  %v3393_v12 = vld [vmem:[#allocation2 + $0x288] sm:$0xff] }
0x127e   :  { %3484 = vmatpush1.bf16.msra.mxu1 %v3378_v60  ;;  %v3392_v13 = vld [vmem:[#allocation2 + $0x280] sm:$0xff]  ;;  %v3395_v14 = vld [vmem:[#allocation2 + $0x298] sm:$0xff]  ;;  %v3394_v15 = vld [vmem:[#allocation2 + $0x290] sm:$0xff] }
0x127f   :  { %3485 = vmatprep.subr.bf16.mxu1 %v3381_v61  ;;  %3513 = vmatprep.mubr.bf16.mxu1 %v3474_v4  ;;  %v3397_v16 = vld [vmem:[#allocation2 + $0x2a8] sm:$0xff]  ;;  %v3396_v17 = vld [vmem:[#allocation2 + $0x2a0] sm:$0xff]  ;;  %v3399_v18 = vld [vmem:[#allocation2 + $0x2b8] sm:$0xff]  ;;  %v3476_v32 = vcombine.high %v3474_v4, %v3474_v4 }
0x1280   :  { %v3398_v19 = vld [vmem:[#allocation2 + $0x2b0] sm:$0xff]  ;;  %v3401_v20 = vld [vmem:[#allocation2 + $0x2c8] sm:$0xff]  ;;  %v3400_v21 = vld [vmem:[#allocation2 + $0x2c0] sm:$0xff] }
0x1281   :  { %v3403_v22 = vld [vmem:[#allocation2 + $0x2d8] sm:$0xff]  ;;  %v3402_v23 = vld [vmem:[#allocation2 + $0x2d0] sm:$0xff]  ;;  %v3405_v24 = vld [vmem:[#allocation2 + $0x2e8] sm:$0xff] }
0x1282   :  { %3486 = vmatpush1.bf16.msra.mxu1 %v3380_v62  ;;  %v3404_v25 = vld [vmem:[#allocation2 + $0x2e0] sm:$0xff]  ;;  %v3407_v27 = vld [vmem:[#allocation2 + $0x2f8] sm:$0xff]  ;;  %v3406_v28 = vld [vmem:[#allocation2 + $0x2f0] sm:$0xff] }
0x1283   :  { %3487 = vmatprep.subr.bf16.mxu1 %v3383_v63  ;;  %v3409_v29 = vld [vmem:[#allocation2 + $0x308] sm:$0xff]  ;;  %v3408_v33 = vld [vmem:[#allocation2 + $0x300] sm:$0xff]  ;;  %v3411_v34 = vld [vmem:[#allocation2 + $0x318] sm:$0xff] }
0x1284   :  { %v3410_v35 = vld [vmem:[#allocation2 + $0x310] sm:$0xff]  ;;  %v3413_v36 = vld [vmem:[#allocation2 + $0x328] sm:$0xff]  ;;  %v3412_v40 = vld [vmem:[#allocation2 + $0x320] sm:$0xff] }
0x1285   :  { %v3415_v41 = vld [vmem:[#allocation2 + $0x338] sm:$0xff]  ;;  %v3414_v42 = vld [vmem:[#allocation2 + $0x330] sm:$0xff]  ;;  %v3417_v43 = vld [vmem:[#allocation2 + $0x348] sm:$0xff] }
0x1286   :  { %3488 = vmatpush1.bf16.msra.mxu1 %v3382_v1  ;;  %v3416_v37 = vld [vmem:[#allocation2 + $0x340] sm:$0xff]  ;;  %v3419_v44 = vld [vmem:[#allocation2 + $0x358] sm:$0xff]  ;;  %v3418_v45 = vld [vmem:[#allocation2 + $0x350] sm:$0xff]  ;;  %v3475_v1 = vcombine.high %v6211_v30, %v6211_v30 }
0x1287   :  { %3489 = vmatprep.subr.bf16.mxu1 %v3385_v3  ;;  %v3421_v46 = vld [vmem:[#allocation2 + $0x368] sm:$0xff]  ;;  %v3420_v47 = vld [vmem:[#allocation2 + $0x360] sm:$0xff]  ;;  %v3423_v48 = vld [vmem:[#allocation2 + $0x378] sm:$0xff] }
0x1288   :  { %v3422_v49 = vld [vmem:[#allocation2 + $0x370] sm:$0xff]  ;;  %v3425_v50 = vld [vmem:[#allocation2 + $0x388] sm:$0xff]  ;;  %v3424_v26 = vld [vmem:[#allocation2 + $0x380] sm:$0xff] }
0x1289   :  { %v3427_v51 = vld [vmem:[#allocation2 + $0x398] sm:$0xff]  ;;  %v3426_v52 = vld [vmem:[#allocation2 + $0x390] sm:$0xff]  ;;  %v3429_v53 = vld [vmem:[#allocation2 + $0x3a8] sm:$0xff] }
0x128a   :  { %3490 = vmatpush1.bf16.msra.mxu1 %v3384_v5  ;;  %v3428_v54 = vld [vmem:[#allocation2 + $0x3a0] sm:$0xff]  ;;  %v3431_v55 = vld [vmem:[#allocation2 + $0x3b8] sm:$0xff]  ;;  %v3430_v56 = vld [vmem:[#allocation2 + $0x3b0] sm:$0xff] }
0x128b   :  { %3491 = vmatprep.subr.bf16.mxu1 %v3387_v6  ;;  %v3433_v57 = vld [vmem:[#allocation2 + $0x3c8] sm:$0xff]  ;;  %v3432_v58 = vld [vmem:[#allocation2 + $0x3c0] sm:$0xff]  ;;  %v3435_v59 = vld [vmem:[#allocation2 + $0x3d8] sm:$0xff] }
0x128c   :  { %v3434_v60 = vld [vmem:[#allocation2 + $0x3d0] sm:$0xff]  ;;  %v3437_v61 = vld [vmem:[#allocation2 + $0x3e8] sm:$0xff]  ;;  %v3436_v62 = vld [vmem:[#allocation2 + $0x3e0] sm:$0xff] }
0x128d   :  { %v3439_v63 = vld [vmem:[#allocation2 + $0x3f8] sm:$0xff]  ;;  %v3438_v0 = vld [vmem:[#allocation2 + $0x3f0] sm:$0xff]  ;;  %v3440_v2 = vld [vmem:[%s6430_s16 + $0x2] sm:$0x3] }
0x128e   :  { %3492 = vmatpush1.bf16.msra.mxu1 %v3386_v7  ;;  %v3445_v3 = vrot.slane %v3440_v2, %v5875_v38  ;;  %v3449_v4 = vrot.slane %v3440_v2, %v5878_v39 }
0x128f   :  { %3493 = vmatprep.subr.bf16.mxu1 %v3389_v8 }
0x1292   :  { %3494 = vmatpush1.bf16.msra.mxu1 %v3388_v9 }
0x1293   :  { %3495 = vmatprep.subr.bf16.mxu1 %v3391_v10 }
0x1296   :  { %3496 = vmatpush1.bf16.msra.mxu1 %v3390_v11 }
0x1297   :  { %3497 = vmatprep.subr.bf16.mxu1 %v3393_v12 }
0x129a   :  { %3498 = vmatpush1.bf16.msra.mxu1 %v3392_v13 }
0x129b   :  { %3499 = vmatprep.subr.bf16.mxu1 %v3395_v14 }
0x129e   :  { %3500 = vmatpush1.bf16.msra.mxu1 %v3394_v15 }
0x129f   :  { %3501 = vmatprep.subr.bf16.mxu1 %v3397_v16 }
0x12a2   :  { %3502 = vmatpush1.bf16.msra.mxu1 %v3396_v17 }
0x12a3   :  { %3503 = vmatprep.subr.bf16.mxu1 %v3399_v18 }
0x12a6   :  { %3504 = vmatpush1.bf16.msra.mxu1 %v3398_v19 }
0x12a7   :  { %3505 = vmatprep.subr.bf16.mxu1 %v3401_v20 }
0x12aa   :  { %3506 = vmatpush1.bf16.msra.mxu1 %v3400_v21 }
0x12ab   :  { %3507 = vmatprep.subr.bf16.mxu1 %v3403_v22 }
0x12ae   :  { %3508 = vmatpush1.bf16.msra.mxu1 %v3402_v23 }
0x12af   :  { %3509 = vmatprep.subr.bf16.mxu1 %v3405_v24 }
0x12b2   :  { %3510 = vmatpush1.bf16.msra.mxu1 %v3404_v25 }
0x12b3   :  { %3511 = vmatprep.subr.bf16.mxu1 %v3407_v27 }
0x12b6   :  { %3512 = vmatpush1.bf16.msra.mxu1 %v3406_v28 }
0x12b7   :  { %3522 = vmatprep.subr.bf16.mxu1 %v3409_v29 }
0x12b9   :  { %3514 = vmatmul.mubr.bf16.vlgmr.msra.gmra.mrb[28].mxu1 %v6211_v30 }
0x12ba   :  { %3523 = vmatpush1.bf16.msra.mxu1 %v3408_v33  ;;  %3554 = vmatprep.mubr.bf16.mxu1 %v3476_v32 }
0x12bb   :  { %3524 = vmatprep.subr.bf16.mxu1 %v3411_v34 }
0x12be   :  { %3525 = vmatpush1.bf16.msra.mxu1 %v3410_v35 }
0x12bf   :  { %3526 = vmatprep.subr.bf16.mxu1 %v3413_v36 }
0x12c2   :  { %3527 = vmatpush1.bf16.msra.mxu1 %v3412_v40 }
0x12c3   :  { %3528 = vmatprep.subr.bf16.mxu1 %v3415_v41 }
0x12c6   :  { %3529 = vmatpush1.bf16.msra.mxu1 %v3414_v42 }
0x12c7   :  { %3530 = vmatprep.subr.bf16.mxu1 %v3417_v43 }
0x12ca   :  { %3531 = vmatpush1.bf16.msra.mxu1 %v3416_v37 }
0x12cb   :  { %3532 = vmatprep.subr.bf16.mxu1 %v3419_v44 }
0x12ce   :  { %3533 = vmatpush1.bf16.msra.mxu1 %v3418_v45 }
0x12cf   :  { %3534 = vmatprep.subr.bf16.mxu1 %v3421_v46 }
0x12d2   :  { %3535 = vmatpush1.bf16.msra.mxu1 %v3420_v47 }
0x12d3   :  { %3536 = vmatprep.subr.bf16.mxu1 %v3423_v48 }
0x12d6   :  { %3537 = vmatpush1.bf16.msra.mxu1 %v3422_v49 }
0x12d7   :  { %3538 = vmatprep.subr.bf16.mxu1 %v3425_v50 }
0x12da   :  { %3539 = vmatpush1.bf16.msra.mxu1 %v3424_v26 }
0x12db   :  { %3540 = vmatprep.subr.bf16.mxu1 %v3427_v51 }
0x12de   :  { %3541 = vmatpush1.bf16.msra.mxu1 %v3426_v52 }
0x12df   :  { %3542 = vmatprep.subr.bf16.mxu1 %v3429_v53 }
0x12e2   :  { %3543 = vmatpush1.bf16.msra.mxu1 %v3428_v54 }
0x12e3   :  { %3544 = vmatprep.subr.bf16.mxu1 %v3431_v55 }
0x12e6   :  { %3545 = vmatpush1.bf16.msra.mxu1 %v3430_v56 }
0x12e7   :  { %3546 = vmatprep.subr.bf16.mxu1 %v3433_v57 }
0x12ea   :  { %3547 = vmatpush1.bf16.msra.mxu1 %v3432_v58 }
0x12eb   :  { %3548 = vmatprep.subr.bf16.mxu1 %v3435_v59 }
0x12ee   :  { %3549 = vmatpush1.bf16.msra.mxu1 %v3434_v60 }
0x12ef   :  { %3550 = vmatprep.subr.bf16.mxu1 %v3437_v61 }
0x12f2   :  { %3551 = vmatpush1.bf16.msra.mxu1 %v3436_v62 }
0x12f3   :  { %3552 = vmatprep.subr.bf16.mxu1 %v3439_v63 }
0x12f6   :  { %3553 = vmatpush1.bf16.msra.mxu1 %v3438_v0 }
0x12f9   :  { %3555 = vmatmul.mubr.bf16.vlgmr.msra.gmra.mrb[28].mxu1 %v3475_v1 }
0x13cc   :  { %v3556_v5 = vpop.f32.mrb[28].mxu1 }
0x13cd   :  { %v5425_v6 = vadd.f32 %v3556_v5, %v3445_v3  ;;  %v3558_v7 = vpop.f32.mrb[29].mxu1 }
0x13ce   :  { %v5426_v8 = vadd.f32 %v3558_v7, %v3449_v4  ;;  %v3560_v9 = vpop.f32.mrb[30].mxu1 }
0x13cf   :  { %v3563_v10 = vmax.f32 %v5425_v6, 0.0  ;;  %v3561_v11 = vpop.f32.mrb[31].mxu1 }
0x13d0   :  { %v3564_v12 = vmax.f32 %v5426_v8, 0.0 }
0x13d2   :  { %v5369_v13 = vpack.c.bf16 %v3564_v12, %v3563_v10 }
0x13d4   :  { %v3576_v14 = vrot.slane %v5369_v13, %v5840_v31 }
0x13d6   :  { %5370 = vst.sshfl [vmem:[#allocation4 + $0x2] sm:$0x5 pattern:$0x73625140] %v3576_v14 }
0x13d7   :  { %5629 = dma.done.wait [#allocation6], 8192 }
0x13d8   :  { %5630 = vsyncadd [#allocation6], 4294959104  ;;  %3604 = sst [smem:[#allocation42]] %s5646_s24  ;;  %s3588_s15 = scalar_lea.hbm %s6421_s7, 8192 }
0x13d9   :  { %3606 = sst [smem:[#allocation42 + $0x1]] %s5646_s24  ;;  %s5672_s0 = smov [#allocation41]  }
0x13da   :  { %3608 = sst [smem:[#allocation42 + $0x2]] %s5647_s2 }
0x13db   :  { %3610 = sst [smem:[#allocation42 + $0x3]] %s5648_s26 }
0x13dc   :  { %3612 = sst [smem:[#allocation42 + $0x4]] %s6456_s21 }
0x13dd   :  { %3614 = sst [smem:[#allocation42 + $0x5]] %s5647_s2 }
0x13de   :  { %3616 = sst [smem:[#allocation42 + $0x6]] %s6456_s21 }
0x13df   :  { %3618 = sst [smem:[#allocation42 + $0x7]] %s5648_s26 }
0x13e0   :  { %3620 = sst [smem:[#allocation42 + $0x8]] %s6457_s30 }
0x13e1   :  { %3622 = dma.general %s3588_s15, 8192, %s5828_s25, %s5655_s5, %s5672_s0, [#allocation42], %s5808_s29, 0  }
0x13e2   :  { %v3625_v15 = vld [vmem:[#allocation2 + $0x8] sm:$0xff]  ;;  %v3624_v16 = vld [vmem:[#allocation2] sm:$0xff]  ;;  %v3627_v17 = vld [vmem:[#allocation2 + $0x18] sm:$0xff] }
0x13e3   :  { %3729 = vmatprep.subr.bf16.mxu0 %v3625_v15  ;;  %v3626_v18 = vld [vmem:[#allocation2 + $0x10] sm:$0xff]  ;;  %v3629_v19 = vld [vmem:[#allocation2 + $0x28] sm:$0xff]  ;;  %v3628_v20 = vld [vmem:[#allocation2 + $0x20] sm:$0xff] }
0x13e4   :  { %3730 = vmatpush1.bf16.msra.mxu0 %v3624_v16  ;;  %v3631_v21 = vld [vmem:[#allocation2 + $0x38] sm:$0xff]  ;;  %v5373_v22 = vld.sshfl [vmem:[#allocation4] sm:$0x33 pattern:$0x75316420]  ;;  %v3630_v23 = vld [vmem:[#allocation2 + $0x30] sm:$0xff] }
0x13e5   :  { %3731 = vmatprep.subr.bf16.mxu0 %v3627_v17  ;;  %v3708_v24 = vcombine.high %v5373_v22, %v5373_v22  ;;  %v3633_v25 = vld [vmem:[#allocation2 + $0x48] sm:$0xff]  ;;  %v3632_v28 = vld [vmem:[#allocation2 + $0x40] sm:$0xff]  ;;  %v3635_v29 = vld [vmem:[#allocation2 + $0x58] sm:$0xff]  ;;  %v6239_v54 = vrot.slane %v5373_v22, %v5840_v31 }
0x13e6   :  { %v3634_v30 = vld [vmem:[#allocation2 + $0x50] sm:$0xff]  ;;  %v3637_v32 = vld [vmem:[#allocation2 + $0x68] sm:$0xff]  ;;  %v3636_v33 = vld [vmem:[#allocation2 + $0x60] sm:$0xff] }
0x13e7   :  { %v3722_v27 = vrot.slane %v3708_v24, %v5840_v31  ;;  %v3639_v34 = vld [vmem:[#allocation2 + $0x78] sm:$0xff]  ;;  %v3638_v35 = vld [vmem:[#allocation2 + $0x70] sm:$0xff]  ;;  %v3641_v36 = vld [vmem:[#allocation2 + $0x88] sm:$0xff] }
0x13e8   :  { %3732 = vmatpush1.bf16.msra.mxu0 %v3626_v18  ;;  %v3640_v40 = vld [vmem:[#allocation2 + $0x80] sm:$0xff]  ;;  %v3643_v41 = vld [vmem:[#allocation2 + $0x98] sm:$0xff]  ;;  %v3642_v42 = vld [vmem:[#allocation2 + $0x90] sm:$0xff] }
0x13e9   :  { %3733 = vmatprep.subr.bf16.mxu0 %v3629_v19  ;;  %3761 = vmatprep.mubr.bf16.mxu0 %v3722_v27  ;;  %v3645_v43 = vld [vmem:[#allocation2 + $0xa8] sm:$0xff]  ;;  %v3644_v37 = vld [vmem:[#allocation2 + $0xa0] sm:$0xff]  ;;  %v3647_v44 = vld [vmem:[#allocation2 + $0xb8] sm:$0xff]  ;;  %v3724_v55 = vcombine.high %v3722_v27, %v3722_v27 }
0x13ea   :  { %v3646_v45 = vld [vmem:[#allocation2 + $0xb0] sm:$0xff]  ;;  %v3649_v46 = vld [vmem:[#allocation2 + $0xc8] sm:$0xff]  ;;  %v3648_v47 = vld [vmem:[#allocation2 + $0xc0] sm:$0xff] }
0x13eb   :  { %v3651_v48 = vld [vmem:[#allocation2 + $0xd8] sm:$0xff]  ;;  %v3650_v49 = vld [vmem:[#allocation2 + $0xd0] sm:$0xff]  ;;  %v3653_v50 = vld [vmem:[#allocation2 + $0xe8] sm:$0xff] }
0x13ec   :  { %3734 = vmatpush1.bf16.msra.mxu0 %v3628_v20  ;;  %v3652_v26 = vld [vmem:[#allocation2 + $0xe0] sm:$0xff]  ;;  %v3655_v51 = vld [vmem:[#allocation2 + $0xf8] sm:$0xff]  ;;  %v3654_v52 = vld [vmem:[#allocation2 + $0xf0] sm:$0xff] }
0x13ed   :  { %3735 = vmatprep.subr.bf16.mxu0 %v3631_v21  ;;  %v3657_v53 = vld [vmem:[#allocation2 + $0x108] sm:$0xff]  ;;  %v3656_v56 = vld [vmem:[#allocation2 + $0x100] sm:$0xff]  ;;  %v3659_v57 = vld [vmem:[#allocation2 + $0x118] sm:$0xff] }
0x13ee   :  { %v3658_v58 = vld [vmem:[#allocation2 + $0x110] sm:$0xff]  ;;  %v3661_v59 = vld [vmem:[#allocation2 + $0x128] sm:$0xff]  ;;  %v3660_v60 = vld [vmem:[#allocation2 + $0x120] sm:$0xff] }
0x13ef   :  { %v3663_v61 = vld [vmem:[#allocation2 + $0x138] sm:$0xff]  ;;  %v3662_v62 = vld [vmem:[#allocation2 + $0x130] sm:$0xff]  ;;  %v3665_v63 = vld [vmem:[#allocation2 + $0x148] sm:$0xff] }
0x13f0   :  { %3736 = vmatpush1.bf16.msra.mxu0 %v3630_v23  ;;  %v3664_v0 = vld [vmem:[#allocation2 + $0x140] sm:$0xff]  ;;  %v3667_v1 = vld [vmem:[#allocation2 + $0x158] sm:$0xff]  ;;  %v3666_v2 = vld [vmem:[#allocation2 + $0x150] sm:$0xff]  ;;  %v3723_v23 = vcombine.high %v6239_v54, %v6239_v54 }
0x13f1   :  { %3737 = vmatprep.subr.bf16.mxu0 %v3633_v25  ;;  %v3669_v3 = vld [vmem:[#allocation2 + $0x168] sm:$0xff]  ;;  %v3668_v4 = vld [vmem:[#allocation2 + $0x160] sm:$0xff]  ;;  %v3671_v5 = vld [vmem:[#allocation2 + $0x178] sm:$0xff] }
0x13f2   :  { %v3670_v6 = vld [vmem:[#allocation2 + $0x170] sm:$0xff]  ;;  %v3673_v7 = vld [vmem:[#allocation2 + $0x188] sm:$0xff]  ;;  %v3672_v8 = vld [vmem:[#allocation2 + $0x180] sm:$0xff] }
0x13f3   :  { %v3675_v9 = vld [vmem:[#allocation2 + $0x198] sm:$0xff]  ;;  %v3674_v10 = vld [vmem:[#allocation2 + $0x190] sm:$0xff]  ;;  %v3677_v11 = vld [vmem:[#allocation2 + $0x1a8] sm:$0xff] }
0x13f4   :  { %3738 = vmatpush1.bf16.msra.mxu0 %v3632_v28  ;;  %v3676_v12 = vld [vmem:[#allocation2 + $0x1a0] sm:$0xff]  ;;  %v3679_v13 = vld [vmem:[#allocation2 + $0x1b8] sm:$0xff]  ;;  %v3678_v14 = vld [vmem:[#allocation2 + $0x1b0] sm:$0xff] }
0x13f5   :  { %3739 = vmatprep.subr.bf16.mxu0 %v3635_v29  ;;  %v3681_v15 = vld [vmem:[#allocation2 + $0x1c8] sm:$0xff]  ;;  %v3680_v16 = vld [vmem:[#allocation2 + $0x1c0] sm:$0xff]  ;;  %v3683_v17 = vld [vmem:[#allocation2 + $0x1d8] sm:$0xff] }
0x13f6   :  { %v3682_v18 = vld [vmem:[#allocation2 + $0x1d0] sm:$0xff]  ;;  %v3685_v19 = vld [vmem:[#allocation2 + $0x1e8] sm:$0xff]  ;;  %v3684_v20 = vld [vmem:[#allocation2 + $0x1e0] sm:$0xff] }
0x13f7   :  { %v3687_v21 = vld [vmem:[#allocation2 + $0x1f8] sm:$0xff]  ;;  %v3686_v22 = vld [vmem:[#allocation2 + $0x1f0] sm:$0xff]  ;;  %v3688_v24 = vld [vmem:[%s6431_s17] sm:$0x3] }
0x13f8   :  { %3740 = vmatpush1.bf16.msra.mxu0 %v3634_v30  ;;  %v3693_v25 = vrot.slane %v3688_v24, %v5875_v38  ;;  %v3697_v27 = vrot.slane %v3688_v24, %v5878_v39 }
0x13f9   :  { %3741 = vmatprep.subr.bf16.mxu0 %v3637_v32 }
0x13fc   :  { %3742 = vmatpush1.bf16.msra.mxu0 %v3636_v33 }
0x13fd   :  { %3743 = vmatprep.subr.bf16.mxu0 %v3639_v34 }
0x1400   :  { %3744 = vmatpush1.bf16.msra.mxu0 %v3638_v35 }
0x1401   :  { %3745 = vmatprep.subr.bf16.mxu0 %v3641_v36 }
0x1404   :  { %3746 = vmatpush1.bf16.msra.mxu0 %v3640_v40 }
0x1405   :  { %3747 = vmatprep.subr.bf16.mxu0 %v3643_v41 }
0x1408   :  { %3748 = vmatpush1.bf16.msra.mxu0 %v3642_v42 }
0x1409   :  { %3749 = vmatprep.subr.bf16.mxu0 %v3645_v43 }
0x140c   :  { %3750 = vmatpush1.bf16.msra.mxu0 %v3644_v37 }
0x140d   :  { %3751 = vmatprep.subr.bf16.mxu0 %v3647_v44 }
0x1410   :  { %3752 = vmatpush1.bf16.msra.mxu0 %v3646_v45 }
0x1411   :  { %3753 = vmatprep.subr.bf16.mxu0 %v3649_v46 }
0x1414   :  { %3754 = vmatpush1.bf16.msra.mxu0 %v3648_v47 }
0x1415   :  { %3755 = vmatprep.subr.bf16.mxu0 %v3651_v48 }
0x1418   :  { %3756 = vmatpush1.bf16.msra.mxu0 %v3650_v49 }
0x1419   :  { %3757 = vmatprep.subr.bf16.mxu0 %v3653_v50 }
0x141c   :  { %3758 = vmatpush1.bf16.msra.mxu0 %v3652_v26 }
0x141d   :  { %3759 = vmatprep.subr.bf16.mxu0 %v3655_v51 }
0x1420   :  { %3760 = vmatpush1.bf16.msra.mxu0 %v3654_v52 }
0x1421   :  { %3770 = vmatprep.subr.bf16.mxu0 %v3657_v53 }
0x1423   :  { %3762 = vmatmul.mubr.bf16.vlgmr.msra.gmra.mrb[28].mxu0 %v6239_v54 }
0x1424   :  { %3771 = vmatpush1.bf16.msra.mxu0 %v3656_v56  ;;  %3802 = vmatprep.mubr.bf16.mxu0 %v3724_v55 }
0x1425   :  { %3772 = vmatprep.subr.bf16.mxu0 %v3659_v57 }
0x1428   :  { %3773 = vmatpush1.bf16.msra.mxu0 %v3658_v58 }
0x1429   :  { %3774 = vmatprep.subr.bf16.mxu0 %v3661_v59 }
0x142c   :  { %3775 = vmatpush1.bf16.msra.mxu0 %v3660_v60 }
0x142d   :  { %3776 = vmatprep.subr.bf16.mxu0 %v3663_v61 }
0x1430   :  { %3777 = vmatpush1.bf16.msra.mxu0 %v3662_v62 }
0x1431   :  { %3778 = vmatprep.subr.bf16.mxu0 %v3665_v63 }
0x1434   :  { %3779 = vmatpush1.bf16.msra.mxu0 %v3664_v0 }
0x1435   :  { %3780 = vmatprep.subr.bf16.mxu0 %v3667_v1 }
0x1438   :  { %3781 = vmatpush1.bf16.msra.mxu0 %v3666_v2 }
0x1439   :  { %3782 = vmatprep.subr.bf16.mxu0 %v3669_v3 }
0x143c   :  { %3783 = vmatpush1.bf16.msra.mxu0 %v3668_v4 }
0x143d   :  { %3784 = vmatprep.subr.bf16.mxu0 %v3671_v5 }
0x1440   :  { %3785 = vmatpush1.bf16.msra.mxu0 %v3670_v6 }
0x1441   :  { %3786 = vmatprep.subr.bf16.mxu0 %v3673_v7 }
0x1444   :  { %3787 = vmatpush1.bf16.msra.mxu0 %v3672_v8 }
0x1445   :  { %3788 = vmatprep.subr.bf16.mxu0 %v3675_v9 }
0x1448   :  { %3789 = vmatpush1.bf16.msra.mxu0 %v3674_v10 }
0x1449   :  { %3790 = vmatprep.subr.bf16.mxu0 %v3677_v11 }
0x144c   :  { %3791 = vmatpush1.bf16.msra.mxu0 %v3676_v12 }
0x144d   :  { %3792 = vmatprep.subr.bf16.mxu0 %v3679_v13 }
0x1450   :  { %3793 = vmatpush1.bf16.msra.mxu0 %v3678_v14 }
0x1451   :  { %3794 = vmatprep.subr.bf16.mxu0 %v3681_v15 }
0x1454   :  { %3795 = vmatpush1.bf16.msra.mxu0 %v3680_v16 }
0x1455   :  { %3796 = vmatprep.subr.bf16.mxu0 %v3683_v17 }
0x1458   :  { %3797 = vmatpush1.bf16.msra.mxu0 %v3682_v18 }
0x1459   :  { %3798 = vmatprep.subr.bf16.mxu0 %v3685_v19 }
0x145c   :  { %3799 = vmatpush1.bf16.msra.mxu0 %v3684_v20 }
0x145d   :  { %3800 = vmatprep.subr.bf16.mxu0 %v3687_v21 }
0x1460   :  { %3801 = vmatpush1.bf16.msra.mxu0 %v3686_v22 }
0x1463   :  { %3803 = vmatmul.mubr.bf16.vlgmr.msra.gmra.mrb[28].mxu0 %v3723_v23 }
0x1536   :  { %v3804_v28 = vpop.f32.mrb[28].mxu0 }
0x1537   :  { %v5427_v29 = vadd.f32 %v3804_v28, %v3693_v25  ;;  %v3806_v30 = vpop.f32.mrb[29].mxu0 }
0x1538   :  { %v5428_v32 = vadd.f32 %v3806_v30, %v3697_v27  ;;  %v3808_v33 = vpop.f32.mrb[30].mxu0 }
0x1539   :  { %v3811_v34 = vmax.f32 %v5427_v29, 0.0  ;;  %v3809_v35 = vpop.f32.mrb[31].mxu0 }
0x153a   :  { %v3812_v36 = vmax.f32 %v5428_v32, 0.0 }
0x153c   :  { %v5374_v40 = vpack.c.bf16 %v3812_v36, %v3811_v34 }
0x153e   :  { %v3824_v41 = vrot.slane %v5374_v40, %v5840_v31 }
0x1540   :  { %5375 = vst.sshfl [vmem:[#allocation3] sm:$0x5 pattern:$0x73625140] %v3824_v41 }
0x1541   :  { %5631 = dma.done.wait [#allocation6 + $0x1], 8192 }
0x1542   :  { %5632 = vsyncadd [#allocation6 + $0x1], 4294959104  ;;  %3851 = sst [smem:[#allocation44]] %s5646_s24  ;;  %s5673_s12 = smov [#allocation43]  }
0x1543   :  { %3853 = sst [smem:[#allocation44 + $0x1]] %s5646_s24 }
0x1544   :  { %3855 = sst [smem:[#allocation44 + $0x2]] %s5647_s2 }
0x1545   :  { %3857 = sst [smem:[#allocation44 + $0x3]] %s5648_s26 }
0x1546   :  { %3859 = sst [smem:[#allocation44 + $0x4]] %s6456_s21 }
0x1547   :  { %3861 = sst [smem:[#allocation44 + $0x5]] %s5647_s2 }
0x1548   :  { %3863 = sst [smem:[#allocation44 + $0x6]] %s6456_s21 }
0x1549   :  { %3865 = sst [smem:[#allocation44 + $0x7]] %s5648_s26 }
0x154a   :  { %3867 = sst [smem:[#allocation44 + $0x8]] %s6457_s30 }
0x154b   :  { %3869 = dma.general %s6422_s8, 8192, %s5812_s3, %s5652_s4, %s5673_s12, [#allocation44], %s5808_s29, 0  }
0x154c   :  { %v3872_v42 = vld [vmem:[#allocation2 + $0x208] sm:$0xff]  ;;  %v3871_v43 = vld [vmem:[#allocation2 + $0x200] sm:$0xff]  ;;  %v3874_v37 = vld [vmem:[#allocation2 + $0x218] sm:$0xff] }
0x154d   :  { %3976 = vmatprep.subr.bf16.mxu1 %v3872_v42  ;;  %v3873_v44 = vld [vmem:[#allocation2 + $0x210] sm:$0xff]  ;;  %v3876_v45 = vld [vmem:[#allocation2 + $0x228] sm:$0xff]  ;;  %v3875_v46 = vld [vmem:[#allocation2 + $0x220] sm:$0xff] }
0x154e   :  { %3977 = vmatpush1.bf16.msra.mxu1 %v3871_v43  ;;  %v3878_v47 = vld [vmem:[#allocation2 + $0x238] sm:$0xff]  ;;  %v5378_v48 = vld.sshfl [vmem:[#allocation4] sm:$0x33 pattern:$0x75316420]  ;;  %v3877_v49 = vld [vmem:[#allocation2 + $0x230] sm:$0xff] }
0x154f   :  { %3978 = vmatprep.subr.bf16.mxu1 %v3874_v37  ;;  %v3955_v50 = vcombine.high %v5378_v48, %v5378_v48  ;;  %v3880_v26 = vld [vmem:[#allocation2 + $0x248] sm:$0xff]  ;;  %v3879_v52 = vld [vmem:[#allocation2 + $0x240] sm:$0xff]  ;;  %v3882_v53 = vld [vmem:[#allocation2 + $0x258] sm:$0xff]  ;;  %v6267_v12 = vrot.slane %v5378_v48, %v5840_v31 }
0x1550   :  { %v3881_v54 = vld [vmem:[#allocation2 + $0x250] sm:$0xff]  ;;  %v3884_v55 = vld [vmem:[#allocation2 + $0x268] sm:$0xff]  ;;  %v3883_v56 = vld [vmem:[#allocation2 + $0x260] sm:$0xff] }
0x1551   :  { %v3969_v51 = vrot.slane %v3955_v50, %v5840_v31  ;;  %v3886_v57 = vld [vmem:[#allocation2 + $0x278] sm:$0xff]  ;;  %v3885_v58 = vld [vmem:[#allocation2 + $0x270] sm:$0xff]  ;;  %v3888_v59 = vld [vmem:[#allocation2 + $0x288] sm:$0xff] }
0x1552   :  { %3979 = vmatpush1.bf16.msra.mxu1 %v3873_v44  ;;  %v3887_v60 = vld [vmem:[#allocation2 + $0x280] sm:$0xff]  ;;  %v3890_v61 = vld [vmem:[#allocation2 + $0x298] sm:$0xff]  ;;  %v3889_v62 = vld [vmem:[#allocation2 + $0x290] sm:$0xff] }
0x1553   :  { %3980 = vmatprep.subr.bf16.mxu1 %v3876_v45  ;;  %4008 = vmatprep.mubr.bf16.mxu1 %v3969_v51  ;;  %v3892_v63 = vld [vmem:[#allocation2 + $0x2a8] sm:$0xff]  ;;  %v3891_v0 = vld [vmem:[#allocation2 + $0x2a0] sm:$0xff]  ;;  %v3894_v1 = vld [vmem:[#allocation2 + $0x2b8] sm:$0xff]  ;;  %v3971_v13 = vcombine.high %v3969_v51, %v3969_v51 }
0x1554   :  { %v3893_v2 = vld [vmem:[#allocation2 + $0x2b0] sm:$0xff]  ;;  %v3896_v3 = vld [vmem:[#allocation2 + $0x2c8] sm:$0xff]  ;;  %v3895_v4 = vld [vmem:[#allocation2 + $0x2c0] sm:$0xff] }
0x1555   :  { %v3898_v5 = vld [vmem:[#allocation2 + $0x2d8] sm:$0xff]  ;;  %v3897_v6 = vld [vmem:[#allocation2 + $0x2d0] sm:$0xff]  ;;  %v3900_v7 = vld [vmem:[#allocation2 + $0x2e8] sm:$0xff] }
0x1556   :  { %3981 = vmatpush1.bf16.msra.mxu1 %v3875_v46  ;;  %v3899_v8 = vld [vmem:[#allocation2 + $0x2e0] sm:$0xff]  ;;  %v3902_v9 = vld [vmem:[#allocation2 + $0x2f8] sm:$0xff]  ;;  %v3901_v10 = vld [vmem:[#allocation2 + $0x2f0] sm:$0xff] }
0x1557   :  { %3982 = vmatprep.subr.bf16.mxu1 %v3878_v47  ;;  %v3904_v11 = vld [vmem:[#allocation2 + $0x308] sm:$0xff]  ;;  %v3903_v14 = vld [vmem:[#allocation2 + $0x300] sm:$0xff]  ;;  %v3906_v15 = vld [vmem:[#allocation2 + $0x318] sm:$0xff] }
0x1558   :  { %v3905_v16 = vld [vmem:[#allocation2 + $0x310] sm:$0xff]  ;;  %v3908_v17 = vld [vmem:[#allocation2 + $0x328] sm:$0xff]  ;;  %v3907_v18 = vld [vmem:[#allocation2 + $0x320] sm:$0xff] }
0x1559   :  { %v3910_v19 = vld [vmem:[#allocation2 + $0x338] sm:$0xff]  ;;  %v3909_v20 = vld [vmem:[#allocation2 + $0x330] sm:$0xff]  ;;  %v3912_v21 = vld [vmem:[#allocation2 + $0x348] sm:$0xff] }
0x155a   :  { %3983 = vmatpush1.bf16.msra.mxu1 %v3877_v49  ;;  %v3911_v22 = vld [vmem:[#allocation2 + $0x340] sm:$0xff]  ;;  %v3914_v23 = vld [vmem:[#allocation2 + $0x358] sm:$0xff]  ;;  %v3913_v24 = vld [vmem:[#allocation2 + $0x350] sm:$0xff]  ;;  %v3970_v49 = vcombine.high %v6267_v12, %v6267_v12 }
0x155b   :  { %3984 = vmatprep.subr.bf16.mxu1 %v3880_v26  ;;  %v3916_v25 = vld [vmem:[#allocation2 + $0x368] sm:$0xff]  ;;  %v3915_v27 = vld [vmem:[#allocation2 + $0x360] sm:$0xff]  ;;  %v3918_v28 = vld [vmem:[#allocation2 + $0x378] sm:$0xff] }
0x155c   :  { %v3917_v29 = vld [vmem:[#allocation2 + $0x370] sm:$0xff]  ;;  %v3920_v30 = vld [vmem:[#allocation2 + $0x388] sm:$0xff]  ;;  %v3919_v32 = vld [vmem:[#allocation2 + $0x380] sm:$0xff] }
0x155d   :  { %v3922_v33 = vld [vmem:[#allocation2 + $0x398] sm:$0xff]  ;;  %v3921_v34 = vld [vmem:[#allocation2 + $0x390] sm:$0xff]  ;;  %v3924_v35 = vld [vmem:[#allocation2 + $0x3a8] sm:$0xff] }
0x155e   :  { %3985 = vmatpush1.bf16.msra.mxu1 %v3879_v52  ;;  %v3923_v36 = vld [vmem:[#allocation2 + $0x3a0] sm:$0xff]  ;;  %v3926_v40 = vld [vmem:[#allocation2 + $0x3b8] sm:$0xff]  ;;  %v3925_v41 = vld [vmem:[#allocation2 + $0x3b0] sm:$0xff] }
0x155f   :  { %3986 = vmatprep.subr.bf16.mxu1 %v3882_v53  ;;  %v3928_v42 = vld [vmem:[#allocation2 + $0x3c8] sm:$0xff]  ;;  %v3927_v43 = vld [vmem:[#allocation2 + $0x3c0] sm:$0xff]  ;;  %v3930_v37 = vld [vmem:[#allocation2 + $0x3d8] sm:$0xff] }
0x1560   :  { %v3929_v44 = vld [vmem:[#allocation2 + $0x3d0] sm:$0xff]  ;;  %v3932_v45 = vld [vmem:[#allocation2 + $0x3e8] sm:$0xff]  ;;  %v3931_v46 = vld [vmem:[#allocation2 + $0x3e0] sm:$0xff] }
0x1561   :  { %v3934_v47 = vld [vmem:[#allocation2 + $0x3f8] sm:$0xff]  ;;  %v3933_v48 = vld [vmem:[#allocation2 + $0x3f0] sm:$0xff]  ;;  %v3935_v50 = vld [vmem:[%s6431_s17 + $0x2] sm:$0x3] }
0x1562   :  { %3987 = vmatpush1.bf16.msra.mxu1 %v3881_v54  ;;  %v3940_v26 = vrot.slane %v3935_v50, %v5875_v38  ;;  %v3944_v51 = vrot.slane %v3935_v50, %v5878_v39 }
0x1563   :  { %3988 = vmatprep.subr.bf16.mxu1 %v3884_v55 }
0x1566   :  { %3989 = vmatpush1.bf16.msra.mxu1 %v3883_v56 }
0x1567   :  { %3990 = vmatprep.subr.bf16.mxu1 %v3886_v57 }
0x156a   :  { %3991 = vmatpush1.bf16.msra.mxu1 %v3885_v58 }
0x156b   :  { %3992 = vmatprep.subr.bf16.mxu1 %v3888_v59 }
0x156e   :  { %3993 = vmatpush1.bf16.msra.mxu1 %v3887_v60 }
0x156f   :  { %3994 = vmatprep.subr.bf16.mxu1 %v3890_v61 }
0x1572   :  { %3995 = vmatpush1.bf16.msra.mxu1 %v3889_v62 }
0x1573   :  { %3996 = vmatprep.subr.bf16.mxu1 %v3892_v63 }
0x1576   :  { %3997 = vmatpush1.bf16.msra.mxu1 %v3891_v0 }
0x1577   :  { %3998 = vmatprep.subr.bf16.mxu1 %v3894_v1 }
0x157a   :  { %3999 = vmatpush1.bf16.msra.mxu1 %v3893_v2 }
0x157b   :  { %4000 = vmatprep.subr.bf16.mxu1 %v3896_v3 }
0x157e   :  { %4001 = vmatpush1.bf16.msra.mxu1 %v3895_v4 }
0x157f   :  { %4002 = vmatprep.subr.bf16.mxu1 %v3898_v5 }
0x1582   :  { %4003 = vmatpush1.bf16.msra.mxu1 %v3897_v6 }
0x1583   :  { %4004 = vmatprep.subr.bf16.mxu1 %v3900_v7 }
0x1586   :  { %4005 = vmatpush1.bf16.msra.mxu1 %v3899_v8 }
0x1587   :  { %4006 = vmatprep.subr.bf16.mxu1 %v3902_v9 }
0x158a   :  { %4007 = vmatpush1.bf16.msra.mxu1 %v3901_v10 }
0x158b   :  { %4017 = vmatprep.subr.bf16.mxu1 %v3904_v11 }
0x158d   :  { %4009 = vmatmul.mubr.bf16.vlgmr.msra.gmra.mrb[32].mxu1 %v6267_v12 }
0x158e   :  { %4018 = vmatpush1.bf16.msra.mxu1 %v3903_v14  ;;  %4049 = vmatprep.mubr.bf16.mxu1 %v3971_v13 }
0x158f   :  { %4019 = vmatprep.subr.bf16.mxu1 %v3906_v15 }
0x1592   :  { %4020 = vmatpush1.bf16.msra.mxu1 %v3905_v16 }
0x1593   :  { %4021 = vmatprep.subr.bf16.mxu1 %v3908_v17 }
0x1596   :  { %4022 = vmatpush1.bf16.msra.mxu1 %v3907_v18 }
0x1597   :  { %4023 = vmatprep.subr.bf16.mxu1 %v3910_v19 }
0x159a   :  { %4024 = vmatpush1.bf16.msra.mxu1 %v3909_v20 }
0x159b   :  { %4025 = vmatprep.subr.bf16.mxu1 %v3912_v21 }
0x159e   :  { %4026 = vmatpush1.bf16.msra.mxu1 %v3911_v22 }
0x159f   :  { %4027 = vmatprep.subr.bf16.mxu1 %v3914_v23 }
0x15a2   :  { %4028 = vmatpush1.bf16.msra.mxu1 %v3913_v24 }
0x15a3   :  { %4029 = vmatprep.subr.bf16.mxu1 %v3916_v25 }
0x15a6   :  { %4030 = vmatpush1.bf16.msra.mxu1 %v3915_v27 }
0x15a7   :  { %4031 = vmatprep.subr.bf16.mxu1 %v3918_v28 }
0x15aa   :  { %4032 = vmatpush1.bf16.msra.mxu1 %v3917_v29 }
0x15ab   :  { %4033 = vmatprep.subr.bf16.mxu1 %v3920_v30 }
0x15ae   :  { %4034 = vmatpush1.bf16.msra.mxu1 %v3919_v32 }
0x15af   :  { %4035 = vmatprep.subr.bf16.mxu1 %v3922_v33 }
0x15b2   :  { %4036 = vmatpush1.bf16.msra.mxu1 %v3921_v34 }
0x15b3   :  { %4037 = vmatprep.subr.bf16.mxu1 %v3924_v35 }
0x15b6   :  { %4038 = vmatpush1.bf16.msra.mxu1 %v3923_v36 }
0x15b7   :  { %4039 = vmatprep.subr.bf16.mxu1 %v3926_v40 }
0x15ba   :  { %4040 = vmatpush1.bf16.msra.mxu1 %v3925_v41 }
0x15bb   :  { %4041 = vmatprep.subr.bf16.mxu1 %v3928_v42 }
0x15be   :  { %4042 = vmatpush1.bf16.msra.mxu1 %v3927_v43 }
0x15bf   :  { %4043 = vmatprep.subr.bf16.mxu1 %v3930_v37 }
0x15c2   :  { %4044 = vmatpush1.bf16.msra.mxu1 %v3929_v44 }
0x15c3   :  { %4045 = vmatprep.subr.bf16.mxu1 %v3932_v45 }
0x15c6   :  { %4046 = vmatpush1.bf16.msra.mxu1 %v3931_v46 }
0x15c7   :  { %4047 = vmatprep.subr.bf16.mxu1 %v3934_v47 }
0x15ca   :  { %4048 = vmatpush1.bf16.msra.mxu1 %v3933_v48 }
0x15cd   :  { %4050 = vmatmul.mubr.bf16.vlgmr.msra.gmra.mrb[32].mxu1 %v3970_v49 }
0x16a0   :  { %v4051_v52 = vpop.f32.mrb[32].mxu1 }
0x16a1   :  { %v5429_v53 = vadd.f32 %v4051_v52, %v3940_v26  ;;  %v4053_v54 = vpop.f32.mrb[33].mxu1 }
0x16a2   :  { %v5430_v55 = vadd.f32 %v4053_v54, %v3944_v51  ;;  %v4055_v56 = vpop.f32.mrb[34].mxu1 }
0x16a3   :  { %v4058_v57 = vmax.f32 %v5429_v53, 0.0  ;;  %v4056_v58 = vpop.f32.mrb[35].mxu1 }
0x16a4   :  { %v4059_v59 = vmax.f32 %v5430_v55, 0.0 }
0x16a6   :  { %v5379_v60 = vpack.c.bf16 %v4059_v59, %v4058_v57 }
0x16a8   :  { %v4071_v61 = vrot.slane %v5379_v60, %v5840_v31 }
0x16aa   :  { %5380 = vst.sshfl [vmem:[#allocation3 + $0x2] sm:$0x5 pattern:$0x73625140] %v4071_v61 }
0x16ab   :  { %5633 = dma.done.wait [#allocation6], 8192 }
0x16ac   :  { %5634 = vsyncadd [#allocation6], 4294959104  ;;  %4099 = sst [smem:[#allocation46]] %s5646_s24  ;;  %s4083_s23 = scalar_lea.hbm %s6422_s8, 8192 }
0x16ad   :  { %4101 = sst [smem:[#allocation46 + $0x1]] %s5646_s24  ;;  %s5674_s27 = smov [#allocation45]  }
0x16ae   :  { %4103 = sst [smem:[#allocation46 + $0x2]] %s5647_s2 }
0x16af   :  { %4105 = sst [smem:[#allocation46 + $0x3]] %s5648_s26 }
0x16b0   :  { %4107 = sst [smem:[#allocation46 + $0x4]] %s6456_s21 }
0x16b1   :  { %4109 = sst [smem:[#allocation46 + $0x5]] %s5647_s2 }
0x16b2   :  { %4111 = sst [smem:[#allocation46 + $0x6]] %s6456_s21 }
0x16b3   :  { %4113 = sst [smem:[#allocation46 + $0x7]] %s5648_s26 }
0x16b4   :  { %4115 = sst [smem:[#allocation46 + $0x8]] %s6457_s30 }
0x16b5   :  { %4117 = dma.general %s4083_s23, 8192, %s5828_s25, %s5655_s5, %s5674_s27, [#allocation46], %s5808_s29, 0  }
0x16b6   :  { %v4120_v62 = vld [vmem:[#allocation2 + $0x8] sm:$0xff]  ;;  %v4119_v63 = vld [vmem:[#allocation2] sm:$0xff]  ;;  %v4122_v0 = vld [vmem:[#allocation2 + $0x18] sm:$0xff] }
0x16b7   :  { %4224 = vmatprep.subr.bf16.mxu0 %v4120_v62  ;;  %v4121_v1 = vld [vmem:[#allocation2 + $0x10] sm:$0xff]  ;;  %v4124_v2 = vld [vmem:[#allocation2 + $0x28] sm:$0xff]  ;;  %v4123_v3 = vld [vmem:[#allocation2 + $0x20] sm:$0xff] }
0x16b8   :  { %4225 = vmatpush1.bf16.msra.mxu0 %v4119_v63  ;;  %v4126_v4 = vld [vmem:[#allocation2 + $0x38] sm:$0xff]  ;;  %v5383_v5 = vld.sshfl [vmem:[#allocation3] sm:$0x33 pattern:$0x75316420]  ;;  %v4125_v6 = vld [vmem:[#allocation2 + $0x30] sm:$0xff] }
0x16b9   :  { %4226 = vmatprep.subr.bf16.mxu0 %v4122_v0  ;;  %v4203_v7 = vcombine.high %v5383_v5, %v5383_v5  ;;  %v4128_v8 = vld [vmem:[#allocation2 + $0x48] sm:$0xff]  ;;  %v4127_v10 = vld [vmem:[#allocation2 + $0x40] sm:$0xff]  ;;  %v4130_v11 = vld [vmem:[#allocation2 + $0x58] sm:$0xff]  ;;  %v6295_v36 = vrot.slane %v5383_v5, %v5840_v31 }
0x16ba   :  { %v4129_v12 = vld [vmem:[#allocation2 + $0x50] sm:$0xff]  ;;  %v4132_v13 = vld [vmem:[#allocation2 + $0x68] sm:$0xff]  ;;  %v4131_v14 = vld [vmem:[#allocation2 + $0x60] sm:$0xff] }
0x16bb   :  { %v4217_v9 = vrot.slane %v4203_v7, %v5840_v31  ;;  %v4134_v15 = vld [vmem:[#allocation2 + $0x78] sm:$0xff]  ;;  %v4133_v16 = vld [vmem:[#allocation2 + $0x70] sm:$0xff]  ;;  %v4136_v17 = vld [vmem:[#allocation2 + $0x88] sm:$0xff] }
0x16bc   :  { %4227 = vmatpush1.bf16.msra.mxu0 %v4121_v1  ;;  %v4135_v18 = vld [vmem:[#allocation2 + $0x80] sm:$0xff]  ;;  %v4138_v19 = vld [vmem:[#allocation2 + $0x98] sm:$0xff]  ;;  %v4137_v20 = vld [vmem:[#allocation2 + $0x90] sm:$0xff] }
0x16bd   :  { %4228 = vmatprep.subr.bf16.mxu0 %v4124_v2  ;;  %4256 = vmatprep.mubr.bf16.mxu0 %v4217_v9  ;;  %v4140_v21 = vld [vmem:[#allocation2 + $0xa8] sm:$0xff]  ;;  %v4139_v22 = vld [vmem:[#allocation2 + $0xa0] sm:$0xff]  ;;  %v4142_v23 = vld [vmem:[#allocation2 + $0xb8] sm:$0xff]  ;;  %v4219_v40 = vcombine.high %v4217_v9, %v4217_v9 }
0x16be   :  { %v4141_v24 = vld [vmem:[#allocation2 + $0xb0] sm:$0xff]  ;;  %v4144_v25 = vld [vmem:[#allocation2 + $0xc8] sm:$0xff]  ;;  %v4143_v27 = vld [vmem:[#allocation2 + $0xc0] sm:$0xff] }
0x16bf   :  { %v4146_v28 = vld [vmem:[#allocation2 + $0xd8] sm:$0xff]  ;;  %v4145_v29 = vld [vmem:[#allocation2 + $0xd0] sm:$0xff]  ;;  %v4148_v30 = vld [vmem:[#allocation2 + $0xe8] sm:$0xff] }
0x16c0   :  { %4229 = vmatpush1.bf16.msra.mxu0 %v4123_v3  ;;  %v4147_v32 = vld [vmem:[#allocation2 + $0xe0] sm:$0xff]  ;;  %v4150_v33 = vld [vmem:[#allocation2 + $0xf8] sm:$0xff]  ;;  %v4149_v34 = vld [vmem:[#allocation2 + $0xf0] sm:$0xff] }
0x16c1   :  { %4230 = vmatprep.subr.bf16.mxu0 %v4126_v4  ;;  %v4152_v35 = vld [vmem:[#allocation2 + $0x108] sm:$0xff]  ;;  %v4151_v41 = vld [vmem:[#allocation2 + $0x100] sm:$0xff]  ;;  %v4154_v42 = vld [vmem:[#allocation2 + $0x118] sm:$0xff] }
0x16c2   :  { %v4153_v43 = vld [vmem:[#allocation2 + $0x110] sm:$0xff]  ;;  %v4156_v37 = vld [vmem:[#allocation2 + $0x128] sm:$0xff]  ;;  %v4155_v44 = vld [vmem:[#allocation2 + $0x120] sm:$0xff] }
0x16c3   :  { %v4158_v45 = vld [vmem:[#allocation2 + $0x138] sm:$0xff]  ;;  %v4157_v46 = vld [vmem:[#allocation2 + $0x130] sm:$0xff]  ;;  %v4160_v47 = vld [vmem:[#allocation2 + $0x148] sm:$0xff] }
0x16c4   :  { %4231 = vmatpush1.bf16.msra.mxu0 %v4125_v6  ;;  %v4159_v48 = vld [vmem:[#allocation2 + $0x140] sm:$0xff]  ;;  %v4162_v49 = vld [vmem:[#allocation2 + $0x158] sm:$0xff]  ;;  %v4161_v50 = vld [vmem:[#allocation2 + $0x150] sm:$0xff]  ;;  %v4218_v6 = vcombine.high %v6295_v36, %v6295_v36 }
0x16c5   :  { %4232 = vmatprep.subr.bf16.mxu0 %v4128_v8  ;;  %v4164_v26 = vld [vmem:[#allocation2 + $0x168] sm:$0xff]  ;;  %v4163_v51 = vld [vmem:[#allocation2 + $0x160] sm:$0xff]  ;;  %v4166_v52 = vld [vmem:[#allocation2 + $0x178] sm:$0xff] }
0x16c6   :  { %v4165_v53 = vld [vmem:[#allocation2 + $0x170] sm:$0xff]  ;;  %v4168_v54 = vld [vmem:[#allocation2 + $0x188] sm:$0xff]  ;;  %v4167_v55 = vld [vmem:[#allocation2 + $0x180] sm:$0xff] }
0x16c7   :  { %v4170_v56 = vld [vmem:[#allocation2 + $0x198] sm:$0xff]  ;;  %v4169_v57 = vld [vmem:[#allocation2 + $0x190] sm:$0xff]  ;;  %v4172_v58 = vld [vmem:[#allocation2 + $0x1a8] sm:$0xff] }
0x16c8   :  { %4233 = vmatpush1.bf16.msra.mxu0 %v4127_v10  ;;  %v4171_v59 = vld [vmem:[#allocation2 + $0x1a0] sm:$0xff]  ;;  %v4174_v60 = vld [vmem:[#allocation2 + $0x1b8] sm:$0xff]  ;;  %v4173_v61 = vld [vmem:[#allocation2 + $0x1b0] sm:$0xff] }
0x16c9   :  { %4234 = vmatprep.subr.bf16.mxu0 %v4130_v11  ;;  %v4176_v62 = vld [vmem:[#allocation2 + $0x1c8] sm:$0xff]  ;;  %v4175_v63 = vld [vmem:[#allocation2 + $0x1c0] sm:$0xff]  ;;  %v4178_v0 = vld [vmem:[#allocation2 + $0x1d8] sm:$0xff] }
0x16ca   :  { %v4177_v1 = vld [vmem:[#allocation2 + $0x1d0] sm:$0xff]  ;;  %v4180_v2 = vld [vmem:[#allocation2 + $0x1e8] sm:$0xff]  ;;  %v4179_v3 = vld [vmem:[#allocation2 + $0x1e0] sm:$0xff] }
0x16cb   :  { %v4182_v4 = vld [vmem:[#allocation2 + $0x1f8] sm:$0xff]  ;;  %v4181_v5 = vld [vmem:[#allocation2 + $0x1f0] sm:$0xff]  ;;  %v4183_v7 = vld [vmem:[%s6432_s18] sm:$0x3] }
0x16cc   :  { %4235 = vmatpush1.bf16.msra.mxu0 %v4129_v12  ;;  %v4188_v8 = vrot.slane %v4183_v7, %v5875_v38  ;;  %v4192_v9 = vrot.slane %v4183_v7, %v5878_v39 }
0x16cd   :  { %4236 = vmatprep.subr.bf16.mxu0 %v4132_v13 }
0x16d0   :  { %4237 = vmatpush1.bf16.msra.mxu0 %v4131_v14 }
0x16d1   :  { %4238 = vmatprep.subr.bf16.mxu0 %v4134_v15 }
0x16d4   :  { %4239 = vmatpush1.bf16.msra.mxu0 %v4133_v16 }
0x16d5   :  { %4240 = vmatprep.subr.bf16.mxu0 %v4136_v17 }
0x16d8   :  { %4241 = vmatpush1.bf16.msra.mxu0 %v4135_v18 }
0x16d9   :  { %4242 = vmatprep.subr.bf16.mxu0 %v4138_v19 }
0x16dc   :  { %4243 = vmatpush1.bf16.msra.mxu0 %v4137_v20 }
0x16dd   :  { %4244 = vmatprep.subr.bf16.mxu0 %v4140_v21 }
0x16e0   :  { %4245 = vmatpush1.bf16.msra.mxu0 %v4139_v22 }
0x16e1   :  { %4246 = vmatprep.subr.bf16.mxu0 %v4142_v23 }
0x16e4   :  { %4247 = vmatpush1.bf16.msra.mxu0 %v4141_v24 }
0x16e5   :  { %4248 = vmatprep.subr.bf16.mxu0 %v4144_v25 }
0x16e8   :  { %4249 = vmatpush1.bf16.msra.mxu0 %v4143_v27 }
0x16e9   :  { %4250 = vmatprep.subr.bf16.mxu0 %v4146_v28 }
0x16ec   :  { %4251 = vmatpush1.bf16.msra.mxu0 %v4145_v29 }
0x16ed   :  { %4252 = vmatprep.subr.bf16.mxu0 %v4148_v30 }
0x16f0   :  { %4253 = vmatpush1.bf16.msra.mxu0 %v4147_v32 }
0x16f1   :  { %4254 = vmatprep.subr.bf16.mxu0 %v4150_v33 }
0x16f4   :  { %4255 = vmatpush1.bf16.msra.mxu0 %v4149_v34 }
0x16f5   :  { %4265 = vmatprep.subr.bf16.mxu0 %v4152_v35 }
0x16f7   :  { %4257 = vmatmul.mubr.bf16.vlgmr.msra.gmra.mrb[32].mxu0 %v6295_v36 }
0x16f8   :  { %4266 = vmatpush1.bf16.msra.mxu0 %v4151_v41  ;;  %4297 = vmatprep.mubr.bf16.mxu0 %v4219_v40 }
0x16f9   :  { %4267 = vmatprep.subr.bf16.mxu0 %v4154_v42 }
0x16fc   :  { %4268 = vmatpush1.bf16.msra.mxu0 %v4153_v43 }
0x16fd   :  { %4269 = vmatprep.subr.bf16.mxu0 %v4156_v37 }
0x1700   :  { %4270 = vmatpush1.bf16.msra.mxu0 %v4155_v44 }
0x1701   :  { %4271 = vmatprep.subr.bf16.mxu0 %v4158_v45 }
0x1704   :  { %4272 = vmatpush1.bf16.msra.mxu0 %v4157_v46 }
0x1705   :  { %4273 = vmatprep.subr.bf16.mxu0 %v4160_v47 }
0x1708   :  { %4274 = vmatpush1.bf16.msra.mxu0 %v4159_v48 }
0x1709   :  { %4275 = vmatprep.subr.bf16.mxu0 %v4162_v49 }
0x170c   :  { %4276 = vmatpush1.bf16.msra.mxu0 %v4161_v50 }
0x170d   :  { %4277 = vmatprep.subr.bf16.mxu0 %v4164_v26 }
0x1710   :  { %4278 = vmatpush1.bf16.msra.mxu0 %v4163_v51 }
0x1711   :  { %4279 = vmatprep.subr.bf16.mxu0 %v4166_v52 }
0x1714   :  { %4280 = vmatpush1.bf16.msra.mxu0 %v4165_v53 }
0x1715   :  { %4281 = vmatprep.subr.bf16.mxu0 %v4168_v54 }
0x1718   :  { %4282 = vmatpush1.bf16.msra.mxu0 %v4167_v55 }
0x1719   :  { %4283 = vmatprep.subr.bf16.mxu0 %v4170_v56 }
0x171c   :  { %4284 = vmatpush1.bf16.msra.mxu0 %v4169_v57 }
0x171d   :  { %4285 = vmatprep.subr.bf16.mxu0 %v4172_v58 }
0x1720   :  { %4286 = vmatpush1.bf16.msra.mxu0 %v4171_v59 }
0x1721   :  { %4287 = vmatprep.subr.bf16.mxu0 %v4174_v60 }
0x1724   :  { %4288 = vmatpush1.bf16.msra.mxu0 %v4173_v61 }
0x1725   :  { %4289 = vmatprep.subr.bf16.mxu0 %v4176_v62 }
0x1728   :  { %4290 = vmatpush1.bf16.msra.mxu0 %v4175_v63 }
0x1729   :  { %4291 = vmatprep.subr.bf16.mxu0 %v4178_v0 }
0x172c   :  { %4292 = vmatpush1.bf16.msra.mxu0 %v4177_v1 }
0x172d   :  { %4293 = vmatprep.subr.bf16.mxu0 %v4180_v2 }
0x1730   :  { %4294 = vmatpush1.bf16.msra.mxu0 %v4179_v3 }
0x1731   :  { %4295 = vmatprep.subr.bf16.mxu0 %v4182_v4 }
0x1734   :  { %4296 = vmatpush1.bf16.msra.mxu0 %v4181_v5 }
0x1737   :  { %4298 = vmatmul.mubr.bf16.vlgmr.msra.gmra.mrb[32].mxu0 %v4218_v6 }
0x180a   :  { %v4299_v10 = vpop.f32.mrb[32].mxu0 }
0x180b   :  { %v5431_v11 = vadd.f32 %v4299_v10, %v4188_v8  ;;  %v4301_v12 = vpop.f32.mrb[33].mxu0 }
0x180c   :  { %v5432_v13 = vadd.f32 %v4301_v12, %v4192_v9  ;;  %v4303_v14 = vpop.f32.mrb[34].mxu0 }
0x180d   :  { %v4306_v15 = vmax.f32 %v5431_v11, 0.0  ;;  %v4304_v16 = vpop.f32.mrb[35].mxu0 }
0x180e   :  { %v4307_v17 = vmax.f32 %v5432_v13, 0.0 }
0x1810   :  { %v5384_v18 = vpack.c.bf16 %v4307_v17, %v4306_v15 }
0x1812   :  { %v4319_v19 = vrot.slane %v5384_v18, %v5840_v31 }
0x1814   :  { %5385 = vst.sshfl [vmem:[#allocation4] sm:$0x5 pattern:$0x73625140] %v4319_v19 }
0x1815   :  { %5635 = dma.done.wait [#allocation6 + $0x1], 8192 }
0x1816   :  { %5636 = vsyncadd [#allocation6 + $0x1], 4294959104  ;;  %4346 = sst [smem:[#allocation48]] %s5646_s24  ;;  %s5675_s14 = smov [#allocation47]  }
0x1817   :  { %4348 = sst [smem:[#allocation48 + $0x1]] %s5646_s24 }
0x1818   :  { %4350 = sst [smem:[#allocation48 + $0x2]] %s5647_s2 }
0x1819   :  { %4352 = sst [smem:[#allocation48 + $0x3]] %s5648_s26 }
0x181a   :  { %4354 = sst [smem:[#allocation48 + $0x4]] %s6456_s21 }
0x181b   :  { %4356 = sst [smem:[#allocation48 + $0x5]] %s5647_s2 }
0x181c   :  { %4358 = sst [smem:[#allocation48 + $0x6]] %s6456_s21 }
0x181d   :  { %4360 = sst [smem:[#allocation48 + $0x7]] %s5648_s26 }
0x181e   :  { %4362 = sst [smem:[#allocation48 + $0x8]] %s6457_s30 }
0x181f   :  { %4364 = dma.general %s6423_s9, 8192, %s5812_s3, %s5652_s4, %s5675_s14, [#allocation48], %s5808_s29, 0  }
0x1820   :  { %v4367_v20 = vld [vmem:[#allocation2 + $0x208] sm:$0xff]  ;;  %v4366_v21 = vld [vmem:[#allocation2 + $0x200] sm:$0xff]  ;;  %v4369_v22 = vld [vmem:[#allocation2 + $0x218] sm:$0xff] }
0x1821   :  { %4471 = vmatprep.subr.bf16.mxu1 %v4367_v20  ;;  %v4368_v23 = vld [vmem:[#allocation2 + $0x210] sm:$0xff]  ;;  %v4371_v24 = vld [vmem:[#allocation2 + $0x228] sm:$0xff]  ;;  %v4370_v25 = vld [vmem:[#allocation2 + $0x220] sm:$0xff] }
0x1822   :  { %4472 = vmatpush1.bf16.msra.mxu1 %v4366_v21  ;;  %v4373_v27 = vld [vmem:[#allocation2 + $0x238] sm:$0xff]  ;;  %v5388_v28 = vld.sshfl [vmem:[#allocation3] sm:$0x33 pattern:$0x75316420]  ;;  %v4372_v29 = vld [vmem:[#allocation2 + $0x230] sm:$0xff] }
0x1823   :  { %4473 = vmatprep.subr.bf16.mxu1 %v4369_v22  ;;  %v4450_v30 = vcombine.high %v5388_v28, %v5388_v28  ;;  %v4375_v32 = vld [vmem:[#allocation2 + $0x248] sm:$0xff]  ;;  %v4374_v34 = vld [vmem:[#allocation2 + $0x240] sm:$0xff]  ;;  %v4377_v35 = vld [vmem:[#allocation2 + $0x258] sm:$0xff]  ;;  %v6323_v59 = vrot.slane %v5388_v28, %v5840_v31 }
0x1824   :  { %v4376_v36 = vld [vmem:[#allocation2 + $0x250] sm:$0xff]  ;;  %v4379_v40 = vld [vmem:[#allocation2 + $0x268] sm:$0xff]  ;;  %v4378_v41 = vld [vmem:[#allocation2 + $0x260] sm:$0xff] }
0x1825   :  { %v4464_v33 = vrot.slane %v4450_v30, %v5840_v31  ;;  %v4381_v42 = vld [vmem:[#allocation2 + $0x278] sm:$0xff]  ;;  %v4380_v43 = vld [vmem:[#allocation2 + $0x270] sm:$0xff]  ;;  %v4383_v37 = vld [vmem:[#allocation2 + $0x288] sm:$0xff] }
0x1826   :  { %4474 = vmatpush1.bf16.msra.mxu1 %v4368_v23  ;;  %v4382_v44 = vld [vmem:[#allocation2 + $0x280] sm:$0xff]  ;;  %v4385_v45 = vld [vmem:[#allocation2 + $0x298] sm:$0xff]  ;;  %v4384_v46 = vld [vmem:[#allocation2 + $0x290] sm:$0xff] }
0x1827   :  { %4475 = vmatprep.subr.bf16.mxu1 %v4371_v24  ;;  %4503 = vmatprep.mubr.bf16.mxu1 %v4464_v33  ;;  %v4387_v47 = vld [vmem:[#allocation2 + $0x2a8] sm:$0xff]  ;;  %v4386_v48 = vld [vmem:[#allocation2 + $0x2a0] sm:$0xff]  ;;  %v4389_v49 = vld [vmem:[#allocation2 + $0x2b8] sm:$0xff]  ;;  %v4466_v60 = vcombine.high %v4464_v33, %v4464_v33 }
0x1828   :  { %v4388_v50 = vld [vmem:[#allocation2 + $0x2b0] sm:$0xff]  ;;  %v4391_v26 = vld [vmem:[#allocation2 + $0x2c8] sm:$0xff]  ;;  %v4390_v51 = vld [vmem:[#allocation2 + $0x2c0] sm:$0xff] }
0x1829   :  { %v4393_v52 = vld [vmem:[#allocation2 + $0x2d8] sm:$0xff]  ;;  %v4392_v53 = vld [vmem:[#allocation2 + $0x2d0] sm:$0xff]  ;;  %v4395_v54 = vld [vmem:[#allocation2 + $0x2e8] sm:$0xff] }
0x182a   :  { %4476 = vmatpush1.bf16.msra.mxu1 %v4370_v25  ;;  %v4394_v55 = vld [vmem:[#allocation2 + $0x2e0] sm:$0xff]  ;;  %v4397_v56 = vld [vmem:[#allocation2 + $0x2f8] sm:$0xff]  ;;  %v4396_v57 = vld [vmem:[#allocation2 + $0x2f0] sm:$0xff] }
0x182b   :  { %4477 = vmatprep.subr.bf16.mxu1 %v4373_v27  ;;  %v4399_v58 = vld [vmem:[#allocation2 + $0x308] sm:$0xff]  ;;  %v4398_v61 = vld [vmem:[#allocation2 + $0x300] sm:$0xff]  ;;  %v4401_v62 = vld [vmem:[#allocation2 + $0x318] sm:$0xff] }
0x182c   :  { %v4400_v63 = vld [vmem:[#allocation2 + $0x310] sm:$0xff]  ;;  %v4403_v0 = vld [vmem:[#allocation2 + $0x328] sm:$0xff]  ;;  %v4402_v1 = vld [vmem:[#allocation2 + $0x320] sm:$0xff] }
0x182d   :  { %v4405_v2 = vld [vmem:[#allocation2 + $0x338] sm:$0xff]  ;;  %v4404_v3 = vld [vmem:[#allocation2 + $0x330] sm:$0xff]  ;;  %v4407_v4 = vld [vmem:[#allocation2 + $0x348] sm:$0xff] }
0x182e   :  { %4478 = vmatpush1.bf16.msra.mxu1 %v4372_v29  ;;  %v4406_v5 = vld [vmem:[#allocation2 + $0x340] sm:$0xff]  ;;  %v4409_v6 = vld [vmem:[#allocation2 + $0x358] sm:$0xff]  ;;  %v4408_v7 = vld [vmem:[#allocation2 + $0x350] sm:$0xff]  ;;  %v4465_v29 = vcombine.high %v6323_v59, %v6323_v59 }
0x182f   :  { %4479 = vmatprep.subr.bf16.mxu1 %v4375_v32  ;;  %v4411_v8 = vld [vmem:[#allocation2 + $0x368] sm:$0xff]  ;;  %v4410_v9 = vld [vmem:[#allocation2 + $0x360] sm:$0xff]  ;;  %v4413_v10 = vld [vmem:[#allocation2 + $0x378] sm:$0xff] }
0x1830   :  { %v4412_v11 = vld [vmem:[#allocation2 + $0x370] sm:$0xff]  ;;  %v4415_v12 = vld [vmem:[#allocation2 + $0x388] sm:$0xff]  ;;  %v4414_v13 = vld [vmem:[#allocation2 + $0x380] sm:$0xff] }
0x1831   :  { %v4417_v14 = vld [vmem:[#allocation2 + $0x398] sm:$0xff]  ;;  %v4416_v15 = vld [vmem:[#allocation2 + $0x390] sm:$0xff]  ;;  %v4419_v16 = vld [vmem:[#allocation2 + $0x3a8] sm:$0xff] }
0x1832   :  { %4480 = vmatpush1.bf16.msra.mxu1 %v4374_v34  ;;  %v4418_v17 = vld [vmem:[#allocation2 + $0x3a0] sm:$0xff]  ;;  %v4421_v18 = vld [vmem:[#allocation2 + $0x3b8] sm:$0xff]  ;;  %v4420_v19 = vld [vmem:[#allocation2 + $0x3b0] sm:$0xff] }
0x1833   :  { %4481 = vmatprep.subr.bf16.mxu1 %v4377_v35  ;;  %v4423_v20 = vld [vmem:[#allocation2 + $0x3c8] sm:$0xff]  ;;  %v4422_v21 = vld [vmem:[#allocation2 + $0x3c0] sm:$0xff]  ;;  %v4425_v22 = vld [vmem:[#allocation2 + $0x3d8] sm:$0xff] }
0x1834   :  { %v4424_v23 = vld [vmem:[#allocation2 + $0x3d0] sm:$0xff]  ;;  %v4427_v24 = vld [vmem:[#allocation2 + $0x3e8] sm:$0xff]  ;;  %v4426_v25 = vld [vmem:[#allocation2 + $0x3e0] sm:$0xff] }
0x1835   :  { %v4429_v27 = vld [vmem:[#allocation2 + $0x3f8] sm:$0xff]  ;;  %v4428_v28 = vld [vmem:[#allocation2 + $0x3f0] sm:$0xff]  ;;  %v4430_v30 = vld [vmem:[%s6432_s18 + $0x2] sm:$0x3] }
0x1836   :  { %4482 = vmatpush1.bf16.msra.mxu1 %v4376_v36  ;;  %v4435_v32 = vrot.slane %v4430_v30, %v5875_v38  ;;  %v4439_v33 = vrot.slane %v4430_v30, %v5878_v39 }
0x1837   :  { %4483 = vmatprep.subr.bf16.mxu1 %v4379_v40 }
0x183a   :  { %4484 = vmatpush1.bf16.msra.mxu1 %v4378_v41 }
0x183b   :  { %4485 = vmatprep.subr.bf16.mxu1 %v4381_v42 }
0x183e   :  { %4486 = vmatpush1.bf16.msra.mxu1 %v4380_v43 }
0x183f   :  { %4487 = vmatprep.subr.bf16.mxu1 %v4383_v37 }
0x1842   :  { %4488 = vmatpush1.bf16.msra.mxu1 %v4382_v44 }
0x1843   :  { %4489 = vmatprep.subr.bf16.mxu1 %v4385_v45 }
0x1846   :  { %4490 = vmatpush1.bf16.msra.mxu1 %v4384_v46 }
0x1847   :  { %4491 = vmatprep.subr.bf16.mxu1 %v4387_v47 }
0x184a   :  { %4492 = vmatpush1.bf16.msra.mxu1 %v4386_v48 }
0x184b   :  { %4493 = vmatprep.subr.bf16.mxu1 %v4389_v49 }
0x184e   :  { %4494 = vmatpush1.bf16.msra.mxu1 %v4388_v50 }
0x184f   :  { %4495 = vmatprep.subr.bf16.mxu1 %v4391_v26 }
0x1852   :  { %4496 = vmatpush1.bf16.msra.mxu1 %v4390_v51 }
0x1853   :  { %4497 = vmatprep.subr.bf16.mxu1 %v4393_v52 }
0x1856   :  { %4498 = vmatpush1.bf16.msra.mxu1 %v4392_v53 }
0x1857   :  { %4499 = vmatprep.subr.bf16.mxu1 %v4395_v54 }
0x185a   :  { %4500 = vmatpush1.bf16.msra.mxu1 %v4394_v55 }
0x185b   :  { %4501 = vmatprep.subr.bf16.mxu1 %v4397_v56 }
0x185e   :  { %4502 = vmatpush1.bf16.msra.mxu1 %v4396_v57 }
0x185f   :  { %4512 = vmatprep.subr.bf16.mxu1 %v4399_v58 }
0x1861   :  { %4504 = vmatmul.mubr.bf16.vlgmr.msra.gmra.mrb[36].mxu1 %v6323_v59 }
0x1862   :  { %4513 = vmatpush1.bf16.msra.mxu1 %v4398_v61  ;;  %4544 = vmatprep.mubr.bf16.mxu1 %v4466_v60 }
0x1863   :  { %4514 = vmatprep.subr.bf16.mxu1 %v4401_v62 }
0x1866   :  { %4515 = vmatpush1.bf16.msra.mxu1 %v4400_v63 }
0x1867   :  { %4516 = vmatprep.subr.bf16.mxu1 %v4403_v0 }
0x186a   :  { %4517 = vmatpush1.bf16.msra.mxu1 %v4402_v1 }
0x186b   :  { %4518 = vmatprep.subr.bf16.mxu1 %v4405_v2 }
0x186e   :  { %4519 = vmatpush1.bf16.msra.mxu1 %v4404_v3 }
0x186f   :  { %4520 = vmatprep.subr.bf16.mxu1 %v4407_v4 }
0x1872   :  { %4521 = vmatpush1.bf16.msra.mxu1 %v4406_v5 }
0x1873   :  { %4522 = vmatprep.subr.bf16.mxu1 %v4409_v6 }
0x1876   :  { %4523 = vmatpush1.bf16.msra.mxu1 %v4408_v7 }
0x1877   :  { %4524 = vmatprep.subr.bf16.mxu1 %v4411_v8 }
0x187a   :  { %4525 = vmatpush1.bf16.msra.mxu1 %v4410_v9 }
0x187b   :  { %4526 = vmatprep.subr.bf16.mxu1 %v4413_v10 }
0x187e   :  { %4527 = vmatpush1.bf16.msra.mxu1 %v4412_v11 }
0x187f   :  { %4528 = vmatprep.subr.bf16.mxu1 %v4415_v12 }
0x1882   :  { %4529 = vmatpush1.bf16.msra.mxu1 %v4414_v13 }
0x1883   :  { %4530 = vmatprep.subr.bf16.mxu1 %v4417_v14 }
0x1886   :  { %4531 = vmatpush1.bf16.msra.mxu1 %v4416_v15 }
0x1887   :  { %4532 = vmatprep.subr.bf16.mxu1 %v4419_v16 }
0x188a   :  { %4533 = vmatpush1.bf16.msra.mxu1 %v4418_v17 }
0x188b   :  { %4534 = vmatprep.subr.bf16.mxu1 %v4421_v18 }
0x188e   :  { %4535 = vmatpush1.bf16.msra.mxu1 %v4420_v19 }
0x188f   :  { %4536 = vmatprep.subr.bf16.mxu1 %v4423_v20 }
0x1892   :  { %4537 = vmatpush1.bf16.msra.mxu1 %v4422_v21 }
0x1893   :  { %4538 = vmatprep.subr.bf16.mxu1 %v4425_v22 }
0x1896   :  { %4539 = vmatpush1.bf16.msra.mxu1 %v4424_v23 }
0x1897   :  { %4540 = vmatprep.subr.bf16.mxu1 %v4427_v24 }
0x189a   :  { %4541 = vmatpush1.bf16.msra.mxu1 %v4426_v25 }
0x189b   :  { %4542 = vmatprep.subr.bf16.mxu1 %v4429_v27 }
0x189e   :  { %4543 = vmatpush1.bf16.msra.mxu1 %v4428_v28 }
0x18a1   :  { %4545 = vmatmul.mubr.bf16.vlgmr.msra.gmra.mrb[36].mxu1 %v4465_v29 }
0x1974   :  { %v4546_v34 = vpop.f32.mrb[36].mxu1 }
0x1975   :  { %v5433_v35 = vadd.f32 %v4546_v34, %v4435_v32  ;;  %v4548_v36 = vpop.f32.mrb[37].mxu1 }
0x1976   :  { %v5434_v40 = vadd.f32 %v4548_v36, %v4439_v33  ;;  %v4550_v41 = vpop.f32.mrb[38].mxu1 }
0x1977   :  { %v4553_v42 = vmax.f32 %v5433_v35, 0.0  ;;  %v4551_v43 = vpop.f32.mrb[39].mxu1 }
0x1978   :  { %v4554_v37 = vmax.f32 %v5434_v40, 0.0 }
0x197a   :  { %v5389_v44 = vpack.c.bf16 %v4554_v37, %v4553_v42 }
0x197c   :  { %v4566_v45 = vrot.slane %v5389_v44, %v5840_v31 }
0x197e   :  { %5390 = vst.sshfl [vmem:[#allocation4 + $0x2] sm:$0x5 pattern:$0x73625140] %v4566_v45 }
0x197f   :  { %5637 = dma.done.wait [#allocation6], 8192 }
0x1980   :  { %5638 = vsyncadd [#allocation6], 4294959104  ;;  %4594 = sst [smem:[#allocation50]] %s5646_s24  ;;  %s4578_s6 = scalar_lea.hbm %s6423_s9, 8192 }
0x1981   :  { %4596 = sst [smem:[#allocation50 + $0x1]] %s5646_s24  ;;  %s5676_s28 = smov [#allocation49]  }
0x1982   :  { %4598 = sst [smem:[#allocation50 + $0x2]] %s5647_s2 }
0x1983   :  { %4600 = sst [smem:[#allocation50 + $0x3]] %s5648_s26 }
0x1984   :  { %4602 = sst [smem:[#allocation50 + $0x4]] %s6456_s21 }
0x1985   :  { %4604 = sst [smem:[#allocation50 + $0x5]] %s5647_s2 }
0x1986   :  { %4606 = sst [smem:[#allocation50 + $0x6]] %s6456_s21 }
0x1987   :  { %4608 = sst [smem:[#allocation50 + $0x7]] %s5648_s26 }
0x1988   :  { %4610 = sst [smem:[#allocation50 + $0x8]] %s6457_s30 }
0x1989   :  { %4612 = dma.general %s4578_s6, 8192, %s5828_s25, %s5655_s5, %s5676_s28, [#allocation50], %s5808_s29, 0  }
0x198a   :  { %v4615_v46 = vld [vmem:[#allocation2 + $0x8] sm:$0xff]  ;;  %v4614_v47 = vld [vmem:[#allocation2] sm:$0xff]  ;;  %v4617_v48 = vld [vmem:[#allocation2 + $0x18] sm:$0xff] }
0x198b   :  { %4719 = vmatprep.subr.bf16.mxu0 %v4615_v46  ;;  %v4616_v49 = vld [vmem:[#allocation2 + $0x10] sm:$0xff]  ;;  %v4619_v50 = vld [vmem:[#allocation2 + $0x28] sm:$0xff]  ;;  %v4618_v26 = vld [vmem:[#allocation2 + $0x20] sm:$0xff] }
0x198c   :  { %4720 = vmatpush1.bf16.msra.mxu0 %v4614_v47  ;;  %v4621_v51 = vld [vmem:[#allocation2 + $0x38] sm:$0xff]  ;;  %v5393_v52 = vld.sshfl [vmem:[#allocation4] sm:$0x33 pattern:$0x75316420]  ;;  %v4620_v53 = vld [vmem:[#allocation2 + $0x30] sm:$0xff] }
0x198d   :  { %4721 = vmatprep.subr.bf16.mxu0 %v4617_v48  ;;  %v4698_v54 = vcombine.high %v5393_v52, %v5393_v52  ;;  %v4623_v55 = vld [vmem:[#allocation2 + $0x48] sm:$0xff]  ;;  %v4622_v57 = vld [vmem:[#allocation2 + $0x40] sm:$0xff]  ;;  %v4625_v58 = vld [vmem:[#allocation2 + $0x58] sm:$0xff]  ;;  %v6351_v17 = vrot.slane %v5393_v52, %v5840_v31 }
0x198e   :  { %v4624_v59 = vld [vmem:[#allocation2 + $0x50] sm:$0xff]  ;;  %v4627_v60 = vld [vmem:[#allocation2 + $0x68] sm:$0xff]  ;;  %v4626_v61 = vld [vmem:[#allocation2 + $0x60] sm:$0xff] }
0x198f   :  { %v4712_v56 = vrot.slane %v4698_v54, %v5840_v31  ;;  %v4629_v62 = vld [vmem:[#allocation2 + $0x78] sm:$0xff]  ;;  %v4628_v63 = vld [vmem:[#allocation2 + $0x70] sm:$0xff]  ;;  %v4631_v0 = vld [vmem:[#allocation2 + $0x88] sm:$0xff] }
0x1990   :  { %4722 = vmatpush1.bf16.msra.mxu0 %v4616_v49  ;;  %v4630_v1 = vld [vmem:[#allocation2 + $0x80] sm:$0xff]  ;;  %v4633_v2 = vld [vmem:[#allocation2 + $0x98] sm:$0xff]  ;;  %v4632_v3 = vld [vmem:[#allocation2 + $0x90] sm:$0xff] }
0x1991   :  { %4723 = vmatprep.subr.bf16.mxu0 %v4619_v50  ;;  %4751 = vmatprep.mubr.bf16.mxu0 %v4712_v56  ;;  %v4635_v4 = vld [vmem:[#allocation2 + $0xa8] sm:$0xff]  ;;  %v4634_v5 = vld [vmem:[#allocation2 + $0xa0] sm:$0xff]  ;;  %v4637_v6 = vld [vmem:[#allocation2 + $0xb8] sm:$0xff]  ;;  %v4714_v18 = vcombine.high %v4712_v56, %v4712_v56 }
0x1992   :  { %v4636_v7 = vld [vmem:[#allocation2 + $0xb0] sm:$0xff]  ;;  %v4639_v8 = vld [vmem:[#allocation2 + $0xc8] sm:$0xff]  ;;  %v4638_v9 = vld [vmem:[#allocation2 + $0xc0] sm:$0xff] }
0x1993   :  { %v4641_v10 = vld [vmem:[#allocation2 + $0xd8] sm:$0xff]  ;;  %v4640_v11 = vld [vmem:[#allocation2 + $0xd0] sm:$0xff]  ;;  %v4643_v12 = vld [vmem:[#allocation2 + $0xe8] sm:$0xff] }
0x1994   :  { %4724 = vmatpush1.bf16.msra.mxu0 %v4618_v26  ;;  %v4642_v13 = vld [vmem:[#allocation2 + $0xe0] sm:$0xff]  ;;  %v4645_v14 = vld [vmem:[#allocation2 + $0xf8] sm:$0xff]  ;;  %v4644_v15 = vld [vmem:[#allocation2 + $0xf0] sm:$0xff] }
0x1995   :  { %4725 = vmatprep.subr.bf16.mxu0 %v4621_v51  ;;  %v4647_v16 = vld [vmem:[#allocation2 + $0x108] sm:$0xff]  ;;  %v4646_v19 = vld [vmem:[#allocation2 + $0x100] sm:$0xff]  ;;  %v4649_v20 = vld [vmem:[#allocation2 + $0x118] sm:$0xff] }
0x1996   :  { %v4648_v21 = vld [vmem:[#allocation2 + $0x110] sm:$0xff]  ;;  %v4651_v22 = vld [vmem:[#allocation2 + $0x128] sm:$0xff]  ;;  %v4650_v23 = vld [vmem:[#allocation2 + $0x120] sm:$0xff] }
0x1997   :  { %v4653_v24 = vld [vmem:[#allocation2 + $0x138] sm:$0xff]  ;;  %v4652_v25 = vld [vmem:[#allocation2 + $0x130] sm:$0xff]  ;;  %v4655_v27 = vld [vmem:[#allocation2 + $0x148] sm:$0xff] }
0x1998   :  { %4726 = vmatpush1.bf16.msra.mxu0 %v4620_v53  ;;  %v4654_v28 = vld [vmem:[#allocation2 + $0x140] sm:$0xff]  ;;  %v4657_v29 = vld [vmem:[#allocation2 + $0x158] sm:$0xff]  ;;  %v4656_v30 = vld [vmem:[#allocation2 + $0x150] sm:$0xff]  ;;  %v4713_v53 = vcombine.high %v6351_v17, %v6351_v17 }
0x1999   :  { %4727 = vmatprep.subr.bf16.mxu0 %v4623_v55  ;;  %v4659_v32 = vld [vmem:[#allocation2 + $0x168] sm:$0xff]  ;;  %v4658_v33 = vld [vmem:[#allocation2 + $0x160] sm:$0xff]  ;;  %v4661_v34 = vld [vmem:[#allocation2 + $0x178] sm:$0xff] }
0x199a   :  { %v4660_v35 = vld [vmem:[#allocation2 + $0x170] sm:$0xff]  ;;  %v4663_v36 = vld [vmem:[#allocation2 + $0x188] sm:$0xff]  ;;  %v4662_v40 = vld [vmem:[#allocation2 + $0x180] sm:$0xff] }
0x199b   :  { %v4665_v41 = vld [vmem:[#allocation2 + $0x198] sm:$0xff]  ;;  %v4664_v42 = vld [vmem:[#allocation2 + $0x190] sm:$0xff]  ;;  %v4667_v43 = vld [vmem:[#allocation2 + $0x1a8] sm:$0xff] }
0x199c   :  { %4728 = vmatpush1.bf16.msra.mxu0 %v4622_v57  ;;  %v4666_v37 = vld [vmem:[#allocation2 + $0x1a0] sm:$0xff]  ;;  %v4669_v44 = vld [vmem:[#allocation2 + $0x1b8] sm:$0xff]  ;;  %v4668_v45 = vld [vmem:[#allocation2 + $0x1b0] sm:$0xff] }
0x199d   :  { %4729 = vmatprep.subr.bf16.mxu0 %v4625_v58  ;;  %v4671_v46 = vld [vmem:[#allocation2 + $0x1c8] sm:$0xff]  ;;  %v4670_v47 = vld [vmem:[#allocation2 + $0x1c0] sm:$0xff]  ;;  %v4673_v48 = vld [vmem:[#allocation2 + $0x1d8] sm:$0xff] }
0x199e   :  { %v4672_v49 = vld [vmem:[#allocation2 + $0x1d0] sm:$0xff]  ;;  %v4675_v50 = vld [vmem:[#allocation2 + $0x1e8] sm:$0xff]  ;;  %v4674_v26 = vld [vmem:[#allocation2 + $0x1e0] sm:$0xff] }
0x199f   :  { %v4677_v51 = vld [vmem:[#allocation2 + $0x1f8] sm:$0xff]  ;;  %v4676_v52 = vld [vmem:[#allocation2 + $0x1f0] sm:$0xff]  ;;  %v4678_v54 = vld [vmem:[%s6433_s19] sm:$0x3] }
0x19a0   :  { %4730 = vmatpush1.bf16.msra.mxu0 %v4624_v59  ;;  %v4683_v55 = vrot.slane %v4678_v54, %v5875_v38  ;;  %v4687_v56 = vrot.slane %v4678_v54, %v5878_v39 }
0x19a1   :  { %4731 = vmatprep.subr.bf16.mxu0 %v4627_v60 }
0x19a4   :  { %4732 = vmatpush1.bf16.msra.mxu0 %v4626_v61 }
0x19a5   :  { %4733 = vmatprep.subr.bf16.mxu0 %v4629_v62 }
0x19a8   :  { %4734 = vmatpush1.bf16.msra.mxu0 %v4628_v63 }
0x19a9   :  { %4735 = vmatprep.subr.bf16.mxu0 %v4631_v0 }
0x19ac   :  { %4736 = vmatpush1.bf16.msra.mxu0 %v4630_v1 }
0x19ad   :  { %4737 = vmatprep.subr.bf16.mxu0 %v4633_v2 }
0x19b0   :  { %4738 = vmatpush1.bf16.msra.mxu0 %v4632_v3 }
0x19b1   :  { %4739 = vmatprep.subr.bf16.mxu0 %v4635_v4 }
0x19b4   :  { %4740 = vmatpush1.bf16.msra.mxu0 %v4634_v5 }
0x19b5   :  { %4741 = vmatprep.subr.bf16.mxu0 %v4637_v6 }
0x19b8   :  { %4742 = vmatpush1.bf16.msra.mxu0 %v4636_v7 }
0x19b9   :  { %4743 = vmatprep.subr.bf16.mxu0 %v4639_v8 }
0x19bc   :  { %4744 = vmatpush1.bf16.msra.mxu0 %v4638_v9 }
0x19bd   :  { %4745 = vmatprep.subr.bf16.mxu0 %v4641_v10 }
0x19c0   :  { %4746 = vmatpush1.bf16.msra.mxu0 %v4640_v11 }
0x19c1   :  { %4747 = vmatprep.subr.bf16.mxu0 %v4643_v12 }
0x19c4   :  { %4748 = vmatpush1.bf16.msra.mxu0 %v4642_v13 }
0x19c5   :  { %4749 = vmatprep.subr.bf16.mxu0 %v4645_v14 }
0x19c8   :  { %4750 = vmatpush1.bf16.msra.mxu0 %v4644_v15 }
0x19c9   :  { %4760 = vmatprep.subr.bf16.mxu0 %v4647_v16 }
0x19cb   :  { %4752 = vmatmul.mubr.bf16.vlgmr.msra.gmra.mrb[36].mxu0 %v6351_v17 }
0x19cc   :  { %4761 = vmatpush1.bf16.msra.mxu0 %v4646_v19  ;;  %4792 = vmatprep.mubr.bf16.mxu0 %v4714_v18 }
0x19cd   :  { %4762 = vmatprep.subr.bf16.mxu0 %v4649_v20 }
0x19d0   :  { %4763 = vmatpush1.bf16.msra.mxu0 %v4648_v21 }
0x19d1   :  { %4764 = vmatprep.subr.bf16.mxu0 %v4651_v22 }
0x19d4   :  { %4765 = vmatpush1.bf16.msra.mxu0 %v4650_v23 }
0x19d5   :  { %4766 = vmatprep.subr.bf16.mxu0 %v4653_v24 }
0x19d8   :  { %4767 = vmatpush1.bf16.msra.mxu0 %v4652_v25 }
0x19d9   :  { %4768 = vmatprep.subr.bf16.mxu0 %v4655_v27 }
0x19dc   :  { %4769 = vmatpush1.bf16.msra.mxu0 %v4654_v28 }
0x19dd   :  { %4770 = vmatprep.subr.bf16.mxu0 %v4657_v29 }
0x19e0   :  { %4771 = vmatpush1.bf16.msra.mxu0 %v4656_v30 }
0x19e1   :  { %4772 = vmatprep.subr.bf16.mxu0 %v4659_v32 }
0x19e4   :  { %4773 = vmatpush1.bf16.msra.mxu0 %v4658_v33 }
0x19e5   :  { %4774 = vmatprep.subr.bf16.mxu0 %v4661_v34 }
0x19e8   :  { %4775 = vmatpush1.bf16.msra.mxu0 %v4660_v35 }
0x19e9   :  { %4776 = vmatprep.subr.bf16.mxu0 %v4663_v36 }
0x19ec   :  { %4777 = vmatpush1.bf16.msra.mxu0 %v4662_v40 }
0x19ed   :  { %4778 = vmatprep.subr.bf16.mxu0 %v4665_v41 }
0x19f0   :  { %4779 = vmatpush1.bf16.msra.mxu0 %v4664_v42 }
0x19f1   :  { %4780 = vmatprep.subr.bf16.mxu0 %v4667_v43 }
0x19f4   :  { %4781 = vmatpush1.bf16.msra.mxu0 %v4666_v37 }
0x19f5   :  { %4782 = vmatprep.subr.bf16.mxu0 %v4669_v44 }
0x19f8   :  { %4783 = vmatpush1.bf16.msra.mxu0 %v4668_v45 }
0x19f9   :  { %4784 = vmatprep.subr.bf16.mxu0 %v4671_v46 }
0x19fc   :  { %4785 = vmatpush1.bf16.msra.mxu0 %v4670_v47 }
0x19fd   :  { %4786 = vmatprep.subr.bf16.mxu0 %v4673_v48 }
0x1a00   :  { %4787 = vmatpush1.bf16.msra.mxu0 %v4672_v49 }
0x1a01   :  { %4788 = vmatprep.subr.bf16.mxu0 %v4675_v50 }
0x1a04   :  { %4789 = vmatpush1.bf16.msra.mxu0 %v4674_v26 }
0x1a05   :  { %4790 = vmatprep.subr.bf16.mxu0 %v4677_v51 }
0x1a08   :  { %4791 = vmatpush1.bf16.msra.mxu0 %v4676_v52 }
0x1a0b   :  { %4793 = vmatmul.mubr.bf16.vlgmr.msra.gmra.mrb[36].mxu0 %v4713_v53 }
0x1ade   :  { %v4794_v57 = vpop.f32.mrb[36].mxu0 }
0x1adf   :  { %v5435_v58 = vadd.f32 %v4794_v57, %v4683_v55  ;;  %v4796_v59 = vpop.f32.mrb[37].mxu0 }
0x1ae0   :  { %v5436_v60 = vadd.f32 %v4796_v59, %v4687_v56  ;;  %v4798_v61 = vpop.f32.mrb[38].mxu0 }
0x1ae1   :  { %v4801_v62 = vmax.f32 %v5435_v58, 0.0  ;;  %v4799_v63 = vpop.f32.mrb[39].mxu0 }
0x1ae2   :  { %v4802_v0 = vmax.f32 %v5436_v60, 0.0 }
0x1ae4   :  { %v5394_v1 = vpack.c.bf16 %v4802_v0, %v4801_v62 }
0x1ae6   :  { %v4814_v2 = vrot.slane %v5394_v1, %v5840_v31 }
0x1ae8   :  { %5395 = vst.sshfl [vmem:[#allocation3] sm:$0x5 pattern:$0x73625140] %v4814_v2 }
0x1ae9   :  { %5639 = dma.done.wait [#allocation6 + $0x1], 8192 }
0x1aea   :  { %5640 = vsyncadd [#allocation6 + $0x1], 4294959104  ;;  %4841 = sst [smem:[#allocation52]] %s5646_s24  ;;  %s5677_s5 = smov [#allocation51]  }
0x1aeb   :  { %4843 = sst [smem:[#allocation52 + $0x1]] %s5646_s24 }
0x1aec   :  { %4845 = sst [smem:[#allocation52 + $0x2]] %s5647_s2 }
0x1aed   :  { %4847 = sst [smem:[#allocation52 + $0x3]] %s5648_s26 }
0x1aee   :  { %4849 = sst [smem:[#allocation52 + $0x4]] %s6456_s21 }
0x1aef   :  { %4851 = sst [smem:[#allocation52 + $0x5]] %s5647_s2 }
0x1af0   :  { %4853 = sst [smem:[#allocation52 + $0x6]] %s6456_s21 }
0x1af1   :  { %4855 = sst [smem:[#allocation52 + $0x7]] %s5648_s26 }
0x1af2   :  { %4857 = sst [smem:[#allocation52 + $0x8]] %s6457_s30 }
0x1af3   :  { %4859 = dma.general %s6424_s10, 8192, %s5812_s3, %s5652_s4, %s5677_s5, [#allocation52], %s5808_s29, 0  }
0x1af4   :  { %v4862_v3 = vld [vmem:[#allocation2 + $0x208] sm:$0xff]  ;;  %v4861_v4 = vld [vmem:[#allocation2 + $0x200] sm:$0xff]  ;;  %v4864_v5 = vld [vmem:[#allocation2 + $0x218] sm:$0xff] }
0x1af5   :  { %4966 = vmatprep.subr.bf16.mxu1 %v4862_v3  ;;  %v4863_v6 = vld [vmem:[#allocation2 + $0x210] sm:$0xff]  ;;  %v4866_v7 = vld [vmem:[#allocation2 + $0x228] sm:$0xff]  ;;  %v4865_v8 = vld [vmem:[#allocation2 + $0x220] sm:$0xff] }
0x1af6   :  { %4967 = vmatpush1.bf16.msra.mxu1 %v4861_v4  ;;  %v4868_v9 = vld [vmem:[#allocation2 + $0x238] sm:$0xff]  ;;  %v5398_v10 = vld.sshfl [vmem:[#allocation4] sm:$0x33 pattern:$0x75316420]  ;;  %v4867_v11 = vld [vmem:[#allocation2 + $0x230] sm:$0xff] }
0x1af7   :  { %4968 = vmatprep.subr.bf16.mxu1 %v4864_v5  ;;  %v4945_v12 = vcombine.high %v5398_v10, %v5398_v10  ;;  %v4870_v13 = vld [vmem:[#allocation2 + $0x248] sm:$0xff]  ;;  %v4869_v15 = vld [vmem:[#allocation2 + $0x240] sm:$0xff]  ;;  %v4872_v16 = vld [vmem:[#allocation2 + $0x258] sm:$0xff]  ;;  %v6379_v37 = vrot.slane %v5398_v10, %v5840_v31 }
0x1af8   :  { %v4871_v17 = vld [vmem:[#allocation2 + $0x250] sm:$0xff]  ;;  %v4874_v18 = vld [vmem:[#allocation2 + $0x268] sm:$0xff]  ;;  %v4873_v19 = vld [vmem:[#allocation2 + $0x260] sm:$0xff] }
0x1af9   :  { %v4959_v14 = vrot.slane %v4945_v12, %v5840_v31  ;;  %v4876_v20 = vld [vmem:[#allocation2 + $0x278] sm:$0xff]  ;;  %v4875_v21 = vld [vmem:[#allocation2 + $0x270] sm:$0xff]  ;;  %v4878_v22 = vld [vmem:[#allocation2 + $0x288] sm:$0xff] }
0x1afa   :  { %4969 = vmatpush1.bf16.msra.mxu1 %v4863_v6  ;;  %v4877_v23 = vld [vmem:[#allocation2 + $0x280] sm:$0xff]  ;;  %v4880_v24 = vld [vmem:[#allocation2 + $0x298] sm:$0xff]  ;;  %v4879_v25 = vld [vmem:[#allocation2 + $0x290] sm:$0xff] }
0x1afb   :  { %4970 = vmatprep.subr.bf16.mxu1 %v4866_v7  ;;  %4998 = vmatprep.mubr.bf16.mxu1 %v4959_v14  ;;  %v4882_v27 = vld [vmem:[#allocation2 + $0x2a8] sm:$0xff]  ;;  %v4881_v28 = vld [vmem:[#allocation2 + $0x2a0] sm:$0xff]  ;;  %v4884_v29 = vld [vmem:[#allocation2 + $0x2b8] sm:$0xff]  ;;  %v4961_v44 = vcombine.high %v4959_v14, %v4959_v14 }
0x1afc   :  { %v4883_v30 = vld [vmem:[#allocation2 + $0x2b0] sm:$0xff]  ;;  %v4886_v32 = vld [vmem:[#allocation2 + $0x2c8] sm:$0xff]  ;;  %v4885_v33 = vld [vmem:[#allocation2 + $0x2c0] sm:$0xff] }
0x1afd   :  { %v4888_v34 = vld [vmem:[#allocation2 + $0x2d8] sm:$0xff]  ;;  %v4887_v35 = vld [vmem:[#allocation2 + $0x2d0] sm:$0xff]  ;;  %v4890_v36 = vld [vmem:[#allocation2 + $0x2e8] sm:$0xff] }
0x1afe   :  { %4971 = vmatpush1.bf16.msra.mxu1 %v4865_v8  ;;  %v4889_v40 = vld [vmem:[#allocation2 + $0x2e0] sm:$0xff]  ;;  %v4892_v41 = vld [vmem:[#allocation2 + $0x2f8] sm:$0xff]  ;;  %v4891_v42 = vld [vmem:[#allocation2 + $0x2f0] sm:$0xff] }
0x1aff   :  { %4972 = vmatprep.subr.bf16.mxu1 %v4868_v9  ;;  %v4894_v43 = vld [vmem:[#allocation2 + $0x308] sm:$0xff]  ;;  %v4893_v45 = vld [vmem:[#allocation2 + $0x300] sm:$0xff]  ;;  %v4896_v46 = vld [vmem:[#allocation2 + $0x318] sm:$0xff] }
0x1b00   :  { %v4895_v47 = vld [vmem:[#allocation2 + $0x310] sm:$0xff]  ;;  %v4898_v48 = vld [vmem:[#allocation2 + $0x328] sm:$0xff]  ;;  %v4897_v49 = vld [vmem:[#allocation2 + $0x320] sm:$0xff] }
0x1b01   :  { %v4900_v50 = vld [vmem:[#allocation2 + $0x338] sm:$0xff]  ;;  %v4899_v26 = vld [vmem:[#allocation2 + $0x330] sm:$0xff]  ;;  %v4902_v51 = vld [vmem:[#allocation2 + $0x348] sm:$0xff] }
0x1b02   :  { %4973 = vmatpush1.bf16.msra.mxu1 %v4867_v11  ;;  %v4901_v52 = vld [vmem:[#allocation2 + $0x340] sm:$0xff]  ;;  %v4904_v53 = vld [vmem:[#allocation2 + $0x358] sm:$0xff]  ;;  %v4903_v54 = vld [vmem:[#allocation2 + $0x350] sm:$0xff]  ;;  %v4960_v11 = vcombine.high %v6379_v37, %v6379_v37 }
0x1b03   :  { %4974 = vmatprep.subr.bf16.mxu1 %v4870_v13  ;;  %v4906_v55 = vld [vmem:[#allocation2 + $0x368] sm:$0xff]  ;;  %v4905_v56 = vld [vmem:[#allocation2 + $0x360] sm:$0xff]  ;;  %v4908_v57 = vld [vmem:[#allocation2 + $0x378] sm:$0xff] }
0x1b04   :  { %v4907_v58 = vld [vmem:[#allocation2 + $0x370] sm:$0xff]  ;;  %v4910_v59 = vld [vmem:[#allocation2 + $0x388] sm:$0xff]  ;;  %v4909_v60 = vld [vmem:[#allocation2 + $0x380] sm:$0xff] }
0x1b05   :  { %v4912_v61 = vld [vmem:[#allocation2 + $0x398] sm:$0xff]  ;;  %v4911_v62 = vld [vmem:[#allocation2 + $0x390] sm:$0xff]  ;;  %v4914_v63 = vld [vmem:[#allocation2 + $0x3a8] sm:$0xff] }
0x1b06   :  { %4975 = vmatpush1.bf16.msra.mxu1 %v4869_v15  ;;  %v4913_v0 = vld [vmem:[#allocation2 + $0x3a0] sm:$0xff]  ;;  %v4916_v1 = vld [vmem:[#allocation2 + $0x3b8] sm:$0xff]  ;;  %v4915_v2 = vld [vmem:[#allocation2 + $0x3b0] sm:$0xff] }
0x1b07   :  { %4976 = vmatprep.subr.bf16.mxu1 %v4872_v16  ;;  %v4918_v3 = vld [vmem:[#allocation2 + $0x3c8] sm:$0xff]  ;;  %v4917_v4 = vld [vmem:[#allocation2 + $0x3c0] sm:$0xff]  ;;  %v4920_v5 = vld [vmem:[#allocation2 + $0x3d8] sm:$0xff] }
0x1b08   :  { %v4919_v6 = vld [vmem:[#allocation2 + $0x3d0] sm:$0xff]  ;;  %v4922_v7 = vld [vmem:[#allocation2 + $0x3e8] sm:$0xff]  ;;  %v4921_v8 = vld [vmem:[#allocation2 + $0x3e0] sm:$0xff] }
0x1b09   :  { %v4924_v9 = vld [vmem:[#allocation2 + $0x3f8] sm:$0xff]  ;;  %v4923_v10 = vld [vmem:[#allocation2 + $0x3f0] sm:$0xff]  ;;  %v4925_v12 = vld [vmem:[%s6433_s19 + $0x2] sm:$0x3] }
0x1b0a   :  { %4977 = vmatpush1.bf16.msra.mxu1 %v4871_v17  ;;  %v4930_v13 = vrot.slane %v4925_v12, %v5875_v38  ;;  %v4934_v14 = vrot.slane %v4925_v12, %v5878_v39 }
0x1b0b   :  { %4978 = vmatprep.subr.bf16.mxu1 %v4874_v18 }
0x1b0e   :  { %4979 = vmatpush1.bf16.msra.mxu1 %v4873_v19 }
0x1b0f   :  { %4980 = vmatprep.subr.bf16.mxu1 %v4876_v20 }
0x1b12   :  { %4981 = vmatpush1.bf16.msra.mxu1 %v4875_v21 }
0x1b13   :  { %4982 = vmatprep.subr.bf16.mxu1 %v4878_v22 }
0x1b16   :  { %4983 = vmatpush1.bf16.msra.mxu1 %v4877_v23 }
0x1b17   :  { %4984 = vmatprep.subr.bf16.mxu1 %v4880_v24 }
0x1b1a   :  { %4985 = vmatpush1.bf16.msra.mxu1 %v4879_v25 }
0x1b1b   :  { %4986 = vmatprep.subr.bf16.mxu1 %v4882_v27 }
0x1b1e   :  { %4987 = vmatpush1.bf16.msra.mxu1 %v4881_v28 }
0x1b1f   :  { %4988 = vmatprep.subr.bf16.mxu1 %v4884_v29 }
0x1b22   :  { %4989 = vmatpush1.bf16.msra.mxu1 %v4883_v30 }
0x1b23   :  { %4990 = vmatprep.subr.bf16.mxu1 %v4886_v32 }
0x1b26   :  { %4991 = vmatpush1.bf16.msra.mxu1 %v4885_v33 }
0x1b27   :  { %4992 = vmatprep.subr.bf16.mxu1 %v4888_v34 }
0x1b2a   :  { %4993 = vmatpush1.bf16.msra.mxu1 %v4887_v35 }
0x1b2b   :  { %4994 = vmatprep.subr.bf16.mxu1 %v4890_v36 }
0x1b2e   :  { %4995 = vmatpush1.bf16.msra.mxu1 %v4889_v40 }
0x1b2f   :  { %4996 = vmatprep.subr.bf16.mxu1 %v4892_v41 }
0x1b32   :  { %4997 = vmatpush1.bf16.msra.mxu1 %v4891_v42 }
0x1b33   :  { %5007 = vmatprep.subr.bf16.mxu1 %v4894_v43 }
0x1b35   :  { %4999 = vmatmul.mubr.bf16.vlgmr.msra.gmra.mrb[40].mxu1 %v6379_v37 }
0x1b36   :  { %5008 = vmatpush1.bf16.msra.mxu1 %v4893_v45  ;;  %5039 = vmatprep.mubr.bf16.mxu1 %v4961_v44 }
0x1b37   :  { %5009 = vmatprep.subr.bf16.mxu1 %v4896_v46 }
0x1b3a   :  { %5010 = vmatpush1.bf16.msra.mxu1 %v4895_v47 }
0x1b3b   :  { %5011 = vmatprep.subr.bf16.mxu1 %v4898_v48 }
0x1b3e   :  { %5012 = vmatpush1.bf16.msra.mxu1 %v4897_v49 }
0x1b3f   :  { %5013 = vmatprep.subr.bf16.mxu1 %v4900_v50 }
0x1b42   :  { %5014 = vmatpush1.bf16.msra.mxu1 %v4899_v26 }
0x1b43   :  { %5015 = vmatprep.subr.bf16.mxu1 %v4902_v51 }
0x1b46   :  { %5016 = vmatpush1.bf16.msra.mxu1 %v4901_v52 }
0x1b47   :  { %5017 = vmatprep.subr.bf16.mxu1 %v4904_v53 }
0x1b4a   :  { %5018 = vmatpush1.bf16.msra.mxu1 %v4903_v54 }
0x1b4b   :  { %5019 = vmatprep.subr.bf16.mxu1 %v4906_v55 }
0x1b4e   :  { %5020 = vmatpush1.bf16.msra.mxu1 %v4905_v56 }
0x1b4f   :  { %5021 = vmatprep.subr.bf16.mxu1 %v4908_v57 }
0x1b52   :  { %5022 = vmatpush1.bf16.msra.mxu1 %v4907_v58 }
0x1b53   :  { %5023 = vmatprep.subr.bf16.mxu1 %v4910_v59 }
0x1b56   :  { %5024 = vmatpush1.bf16.msra.mxu1 %v4909_v60 }
0x1b57   :  { %5025 = vmatprep.subr.bf16.mxu1 %v4912_v61 }
0x1b5a   :  { %5026 = vmatpush1.bf16.msra.mxu1 %v4911_v62 }
0x1b5b   :  { %5027 = vmatprep.subr.bf16.mxu1 %v4914_v63 }
0x1b5e   :  { %5028 = vmatpush1.bf16.msra.mxu1 %v4913_v0 }
0x1b5f   :  { %5029 = vmatprep.subr.bf16.mxu1 %v4916_v1 }
0x1b62   :  { %5030 = vmatpush1.bf16.msra.mxu1 %v4915_v2 }
0x1b63   :  { %5031 = vmatprep.subr.bf16.mxu1 %v4918_v3 }
0x1b66   :  { %5032 = vmatpush1.bf16.msra.mxu1 %v4917_v4 }
0x1b67   :  { %5033 = vmatprep.subr.bf16.mxu1 %v4920_v5 }
0x1b6a   :  { %5034 = vmatpush1.bf16.msra.mxu1 %v4919_v6 }
0x1b6b   :  { %5035 = vmatprep.subr.bf16.mxu1 %v4922_v7 }
0x1b6e   :  { %5036 = vmatpush1.bf16.msra.mxu1 %v4921_v8 }
0x1b6f   :  { %5037 = vmatprep.subr.bf16.mxu1 %v4924_v9 }
0x1b72   :  { %5038 = vmatpush1.bf16.msra.mxu1 %v4923_v10 }
0x1b75   :  { %5040 = vmatmul.mubr.bf16.vlgmr.msra.gmra.mrb[40].mxu1 %v4960_v11 }
0x1c48   :  { %v5041_v15 = vpop.f32.mrb[40].mxu1 }
0x1c49   :  { %v5437_v16 = vadd.f32 %v5041_v15, %v4930_v13  ;;  %v5043_v17 = vpop.f32.mrb[41].mxu1 }
0x1c4a   :  { %v5438_v18 = vadd.f32 %v5043_v17, %v4934_v14  ;;  %v5045_v19 = vpop.f32.mrb[42].mxu1 }
0x1c4b   :  { %v5048_v20 = vmax.f32 %v5437_v16, 0.0  ;;  %v5046_v21 = vpop.f32.mrb[43].mxu1 }
0x1c4c   :  { %v5049_v22 = vmax.f32 %v5438_v18, 0.0 }
0x1c4e   :  { %v5399_v23 = vpack.c.bf16 %v5049_v22, %v5048_v20 }
0x1c50   :  { %v5061_v24 = vrot.slane %v5399_v23, %v5840_v31 }
0x1c52   :  { %5400 = vst.sshfl [vmem:[#allocation3 + $0x2] sm:$0x5 pattern:$0x73625140] %v5061_v24 }
0x1c53   :  { %5641 = dma.done.wait [#allocation6], 8192 }
0x1c54   :  { %5642 = vsyncadd [#allocation6], 4294959104  ;;  %v5075_v25 = vld [vmem:[#allocation2 + $0x8] sm:$0xff]  ;;  %v5074_v27 = vld [vmem:[#allocation2] sm:$0xff]  ;;  %s5678_s2 = smov [#allocation10]  }
0x1c55   :  { %v5077_v28 = vld [vmem:[#allocation2 + $0x18] sm:$0xff]  ;;  %5179 = vmatprep.subr.bf16.mxu0 %v5075_v25  ;;  %v5076_v29 = vld [vmem:[#allocation2 + $0x10] sm:$0xff]  ;;  %v5079_v30 = vld [vmem:[#allocation2 + $0x28] sm:$0xff]  ;;  %s5279_s26 = sshll.u32 %s5678_s2, 4  ;;  %s5280_s26 = int_to_ptr.vmem [resolvable:$true] %s5279_s26 }
0x1c56   :  { %5180 = vmatpush1.bf16.msra.mxu0 %v5074_v27  ;;  %v5078_v32 = vld [vmem:[#allocation2 + $0x20] sm:$0xff]  ;;  %v5081_v33 = vld [vmem:[#allocation2 + $0x38] sm:$0xff]  ;;  %v5080_v35 = vld [vmem:[#allocation2 + $0x30] sm:$0xff]  ;;  %s5577_s3 = scalar_lea.vmem %s5280_s26, 64  ;;  %p5582_p9 = scmp.lt.s32.totalorder %s5280_s26, %s5280_s26 }
0x1c57   :  { %5181 = vmatprep.subr.bf16.mxu0 %v5077_v28  ;;  %v5083_v40 = vld [vmem:[#allocation2 + $0x48] sm:$0xff]  ;;  %v5082_v42 = vld [vmem:[#allocation2 + $0x40] sm:$0xff]  ;;  %v5085_v43 = vld [vmem:[#allocation2 + $0x58] sm:$0xff]  ;;  %p5578_p8 = scmp.ne.s32.totalorder %s5280_s26, %s5577_s3  ;;  %p5583_p10 = scmp.lt.s32.totalorder %s5577_s3, %s5577_s3 }
0x1c58   :  { %v5084_v37 = vld [vmem:[#allocation2 + $0x50] sm:$0xff]  ;;  %v5087_v44 = vld [vmem:[#allocation2 + $0x68] sm:$0xff]  ;;  %v5086_v45 = vld [vmem:[#allocation2 + $0x60] sm:$0xff] }
0x1c59   :  { %v5401_v34 = vld.sshfl [vmem:[#allocation3] sm:$0x33 pattern:$0x75316420]  ;;  %v5089_v46 = vld [vmem:[#allocation2 + $0x78] sm:$0xff]  ;;  %v5088_v47 = vld [vmem:[#allocation2 + $0x70] sm:$0xff]  ;;  %p5584_p11 = por %p5583_p10, %p5582_p9 }
0x1c5a   :  { %5182 = vmatpush1.bf16.msra.mxu0 %v5076_v29  ;;  %v5158_v36 = vcombine.high %v5401_v34, %v5401_v34  ;;  %v5091_v48 = vld [vmem:[#allocation2 + $0x88] sm:$0xff]  ;;  %v5090_v49 = vld [vmem:[#allocation2 + $0x80] sm:$0xff]  ;;  %v5093_v50 = vld [vmem:[#allocation2 + $0x98] sm:$0xff]  ;;  %v6392_v0 = vrot.slane %v5401_v34, %v5840_v31 }
0x1c5b   :  { %5183 = vmatprep.subr.bf16.mxu0 %v5079_v30  ;;  %v5092_v26 = vld [vmem:[#allocation2 + $0x90] sm:$0xff]  ;;  %v5095_v51 = vld [vmem:[#allocation2 + $0xa8] sm:$0xff]  ;;  %v5094_v52 = vld [vmem:[#allocation2 + $0xa0] sm:$0xff]  ;;  %p5585_p12 = pnand %p5584_p11, %p5578_p8 }
0x1c5c   :  { %v5172_v41 = vrot.slane %v5158_v36, %v5840_v31  ;;  %v5097_v53 = vld [vmem:[#allocation2 + $0xb8] sm:$0xff]  ;;  %v5096_v54 = vld [vmem:[#allocation2 + $0xb0] sm:$0xff]  ;;  %v5099_v55 = vld [vmem:[#allocation2 + $0xc8] sm:$0xff]  ;;  %v5173_v34 = vcombine.high %v6392_v0, %v6392_v0 }
0x1c5d   :  { %v5098_v56 = vld [vmem:[#allocation2 + $0xc0] sm:$0xff]  ;;  %v5101_v57 = vld [vmem:[#allocation2 + $0xd8] sm:$0xff]  ;;  %v5100_v58 = vld [vmem:[#allocation2 + $0xd0] sm:$0xff] }
0x1c5e   :  { %5184 = vmatpush1.bf16.msra.mxu0 %v5078_v32  ;;  %5211 = vmatprep.mubr.bf16.mxu0 %v5172_v41  ;;  %v5103_v59 = vld [vmem:[#allocation2 + $0xe8] sm:$0xff]  ;;  %v5102_v60 = vld [vmem:[#allocation2 + $0xe0] sm:$0xff]  ;;  %v5105_v61 = vld [vmem:[#allocation2 + $0xf8] sm:$0xff]  ;;  %v5174_v1 = vcombine.high %v5172_v41, %v5172_v41 }
0x1c5f   :  { %5185 = vmatprep.subr.bf16.mxu0 %v5081_v33  ;;  %v5104_v62 = vld [vmem:[#allocation2 + $0xf0] sm:$0xff]  ;;  %v5107_v63 = vld [vmem:[#allocation2 + $0x108] sm:$0xff]  ;;  %v5106_v2 = vld [vmem:[#allocation2 + $0x100] sm:$0xff] }
0x1c60   :  { %v5109_v3 = vld [vmem:[#allocation2 + $0x118] sm:$0xff]  ;;  %v5108_v4 = vld [vmem:[#allocation2 + $0x110] sm:$0xff]  ;;  %v5111_v5 = vld [vmem:[#allocation2 + $0x128] sm:$0xff] }
0x1c61   :  { %v5110_v6 = vld [vmem:[#allocation2 + $0x120] sm:$0xff]  ;;  %v5113_v7 = vld [vmem:[#allocation2 + $0x138] sm:$0xff]  ;;  %v5112_v31 = vld [vmem:[#allocation2 + $0x130] sm:$0xff] }
0x1c62   :  { %5186 = vmatpush1.bf16.msra.mxu0 %v5080_v35  ;;  %v5115_v8 = vld [vmem:[#allocation2 + $0x148] sm:$0xff]  ;;  %v5114_v9 = vld [vmem:[#allocation2 + $0x140] sm:$0xff]  ;;  %v5117_v10 = vld [vmem:[#allocation2 + $0x158] sm:$0xff] }
0x1c63   :  { %5187 = vmatprep.subr.bf16.mxu0 %v5083_v40  ;;  %v5116_v11 = vld [vmem:[#allocation2 + $0x150] sm:$0xff]  ;;  %v5119_v12 = vld [vmem:[#allocation2 + $0x168] sm:$0xff]  ;;  %v5118_v13 = vld [vmem:[#allocation2 + $0x160] sm:$0xff] }
0x1c64   :  { %v5121_v14 = vld [vmem:[#allocation2 + $0x178] sm:$0xff]  ;;  %v5120_v15 = vld [vmem:[#allocation2 + $0x170] sm:$0xff]  ;;  %v5123_v16 = vld [vmem:[#allocation2 + $0x188] sm:$0xff] }
0x1c65   :  { %v5122_v17 = vld [vmem:[#allocation2 + $0x180] sm:$0xff]  ;;  %v5125_v18 = vld [vmem:[#allocation2 + $0x198] sm:$0xff]  ;;  %v5124_v19 = vld [vmem:[#allocation2 + $0x190] sm:$0xff] }
0x1c66   :  { %5188 = vmatpush1.bf16.msra.mxu0 %v5082_v42  ;;  %v5127_v20 = vld [vmem:[#allocation2 + $0x1a8] sm:$0xff]  ;;  %v5126_v21 = vld [vmem:[#allocation2 + $0x1a0] sm:$0xff]  ;;  %v5129_v22 = vld [vmem:[#allocation2 + $0x1b8] sm:$0xff] }
0x1c67   :  { %5189 = vmatprep.subr.bf16.mxu0 %v5085_v43  ;;  %v5128_v23 = vld [vmem:[#allocation2 + $0x1b0] sm:$0xff]  ;;  %v5131_v24 = vld [vmem:[#allocation2 + $0x1c8] sm:$0xff]  ;;  %v5130_v25 = vld [vmem:[#allocation2 + $0x1c0] sm:$0xff] }
0x1c68   :  { %v5133_v27 = vld [vmem:[#allocation2 + $0x1d8] sm:$0xff]  ;;  %v5132_v28 = vld [vmem:[#allocation2 + $0x1d0] sm:$0xff]  ;;  %v5135_v29 = vld [vmem:[#allocation2 + $0x1e8] sm:$0xff] }
0x1c69   :  { %v5134_v30 = vld [vmem:[#allocation2 + $0x1e0] sm:$0xff]  ;;  %v5137_v32 = vld [vmem:[#allocation2 + $0x1f8] sm:$0xff]  ;;  %v5136_v33 = vld [vmem:[#allocation2 + $0x1f0] sm:$0xff] }
0x1c6a   :  { %5190 = vmatpush1.bf16.msra.mxu0 %v5084_v37  ;;  %v5138_v35 = vld [vmem:[%s6434_s20] sm:$0x3] }
0x1c6b   :  { %5191 = vmatprep.subr.bf16.mxu0 %v5087_v44  ;;  %v5143_v36 = vrot.slane %v5138_v35, %v5875_v38  ;;  %v5147_v40 = vrot.slane %v5138_v35, %v5878_v39 }
0x1c6e   :  { %5192 = vmatpush1.bf16.msra.mxu0 %v5086_v45 }
0x1c6f   :  { %5193 = vmatprep.subr.bf16.mxu0 %v5089_v46 }
0x1c72   :  { %5194 = vmatpush1.bf16.msra.mxu0 %v5088_v47 }
0x1c73   :  { %5195 = vmatprep.subr.bf16.mxu0 %v5091_v48 }
0x1c76   :  { %5196 = vmatpush1.bf16.msra.mxu0 %v5090_v49 }
0x1c77   :  { %5197 = vmatprep.subr.bf16.mxu0 %v5093_v50 }
0x1c7a   :  { %5198 = vmatpush1.bf16.msra.mxu0 %v5092_v26 }
0x1c7b   :  { %5199 = vmatprep.subr.bf16.mxu0 %v5095_v51 }
0x1c7e   :  { %5200 = vmatpush1.bf16.msra.mxu0 %v5094_v52 }
0x1c7f   :  { %5201 = vmatprep.subr.bf16.mxu0 %v5097_v53 }
0x1c82   :  { %5202 = vmatpush1.bf16.msra.mxu0 %v5096_v54 }
0x1c83   :  { %5203 = vmatprep.subr.bf16.mxu0 %v5099_v55 }
0x1c86   :  { %5204 = vmatpush1.bf16.msra.mxu0 %v5098_v56 }
0x1c87   :  { %5205 = vmatprep.subr.bf16.mxu0 %v5101_v57 }
0x1c8a   :  { %5206 = vmatpush1.bf16.msra.mxu0 %v5100_v58 }
0x1c8b   :  { %5207 = vmatprep.subr.bf16.mxu0 %v5103_v59 }
0x1c8e   :  { %5208 = vmatpush1.bf16.msra.mxu0 %v5102_v60 }
0x1c8f   :  { %5209 = vmatprep.subr.bf16.mxu0 %v5105_v61 }
0x1c92   :  { %5210 = vmatpush1.bf16.msra.mxu0 %v5104_v62 }
0x1c93   :  { %5220 = vmatprep.subr.bf16.mxu0 %v5107_v63 }
0x1c95   :  { %5212 = vmatmul.mubr.bf16.vlgmr.msra.gmra.mrb[40].mxu0 %v6392_v0 }
0x1c96   :  { %5221 = vmatpush1.bf16.msra.mxu0 %v5106_v2  ;;  %5252 = vmatprep.mubr.bf16.mxu0 %v5174_v1 }
0x1c97   :  { %5222 = vmatprep.subr.bf16.mxu0 %v5109_v3 }
0x1c9a   :  { %5223 = vmatpush1.bf16.msra.mxu0 %v5108_v4 }
0x1c9b   :  { %5224 = vmatprep.subr.bf16.mxu0 %v5111_v5 }
0x1c9e   :  { %5225 = vmatpush1.bf16.msra.mxu0 %v5110_v6 }
0x1c9f   :  { %5226 = vmatprep.subr.bf16.mxu0 %v5113_v7 }
0x1ca2   :  { %5227 = vmatpush1.bf16.msra.mxu0 %v5112_v31 }
0x1ca3   :  { %5228 = vmatprep.subr.bf16.mxu0 %v5115_v8 }
0x1ca6   :  { %5229 = vmatpush1.bf16.msra.mxu0 %v5114_v9 }
0x1ca7   :  { %5230 = vmatprep.subr.bf16.mxu0 %v5117_v10 }
0x1caa   :  { %5231 = vmatpush1.bf16.msra.mxu0 %v5116_v11 }
0x1cab   :  { %5232 = vmatprep.subr.bf16.mxu0 %v5119_v12 }
0x1cae   :  { %5233 = vmatpush1.bf16.msra.mxu0 %v5118_v13 }
0x1caf   :  { %5234 = vmatprep.subr.bf16.mxu0 %v5121_v14 }
0x1cb2   :  { %5235 = vmatpush1.bf16.msra.mxu0 %v5120_v15 }
0x1cb3   :  { %5236 = vmatprep.subr.bf16.mxu0 %v5123_v16 }
0x1cb6   :  { %5237 = vmatpush1.bf16.msra.mxu0 %v5122_v17 }
0x1cb7   :  { %5238 = vmatprep.subr.bf16.mxu0 %v5125_v18 }
0x1cba   :  { %5239 = vmatpush1.bf16.msra.mxu0 %v5124_v19 }
0x1cbb   :  { %5240 = vmatprep.subr.bf16.mxu0 %v5127_v20 }
0x1cbe   :  { %5241 = vmatpush1.bf16.msra.mxu0 %v5126_v21 }
0x1cbf   :  { %5242 = vmatprep.subr.bf16.mxu0 %v5129_v22 }
0x1cc2   :  { %5243 = vmatpush1.bf16.msra.mxu0 %v5128_v23 }
0x1cc3   :  { %5244 = vmatprep.subr.bf16.mxu0 %v5131_v24 }
0x1cc6   :  { %5245 = vmatpush1.bf16.msra.mxu0 %v5130_v25 }
0x1cc7   :  { %5246 = vmatprep.subr.bf16.mxu0 %v5133_v27 }
0x1cca   :  { %5247 = vmatpush1.bf16.msra.mxu0 %v5132_v28 }
0x1ccb   :  { %5248 = vmatprep.subr.bf16.mxu0 %v5135_v29 }
0x1cce   :  { %5249 = vmatpush1.bf16.msra.mxu0 %v5134_v30 }
0x1ccf   :  { %5250 = vmatprep.subr.bf16.mxu0 %v5137_v32 }
0x1cd2   :  { %5251 = vmatpush1.bf16.msra.mxu0 %v5136_v33 }
0x1cd5   :  { %5253 = vmatmul.mubr.bf16.vlgmr.msra.gmra.mrb[40].mxu0 %v5173_v34 }
0x1da8   :  { %v5254_v41 = vpop.f32.mrb[40].mxu0 }
0x1da9   :  { %v5439_v42 = vadd.f32 %v5254_v41, %v5143_v36  ;;  %v5256_v43 = vpop.f32.mrb[41].mxu0 }
0x1daa   :  { %v5440_v37 = vadd.f32 %v5256_v43, %v5147_v40  ;;  %v5258_v44 = vpop.f32.mrb[42].mxu0 }
0x1dab   :  { %v5259_v45 = vpop.f32.mrb[43].mxu0 }
0x1dac   :  { %v5263_v46 = vcombine.low %v5439_v42, %v5440_v37 }
0x1dae   :  { %5402 = vst.sshfl [vmem:[#allocation10] sm:$0x33 pattern:$0x76325410] %v5263_v46 }
0x1daf   :  { %5588 = shalt.err (!%p5585_p12)
}
0x1db0   :  { %s6462_s4 = sld [smem:[#allocation82_spill]] }
0x1db6   :  { %s5589_s30 = scalar_lea.hbm %s6462_s4, 64 }
0x1db7   :  { %p5590_p13 = scmp.ne.s32.totalorder %s6462_s4, %s5589_s30  ;;  %p5593_p0 = scmp.lt.u32.totalorder %s5589_s30, %s6462_s4 }
0x1db9   :  { %p5595_p1 = pnand %p5593_p0, %p5590_p13 }
0x1dbb   :  { %5598 = shalt.err (!%p5595_p1)
}
0x1dbc   :  { %5282 = dma.vmem_to_hbm [thread:$0]  %s5280_s26, 64, %s6462_s4, [#allocation9]  }
0x1dbd   :  { %5643 = dma.done.wait [#allocation9], 64  }
0x1dbe   :  { %5644 = vsyncadd [#allocation9], 4294967232 }
0x1dbf   :  { %5286 = vsyncpa [#allocation8], 1 }
0x1dc0   :  { %5287 = vsyncpa [#allocation9], 1 }
0x1dc1   :  { %5288 = vsyncmov [#allocation6] }
0x1dc4   :  { %s5289_s14 = vpop.sfrf %5288 }
0x1dc5   :  { %p5403_p2 = scmp.ne.s32.totalorder %s5289_s14, 0 }
0x1dc7   :  { %5293 = shalt.err (%p5403_p2)  }
0x1dc8   :  { %5295 = vsyncmov [#allocation6 + $0x1] }
0x1dcb   :  { %s5296_s15 = vpop.sfrf %5295 }
0x1dcc   :  { %p5404_p3 = scmp.ne.s32.totalorder %s5296_s15, 0 }
0x1dce   :  { %5300 = shalt.err (%p5404_p3)  }

</bundles_post_ra>
